<compile_context>
chip_gen: v7x
topology: tpu7x:2x2x1
jax: 0.10.0
libtpu: 0.0.40
codegen_flags: <defaults>
</compile_context>

<pallas_src>
import functools
import numpy as np
import jax
import jax.numpy as jnp
from jax.experimental import pallas as pl
from jax.experimental.pallas import tpu as pltpu  # noqa: F401  (kept for bf16/megacore knobs)

# ---- model constants (from the PyTorch module, input_shape = (1, 10, 10)) ----
C_IN, H_IN, W_IN = 1, 10, 10
C_CONV = 16
H_POOL, W_POOL = H_IN // 2, W_IN // 2
NPOOL = H_POOL * W_POOL                   # 25 pooled positions
FEAT = C_CONV * NPOOL                     # 16 * 5 * 5 = 400
HIDDEN = 64
FC_HID = 32
ACTIONS = 4                               # synthetic stand-in for env.action_space.n
PATCH = NPOOL * 9                         # 225 = 25 pooled positions x 9 conv taps
_HP = jax.lax.Precision.HIGHEST


# ------------------------------------------------------------------ im2col map
# Constant gather map: for quadrant q = dh*2+dw and lane (p*9 + t) with
# p = ph*5+pw, t = kh*3+kw, pick padded pixel (2ph+dh+kh, 2pw+dw+kw).
def _build_patch_index():
    idx = np.empty((4, PATCH), dtype=np.int32)
    wpad = W_IN + 2
    for dh in range(2):
        for dw in range(2):
            q = dh * 2 + dw
            col = 0
            for ph in range(H_POOL):
                for pw in range(W_POOL):
                    for kh in range(3):
                        for kw in range(3):
                            idx[q, col] = (2 * ph + dh + kh) * wpad + (2 * pw + dw + kw)
                            col += 1
    return idx


_PATCH_IDX = _build_patch_index()         # (4, 225) numpy constant


# ---------------- fused kernel: conv + pool + projection + LSTM + FC head -----
def fused_rnn_kernel(quads_ref, wbig_ref, bbig_ref, wproj_ref, bgate_ref,
                     whh_ref, w1_ref, b1_ref, w2_ref, b2_ref,
                     logits_ref, h_ref, c_ref, *, B, S):
    n = B * S

    # Conv as ONE lane-dense matmul: (4n,225) @ (225,400).  RHS pushed to MXU once.
    acc = jnp.dot(quads_ref[...], wbig_ref[...],
                  preferred_element_type=jnp.float32, precision=_HP)        # (4n, 400)

    # 2x2 max-pool = max over the quadrant axis: 3 sublane-aligned row-slab maxes.
    pooled = jnp.maximum(jnp.maximum(acc[0:n], acc[n:2 * n]),
                         jnp.maximum(acc[2 * n:3 * n], acc[3 * n:4 * n]))    # (n, 400)
    # Conv bias + ReLU commute with the max (same bias per quadrant, ReLU monotone).
    pooled = jnp.maximum(pooled + bbig_ref[...], 0.0)

    # LSTM input projection for ALL time steps in one matmul (hoisted out of the
    # recurrence): gx = x @ W_ih^T + (b_ih + b_hh), rows in time-major (s, b) order.
    gx = jnp.dot(pooled, wproj_ref[...],
                 preferred_element_type=jnp.float32, precision=_HP) + bgate_ref[...]  # (n, 256)

    whh = whh_ref[...]                                                        # (64, 256)

    # Gate constants hoisted out of the loop (JAX does not CSE broadcast_in_dim).
    # PyTorch gate order i,f,g,o; only g uses tanh, the rest sigmoid.  Use a single
    # full-width tanh pass with sigmoid(x) = 0.5*(1 + tanh(x/2)).
    lane = jax.lax.broadcasted_iota(jnp.int32, (1, 4 * HIDDEN), 1)
    is_g = jnp.logical_and(lane >= 2 * HIDDEN, lane < 3 * HIDDEN)
    gmul = jnp.where(is_g, 1.0, 0.5)                                          # (1, 256)
    gadd = jnp.where(is_g, 0.0, 0.5)                                          # (1, 256)

    h = jnp.zeros((B, HIDDEN), jnp.float32)
    c = jnp.zeros((B, HIDDEN), jnp.float32)
    # S is a small static constant -> fully unrolled recurrence: no grid-step overhead,
    # LLO sees across steps, gx stays in VMEM/vregs.
    for t in range(S):
        gates = gx[t * B:(t + 1) * B, :] + jnp.dot(
            h, whh, preferred_element_type=jnp.float32, precision=_HP)       # (B, 256)
        act = jnp.tanh(gates * gmul) * gmul + gadd                           # one EUP pass
        i_g = act[:, 0 * HIDDEN:1 * HIDDEN]
        f_g = act[:, 1 * HIDDEN:2 * HIDDEN]
        g_g = act[:, 2 * HIDDEN:3 * HIDDEN]
        o_g = act[:, 3 * HIDDEN:4 * HIDDEN]
        c = f_g * c + i_g * g_g
        h = o_g * jnp.tanh(c)

    h_ref[...] = h
    c_ref[...] = c

    # FC head fused as an epilogue on the final hidden state (h never leaves VMEM).
    z = jnp.maximum(jnp.dot(h, w1_ref[...], preferred_element_type=jnp.float32,
                            precision=_HP) + b1_ref[...], 0.0)
    logits_ref[...] = (jnp.dot(z, w2_ref[...], preferred_element_type=jnp.float32,
                               precision=_HP) + b2_ref[...])


def _fused_call(quads, pk, B, S):
    n = B * S
    kernel = functools.partial(fused_rnn_kernel, B=B, S=S)
    return pl.pallas_call(
        kernel,
        out_shape=(jax.ShapeDtypeStruct((B, ACTIONS), jnp.float32),   # logits
                   jax.ShapeDtypeStruct((B, HIDDEN), jnp.float32),    # h_n
                   jax.ShapeDtypeStruct((B, HIDDEN), jnp.float32)),   # c_n
        in_specs=[pl.BlockSpec((4 * n, PATCH), lambda: (0, 0)),
                  pl.BlockSpec((PATCH, FEAT), lambda: (0, 0)),
                  pl.BlockSpec((1, FEAT), lambda: (0, 0)),
                  pl.BlockSpec((FEAT, 4 * HIDDEN), lambda: (0, 0)),
                  pl.BlockSpec((1, 4 * HIDDEN), lambda: (0, 0)),
                  pl.BlockSpec((HIDDEN, 4 * HIDDEN), lambda: (0, 0)),
                  pl.BlockSpec((HIDDEN, FC_HID), lambda: (0, 0)),
                  pl.BlockSpec((1, FC_HID), lambda: (0, 0)),
                  pl.BlockSpec((FC_HID, ACTIONS), lambda: (0, 0)),
                  pl.BlockSpec((1, ACTIONS), lambda: (0, 0))],
        out_specs=(pl.BlockSpec((B, ACTIONS), lambda: (0, 0)),
                   pl.BlockSpec((B, HIDDEN), lambda: (0, 0)),
                   pl.BlockSpec((B, HIDDEN), lambda: (0, 0))),
    )(quads, pk['wbig'], pk['bbig'], pk['wproj'], pk['bgate'],
      pk['whh_t'], pk['w1_t'], pk['b1'], pk['w2_t'], pk['b2'])
    # NOTE: at B*S = 8 rows everything is one block.  For large B*S, grid the encoder
    # row dimension with dimension_semantics=("parallel",) and shard the recurrence
    # over B across cores (time axis stays serial).


# --------------------------- parameters & packing ----------------------------
def init_params(key):
    ks = jax.random.split(key, 10)

    def u(k, shape, bound):
        return jax.random.uniform(k, shape, jnp.float32, -bound, bound)

    kc = 1.0 / (C_IN * 9) ** 0.5
    kl = 1.0 / HIDDEN ** 0.5
    k1 = 1.0 / HIDDEN ** 0.5
    k2 = 1.0 / FC_HID ** 0.5
    return dict(
        w_conv=u(ks[0], (C_CONV, C_IN, 3, 3), kc),     # PyTorch OIHW
        b_conv=u(ks[1], (C_CONV,), kc),
        w_ih=u(ks[2], (4 * HIDDEN, FEAT), kl),
        w_hh=u(ks[3], (4 * HIDDEN, HIDDEN), kl),
        b_ih=u(ks[4], (4 * HIDDEN,), kl),
        b_hh=u(ks[5], (4 * HIDDEN,), kl),
        w1=u(ks[6], (FC_HID, HIDDEN), k1),
        b1=u(ks[7], (FC_HID,), k1),
        w2=u(ks[8], (ACTIONS, FC_HID), k2),
        b2=u(ks[9], (ACTIONS,), k2),
    )


def prepare_params(p):
    """One-time weight packing, kept OUT of the jitted forward path."""
    # Conv weight as block-diagonal kron(I_25, Wc) -> conv matmul output is a
    # lane-dense (rows, 400) slab in (pooled position p, channel c) order.
    wc = p['w_conv'].reshape(C_CONV, 9).T                               # (9, 16)
    wbig = jnp.kron(jnp.eye(NPOOL, dtype=jnp.float32), wc)              # (225, 400)
    bbig = jnp.tile(p['b_conv'], NPOOL).reshape(1, FEAT)                # (1, 400)
    # W_ih columns permuted from PyTorch's (c, p) flatten order to the kernel's (p, c).
    wproj = (p['w_ih'].reshape(4 * HIDDEN, C_CONV, NPOOL)
             .transpose(2, 1, 0).reshape(FEAT, 4 * HIDDEN))             # (400, 256)
    bgate = (p['b_ih'] + p['b_hh']).reshape(1, 4 * HIDDEN)              # (1, 256)
    # bf16 knob (v5e/v6e DMA saver): .astype(jnp.bfloat16) on wbig/wproj here.
    return dict(wbig=wbig, bbig=bbig, wproj=wproj, bgate=bgate,
                whh_t=p['w_hh'].T,
                w1_t=p['w1'].T, b1=p['b1'].reshape(1, FC_HID),
                w2_t=p['w2'].T, b2=p['b2'].reshape(1, ACTIONS))


# ------------------------------- forward wrapper -----------------------------
def rnn_agent_forward(x, pk):
    """x: (B, S, 1, 10, 10) f32 -> (logits (B, A), (h_n (1,B,64), c_n (1,B,64)))."""
    B, S, C, H, W = x.shape
    n = B * S
    wpad = W + 2

    xs = x.reshape(n, H, W)                                 # (b,s)-major rows, C == 1
    xpad = jnp.pad(xs, ((0, 0), (1, 1), (1, 1)))            # (n, 12, 12)
    flat = xpad.reshape(n * (H + 2) * wpad)

    # Trace-time (numpy) gather index that simultaneously builds all 4 pooling-quadrant
    # im2col slabs (quadrant-major -> sublane-aligned max in-kernel) AND reorders rows
    # from (b,s) to time-major (s,b), so no activation transpose is ever emitted.
    row_src = (np.arange(B)[None, :] * S + np.arange(S)[:, None]).reshape(-1)   # r=s*B+b -> b*S+s
    big_idx = (row_src[None, :, None] * ((H + 2) * wpad)
               + _PATCH_IDX[:, None, :]).reshape(4 * n, PATCH)
    quads = flat[big_idx]                                   # (4n, 225), one XLA gather

    logits, h_n, c_n = _fused_call(quads, pk, B, S)
    return logits, (h_n[None], c_n[None])                   # hidden like PyTorch (1, B, 64)


# --------------------------- pure-JAX reference ------------------------------
def reference_forward(x, p):
    B, S, C, H, W = x.shape
    xi = x.reshape(B * S, C, H, W)
    y = jax.lax.conv_general_dilated(
        xi, p['w_conv'], (1, 1), [(1, 1), (1, 1)],
        dimension_numbers=('NCHW', 'OIHW', 'NCHW'), precision=_HP)
    y = jnp.maximum(y + p['b_conv'].reshape(1, C_CONV, 1, 1), 0.0)
    y = y.reshape(B * S, C_CONV, H_POOL, 2, W_POOL, 2).max(axis=(3, 5))
    feats = y.reshape(B, S, FEAT)
    h = jnp.zeros((B, HIDDEN), jnp.float32)
    c = jnp.zeros((B, HIDDEN), jnp.float32)
    for t in range(S):
        g = (jnp.dot(feats[:, t], p['w_ih'].T, precision=_HP) + p['b_ih']
             + jnp.dot(h, p['w_hh'].T, precision=_HP) + p['b_hh'])
        i_g = jax.nn.sigmoid(g[:, 0:HIDDEN])
        f_g = jax.nn.sigmoid(g[:, HIDDEN:2 * HIDDEN])
        g_g = jnp.tanh(g[:, 2 * HIDDEN:3 * HIDDEN])
        o_g = jax.nn.sigmoid(g[:, 3 * HIDDEN:4 * HIDDEN])
        c = f_g * c + i_g * g_g
        h = o_g * jnp.tanh(c)
    z = jnp.maximum(jnp.dot(h, p['w1'].T, precision=_HP) + p['b1'], 0.0)
    return jnp.dot(z, p['w2'].T, precision=_HP) + p['b2'], (h[None], c[None])


if __name__ == "__main__":
    key = jax.random.PRNGKey(0)
    k_x, k_p = jax.random.split(key)
    B, S = 2, 4
    x = jax.random.normal(k_x, (B, S, C_IN, H_IN, W_IN), jnp.float32)
    params = init_params(k_p)
    packed = prepare_params(params)      # one-time packing, outside the jitted path

    fwd = jax.jit(rnn_agent_forward)
    logits, (h_n, c_n) = jax.block_until_ready(fwd(x, packed))

    ref_logits, (ref_h, ref_c) = reference_forward(x, params)
    assert logits.shape == (B, ACTIONS) and h_n.shape == (1, B, HIDDEN)
    assert jnp.allclose(logits, ref_logits, atol=2e-3, rtol=2e-3)
    assert jnp.allclose(h_n, ref_h, atol=2e-3, rtol=2e-3)
    assert jnp.allclose(c_n, ref_c, atol=2e-3, rtol=2e-3)
    print("KERNEL_OK")
</pallas_src>

<mosaic_0001>
module attributes {stable_mosaic.version = 11 : i64} {
  func.func @fused_rnn_kernel(%arg0: memref<32x225xf32, #tpu.memory_space<vmem>>, %arg1: memref<225x400xf32, #tpu.memory_space<vmem>>, %arg2: memref<1x400xf32, #tpu.memory_space<vmem>>, %arg3: memref<400x256xf32, #tpu.memory_space<vmem>>, %arg4: memref<1x256xf32, #tpu.memory_space<vmem>>, %arg5: memref<64x256xf32, #tpu.memory_space<vmem>>, %arg6: memref<64x32xf32, #tpu.memory_space<vmem>>, %arg7: memref<1x32xf32, #tpu.memory_space<vmem>>, %arg8: memref<32x4xf32, #tpu.memory_space<vmem>>, %arg9: memref<1x4xf32, #tpu.memory_space<vmem>>, %arg10: memref<2x4xf32, #tpu.memory_space<vmem>>, %arg11: memref<2x64xf32, #tpu.memory_space<vmem>>, %arg12: memref<2x64xf32, #tpu.memory_space<vmem>>) attributes {dimension_semantics = [], scalar_prefetch = 0 : i64, scratch_operands = 0 : i64, tpu.core_type = #tpu.core_type<tc>} {
    %c0 = arith.constant 0 : index
    %c0_0 = arith.constant 0 : index
    %0 = vector.load %arg0[%c0, %c0_0] : memref<32x225xf32, #tpu.memory_space<vmem>>, vector<32x225xf32>
    %c0_1 = arith.constant 0 : index
    %c0_2 = arith.constant 0 : index
    %1 = vector.load %arg1[%c0_1, %c0_2] : memref<225x400xf32, #tpu.memory_space<vmem>>, vector<225x400xf32>
    %cst = arith.constant dense<0.000000e+00> : vector<32x400xf32>
    %2 = tpu.matmul %0, %1, %cst {dimension_numbers = #tpu.dot_dimension_numbers<[1], [0], [0], [1], [0, 0, 1, 1], [], []>, precision = #tpu.contract_precision<fp32>} : vector<32x225xf32>, vector<225x400xf32>, vector<32x400xf32> -> vector<32x400xf32>
    %3 = vector.extract_strided_slice %2 {offsets = [0, 0], sizes = [8, 400], strides = [1, 1]} : vector<32x400xf32> to vector<8x400xf32>
    %4 = vector.extract_strided_slice %2 {offsets = [8, 0], sizes = [8, 400], strides = [1, 1]} : vector<32x400xf32> to vector<8x400xf32>
    %5 = arith.maximumf %3, %4 : vector<8x400xf32>
    %6 = vector.extract_strided_slice %2 {offsets = [16, 0], sizes = [8, 400], strides = [1, 1]} : vector<32x400xf32> to vector<8x400xf32>
    %7 = vector.extract_strided_slice %2 {offsets = [24, 0], sizes = [8, 400], strides = [1, 1]} : vector<32x400xf32> to vector<8x400xf32>
    %8 = arith.maximumf %6, %7 : vector<8x400xf32>
    %9 = arith.maximumf %5, %8 : vector<8x400xf32>
    %c0_3 = arith.constant 0 : index
    %c0_4 = arith.constant 0 : index
    %10 = vector.load %arg2[%c0_3, %c0_4] : memref<1x400xf32, #tpu.memory_space<vmem>>, vector<1x400xf32>
    %11 = vector.broadcast %10 : vector<1x400xf32> to vector<8x400xf32>
    %12 = arith.addf %9, %11 : vector<8x400xf32>
    %cst_5 = arith.constant 0.000000e+00 : f32
    %13 = vector.broadcast %cst_5 : f32 to vector<8x400xf32>
    %14 = arith.maximumf %12, %13 : vector<8x400xf32>
    %c0_6 = arith.constant 0 : index
    %c0_7 = arith.constant 0 : index
    %15 = vector.load %arg3[%c0_6, %c0_7] : memref<400x256xf32, #tpu.memory_space<vmem>>, vector<400x256xf32>
    %cst_8 = arith.constant dense<0.000000e+00> : vector<8x256xf32>
    %16 = tpu.matmul %14, %15, %cst_8 {dimension_numbers = #tpu.dot_dimension_numbers<[1], [0], [0], [1], [0, 0, 1, 1], [], []>, precision = #tpu.contract_precision<fp32>} : vector<8x400xf32>, vector<400x256xf32>, vector<8x256xf32> -> vector<8x256xf32>
    %c0_9 = arith.constant 0 : index
    %c0_10 = arith.constant 0 : index
    %17 = vector.load %arg4[%c0_9, %c0_10] : memref<1x256xf32, #tpu.memory_space<vmem>>, vector<1x256xf32>
    %18 = vector.broadcast %17 : vector<1x256xf32> to vector<8x256xf32>
    %19 = arith.addf %16, %18 : vector<8x256xf32>
    %c0_11 = arith.constant 0 : index
    %c0_12 = arith.constant 0 : index
    %20 = vector.load %arg5[%c0_11, %c0_12] : memref<64x256xf32, #tpu.memory_space<vmem>>, vector<64x256xf32>
    %21 = tpu.iota {dimensions = array<i32: 1>} : vector<1x256xi32>
    %c128_i32 = arith.constant 128 : i32
    %22 = vector.broadcast %c128_i32 : i32 to vector<1x256xi32>
    %23 = arith.cmpi sge, %21, %22 : vector<1x256xi32>
    %c192_i32 = arith.constant 192 : i32
    %24 = vector.broadcast %c192_i32 : i32 to vector<1x256xi32>
    %25 = arith.cmpi slt, %21, %24 : vector<1x256xi32>
    %26 = arith.andi %23, %25 : vector<1x256xi1>
    %cst_13 = arith.constant 1.000000e+00 : f32
    %cst_14 = arith.constant 5.000000e-01 : f32
    %27 = vector.broadcast %cst_13 : f32 to vector<1x256xf32>
    %28 = vector.broadcast %cst_14 : f32 to vector<1x256xf32>
    %29 = arith.select %26, %27, %28 : vector<1x256xi1>, vector<1x256xf32>
    %cst_15 = arith.constant 0.000000e+00 : f32
    %cst_16 = arith.constant 5.000000e-01 : f32
    %30 = vector.broadcast %cst_15 : f32 to vector<1x256xf32>
    %31 = vector.broadcast %cst_16 : f32 to vector<1x256xf32>
    %32 = arith.select %26, %30, %31 : vector<1x256xi1>, vector<1x256xf32>
    %cst_17 = arith.constant 0.000000e+00 : f32
    %33 = vector.broadcast %cst_17 : f32 to vector<2x64xf32>
    %cst_18 = arith.constant 0.000000e+00 : f32
    %34 = vector.broadcast %cst_18 : f32 to vector<2x64xf32>
    %35 = vector.extract_strided_slice %19 {offsets = [0, 0], sizes = [2, 256], strides = [1, 1]} : vector<8x256xf32> to vector<2x256xf32>
    %cst_19 = arith.constant dense<0.000000e+00> : vector<2x256xf32>
    %36 = tpu.matmul %33, %20, %cst_19 {dimension_numbers = #tpu.dot_dimension_numbers<[1], [0], [0], [1], [0, 0, 1, 1], [], []>, precision = #tpu.contract_precision<fp32>} : vector<2x64xf32>, vector<64x256xf32>, vector<2x256xf32> -> vector<2x256xf32>
    %37 = arith.addf %35, %36 : vector<2x256xf32>
    %38 = vector.broadcast %29 : vector<1x256xf32> to vector<2x256xf32>
    %39 = arith.mulf %37, %38 : vector<2x256xf32>
    %40 = math.tanh %39 : vector<2x256xf32>
    %41 = vector.broadcast %29 : vector<1x256xf32> to vector<2x256xf32>
    %42 = arith.mulf %40, %41 : vector<2x256xf32>
    %43 = vector.broadcast %32 : vector<1x256xf32> to vector<2x256xf32>
    %44 = arith.addf %42, %43 : vector<2x256xf32>
    %45 = vector.extract_strided_slice %44 {offsets = [0, 0], sizes = [2, 64], strides = [1, 1]} : vector<2x256xf32> to vector<2x64xf32>
    %46 = vector.extract_strided_slice %44 {offsets = [0, 64], sizes = [2, 64], strides = [1, 1]} : vector<2x256xf32> to vector<2x64xf32>
    %47 = vector.extract_strided_slice %44 {offsets = [0, 128], sizes = [2, 64], strides = [1, 1]} : vector<2x256xf32> to vector<2x64xf32>
    %48 = vector.extract_strided_slice %44 {offsets = [0, 192], sizes = [2, 64], strides = [1, 1]} : vector<2x256xf32> to vector<2x64xf32>
    %49 = arith.mulf %46, %34 : vector<2x64xf32>
    %50 = arith.mulf %45, %47 : vector<2x64xf32>
    %51 = arith.addf %49, %50 : vector<2x64xf32>
    %52 = math.tanh %51 : vector<2x64xf32>
    %53 = arith.mulf %48, %52 : vector<2x64xf32>
    %54 = vector.extract_strided_slice %19 {offsets = [2, 0], sizes = [2, 256], strides = [1, 1]} : vector<8x256xf32> to vector<2x256xf32>
    %cst_20 = arith.constant dense<0.000000e+00> : vector<2x256xf32>
    %55 = tpu.matmul %53, %20, %cst_20 {dimension_numbers = #tpu.dot_dimension_numbers<[1], [0], [0], [1], [0, 0, 1, 1], [], []>, precision = #tpu.contract_precision<fp32>} : vector<2x64xf32>, vector<64x256xf32>, vector<2x256xf32> -> vector<2x256xf32>
    %56 = arith.addf %54, %55 : vector<2x256xf32>
    %57 = vector.broadcast %29 : vector<1x256xf32> to vector<2x256xf32>
    %58 = arith.mulf %56, %57 : vector<2x256xf32>
    %59 = math.tanh %58 : vector<2x256xf32>
    %60 = vector.broadcast %29 : vector<1x256xf32> to vector<2x256xf32>
    %61 = arith.mulf %59, %60 : vector<2x256xf32>
    %62 = vector.broadcast %32 : vector<1x256xf32> to vector<2x256xf32>
    %63 = arith.addf %61, %62 : vector<2x256xf32>
    %64 = vector.extract_strided_slice %63 {offsets = [0, 0], sizes = [2, 64], strides = [1, 1]} : vector<2x256xf32> to vector<2x64xf32>
    %65 = vector.extract_strided_slice %63 {offsets = [0, 64], sizes = [2, 64], strides = [1, 1]} : vector<2x256xf32> to vector<2x64xf32>
    %66 = vector.extract_strided_slice %63 {offsets = [0, 128], sizes = [2, 64], strides = [1, 1]} : vector<2x256xf32> to vector<2x64xf32>
    %67 = vector.extract_strided_slice %63 {offsets = [0, 192], sizes = [2, 64], strides = [1, 1]} : vector<2x256xf32> to vector<2x64xf32>
    %68 = arith.mulf %65, %51 : vector<2x64xf32>
    %69 = arith.mulf %64, %66 : vector<2x64xf32>
    %70 = arith.addf %68, %69 : vector<2x64xf32>
    %71 = math.tanh %70 : vector<2x64xf32>
    %72 = arith.mulf %67, %71 : vector<2x64xf32>
    %73 = vector.extract_strided_slice %19 {offsets = [4, 0], sizes = [2, 256], strides = [1, 1]} : vector<8x256xf32> to vector<2x256xf32>
    %cst_21 = arith.constant dense<0.000000e+00> : vector<2x256xf32>
    %74 = tpu.matmul %72, %20, %cst_21 {dimension_numbers = #tpu.dot_dimension_numbers<[1], [0], [0], [1], [0, 0, 1, 1], [], []>, precision = #tpu.contract_precision<fp32>} : vector<2x64xf32>, vector<64x256xf32>, vector<2x256xf32> -> vector<2x256xf32>
    %75 = arith.addf %73, %74 : vector<2x256xf32>
    %76 = vector.broadcast %29 : vector<1x256xf32> to vector<2x256xf32>
    %77 = arith.mulf %75, %76 : vector<2x256xf32>
    %78 = math.tanh %77 : vector<2x256xf32>
    %79 = vector.broadcast %29 : vector<1x256xf32> to vector<2x256xf32>
    %80 = arith.mulf %78, %79 : vector<2x256xf32>
    %81 = vector.broadcast %32 : vector<1x256xf32> to vector<2x256xf32>
    %82 = arith.addf %80, %81 : vector<2x256xf32>
    %83 = vector.extract_strided_slice %82 {offsets = [0, 0], sizes = [2, 64], strides = [1, 1]} : vector<2x256xf32> to vector<2x64xf32>
    %84 = vector.extract_strided_slice %82 {offsets = [0, 64], sizes = [2, 64], strides = [1, 1]} : vector<2x256xf32> to vector<2x64xf32>
    %85 = vector.extract_strided_slice %82 {offsets = [0, 128], sizes = [2, 64], strides = [1, 1]} : vector<2x256xf32> to vector<2x64xf32>
    %86 = vector.extract_strided_slice %82 {offsets = [0, 192], sizes = [2, 64], strides = [1, 1]} : vector<2x256xf32> to vector<2x64xf32>
    %87 = arith.mulf %84, %70 : vector<2x64xf32>
    %88 = arith.mulf %83, %85 : vector<2x64xf32>
    %89 = arith.addf %87, %88 : vector<2x64xf32>
    %90 = math.tanh %89 : vector<2x64xf32>
    %91 = arith.mulf %86, %90 : vector<2x64xf32>
    %92 = vector.extract_strided_slice %19 {offsets = [6, 0], sizes = [2, 256], strides = [1, 1]} : vector<8x256xf32> to vector<2x256xf32>
    %cst_22 = arith.constant dense<0.000000e+00> : vector<2x256xf32>
    %93 = tpu.matmul %91, %20, %cst_22 {dimension_numbers = #tpu.dot_dimension_numbers<[1], [0], [0], [1], [0, 0, 1, 1], [], []>, precision = #tpu.contract_precision<fp32>} : vector<2x64xf32>, vector<64x256xf32>, vector<2x256xf32> -> vector<2x256xf32>
    %94 = arith.addf %92, %93 : vector<2x256xf32>
    %95 = vector.broadcast %29 : vector<1x256xf32> to vector<2x256xf32>
    %96 = arith.mulf %94, %95 : vector<2x256xf32>
    %97 = math.tanh %96 : vector<2x256xf32>
    %98 = vector.broadcast %29 : vector<1x256xf32> to vector<2x256xf32>
    %99 = arith.mulf %97, %98 : vector<2x256xf32>
    %100 = vector.broadcast %32 : vector<1x256xf32> to vector<2x256xf32>
    %101 = arith.addf %99, %100 : vector<2x256xf32>
    %102 = vector.extract_strided_slice %101 {offsets = [0, 0], sizes = [2, 64], strides = [1, 1]} : vector<2x256xf32> to vector<2x64xf32>
    %103 = vector.extract_strided_slice %101 {offsets = [0, 64], sizes = [2, 64], strides = [1, 1]} : vector<2x256xf32> to vector<2x64xf32>
    %104 = vector.extract_strided_slice %101 {offsets = [0, 128], sizes = [2, 64], strides = [1, 1]} : vector<2x256xf32> to vector<2x64xf32>
    %105 = vector.extract_strided_slice %101 {offsets = [0, 192], sizes = [2, 64], strides = [1, 1]} : vector<2x256xf32> to vector<2x64xf32>
    %106 = arith.mulf %103, %89 : vector<2x64xf32>
    %107 = arith.mulf %102, %104 : vector<2x64xf32>
    %108 = arith.addf %106, %107 : vector<2x64xf32>
    %109 = math.tanh %108 : vector<2x64xf32>
    %110 = arith.mulf %105, %109 : vector<2x64xf32>
    %c0_23 = arith.constant 0 : index
    %c0_24 = arith.constant 0 : index
    %111 = vector.load %arg11[%c0_23, %c0_24] : memref<2x64xf32, #tpu.memory_space<vmem>>, vector<2x64xf32>
    tpu.vector_store %arg11[%c0_23, %c0_24], %110 {strides = array<i32>} : memref<2x64xf32, #tpu.memory_space<vmem>>, vector<2x64xf32>,
    %c0_25 = arith.constant 0 : index
    %c0_26 = arith.constant 0 : index
    %112 = vector.load %arg12[%c0_25, %c0_26] : memref<2x64xf32, #tpu.memory_space<vmem>>, vector<2x64xf32>
    tpu.vector_store %arg12[%c0_25, %c0_26], %108 {strides = array<i32>} : memref<2x64xf32, #tpu.memory_space<vmem>>, vector<2x64xf32>,
    %c0_27 = arith.constant 0 : index
    %c0_28 = arith.constant 0 : index
    %113 = vector.load %arg6[%c0_27, %c0_28] : memref<64x32xf32, #tpu.memory_space<vmem>>, vector<64x32xf32>
    %cst_29 = arith.constant dense<0.000000e+00> : vector<2x32xf32>
    %114 = tpu.matmul %110, %113, %cst_29 {dimension_numbers = #tpu.dot_dimension_numbers<[1], [0], [0], [1], [0, 0, 1, 1], [], []>, precision = #tpu.contract_precision<fp32>} : vector<2x64xf32>, vector<64x32xf32>, vector<2x32xf32> -> vector<2x32xf32>
    %c0_30 = arith.constant 0 : index
    %c0_31 = arith.constant 0 : index
    %115 = vector.load %arg7[%c0_30, %c0_31] : memref<1x32xf32, #tpu.memory_space<vmem>>, vector<1x32xf32>
    %116 = vector.broadcast %115 : vector<1x32xf32> to vector<2x32xf32>
    %117 = arith.addf %114, %116 : vector<2x32xf32>
    %cst_32 = arith.constant 0.000000e+00 : f32
    %118 = vector.broadcast %cst_32 : f32 to vector<2x32xf32>
    %119 = arith.maximumf %117, %118 : vector<2x32xf32>
    %c0_33 = arith.constant 0 : index
    %c0_34 = arith.constant 0 : index
    %120 = vector.load %arg8[%c0_33, %c0_34] : memref<32x4xf32, #tpu.memory_space<vmem>>, vector<32x4xf32>
    %cst_35 = arith.constant dense<0.000000e+00> : vector<2x4xf32>
    %121 = tpu.matmul %119, %120, %cst_35 {dimension_numbers = #tpu.dot_dimension_numbers<[1], [0], [0], [1], [0, 0, 1, 1], [], []>, precision = #tpu.contract_precision<fp32>} : vector<2x32xf32>, vector<32x4xf32>, vector<2x4xf32> -> vector<2x4xf32>
    %c0_36 = arith.constant 0 : index
    %c0_37 = arith.constant 0 : index
    %122 = vector.load %arg9[%c0_36, %c0_37] : memref<1x4xf32, #tpu.memory_space<vmem>>, vector<1x4xf32>
    %123 = vector.broadcast %122 : vector<1x4xf32> to vector<2x4xf32>
    %124 = arith.addf %121, %123 : vector<2x4xf32>
    %c0_38 = arith.constant 0 : index
    %c0_39 = arith.constant 0 : index
    %125 = vector.load %arg10[%c0_38, %c0_39] : memref<2x4xf32, #tpu.memory_space<vmem>>, vector<2x4xf32>
    tpu.vector_store %arg10[%c0_38, %c0_39], %124 {strides = array<i32>} : memref<2x4xf32, #tpu.memory_space<vmem>>, vector<2x4xf32>,
    return
  }
}

</mosaic_0001>

<bundles_post_ra>
// kernel: rnn_agent_forward.1
= control target key start
LH: loop header
LB: loop body
LE: loop exit
PB: predicated region body
PF: predicated region fallthrough
CT: control target
= control target key end

     0   :  { %18 = vsyncpa [#allocation3], 0  ;;  %vm177_vm0 = vcmask 1040384   ;;  %vm164_vm1 = vcmask 793600   ;;  %s16569_s0 = inlined_call_operand.vmem [shape: f32[32,225], index: 0, kind: input, shape index: {}]   ;;  %s16570_s1 = inlined_call_operand.vmem [shape: f32[225,400], index: 1, kind: input, shape index: {}]   ;;  %s16571_s2 = inlined_call_operand.vmem [shape: f32[1,400], index: 2, kind: input, shape index: {}]   ;;  %s16572_s3 = inlined_call_operand.vmem [shape: f32[400,256], index: 3, kind: input, shape index: {}]   ;;  %s16573_s4 = inlined_call_operand.vmem [shape: f32[1,256], index: 4, kind: input, shape index: {}]   ;;  %s16574_s5 = inlined_call_operand.vmem [shape: f32[64,256], index: 5, kind: input, shape index: {}]   ;;  %s16575_s6 = inlined_call_operand.vmem [shape: f32[64,32], index: 6, kind: input, shape index: {}]   ;;  %s16576_s7 = inlined_call_operand.vmem [shape: f32[1,32], index: 7, kind: input, shape index: {}]   ;;  %s16577_s8 = inlined_call_operand.vmem [shape: f32[32,4], index: 8, kind: input, shape index: {}]   ;;  %s16578_s9 = inlined_call_operand.vmem [shape: f32[1,4], index: 9, kind: input, shape index: {}]   ;;  %s16579_s10 = inlined_call_operand.hbm [shape: f32[2,4], index: 10, kind: output, shape index: {0}]   ;;  %s16580_s11 = inlined_call_operand.hbm [shape: f32[2,64], index: 11, kind: output, shape index: {1}]   ;;  %s16581_s12 = inlined_call_operand.hbm [shape: f32[2,64], index: 12, kind: output, shape index: {2}]  }
   0x1   :  { %v49_v0 = vld [vmem:[%s16570_s1 + $0x8] sm:$0xff]  ;;  %v48_v2 = vld [vmem:[%s16570_s1] sm:$0xff] }
   0x2   :  { %v53_v1 = vld [vmem:[%s16570_s1 + $0x28] sm:$0xff]  ;;  %v190_v3 = vand.u32 4294901760, %v49_v0  ;;  %v52_v5 = vld [vmem:[%s16570_s1 + $0x20] sm:$0xff]  ;;  %v192_v6 = vand.u32 4294901760, %v48_v2 }
   0x3   :  { %v194_v4 = vand.u32 4294901760, %v53_v1  ;;  %v57_v7 = vld [vmem:[%s16570_s1 + $0x48] sm:$0xff]  ;;  %v196_v9 = vand.u32 4294901760, %v52_v5  ;;  %v56_v12 = vld [vmem:[%s16570_s1 + $0x40] sm:$0xff] }
   0x4   :  { %v61_v8 = vld [vmem:[%s16570_s1 + $0x68] sm:$0xff]  ;;  %v198_v10 = vand.u32 4294901760, %v57_v7  ;;  %v60_v13 = vld [vmem:[%s16570_s1 + $0x60] sm:$0xff]  ;;  %v11589_v16 = vsub.f32 %v49_v0, %v190_v3  ;;  %v11604_v22 = vsub.f32 %v48_v2, %v192_v6  ;;  %v200_v27 = vand.u32 4294901760, %v56_v12 }
   0x5   :  { %v202_v11 = vand.u32 4294901760, %v61_v8  ;;  %v65_v14 = vld [vmem:[%s16570_s1 + $0x88] sm:$0xff]  ;;  %v11587_v15 = vpack.c.bf16 %v194_v4, %v190_v3  ;;  %v11591_v17 = vsub.f32 %v53_v1, %v194_v4  ;;  %v64_v19 = vld [vmem:[%s16570_s1 + $0x80] sm:$0xff]  ;;  %v11602_v21 = vpack.c.bf16 %v196_v9, %v192_v6 }
   0x6   :  { %17481 = vst [vmem:[#allocation10_spill] sm:$0xff] %v11589_v16  ;;  %v69_v18 = vld [vmem:[%s16570_s1 + $0xa8] sm:$0xff]  ;;  %v68_v20 = vld [vmem:[%s16570_s1 + $0xa0] sm:$0xff]  ;;  %17484 = vst [vmem:[#allocation13_spill] sm:$0xff] %v11604_v22  ;;  %v11606_v23 = vsub.f32 %v52_v5, %v196_v9  ;;  %v11614_v26 = vsub.f32 %v57_v7, %v198_v10  ;;  %v204_v28 = vand.u32 4294901760, %v60_v13  ;;  %v206_v29 = vand.u32 4294901760, %v65_v14 }
   0x7   :  { %17480 = vst [vmem:[#allocation9_spill] sm:$0xff] %v11587_v15  ;;  %17482 = vst [vmem:[#allocation11_spill] sm:$0xff] %v11591_v17  ;;  %v11608_v24 = vpack.c.bf16 %v202_v11, %v198_v10  ;;  %v73_v25 = vld [vmem:[%s16570_s1 + $0xc8] sm:$0xff]  ;;  %9456 = vmatprep.subr.bf16.mxu0 %v11587_v15  ;;  %v11617_v30 = vsub.f32 %v61_v8, %v202_v11  ;;  %v210_v31 = vand.u32 4294901760, %v69_v18  ;;  %v208_v32 = vand.u32 4294901760, %v64_v19  ;;  %v72_v35 = vld [vmem:[%s16570_s1 + $0xc0] sm:$0xff] }
   0x8   :  { %17483 = vst [vmem:[#allocation12_spill] sm:$0xff] %v11602_v21  ;;  %17485 = vst [vmem:[#allocation14_spill] sm:$0xff] %v11606_v23  ;;  %9458 = vmatpush1.bf16.msra.mxu0 %v11602_v21  ;;  %v212_v33 = vand.u32 4294901760, %v68_v20  ;;  %v77_v34 = vld [vmem:[%s16570_s1 + $0xe8] sm:$0xff]  ;;  %v76_v36 = vld [vmem:[%s16570_s1 + $0xe0] sm:$0xff]  ;;  %v11629_v37 = vpack.c.bf16 %v204_v28, %v200_v27  ;;  %v11631_v38 = vsub.f32 %v56_v12, %v200_v27  ;;  %v214_v40 = vand.u32 4294901760, %v73_v25 }
   0x9   :  { %17486 = vst [vmem:[#allocation15_spill] sm:$0xff] %v11608_v24  ;;  %17487 = vst [vmem:[#allocation16_spill] sm:$0xff] %v11614_v26  ;;  %9460 = vmatprep.subr.bf16.mxu0 %v11608_v24  ;;  %v11633_v39 = vsub.f32 %v60_v13, %v204_v28  ;;  %v81_v41 = vld [vmem:[%s16570_s1 + $0x108] sm:$0xff]  ;;  %v80_v43 = vld [vmem:[%s16570_s1 + $0x100] sm:$0xff]  ;;  %v11644_v44 = vpack.c.bf16 %v210_v31, %v206_v29  ;;  %v11646_v45 = vsub.f32 %v65_v14, %v206_v29 }
   0xa   :  { %17488 = vst [vmem:[#allocation17_spill] sm:$0xff] %v11617_v30  ;;  %17489 = vst [vmem:[#allocation18_spill] sm:$0xff] %v11629_v37  ;;  %v85_v42 = vld [vmem:[%s16570_s1 + $0x128] sm:$0xff]  ;;  %v11648_v46 = vsub.f32 %v69_v18, %v210_v31  ;;  %v11650_v47 = vpack.c.bf16 %v212_v33, %v208_v32  ;;  %v84_v48 = vld [vmem:[%s16570_s1 + $0x120] sm:$0xff]  ;;  %v11655_v49 = vsub.f32 %v64_v19, %v208_v32  ;;  %v218_v51 = vand.u32 4294901760, %v77_v34 }
   0xb   :  { %17490 = vst [vmem:[#allocation19_spill] sm:$0xff] %v11631_v38  ;;  %17491 = vst [vmem:[#allocation20_spill] sm:$0xff] %v11633_v39  ;;  %v11657_v50 = vsub.f32 %v68_v20, %v212_v33  ;;  %v216_v52 = vand.u32 4294901760, %v72_v35  ;;  %v220_v53 = vand.u32 4294901760, %v76_v36  ;;  %v222_v54 = vand.u32 4294901760, %v81_v41  ;;  %v89_v57 = vld [vmem:[%s16570_s1 + $0x148] sm:$0xff] }
   0xc   :  { %17492 = vst [vmem:[#allocation21_spill] sm:$0xff] %v11644_v44  ;;  %17493 = vst [vmem:[#allocation22_spill] sm:$0xff] %v11646_v45  ;;  %9462 = vmatpush1.bf16.msra.mxu0 %v11629_v37  ;;  %v226_v55 = vand.u32 4294901760, %v85_v42  ;;  %v224_v56 = vand.u32 4294901760, %v80_v43  ;;  %v93_v58 = vld [vmem:[%s16570_s1 + $0x168] sm:$0xff]  ;;  %v11667_v59 = vpack.c.bf16 %v218_v51, %v214_v40  ;;  %v11669_v60 = vsub.f32 %v73_v25, %v214_v40  ;;  %v88_v63 = vld [vmem:[%s16570_s1 + $0x140] sm:$0xff] }
   0xd   :  { %17494 = vst [vmem:[#allocation23_spill] sm:$0xff] %v11648_v46  ;;  %17495 = vst [vmem:[#allocation24_spill] sm:$0xff] %v11650_v47  ;;  %9464 = vmatprep.subr.bf16.mxu0 %v11644_v44  ;;  %v11671_v61 = vsub.f32 %v77_v34, %v218_v51  ;;  %v228_v62 = vand.u32 4294901760, %v84_v48  ;;  %v92_v0 = vld [vmem:[%s16570_s1 + $0x160] sm:$0xff]  ;;  %v97_v1 = vld [vmem:[%s16570_s1 + $0x188] sm:$0xff]  ;;  %v11682_v2 = vpack.c.bf16 %v220_v53, %v216_v52  ;;  %v230_v13 = vand.u32 4294901760, %v89_v57 }
   0xe   :  { %17496 = vst [vmem:[#allocation25_spill] sm:$0xff] %v11655_v49  ;;  %17497 = vst [vmem:[#allocation26_spill] sm:$0xff] %v11657_v50  ;;  %v11684_v3 = vsub.f32 %v72_v35, %v216_v52  ;;  %v11686_v4 = vsub.f32 %v76_v36, %v220_v53  ;;  %v11688_v5 = vpack.c.bf16 %v226_v55, %v222_v54  ;;  %v101_v6 = vld [vmem:[%s16570_s1 + $0x1a8] sm:$0xff]  ;;  %v96_v7 = vld [vmem:[%s16570_s1 + $0x180] sm:$0xff]  ;;  %v234_v14 = vand.u32 4294901760, %v93_v58 }
   0xf   :  { %17498 = vst [vmem:[#allocation27_spill] sm:$0xff] %v11667_v59  ;;  %17499 = vst [vmem:[#allocation28_spill] sm:$0xff] %v11669_v60  ;;  %v100_v8 = vld [vmem:[%s16570_s1 + $0x1a0] sm:$0xff]  ;;  %v11699_v9 = vsub.f32 %v81_v41, %v222_v54  ;;  %v11701_v10 = vsub.f32 %v85_v42, %v226_v55  ;;  %v11703_v11 = vpack.c.bf16 %v228_v62, %v224_v56  ;;  %v232_v18 = vand.u32 4294901760, %v88_v63  ;;  %v105_v29 = vld [vmem:[%s16570_s1 + $0x1c8] sm:$0xff] }
  0x10   :  { %17500 = vst [vmem:[#allocation29_spill] sm:$0xff] %v11671_v61  ;;  %17501 = vst [vmem:[#allocation30_spill] sm:$0xff] %v11682_v2  ;;  %v11705_v12 = vsub.f32 %v80_v43, %v224_v56  ;;  %9466 = vmatpush1.bf16.msra.mxu0 %v11650_v47  ;;  %v236_v19 = vand.u32 4294901760, %v92_v0  ;;  %v238_v20 = vand.u32 4294901760, %v97_v1  ;;  %v242_v25 = vand.u32 4294901760, %v101_v6  ;;  %v109_v31 = vld [vmem:[%s16570_s1 + $0x1e8] sm:$0xff] }
  0x11   :  { %17502 = vst [vmem:[#allocation31_spill] sm:$0xff] %v11684_v3  ;;  %17503 = vst [vmem:[#allocation32_spill] sm:$0xff] %v11686_v4  ;;  %9468 = vmatprep.subr.bf16.mxu0 %v11667_v59  ;;  %v240_v27 = vand.u32 4294901760, %v96_v7  ;;  %v244_v28 = vand.u32 4294901760, %v100_v8  ;;  %v11715_v32 = vsub.f32 %v84_v48, %v228_v62  ;;  %v11717_v33 = vpack.c.bf16 %v234_v14, %v230_v13  ;;  %v104_v36 = vld [vmem:[%s16570_s1 + $0x1c0] sm:$0xff]  ;;  %v113_v41 = vld [vmem:[%s16570_s1 + $0x208] sm:$0xff] }
  0x12   :  { %17504 = vst [vmem:[#allocation33_spill] sm:$0xff] %v11688_v5  ;;  %17505 = vst [vmem:[#allocation34_spill] sm:$0xff] %v11699_v9  ;;  %v11719_v34 = vsub.f32 %v89_v57, %v230_v13  ;;  %v11721_v35 = vsub.f32 %v93_v58, %v234_v14  ;;  %v108_v40 = vld [vmem:[%s16570_s1 + $0x1e0] sm:$0xff]  ;;  %v11732_v42 = vpack.c.bf16 %v236_v19, %v232_v18  ;;  %v117_v52 = vld [vmem:[%s16570_s1 + $0x228] sm:$0xff]  ;;  %v246_v62 = vand.u32 4294901760, %v105_v29 }
  0x13   :  { %17506 = vst [vmem:[#allocation35_spill] sm:$0xff] %v11701_v10  ;;  %17507 = vst [vmem:[#allocation36_spill] sm:$0xff] %v11703_v11  ;;  %v11734_v43 = vsub.f32 %v88_v63, %v232_v18  ;;  %v11736_v48 = vsub.f32 %v92_v0, %v236_v19  ;;  %v11738_v51 = vpack.c.bf16 %v242_v25, %v238_v20  ;;  %v112_v53 = vld [vmem:[%s16570_s1 + $0x200] sm:$0xff]  ;;  %v250_v63 = vand.u32 4294901760, %v109_v31  ;;  %v129_v47 = vld [vmem:[%s16570_s1 + $0x288] sm:$0xff] }
  0x14   :  { %17508 = vst [vmem:[#allocation37_spill] sm:$0xff] %v11705_v12  ;;  %17509 = vst [vmem:[#allocation38_spill] sm:$0xff] %v11715_v32  ;;  %v116_v54 = vld [vmem:[%s16570_s1 + $0x220] sm:$0xff]  ;;  %9470 = vmatpush1.bf16.msra.mxu0 %v11682_v2  ;;  %v11750_v55 = vsub.f32 %v97_v1, %v238_v20  ;;  %v11752_v56 = vsub.f32 %v101_v6, %v242_v25  ;;  %v11754_v57 = vpack.c.bf16 %v244_v28, %v240_v27  ;;  %v121_v1 = vld [vmem:[%s16570_s1 + $0x248] sm:$0xff] }
  0x15   :  { %17510 = vst [vmem:[#allocation39_spill] sm:$0xff] %v11717_v33  ;;  %17511 = vst [vmem:[#allocation40_spill] sm:$0xff] %v11719_v34  ;;  %v11756_v58 = vsub.f32 %v96_v7, %v240_v27  ;;  %9472 = vmatprep.subr.bf16.mxu0 %v11688_v5  ;;  %v248_v0 = vand.u32 4294901760, %v104_v36  ;;  %v252_v13 = vand.u32 4294901760, %v108_v40  ;;  %v254_v14 = vand.u32 4294901760, %v113_v41  ;;  %v125_v6 = vld [vmem:[%s16570_s1 + $0x268] sm:$0xff] }
  0x16   :  { %17512 = vst [vmem:[#allocation41_spill] sm:$0xff] %v11721_v35  ;;  %17513 = vst [vmem:[#allocation42_spill] sm:$0xff] %v11732_v42  ;;  %v258_v18 = vand.u32 4294901760, %v117_v52  ;;  %v256_v19 = vand.u32 4294901760, %v112_v53  ;;  %v260_v59 = vand.u32 4294901760, %v116_v54  ;;  %v11765_v7 = vsub.f32 %v100_v8, %v244_v28  ;;  %v120_v5 = vld [vmem:[%s16570_s1 + $0x240] sm:$0xff] }
  0x17   :  { %17514 = vst [vmem:[#allocation43_spill] sm:$0xff] %v11734_v43  ;;  %17515 = vst [vmem:[#allocation44_spill] sm:$0xff] %v11736_v48  ;;  %v11767_v20 = vpack.c.bf16 %v250_v63, %v246_v62  ;;  %v11769_v25 = vsub.f32 %v105_v29, %v246_v62  ;;  %v11771_v27 = vsub.f32 %v109_v31, %v250_v63  ;;  %v124_v2 = vld [vmem:[%s16570_s1 + $0x260] sm:$0xff]  ;;  %v133_v62 = vld [vmem:[%s16570_s1 + $0x2a8] sm:$0xff]  ;;  %v262_v44 = vand.u32 4294901760, %v121_v1 }
  0x18   :  { %17516 = vst [vmem:[#allocation45_spill] sm:$0xff] %v11738_v51  ;;  %17517 = vst [vmem:[#allocation46_spill] sm:$0xff] %v11750_v55  ;;  %9474 = vmatpush1.bf16.msra.mxu0 %v11703_v11  ;;  %v11783_v8 = vpack.c.bf16 %v252_v13, %v248_v0  ;;  %v11785_v28 = vsub.f32 %v104_v36, %v248_v0  ;;  %v11787_v29 = vsub.f32 %v108_v40, %v252_v13  ;;  %v128_v63 = vld [vmem:[%s16570_s1 + $0x280] sm:$0xff] }
  0x19   :  { %17518 = vst [vmem:[#allocation47_spill] sm:$0xff] %v11752_v56  ;;  %17519 = vst [vmem:[#allocation48_spill] sm:$0xff] %v11754_v57  ;;  %v11789_v31 = vpack.c.bf16 %v258_v18, %v254_v14  ;;  %v132_v11 = vld [vmem:[%s16570_s1 + $0x2a0] sm:$0xff]  ;;  %9476 = vmatprep.subr.bf16.mxu0 %v11717_v33  ;;  %v11801_v36 = vsub.f32 %v113_v41, %v254_v14  ;;  %v11803_v40 = vsub.f32 %v117_v52, %v258_v18  ;;  %v137_v33 = vld [vmem:[%s16570_s1 + $0x2c8] sm:$0xff] }
  0x1a   :  { %17520 = vst [vmem:[#allocation49_spill] sm:$0xff] %v11756_v58  ;;  %17521 = vst [vmem:[#allocation50_spill] sm:$0xff] %v11765_v7  ;;  %v11805_v0 = vpack.c.bf16 %v260_v59, %v256_v19  ;;  %v11807_v13 = vsub.f32 %v112_v53, %v256_v19  ;;  %v266_v37 = vand.u32 4294901760, %v125_v6  ;;  %v264_v24 = vand.u32 4294901760, %v120_v5  ;;  %v141_v18 = vld [vmem:[%s16570_s1 + $0x2e8] sm:$0xff]  ;;  %v136_v19 = vld [vmem:[%s16570_s1 + $0x2c0] sm:$0xff] }
  0x1b   :  { %17522 = vst [vmem:[#allocation51_spill] sm:$0xff] %v11767_v20  ;;  %17523 = vst [vmem:[#allocation52_spill] sm:$0xff] %v11769_v25  ;;  %v268_v21 = vand.u32 4294901760, %v124_v2  ;;  %v270_v15 = vand.u32 4294901760, %v129_v47  ;;  %v11813_v41 = vsub.f32 %v116_v54, %v260_v59  ;;  %v11817_v53 = vsub.f32 %v121_v1, %v262_v44  ;;  %v145_v1 = vld [vmem:[%s16570_s1 + $0x308] sm:$0xff] }
  0x1c   :  { %17524 = vst [vmem:[#allocation53_spill] sm:$0xff] %v11771_v27  ;;  %17525 = vst [vmem:[#allocation54_spill] sm:$0xff] %v11783_v8  ;;  %v276_v27 = vand.u32 4294901760, %v132_v11  ;;  %9478 = vmatpush1.bf16.msra.mxu0 %v11732_v42  ;;  %v11815_v52 = vpack.c.bf16 %v266_v37, %v262_v44  ;;  %v11819_v14 = vsub.f32 %v125_v6, %v266_v37  ;;  %v140_v42 = vld [vmem:[%s16570_s1 + $0x2e0] sm:$0xff]  ;;  %v149_v6 = vld [vmem:[%s16570_s1 + $0x328] sm:$0xff] }
  0x1d   :  { %17526 = vst [vmem:[#allocation55_spill] sm:$0xff] %v11785_v28  ;;  %17527 = vst [vmem:[#allocation56_spill] sm:$0xff] %v11787_v29  ;;  %v274_v29 = vand.u32 4294901760, %v133_v62  ;;  %v272_v28 = vand.u32 4294901760, %v128_v63  ;;  %9480 = vmatprep.subr.bf16.mxu0 %v11738_v51  ;;  %v11831_v59 = vpack.c.bf16 %v268_v21, %v264_v24  ;;  %v11833_v44 = vsub.f32 %v120_v5, %v264_v24  ;;  %v144_v51 = vld [vmem:[%s16570_s1 + $0x300] sm:$0xff] }
  0x1e   :  { %17528 = vst [vmem:[#allocation57_spill] sm:$0xff] %v11789_v31  ;;  %17529 = vst [vmem:[#allocation58_spill] sm:$0xff] %v11801_v36  ;;  %v11835_v37 = vsub.f32 %v124_v2, %v268_v21  ;;  %v148_v5 = vld [vmem:[%s16570_s1 + $0x320] sm:$0xff] }
  0x1f   :  { %17530 = vst [vmem:[#allocation59_spill] sm:$0xff] %v11803_v40  ;;  %17531 = vst [vmem:[#allocation60_spill] sm:$0xff] %v11805_v0  ;;  %v11837_v54 = vpack.c.bf16 %v274_v29, %v270_v15  ;;  %v11850_v24 = vsub.f32 %v133_v62, %v274_v29  ;;  %v11852_v21 = vpack.c.bf16 %v276_v27, %v272_v28  ;;  %v290_v29 = vand.u32 4294901760, %v149_v6 }
  0x20   :  { %17532 = vst [vmem:[#allocation61_spill] sm:$0xff] %v11807_v13  ;;  %17533 = vst [vmem:[#allocation62_spill] sm:$0xff] %v11813_v41  ;;  %v11854_v2 = vsub.f32 %v128_v63, %v272_v28  ;;  %v284_v41 = vand.u32 4294901760, %v140_v42  ;;  %9482 = vmatpush1.bf16.msra.mxu0 %v11754_v57  ;;  %v288_v62 = vand.u32 4294901760, %v144_v51  ;;  %v153_v28 = vld [vmem:[%s16570_s1 + $0x348] sm:$0xff] }
  0x21   :  { %17534 = vst [vmem:[#allocation63_spill] sm:$0xff] %v11815_v52  ;;  %17535 = vst [vmem:[#allocation64_spill] sm:$0xff] %v11817_v53  ;;  %v280_v53 = vand.u32 4294901760, %v136_v19  ;;  %v157_v63 = vld [vmem:[%s16570_s1 + $0x368] sm:$0xff]  ;;  %9484 = vmatprep.subr.bf16.mxu0 %v11767_v20 }
  0x22   :  { %17536 = vst [vmem:[#allocation65_spill] sm:$0xff] %v11819_v14  ;;  %17537 = vst [vmem:[#allocation66_spill] sm:$0xff] %v11831_v59  ;;  %v11848_v14 = vsub.f32 %v129_v47, %v270_v15  ;;  %v11860_v15 = vsub.f32 %v132_v11, %v276_v27  ;;  %v286_v47 = vand.u32 4294901760, %v145_v1  ;;  %v292_v11 = vand.u32 4294901760, %v148_v5  ;;  %v152_v27 = vld [vmem:[%s16570_s1 + $0x340] sm:$0xff] }
  0x23   :  { %17538 = vst [vmem:[#allocation67_spill] sm:$0xff] %v11833_v44  ;;  %17539 = vst [vmem:[#allocation68_spill] sm:$0xff] %v11835_v37  ;;  %v278_v37 = vand.u32 4294901760, %v137_v33  ;;  %v282_v44 = vand.u32 4294901760, %v141_v18  ;;  %v11884_v20 = vpack.c.bf16 %v284_v41, %v280_v53  ;;  %v11886_v13 = vsub.f32 %v136_v19, %v280_v53 }
  0x24   :  { %17540 = vst [vmem:[#allocation69_spill] sm:$0xff] %v11837_v54  ;;  %17541 = vst [vmem:[#allocation70_spill] sm:$0xff] %v11848_v14  ;;  %v51_v14 = vld [vmem:[%s16570_s1 + $0x18] sm:$0xff]  ;;  %v11903_v53 = vsub.f32 %v149_v6, %v290_v29  ;;  %9486 = vmatpush1.bf16.msra.mxu0 %v11783_v8  ;;  %v294_v19 = vand.u32 4294901760, %v153_v28  ;;  %v41_v8 = vld [vmem:[%s16569_s0 + $0x8] sm:$0xff] }
  0x25   :  { %17542 = vst [vmem:[#allocation71_spill] sm:$0xff] %v11850_v24  ;;  %17543 = vst [vmem:[#allocation72_spill] sm:$0xff] %v11852_v21  ;;  %v11871_v24 = vsub.f32 %v137_v33, %v278_v37  ;;  %v11873_v57 = vsub.f32 %v141_v18, %v282_v44  ;;  %v11888_v33 = vsub.f32 %v140_v42, %v284_v41  ;;  %9488 = vmatprep.subr.bf16.mxu0 %v11789_v31  ;;  %v160_v31 = vld [vmem:[%s16570_s1 + $0x380] sm:$0x1] }
  0x26   :  { %17544 = vst [vmem:[#allocation73_spill] sm:$0xff] %v11854_v2  ;;  %17545 = vst [vmem:[#allocation74_spill] sm:$0xff] %v11860_v15  ;;  %v11869_v2 = vpack.c.bf16 %v282_v44, %v278_v37  ;;  %v156_v15 = vld [vmem:[%s16570_s1 + $0x360] sm:$0xff]  ;;  %v11890_v18 = vsub.f32 %v145_v1, %v286_v47  ;;  %v55_v44 = vld [vmem:[%s16570_s1 + $0x38] sm:$0xff]  ;;  %v11905_v42 = vsub.f32 %v144_v51, %v288_v62  ;;  %v298_v1 = vand.u32 4294901760, %v157_v63 }
  0x27   :  { %17547 = vst [vmem:[#allocation76_spill] sm:$0xff] %v11871_v24  ;;  %17548 = vst [vmem:[#allocation77_spill] sm:$0xff] %v11873_v57  ;;  %v50_v37 = vld [vmem:[%s16570_s1 + $0x10] sm:$0xff]  ;;  %v11901_v24 = vpack.c.bf16 %v290_v29, %v286_v47  ;;  %v11907_v41 = vsub.f32 %v148_v5, %v292_v11  ;;  %v1586_v40 = vand.u32 4294901760, %v55_v44  ;;  %v11911_v47 = vpack.c.bf16 %v292_v11, %v288_v62  ;;  %v161_v29 = vld [vmem:[%s16570_s1 + $0x388] sm:$0x1] }
  0x28   :  { %17546 = vst [vmem:[#allocation75_spill] sm:$0xff] %v11869_v2  ;;  %17549 = vst [vmem:[#allocation78_spill] sm:$0xff] %v11884_v20  ;;  %v54_v57 = vld [vmem:[%s16570_s1 + $0x30] sm:$0xff]  ;;  %v1584_v36 = vand.u32 4294901760, %v50_v37  ;;  %v11913_v6 = vpack.c.bf16 %v298_v1, %v294_v19  ;;  %v11915_v51 = vsub.f32 %v153_v28, %v294_v19  ;;  %v11917_v5 = vsub.f32 %v157_v63, %v298_v1 }
  0x29   :  { %17550 = vst [vmem:[#allocation79_spill] sm:$0xff] %v11886_v13  ;;  %17551 = vst [vmem:[#allocation80_spill] sm:$0xff] %v11888_v33  ;;  %v300_v33 = vand.u32 4294901760, %v156_v15  ;;  %v1582_v13 = vand.u32 4294901760, %v51_v14  ;;  %v1588_v25 = vand.u32 4294901760, %v54_v57  ;;  %9490 = vmatpush1.bf16.msra.mxu0 %v11805_v0  ;;  %v11937_v19 = vsub.f32 %v55_v44, %v1586_v40 }
  0x2a   :  { %17552 = vst [vmem:[#allocation81_spill] sm:$0xff] %v11890_v18  ;;  %17553 = vst [vmem:[#allocation82_spill] sm:$0xff] %v11901_v24  ;;  %v296_v18 = vand.u32 4294901760, %v152_v27  ;;  %9492 = vmatprep.subr.bf16.mxu0 %v11815_v52 }
  0x2b   :  { %17554 = vst [vmem:[#allocation83_spill] sm:$0xff] %v11903_v53  ;;  %17555 = vst [vmem:[#allocation84_spill] sm:$0xff] %v11905_v42  ;;  %v11930_v11 = vsub.f32 %v156_v15, %v300_v33  ;;  %v11932_v28 = vpack.c.bf16 %v1586_v40, %v1582_v13  ;;  %v11934_v63 = vsub.f32 %v51_v14, %v1582_v13  ;;  %v63_v15 = vld [vmem:[%s16570_s1 + $0x78] sm:$0xff]  ;;  %v40_v13 = vld [vmem:[%s16569_s0] sm:$0xff]  ;;  %v16647_v40 = vand.u32 4294901760, %v11589_v16 }
  0x2c   :  { %17556 = vst [vmem:[#allocation85_spill] sm:$0xff] %v11907_v41  ;;  %17557 = vst [vmem:[#allocation86_spill] sm:$0xff] %v11911_v47  ;;  %v11928_v62 = vsub.f32 %v152_v27, %v296_v18  ;;  %v11939_v1 = vpack.c.bf16 %v1588_v25, %v1584_v36  ;;  %v59_v27 = vld [vmem:[%s16570_s1 + $0x58] sm:$0xff]  ;;  %v11964_v14 = vpack.c.bf16 %v300_v33, %v296_v18  ;;  %v1594_v52 = vand.u32 4294901760, %v63_v15 }
  0x2d   :  { %17558 = vst [vmem:[#allocation87_spill] sm:$0xff] %v11913_v6  ;;  %17559 = vst [vmem:[#allocation88_spill] sm:$0xff] %v11915_v51  ;;  %v11943_v51 = vsub.f32 %v54_v57, %v1588_v25  ;;  %9792 = vmatprep.subr.bf16.mxu1 %v11932_v28  ;;  %v11960_v57 = vsel %vm177_vm0, %v160_v31, 0  ;;  %v166_v25 = vsel %vm164_vm1, %v41_v8, 0  ;;  %v380_v31 = vsub.f32 %v11589_v16, %v16647_v40  ;;  %v58_v40 = vld [vmem:[%s16570_s1 + $0x50] sm:$0xff] }
  0x2e   :  { %17560 = vst [vmem:[#allocation89_spill] sm:$0xff] %v11917_v5  ;;  %17561 = vst [vmem:[#allocation90_spill] sm:$0xff] %v11928_v62  ;;  %v11941_v5 = vsub.f32 %v50_v37, %v1584_v36  ;;  %v11957_v36 = vsel %vm177_vm0, %v161_v29, 0  ;;  %9794 = vmatpush1.bf16.msra.mxu1 %v11939_v1  ;;  %v11970_v37 = vand.u32 4294901760, %v166_v25  ;;  %v1590_v29 = vand.u32 4294901760, %v59_v27  ;;  %9494 = vmatpush1.bf16.msra.mxu0 %v11831_v59  ;;  %v62_v59 = vld [vmem:[%s16570_s1 + $0x70] sm:$0xff] }
  0x2f   :  { %17562 = vst [vmem:[#allocation91_spill] sm:$0xff] %v11930_v11  ;;  %17563 = vst [vmem:[#allocation92_spill] sm:$0xff] %v11932_v28  ;;  %v11968_v44 = vand.u32 4294901760, %v11957_v36  ;;  %v16655_v28 = vand.u32 4294901760, %v11591_v17  ;;  %v11976_v8 = vand.u32 4294901760, %v40_v13  ;;  %v11980_v33 = vand.u32 4294901760, %v11960_v57  ;;  %9496 = vmatprep.subr.bf16.mxu0 %v11837_v54 }
  0x30   :  { %17564 = vst [vmem:[#allocation93_spill] sm:$0xff] %v11934_v63  ;;  %17565 = vst [vmem:[#allocation94_spill] sm:$0xff] %v11937_v19  ;;  %v11983_v18 = vsub.f32 %v166_v25, %v11970_v37  ;;  %v381_v16 = vand.u32 4294901760, %v380_v31  ;;  %v11998_v25 = vsub.f32 %v59_v27, %v1590_v29  ;;  %v1592_v54 = vand.u32 4294901760, %v58_v40  ;;  %v71_v31 = vld [vmem:[%s16570_s1 + $0xb8] sm:$0xff] }
  0x31   :  { %17566 = vst [vmem:[#allocation95_spill] sm:$0xff] %v11939_v1  ;;  %17567 = vst [vmem:[#allocation96_spill] sm:$0xff] %v11941_v5  ;;  %v392_v1 = vsub.f32 %v11591_v17, %v16655_v28  ;;  %v12006_v17 = vsub.f32 %v40_v13, %v11976_v8  ;;  %v1596_v27 = vand.u32 4294901760, %v62_v59 }
  0x32   :  { %17568 = vst [vmem:[#allocation97_spill] sm:$0xff] %v11943_v51  ;;  %17569 = vst [vmem:[#allocation98_spill] sm:$0xff] %v11957_v36  ;;  %v11996_v36 = vpack.c.bf16 %v1594_v52, %v1590_v29  ;;  %v12003_v28 = vand.u32 4294901760, %v11983_v18  ;;  %v17581_v51 = vand.u32 4294901760, %v11604_v22  ;;  %9498 = vmatpush1.bf16.msra.mxu0 %v11852_v21 }
  0x33   :  { %17570 = vst [vmem:[#allocation99_spill] sm:$0xff] %v11964_v14  ;;  %17571 = vst [vmem:[#allocation100_spill] sm:$0xff] %v11968_v44  ;;  %v393_v0 = vand.u32 4294901760, %v392_v1  ;;  %v12020_v13 = vand.u32 4294901760, %v12006_v17 }
  0x34   :  { %17572 = vst [vmem:[#allocation101_spill] sm:$0xff] %v11970_v37  ;;  %17573 = vst [vmem:[#allocation102_spill] sm:$0xff] %v11976_v8  ;;  %v12000_v37 = vsub.f32 %v63_v15, %v1594_v52  ;;  %v386_v5 = vsub.f32 %v11604_v22, %v17581_v51  ;;  %9796 = vmatprep.subr.bf16.mxu1 %v11996_v36  ;;  %v315_v1 = vsub.f32 %v11983_v18, %v12003_v28  ;;  %v67_v51 = vld [vmem:[%s16570_s1 + $0x98] sm:$0xff] }
  0x35   :  { %17574 = vst [vmem:[#allocation103_spill] sm:$0xff] %v11980_v33  ;;  %17575 = vst [vmem:[#allocation104_spill] sm:$0xff] %v11983_v18  ;;  %v12017_v15 = vpack.c.bf16 %v393_v0, %v381_v16 }
  0x36   :  { %17576 = vst [vmem:[#allocation105_spill] sm:$0xff] %v11996_v36  ;;  %17577 = vst [vmem:[#allocation106_spill] sm:$0xff] %v11998_v25  ;;  %v387_v29 = vand.u32 4294901760, %v386_v5 }
  0x37   :  { %17578 = vst [vmem:[#allocation107_spill] sm:$0xff] %v12000_v37  ;;  %17579 = vst [vmem:[#allocation108_spill] sm:$0xff] %v12003_v28 }
  0x38   :  { %17580 = vst [vmem:[#allocation109_spill] sm:$0xff] %v12006_v17  ;;  %17582 = vst [vmem:[#allocation110_spill] sm:$0xff] %v12020_v13 }
  0x39   :  { %19 = vsyncpa [#allocation5], 0  ;;  %9500 = vmatprep.subr.bf16.mxu0 %v11869_v2  ;;  %v17583_v52 = vand.u32 4294901760, %v11606_v23  ;;  %v12032_v0 = vpack.c.bf16 %v1596_v27, %v1592_v54  ;;  %v12034_v36 = vsub.f32 %v58_v40, %v1592_v54  ;;  %v12036_v5 = vsub.f32 %v62_v59, %v1596_v27  ;;  %v66_v59 = vld [vmem:[%s16570_s1 + $0x90] sm:$0xff]  ;;  %v75_v54 = vld [vmem:[%s16570_s1 + $0xd8] sm:$0xff] }
  0x3a   :  { %v316_v21 = vand.u32 4294901760, %v315_v1  ;;  %v321_v28 = vsub.f32 %v12006_v17, %v12020_v13  ;;  %v17587_v18 = vand.u32 4294901760, %v11614_v26  ;;  %v16682_v2 = vand.u32 4294901760, %v11617_v30  ;;  %9502 = vmatpush1.bf16.msra.mxu0 %v11884_v20 }
  0x3b   :  { %v398_v16 = vsub.f32 %v11606_v23, %v17583_v52  ;;  %17584 = vst [vmem:[#allocation111_spill] sm:$0xff] %v12032_v0  ;;  %17585 = vst [vmem:[#allocation112_spill] sm:$0xff] %v12034_v36  ;;  %9798 = vmatpush1.bf16.msra.mxu1 %v12032_v0  ;;  %v1598_v52 = vand.u32 4294901760, %v67_v51  ;;  %v1602_v23 = vand.u32 4294901760, %v71_v31  ;;  %9504 = vmatprep.subr.bf16.mxu0 %v11901_v24  ;;  %v17591_v1 = vand.u32 4294901760, %v11631_v38 }
  0x3c   :  { %17586 = vst [vmem:[#allocation113_spill] sm:$0xff] %v12036_v5  ;;  %v404_v8 = vsub.f32 %v11614_v26, %v17587_v18  ;;  %317 = vmatprep.mubr.f32.mxu0 %v316_v21  ;;  %v12050_v40 = vand.u32 4294901760, %v321_v28  ;;  %v416_v18 = vsub.f32 %v11617_v30, %v16682_v2  ;;  %v17592_v17 = vand.u32 4294901760, %v11633_v39  ;;  %1709 = vmatprep.mubr.f32.mxu1 %v316_v21  ;;  %v74_v21 = vld [vmem:[%s16570_s1 + $0xd0] sm:$0xff] }
  0x3d   :  { %v399_v22 = vand.u32 4294901760, %v398_v16  ;;  %v70_v16 = vld [vmem:[%s16570_s1 + $0xb0] sm:$0xff]  ;;  %v12065_v28 = vpack.c.bf16 %v1602_v23, %v1598_v52  ;;  %v12069_v13 = vsub.f32 %v71_v31, %v1602_v23  ;;  %v410_v20 = vsub.f32 %v11631_v38, %v17591_v1  ;;  %v79_v23 = vld [vmem:[%s16570_s1 + $0xf8] sm:$0xff] }
  0x3e   :  { %v405_v27 = vand.u32 4294901760, %v404_v8  ;;  %v12067_v8 = vsub.f32 %v67_v51, %v1598_v52  ;;  %v417_v2 = vand.u32 4294901760, %v416_v18  ;;  %v422_v30 = vsub.f32 %v11633_v39, %v17592_v17  ;;  %9506 = vmatpush1.bf16.msra.mxu0 %v11911_v47 }
  0x3f   :  { %v12063_v0 = vpack.c.bf16 %v399_v22, %v387_v29  ;;  %17588 = vst [vmem:[#allocation114_spill] sm:$0xff] %v12065_v28  ;;  %17590 = vst [vmem:[#allocation116_spill] sm:$0xff] %v12069_v13  ;;  %v1600_v26 = vand.u32 4294901760, %v66_v59  ;;  %9800 = vmatprep.subr.bf16.mxu1 %v12065_v28  ;;  %v1604_v22 = vand.u32 4294901760, %v70_v16  ;;  %v1606_v31 = vand.u32 4294901760, %v75_v54  ;;  %9508 = vmatprep.subr.bf16.mxu0 %v11913_v6 }
  0x40   :  { %17589 = vst [vmem:[#allocation115_spill] sm:$0xff] %v12067_v8  ;;  %v9515_v52 = vpack.c.bf16 %v417_v2, %v405_v27  ;;  %v411_v18 = vand.u32 4294901760, %v410_v20  ;;  %v423_v1 = vand.u32 4294901760, %v422_v30  ;;  %v17596_v28 = vand.u32 4294901760, %v11646_v45  ;;  %v78_v20 = vld [vmem:[%s16570_s1 + $0xf0] sm:$0xff] }
  0x41   :  { %v12084_v17 = vsub.f32 %v66_v59, %v1600_v26  ;;  %v12090_v29 = vpack.c.bf16 %v1604_v22, %v1600_v26  ;;  %v12092_v51 = vsub.f32 %v70_v16, %v1604_v22  ;;  %v17597_v2 = vand.u32 4294901760, %v11648_v46 }
  0x42   :  { %v428_v24 = vsub.f32 %v11646_v45, %v17596_v28  ;;  %v12103_v59 = vpack.c.bf16 %v423_v1, %v411_v18  ;;  %v1610_v27 = vand.u32 4294901760, %v79_v23  ;;  %v12105_v6 = vsub.f32 %v75_v54, %v1606_v31  ;;  %9510 = vmatpush1.bf16.msra.mxu0 %v11964_v14  ;;  %v83_v1 = vld [vmem:[%s16570_s1 + $0x118] sm:$0xff] }
  0x43   :  { %17593 = vst [vmem:[#allocation117_spill] sm:$0xff] %v12084_v17  ;;  %17594 = vst [vmem:[#allocation118_spill] sm:$0xff] %v12090_v29  ;;  %v440_v30 = vsub.f32 %v11648_v46, %v17597_v2  ;;  %v16701_v26 = vand.u32 4294901760, %v11655_v49  ;;  %9802 = vmatpush1.bf16.msra.mxu1 %v12090_v29  ;;  %v16708_v28 = vand.u32 4294901760, %v11657_v50  ;;  %v1608_v47 = vand.u32 4294901760, %v74_v21  ;;  %303 = vmatprep.subr.mxu0 %v11968_v44 }
  0x44   :  { %17595 = vst [vmem:[#allocation119_spill] sm:$0xff] %v12092_v51  ;;  %v429_v16 = vand.u32 4294901760, %v428_v24  ;;  %v12111_v2 = vpack.c.bf16 %v1610_v27, %v1606_v31  ;;  %v12113_v46 = vsub.f32 %v79_v23, %v1610_v27  ;;  %v1612_v18 = vand.u32 4294901760, %v78_v20  ;;  %v87_v24 = vld [vmem:[%s16570_s1 + $0x138] sm:$0xff] }
  0x45   :  { %v441_v22 = vand.u32 4294901760, %v440_v30  ;;  %v434_v54 = vsub.f32 %v11655_v49, %v16701_v26  ;;  %v446_v23 = vsub.f32 %v11657_v50, %v16708_v28  ;;  %v12128_v31 = vsub.f32 %v74_v21, %v1608_v47  ;;  %v82_v26 = vld [vmem:[%s16570_s1 + $0x110] sm:$0xff] }
  0x46   :  { %17598 = vst [vmem:[#allocation120_spill] sm:$0xff] %v12111_v2  ;;  %v16711_v27 = vand.u32 4294901760, %v11669_v60  ;;  %9804 = vmatprep.subr.bf16.mxu1 %v12111_v2  ;;  %v12135_v14 = vpack.c.bf16 %v1612_v18, %v1608_v47  ;;  %v12137_v49 = vsub.f32 %v78_v20, %v1612_v18  ;;  %v1614_v28 = vand.u32 4294901760, %v83_v1  ;;  %305 = vmatpush1.msra.mxu0 %v11980_v33  ;;  %v86_v18 = vld [vmem:[%s16570_s1 + $0x130] sm:$0xff] }
  0x47   :  { %v9519_v30 = vpack.c.bf16 %v441_v22, %v429_v16  ;;  %v435_v29 = vand.u32 4294901760, %v434_v54  ;;  %v16718_v16 = vand.u32 4294901760, %v11671_v61  ;;  %v447_v22 = vand.u32 4294901760, %v446_v23  ;;  %9512 = vmatprep.subr.bf16.mxu0 %v12017_v15  ;;  %323 = vmatmul.mubr.f32.vlgmr.msra.gmra.mrb[0].mxu0 %v12050_v40 }
  0x48   :  { %17599 = vst [vmem:[#allocation121_spill] sm:$0xff] %v12135_v14  ;;  %v452_v21 = vsub.f32 %v11669_v60, %v16711_v27  ;;  %v1618_v50 = vand.u32 4294901760, %v87_v24  ;;  %9806 = vmatpush1.bf16.msra.mxu1 %v12135_v14  ;;  %v1616_v23 = vand.u32 4294901760, %v82_v26  ;;  %v12157_v60 = vsub.f32 %v83_v1, %v1614_v28  ;;  %9514 = vmatpush1.bf16.msra.mxu0 %v12063_v0 }
  0x49   :  { %v464_v47 = vsub.f32 %v11671_v61, %v16718_v16  ;;  %v9521_v27 = vpack.c.bf16 %v447_v22, %v435_v29  ;;  %v91_v16 = vld [vmem:[%s16570_s1 + $0x158] sm:$0xff]  ;;  %v17601_v61 = vand.u32 4294901760, %v11684_v3  ;;  %v17602_v29 = vand.u32 4294901760, %v11686_v4  ;;  %9516 = vmatprep.subr.bf16.mxu0 %v9515_v52  ;;  %v90_v52 = vld [vmem:[%s16570_s1 + $0x150] sm:$0xff] }
  0x4a   :  { %v453_v2 = vand.u32 4294901760, %v452_v21  ;;  %v12155_v14 = vpack.c.bf16 %v1618_v50, %v1614_v28  ;;  %v12163_v20 = vsub.f32 %v87_v24, %v1618_v50  ;;  %v1620_v28 = vand.u32 4294901760, %v86_v18  ;;  %v95_v50 = vld [vmem:[%s16570_s1 + $0x178] sm:$0xff] }
  0x4b   :  { %v465_v54 = vand.u32 4294901760, %v464_v47  ;;  %v458_v15 = vsub.f32 %v11684_v3, %v17601_v61  ;;  %v470_v22 = vsub.f32 %v11686_v4, %v17602_v29  ;;  %v12172_v1 = vsub.f32 %v82_v26, %v1616_v23 }
  0x4c   :  { %17600 = vst [vmem:[#allocation122_spill] sm:$0xff] %v12155_v14  ;;  %9808 = vmatprep.subr.bf16.mxu1 %v12155_v14  ;;  %v16727_v21 = vand.u32 4294901760, %v11699_v9  ;;  %v1622_v3 = vand.u32 4294901760, %v91_v16  ;;  %v12182_v29 = vpack.c.bf16 %v1620_v28, %v1616_v23  ;;  %v12184_v26 = vsub.f32 %v86_v18, %v1620_v28  ;;  %9518 = vmatpush1.bf16.msra.mxu0 %v12103_v59 }
  0x4d   :  { %v9523_v24 = vpack.c.bf16 %v465_v54, %v453_v2  ;;  %v459_v61 = vand.u32 4294901760, %v458_v15  ;;  %v471_v47 = vand.u32 4294901760, %v470_v22  ;;  %v17604_v14 = vand.u32 4294901760, %v11701_v10  ;;  %v94_v2 = vld [vmem:[%s16570_s1 + $0x170] sm:$0xff]  ;;  %9520 = vmatprep.subr.bf16.mxu0 %v9519_v30  ;;  %v99_v30 = vld [vmem:[%s16570_s1 + $0x198] sm:$0xff] }
  0x4e   :  { %17603 = vst [vmem:[#allocation123_spill] sm:$0xff] %v12182_v29  ;;  %v476_v0 = vsub.f32 %v11699_v9, %v16727_v21  ;;  %v1626_v15 = vand.u32 4294901760, %v95_v50  ;;  %v12196_v23 = vsub.f32 %v91_v16, %v1622_v3  ;;  %v16732_v18 = vand.u32 4294901760, %v11705_v12  ;;  %9810 = vmatpush1.bf16.msra.mxu1 %v12182_v29 }
  0x4f   :  { %v488_v4 = vsub.f32 %v11701_v10, %v17604_v14  ;;  %v9525_v54 = vpack.c.bf16 %v471_v47, %v459_v61  ;;  %v16735_v21 = vand.u32 4294901760, %v11715_v32  ;;  %v1624_v14 = vand.u32 4294901760, %v90_v52  ;;  %v98_v47 = vld [vmem:[%s16570_s1 + $0x190] sm:$0xff] }
  0x50   :  { %v477_v22 = vand.u32 4294901760, %v476_v0  ;;  %v12201_v10 = vpack.c.bf16 %v1626_v15, %v1622_v3  ;;  %v12203_v9 = vsub.f32 %v95_v50, %v1626_v15  ;;  %v482_v59 = vsub.f32 %v11705_v12, %v16732_v18  ;;  %9522 = vmatpush1.bf16.msra.mxu0 %v9521_v27 }
  0x51   :  { %v489_v28 = vand.u32 4294901760, %v488_v4  ;;  %v1628_v16 = vand.u32 4294901760, %v94_v2  ;;  %v103_v4 = vld [vmem:[%s16570_s1 + $0x1b8] sm:$0xff]  ;;  %v494_v3 = vsub.f32 %v11715_v32, %v16735_v21  ;;  %v12217_v50 = vsub.f32 %v90_v52, %v1624_v14  ;;  %9524 = vmatprep.subr.bf16.mxu0 %v9523_v24  ;;  %v102_v24 = vld [vmem:[%s16570_s1 + $0x1b0] sm:$0xff] }
  0x52   :  { %17605 = vst [vmem:[#allocation124_spill] sm:$0xff] %v12201_v10  ;;  %v16738_v61 = vand.u32 4294901760, %v11719_v34  ;;  %9812 = vmatprep.subr.bf16.mxu1 %v12201_v10  ;;  %v483_v15 = vand.u32 4294901760, %v482_v59  ;;  %v1630_v21 = vand.u32 4294901760, %v99_v30  ;;  %v1634_v32 = vand.u32 4294901760, %v103_v4 }
  0x53   :  { %v9527_v0 = vpack.c.bf16 %v489_v28, %v477_v22  ;;  %v12224_v18 = vpack.c.bf16 %v1628_v16, %v1624_v14  ;;  %v12226_v29 = vsub.f32 %v94_v2, %v1628_v16  ;;  %v16743_v22 = vand.u32 4294901760, %v11721_v35 }
  0x54   :  { %v495_v28 = vand.u32 4294901760, %v494_v3  ;;  %v500_v52 = vsub.f32 %v11719_v34, %v16738_v61  ;;  %v1632_v59 = vand.u32 4294901760, %v98_v47  ;;  %v12241_v61 = vpack.c.bf16 %v1634_v32, %v1630_v21  ;;  %9526 = vmatpush1.bf16.msra.mxu0 %v9525_v54 }
  0x55   :  { %17606 = vst [vmem:[#allocation125_spill] sm:$0xff] %v12224_v18  ;;  %9814 = vmatpush1.bf16.msra.mxu1 %v12224_v18  ;;  %v512_v27 = vsub.f32 %v11721_v35, %v16743_v22  ;;  %v12243_v10 = vsub.f32 %v99_v30, %v1630_v21  ;;  %v107_v18 = vld [vmem:[%s16570_s1 + $0x1d8] sm:$0xff]  ;;  %v12248_v14 = vsub.f32 %v103_v4, %v1634_v32  ;;  %v17608_v2 = vand.u32 4294901760, %v11734_v43 }
  0x56   :  { %v9529_v16 = vpack.c.bf16 %v495_v28, %v483_v15  ;;  %v501_v3 = vand.u32 4294901760, %v500_v52  ;;  %17607 = vst [vmem:[#allocation126_spill] sm:$0xff] %v12241_v61  ;;  %v17609_v34 = vand.u32 4294901760, %v11736_v48  ;;  %9528 = vmatprep.subr.bf16.mxu0 %v9527_v0  ;;  %9816 = vmatprep.subr.bf16.mxu1 %v12241_v61  ;;  %v1636_v21 = vand.u32 4294901760, %v102_v24  ;;  %v111_v32 = vld [vmem:[%s16570_s1 + $0x1f8] sm:$0xff] }
  0x57   :  { %v513_v22 = vand.u32 4294901760, %v512_v27  ;;  %v506_v35 = vsub.f32 %v11734_v43, %v17608_v2  ;;  %v12257_v30 = vsub.f32 %v98_v47, %v1632_v59  ;;  %v16752_v28 = vand.u32 4294901760, %v11750_v55 }
  0x58   :  { %v518_v15 = vsub.f32 %v11736_v48, %v17609_v34  ;;  %v1638_v2 = vand.u32 4294901760, %v107_v18  ;;  %v106_v34 = vld [vmem:[%s16570_s1 + $0x1d0] sm:$0xff]  ;;  %v12267_v0 = vpack.c.bf16 %v1636_v21, %v1632_v59  ;;  %v12269_v47 = vsub.f32 %v102_v24, %v1636_v21  ;;  %9530 = vmatpush1.bf16.msra.mxu0 %v9529_v16 }
  0x59   :  { %v9531_v4 = vpack.c.bf16 %v513_v22, %v501_v3  ;;  %v507_v52 = vand.u32 4294901760, %v506_v35  ;;  %v524_v54 = vsub.f32 %v11750_v55, %v16752_v28  ;;  %v17611_v61 = vand.u32 4294901760, %v11752_v56  ;;  %v110_v35 = vld [vmem:[%s16570_s1 + $0x1f0] sm:$0xff] }
  0x5a   :  { %v519_v27 = vand.u32 4294901760, %v518_v15  ;;  %17610 = vst [vmem:[#allocation127_spill] sm:$0xff] %v12267_v0  ;;  %v1642_v3 = vand.u32 4294901760, %v111_v32  ;;  %v12280_v15 = vsub.f32 %v107_v18, %v1638_v2  ;;  %v16757_v24 = vand.u32 4294901760, %v11756_v58  ;;  %9818 = vmatpush1.bf16.msra.mxu1 %v12267_v0 }
  0x5b   :  { %v536_v48 = vsub.f32 %v11752_v56, %v17611_v61  ;;  %9532 = vmatprep.subr.bf16.mxu0 %v9531_v4  ;;  %v525_v59 = vand.u32 4294901760, %v524_v54  ;;  %v16762_v28 = vand.u32 4294901760, %v11765_v7  ;;  %v1640_v55 = vand.u32 4294901760, %v106_v34  ;;  %v115_v4 = vld [vmem:[%s16570_s1 + $0x218] sm:$0xff] }
  0x5c   :  { %v9533_v22 = vpack.c.bf16 %v519_v27, %v507_v52  ;;  %17612 = vst [vmem:[#allocation128_spill] sm:$0xff] %v12280_v15  ;;  %v12285_v61 = vpack.c.bf16 %v1642_v3, %v1638_v2  ;;  %v12287_v56 = vsub.f32 %v111_v32, %v1642_v3  ;;  %v530_v16 = vsub.f32 %v11756_v58, %v16757_v24  ;;  %v17616_v27 = vld [vmem:[#allocation52_spill] sm:$0xff]  ;;  %v114_v3 = vld [vmem:[%s16570_s1 + $0x210] sm:$0xff] }
  0x5d   :  { %v537_v21 = vand.u32 4294901760, %v536_v48  ;;  %v1644_v18 = vand.u32 4294901760, %v110_v35  ;;  %v119_v48 = vld [vmem:[%s16570_s1 + $0x238] sm:$0xff]  ;;  %v542_v52 = vsub.f32 %v11765_v7, %v16762_v28  ;;  %v12301_v32 = vsub.f32 %v106_v34, %v1640_v55 }
  0x5e   :  { %17613 = vst [vmem:[#allocation129_spill] sm:$0xff] %v12285_v61  ;;  %17614 = vst [vmem:[#allocation130_spill] sm:$0xff] %v12287_v56  ;;  %v16769_v2 = vand.u32 4294901760, %v17616_v27  ;;  %9534 = vmatpush1.bf16.msra.mxu0 %v9533_v22  ;;  %9820 = vmatprep.subr.bf16.mxu1 %v12285_v61  ;;  %v531_v24 = vand.u32 4294901760, %v530_v16  ;;  %v1646_v7 = vand.u32 4294901760, %v115_v4  ;;  %vm3128_vm2 = vcmask 130048  }
  0x5f   :  { %v9535_v54 = vpack.c.bf16 %v537_v21, %v525_v59  ;;  %17615 = vst [vmem:[#allocation131_spill] sm:$0xff] %v12301_v32  ;;  %v12308_v0 = vpack.c.bf16 %v1644_v18, %v1640_v55  ;;  %v12310_v58 = vsub.f32 %v110_v35, %v1644_v18  ;;  %v17619_v59 = vld [vmem:[#allocation53_spill] sm:$0xff]  ;;  %v543_v28 = vand.u32 4294901760, %v542_v52  ;;  %v17620_v55 = vld [vmem:[#allocation55_spill] sm:$0xff]  ;;  %v17621_v35 = vld [vmem:[#allocation56_spill] sm:$0xff] }
  0x60   :  { %v16773_v21 = vand.u32 4294901760, %v17619_v59  ;;  %v548_v34 = vsub.f32 %v17616_v27, %v16769_v2  ;;  %v1650_v32 = vand.u32 4294901760, %v119_v48  ;;  %v16777_v16 = vand.u32 4294901760, %v17620_v55 }
  0x61   :  { %17617 = vst [vmem:[#allocation132_spill] sm:$0xff] %v12308_v0  ;;  %17618 = vst [vmem:[#allocation133_spill] sm:$0xff] %v12310_v58  ;;  %9536 = vmatprep.subr.bf16.mxu0 %v9535_v54  ;;  %9822 = vmatpush1.bf16.msra.mxu1 %v12308_v0  ;;  %v118_v54 = vld [vmem:[%s16570_s1 + $0x230] sm:$0xff]  ;;  %v1648_v52 = vand.u32 4294901760, %v114_v3  ;;  %v9537_v61 = vpack.c.bf16 %v543_v28, %v531_v24  ;;  %v12327_v27 = vsub.f32 %v115_v4, %v1646_v7  ;;  %v123_v0 = vld [vmem:[%s16570_s1 + $0x258] sm:$0xff]  ;;  %vm5365_vm4 = vcmask 523264  }
  0x62   :  { %v560_v22 = vsub.f32 %v17619_v59, %v16773_v21  ;;  %v549_v58 = vand.u32 4294901760, %v548_v34  ;;  %v12325_v2 = vpack.c.bf16 %v1650_v32, %v1646_v7  ;;  %v12332_v59 = vsub.f32 %v119_v48, %v1650_v32  ;;  %v17627_v4 = vld [vmem:[#allocation58_spill] sm:$0xff]  ;;  %v127_v48 = vld [vmem:[%s16570_s1 + $0x278] sm:$0xff] }
  0x63   :  { %17623 = vst [vmem:[#allocation135_spill] sm:$0xff] %v12327_v27  ;;  %v554_v18 = vsub.f32 %v17620_v55, %v16777_v16  ;;  %v17625_v56 = vand.u32 4294901760, %v17621_v35  ;;  %9538 = vmatpush1.bf16.msra.mxu0 %v9537_v61  ;;  %v1652_v7 = vand.u32 4294901760, %v118_v54  ;;  %v12341_v24 = vsub.f32 %v114_v3, %v1648_v52  ;;  %v17628_v27 = vld [vmem:[#allocation59_spill] sm:$0xff] }
  0x64   :  { %17622 = vst [vmem:[#allocation134_spill] sm:$0xff] %v12325_v2  ;;  %v561_v21 = vand.u32 4294901760, %v560_v22  ;;  %17624 = vst [vmem:[#allocation136_spill] sm:$0xff] %v12332_v59  ;;  %9824 = vmatprep.subr.bf16.mxu1 %v12325_v2  ;;  %v16784_v34 = vand.u32 4294901760, %v17627_v4  ;;  %v1654_v59 = vand.u32 4294901760, %v123_v0  ;;  %v17631_v2 = vand.u32 4294901760, %v17628_v27 }
  0x65   :  { %v566_v28 = vsub.f32 %v17621_v35, %v17625_v56  ;;  %17626 = vst [vmem:[#allocation137_spill] sm:$0xff] %v12341_v24  ;;  %v555_v16 = vand.u32 4294901760, %v554_v18  ;;  %v122_v56 = vld [vmem:[%s16570_s1 + $0x250] sm:$0xff]  ;;  %v12351_v61 = vpack.c.bf16 %v1652_v7, %v1648_v52  ;;  %v12353_v3 = vsub.f32 %v118_v54, %v1652_v7  ;;  %v17633_v52 = vld [vmem:[#allocation61_spill] sm:$0xff] }
  0x66   :  { %v9539_v32 = vpack.c.bf16 %v561_v21, %v549_v58  ;;  %v572_v22 = vsub.f32 %v17627_v4, %v16784_v34  ;;  %v584_v35 = vsub.f32 %v17628_v27, %v17631_v2  ;;  %v126_v58 = vld [vmem:[%s16570_s1 + $0x270] sm:$0xff]  ;;  %v1658_v18 = vand.u32 4294901760, %v127_v48 }
  0x67   :  { %v567_v55 = vand.u32 4294901760, %v566_v28  ;;  %17629 = vst [vmem:[#allocation138_spill] sm:$0xff] %v12351_v61  ;;  %17630 = vst [vmem:[#allocation139_spill] sm:$0xff] %v12353_v3  ;;  %v12364_v28 = vsub.f32 %v123_v0, %v1654_v59  ;;  %v16788_v54 = vand.u32 4294901760, %v17633_v52  ;;  %9826 = vmatpush1.bf16.msra.mxu1 %v12351_v61  ;;  %v17634_v34 = vld [vmem:[#allocation62_spill] sm:$0xff]  ;;  %v1656_v24 = vand.u32 4294901760, %v122_v56 }
  0x68   :  { %9540 = vmatprep.subr.bf16.mxu0 %v9539_v32  ;;  %v573_v7 = vand.u32 4294901760, %v572_v22  ;;  %v585_v3 = vand.u32 4294901760, %v584_v35  ;;  %v16793_v4 = vand.u32 4294901760, %v17634_v34  ;;  %v12369_v2 = vpack.c.bf16 %v1658_v18, %v1654_v59  ;;  %v135_v35 = vld [vmem:[%s16570_s1 + $0x2b8] sm:$0xff] }
  0x69   :  { %v9541_v21 = vpack.c.bf16 %v567_v55, %v555_v16  ;;  %17632 = vst [vmem:[#allocation140_spill] sm:$0xff] %v12364_v28  ;;  %v12371_v27 = vsub.f32 %v127_v48, %v1658_v18  ;;  %v578_v55 = vsub.f32 %v17633_v52, %v16788_v54  ;;  %v1660_v0 = vand.u32 4294901760, %v126_v58  ;;  %v131_v16 = vld [vmem:[%s16570_s1 + $0x298] sm:$0xff]  ;;  %v130_v18 = vld [vmem:[%s16570_s1 + $0x290] sm:$0xff] }
  0x6a   :  { %17635 = vst [vmem:[#allocation141_spill] sm:$0xff] %v12369_v2  ;;  %v9543_v22 = vpack.c.bf16 %v585_v3, %v573_v7  ;;  %v590_v59 = vsub.f32 %v17634_v34, %v16793_v4  ;;  %v12385_v48 = vsub.f32 %v122_v56, %v1656_v24  ;;  %v17638_v32 = vld [vmem:[#allocation64_spill] sm:$0xff]  ;;  %9828 = vmatprep.subr.bf16.mxu1 %v12369_v2  ;;  %v17641_v3 = vld [vmem:[#allocation65_spill] sm:$0xff]  ;;  %v1662_v4 = vand.u32 4294901760, %v131_v16 }
  0x6b   :  { %9542 = vmatpush1.bf16.msra.mxu0 %v9541_v21  ;;  %17636 = vst [vmem:[#allocation142_spill] sm:$0xff] %v12371_v27  ;;  %v16799_v21 = vand.u32 4294901760, %v17638_v32  ;;  %v579_v54 = vand.u32 4294901760, %v578_v55  ;;  %v12392_v61 = vpack.c.bf16 %v1660_v0, %v1656_v24  ;;  %v12394_v52 = vsub.f32 %v126_v58, %v1660_v0  ;;  %v17642_v24 = vld [vmem:[#allocation67_spill] sm:$0xff]  ;;  %v17643_v58 = vld [vmem:[#allocation68_spill] sm:$0xff] }
  0x6c   :  { %17637 = vst [vmem:[#allocation143_spill] sm:$0xff] %v12385_v48  ;;  %v16803_v7 = vand.u32 4294901760, %v17641_v3  ;;  %9544 = vmatprep.subr.bf16.mxu0 %v9543_v22  ;;  %v591_v27 = vand.u32 4294901760, %v590_v59  ;;  %v1666_v34 = vand.u32 4294901760, %v135_v35  ;;  %v16807_v2 = vand.u32 4294901760, %v17642_v24  ;;  %v134_v22 = vld [vmem:[%s16570_s1 + $0x2b0] sm:$0xff] }
  0x6d   :  { %17639 = vst [vmem:[#allocation144_spill] sm:$0xff] %v12392_v61  ;;  %17640 = vst [vmem:[#allocation145_spill] sm:$0xff] %v12394_v52  ;;  %v596_v56 = vsub.f32 %v17638_v32, %v16799_v21  ;;  %9830 = vmatpush1.bf16.msra.mxu1 %v12392_v61  ;;  %v1664_v59 = vand.u32 4294901760, %v130_v18  ;;  %v12411_v32 = vsub.f32 %v131_v16, %v1662_v4  ;;  %v139_v61 = vld [vmem:[%s16570_s1 + $0x2d8] sm:$0xff]  ;;  %v17647_v28 = vand.u32 4294901760, %v17643_v58  ;;  %v17649_v16 = vld [vmem:[#allocation70_spill] sm:$0xff] }
  0x6e   :  { %v608_v55 = vsub.f32 %v17641_v3, %v16803_v7  ;;  %v9545_v52 = vpack.c.bf16 %v591_v27, %v579_v54  ;;  %v12409_v21 = vpack.c.bf16 %v1666_v34, %v1662_v4  ;;  %v12416_v3 = vsub.f32 %v135_v35, %v1666_v34  ;;  %v143_v34 = vld [vmem:[%s16570_s1 + $0x2f8] sm:$0xff] }
  0x6f   :  { %v597_v48 = vand.u32 4294901760, %v596_v56  ;;  %17645 = vst [vmem:[#allocation147_spill] sm:$0xff] %v12411_v32  ;;  %v602_v0 = vsub.f32 %v17642_v24, %v16807_v2  ;;  %v614_v27 = vsub.f32 %v17643_v58, %v17647_v28  ;;  %v1668_v4 = vand.u32 4294901760, %v134_v22  ;;  %v17650_v32 = vld [vmem:[#allocation71_spill] sm:$0xff] }
  0x70   :  { %17644 = vst [vmem:[#allocation146_spill] sm:$0xff] %v12409_v21  ;;  %v609_v7 = vand.u32 4294901760, %v608_v55  ;;  %17646 = vst [vmem:[#allocation148_spill] sm:$0xff] %v12416_v3  ;;  %9546 = vmatpush1.bf16.msra.mxu0 %v9545_v52  ;;  %9832 = vmatprep.subr.bf16.mxu1 %v12409_v21  ;;  %v12425_v54 = vsub.f32 %v130_v18, %v1664_v59  ;;  %v16814_v56 = vand.u32 4294901760, %v17649_v16  ;;  %v1670_v3 = vand.u32 4294901760, %v139_v61  ;;  %v138_v28 = vld [vmem:[%s16570_s1 + $0x2d0] sm:$0xff] }
  0x71   :  { %v603_v2 = vand.u32 4294901760, %v602_v0  ;;  %v615_v24 = vand.u32 4294901760, %v614_v27  ;;  %v12435_v52 = vpack.c.bf16 %v1668_v4, %v1664_v59  ;;  %v12437_v18 = vsub.f32 %v134_v22, %v1668_v4  ;;  %v17655_v59 = vld [vmem:[#allocation73_spill] sm:$0xff] }
  0x72   :  { %17648 = vst [vmem:[#allocation149_spill] sm:$0xff] %v12425_v54  ;;  %v9547_v35 = vpack.c.bf16 %v609_v7, %v597_v48  ;;  %v620_v55 = vsub.f32 %v17649_v16, %v16814_v56  ;;  %v17653_v21 = vand.u32 4294901760, %v17650_v32  ;;  %v142_v48 = vld [vmem:[%s16570_s1 + $0x2f0] sm:$0xff]  ;;  %v1674_v0 = vand.u32 4294901760, %v143_v34 }
  0x73   :  { %17651 = vst [vmem:[#allocation150_spill] sm:$0xff] %v12435_v52  ;;  %17652 = vst [vmem:[#allocation151_spill] sm:$0xff] %v12437_v18  ;;  %v9549_v7 = vpack.c.bf16 %v615_v24, %v603_v2  ;;  %v12448_v27 = vsub.f32 %v139_v61, %v1670_v3  ;;  %v16818_v22 = vand.u32 4294901760, %v17655_v59  ;;  %9834 = vmatpush1.bf16.msra.mxu1 %v12435_v52  ;;  %v17656_v56 = vld [vmem:[#allocation74_spill] sm:$0xff]  ;;  %v1672_v54 = vand.u32 4294901760, %v138_v28  ;;  %v147_v24 = vld [vmem:[%s16570_s1 + $0x318] sm:$0xff] }
  0x74   :  { %v632_v58 = vsub.f32 %v17650_v32, %v17653_v21  ;;  %9548 = vmatprep.subr.bf16.mxu0 %v9547_v35  ;;  %v621_v4 = vand.u32 4294901760, %v620_v55  ;;  %v16823_v16 = vand.u32 4294901760, %v17656_v56  ;;  %v12453_v21 = vpack.c.bf16 %v1674_v0, %v1670_v3  ;;  %v17660_v35 = vld [vmem:[#allocation76_spill] sm:$0xff] }
  0x75   :  { %17654 = vst [vmem:[#allocation152_spill] sm:$0xff] %v12448_v27  ;;  %9550 = vmatpush1.bf16.msra.mxu0 %v9549_v7  ;;  %v12455_v32 = vsub.f32 %v143_v34, %v1674_v0  ;;  %v626_v2 = vsub.f32 %v17655_v59, %v16818_v22  ;;  %v1676_v61 = vand.u32 4294901760, %v142_v48  ;;  %v12469_v34 = vsub.f32 %v138_v28, %v1672_v54  ;;  %v146_v0 = vld [vmem:[%s16570_s1 + $0x310] sm:$0xff] }
  0x76   :  { %v633_v18 = vand.u32 4294901760, %v632_v58  ;;  %17657 = vst [vmem:[#allocation153_spill] sm:$0xff] %v12453_v21  ;;  %v151_v58 = vld [vmem:[%s16570_s1 + $0x338] sm:$0xff]  ;;  %v638_v3 = vsub.f32 %v17656_v56, %v16823_v16  ;;  %v16827_v7 = vand.u32 4294901760, %v17660_v35  ;;  %9836 = vmatprep.subr.bf16.mxu1 %v12453_v21  ;;  %v1678_v16 = vand.u32 4294901760, %v147_v24 }
  0x77   :  { %17658 = vst [vmem:[#allocation154_spill] sm:$0xff] %v12455_v32  ;;  %17659 = vst [vmem:[#allocation155_spill] sm:$0xff] %v12469_v34  ;;  %v627_v22 = vand.u32 4294901760, %v626_v2  ;;  %v12476_v52 = vpack.c.bf16 %v1676_v61, %v1672_v54  ;;  %v12478_v59 = vsub.f32 %v142_v48, %v1676_v61  ;;  %v1682_v56 = vand.u32 4294901760, %v151_v58  ;;  %v17664_v54 = vld [vmem:[#allocation79_spill] sm:$0xff]  ;;  %v17665_v48 = vld [vmem:[#allocation80_spill] sm:$0xff] }
  0x78   :  { %v9551_v55 = vpack.c.bf16 %v633_v18, %v621_v4  ;;  %v17663_v18 = vld [vmem:[#allocation77_spill] sm:$0xff]  ;;  %v639_v32 = vand.u32 4294901760, %v638_v3  ;;  %v644_v28 = vsub.f32 %v17660_v35, %v16827_v7  ;;  %v1680_v3 = vand.u32 4294901760, %v146_v0  ;;  %v43_v7 = vld [vmem:[%s16569_s0 + $0x18] sm:$0xff] }
  0x79   :  { %17661 = vst [vmem:[#allocation156_spill] sm:$0xff] %v12476_v52  ;;  %17662 = vst [vmem:[#allocation157_spill] sm:$0xff] %v12478_v59  ;;  %v16832_v4 = vand.u32 4294901760, %v17663_v18  ;;  %9838 = vmatpush1.bf16.msra.mxu1 %v12476_v52  ;;  %v42_v52 = vld [vmem:[%s16569_s0 + $0x10] sm:$0xff]  ;;  %v12501_v21 = vsub.f32 %v147_v24, %v1678_v16  ;;  %v17669_v34 = vand.u32 4294901760, %v17664_v54  ;;  %v17670_v15 = vand.u32 4294901760, %v17665_v48 }
  0x7a   :  { %9552 = vmatprep.subr.bf16.mxu0 %v9551_v55  ;;  %v150_v55 = vld [vmem:[%s16570_s1 + $0x330] sm:$0xff]  ;;  %v9553_v35 = vpack.c.bf16 %v639_v32, %v627_v22  ;;  %v645_v59 = vand.u32 4294901760, %v644_v28  ;;  %v12512_v22 = vsub.f32 %v146_v0, %v1680_v3  ;;  %v12515_v24 = vand.u32 4294901760, %v42_v52 }
  0x7b   :  { %v656_v2 = vsub.f32 %v17663_v18, %v16832_v4  ;;  %v12499_v4 = vpack.c.bf16 %v1682_v56, %v1678_v16  ;;  %17667 = vst [vmem:[#allocation159_spill] sm:$0xff] %v12501_v21  ;;  %v12503_v18 = vsub.f32 %v151_v58, %v1682_v56  ;;  %v650_v27 = vsub.f32 %v17664_v54, %v17669_v34  ;;  %v155_v56 = vld [vmem:[%s16570_s1 + $0x358] sm:$0xff] }
  0x7c   :  { %v662_v43 = vsub.f32 %v17665_v48, %v17670_v15  ;;  %9554 = vmatpush1.bf16.msra.mxu0 %v9553_v35  ;;  %v1684_v32 = vand.u32 4294901760, %v150_v55  ;;  %17671 = vst [vmem:[#allocation161_spill] sm:$0xff] %v12512_v22  ;;  %v169_v16 = vsel %vm164_vm1, %v43_v7, 0  ;;  %17672 = vst [vmem:[#allocation162_spill] sm:$0xff] %v12515_v24  ;;  %v159_v15 = vld [vmem:[%s16570_s1 + $0x378] sm:$0xff]  ;;  %v12530_v7 = vsub.f32 %v42_v52, %v12515_v24 }
  0x7d   :  { %17666 = vst [vmem:[#allocation158_spill] sm:$0xff] %v12499_v4  ;;  %v657_v61 = vand.u32 4294901760, %v656_v2  ;;  %17668 = vst [vmem:[#allocation160_spill] sm:$0xff] %v12503_v18  ;;  %9840 = vmatprep.subr.bf16.mxu1 %v12499_v4  ;;  %v651_v34 = vand.u32 4294901760, %v650_v27  ;;  %v12520_v2 = vand.u32 4294901760, %v169_v16  ;;  %v17677_v4 = vld [vmem:[#allocation81_spill] sm:$0xff] }
  0x7e   :  { %v663_v28 = vand.u32 4294901760, %v662_v43  ;;  %v12525_v35 = vpack.c.bf16 %v1684_v32, %v1680_v3  ;;  %v12527_v0 = vsub.f32 %v150_v55, %v1684_v32  ;;  %17676 = vst [vmem:[#allocation166_spill] sm:$0xff] %v12530_v7  ;;  %v16843_v48 = vand.u32 4294901760, %v17677_v4 }
  0x7f   :  { %v9555_v58 = vpack.c.bf16 %v657_v61, %v645_v59  ;;  %17673 = vst [vmem:[#allocation163_spill] sm:$0xff] %v12520_v2  ;;  %v12534_v27 = vsub.f32 %v169_v16, %v12520_v2  ;;  %v16844_v43 = vand.u32 4294901760, %v11903_v53  ;;  %v1686_v59 = vand.u32 4294901760, %v155_v56 }
  0x80   :  { %17674 = vst [vmem:[#allocation164_spill] sm:$0xff] %v12525_v35  ;;  %17675 = vst [vmem:[#allocation165_spill] sm:$0xff] %v12527_v0  ;;  %v9557_v54 = vpack.c.bf16 %v663_v28, %v651_v34  ;;  %9842 = vmatpush1.bf16.msra.mxu1 %v12525_v35  ;;  %v12539_v61 = vand.u32 4294901760, %v12530_v7  ;;  %v668_v52 = vsub.f32 %v17677_v4, %v16843_v48  ;;  %v1690_v55 = vand.u32 4294901760, %v159_v15  ;;  %v154_v28 = vld [vmem:[%s16570_s1 + $0x350] sm:$0xff] }
  0x81   :  { %9556 = vmatprep.subr.bf16.mxu0 %v9555_v58  ;;  %17678 = vst [vmem:[#allocation167_spill] sm:$0xff] %v12534_v27  ;;  %v12546_v32 = vand.u32 4294901760, %v12534_v27  ;;  %v680_v16 = vsub.f32 %v11903_v53, %v16844_v43  ;;  %v12551_v58 = vsub.f32 %v155_v56, %v1686_v59  ;;  %v158_v48 = vld [vmem:[%s16570_s1 + $0x370] sm:$0xff]  ;;  %v17684_v4 = vand.u32 4294901760, %v11905_v42 }
  0x82   :  { %17679 = vst [vmem:[#allocation168_spill] sm:$0xff] %v12539_v61  ;;  %9558 = vmatpush1.bf16.msra.mxu0 %v9557_v54  ;;  %v45_v54 = vld [vmem:[%s16569_s0 + $0x28] sm:$0xff]  ;;  %v337_v3 = vsub.f32 %v12530_v7, %v12539_v61  ;;  %v669_v43 = vand.u32 4294901760, %v668_v52  ;;  %v12565_v56 = vpack.c.bf16 %v1690_v55, %v1686_v59  ;;  %v12567_v35 = vsub.f32 %v159_v15, %v1690_v55  ;;  %v44_v55 = vld [vmem:[%s16569_s0 + $0x20] sm:$0xff] }
  0x83   :  { %17680 = vst [vmem:[#allocation169_spill] sm:$0xff] %v12546_v32  ;;  %17681 = vst [vmem:[#allocation170_spill] sm:$0xff] %v12551_v58  ;;  %v331_v34 = vsub.f32 %v12534_v27, %v12546_v32  ;;  %v681_v53 = vand.u32 4294901760, %v680_v16  ;;  %v674_v58 = vsub.f32 %v11905_v42, %v17684_v4  ;;  %v17685_v0 = vand.u32 4294901760, %v11907_v41 }
  0x84   :  { %17682 = vst [vmem:[#allocation171_spill] sm:$0xff] %v12565_v56  ;;  %17683 = vst [vmem:[#allocation172_spill] sm:$0xff] %v12567_v35  ;;  %v12577_v18 = vand.u32 4294901760, %v337_v3  ;;  %9844 = vmatprep.subr.bf16.mxu1 %v12565_v56  ;;  %v1688_v59 = vand.u32 4294901760, %v154_v28  ;;  %v1692_v52 = vand.u32 4294901760, %v158_v48  ;;  %v172_v15 = vsel %vm164_vm1, %v45_v54, 0 }
  0x85   :  { %v686_v22 = vsub.f32 %v11907_v41, %v17685_v0  ;;  %v332_v16 = vand.u32 4294901760, %v331_v34  ;;  %v9559_v61 = vpack.c.bf16 %v681_v53, %v669_v43  ;;  %v675_v32 = vand.u32 4294901760, %v674_v58  ;;  %v163_v0 = vld [vmem:[%s16570_s1 + $0x398] sm:$0x1]  ;;  %v17691_v53 = vld [vmem:[#allocation88_spill] sm:$0xff] }
  0x86   :  { %v12587_v3 = vpack.c.bf16 %v1692_v52, %v1688_v59  ;;  %v12589_v7 = vsub.f32 %v154_v28, %v1688_v59  ;;  %v12591_v56 = vsub.f32 %v158_v48, %v1692_v52  ;;  %v12593_v27 = vand.u32 4294901760, %v172_v15  ;;  %v162_v34 = vld [vmem:[%s16570_s1 + $0x390] sm:$0x1] }
  0x87   :  { %v687_v4 = vand.u32 4294901760, %v686_v22  ;;  %333 = vmatprep.mubr.f32.mxu0 %v332_v16  ;;  %9560 = vmatprep.subr.bf16.mxu0 %v9559_v61  ;;  %v12595_v41 = vand.u32 4294901760, %v44_v55  ;;  %v16866_v43 = vand.u32 4294901760, %v17691_v53  ;;  %v17692_v22 = vld [vmem:[#allocation89_spill] sm:$0xff]  ;;  %v12608_v61 = vsel %vm177_vm0, %v163_v0, 0  ;;  %v47_v0 = vld [vmem:[%s16569_s0 + $0x38] sm:$0xff] }
  0x88   :  { %17686 = vst [vmem:[#allocation173_spill] sm:$0xff] %v12587_v3  ;;  %17687 = vst [vmem:[#allocation174_spill] sm:$0xff] %v12589_v7  ;;  %v16867_v58 = vand.u32 4294901760, %v17692_v22  ;;  %339 = vmatmul.mubr.f32.gmra.mrb[2].mxu0 %v12577_v18  ;;  %9846 = vmatpush1.bf16.msra.mxu1 %v12587_v3  ;;  %v12605_v48 = vsub.f32 %v172_v15, %v12593_v27  ;;  %v16879_v28 = vand.u32 4294901760, %v11930_v11  ;;  %vm11491_vm5 = vmmov 0  }
  0x89   :  { %17688 = vst [vmem:[#allocation175_spill] sm:$0xff] %v12591_v56  ;;  %17689 = vst [vmem:[#allocation176_spill] sm:$0xff] %v12593_v27  ;;  %v9561_v54 = vpack.c.bf16 %v687_v4, %v675_v32  ;;  %v16876_v32 = vand.u32 4294901760, %v11928_v62  ;;  %v12613_v59 = vsub.f32 %v44_v55, %v12595_v41  ;;  %v692_v52 = vsub.f32 %v17691_v53, %v16866_v43 }
  0x8a   :  { %17690 = vst [vmem:[#allocation177_spill] sm:$0xff] %v12595_v41  ;;  %17693 = vst [vmem:[#allocation178_spill] sm:$0xff] %v12605_v48  ;;  %v704_v15 = vsub.f32 %v17692_v22, %v16867_v58  ;;  %v12622_v4 = vand.u32 4294901760, %v12608_v61  ;;  %v710_v43 = vsub.f32 %v11930_v11, %v16879_v28  ;;  %v185_v58 = vsel %vm177_vm0, %v162_v34, 0  ;;  %v46_v34 = vld [vmem:[%s16569_s0 + $0x30] sm:$0xff] }
  0x8b   :  { %17694 = vst [vmem:[#allocation179_spill] sm:$0xff] %v12608_v61  ;;  %9562 = vmatpush1.bf16.msra.mxu0 %v9561_v54  ;;  %17695 = vst [vmem:[#allocation180_spill] sm:$0xff] %v12613_v59  ;;  %v12628_v54 = vand.u32 4294901760, %v12605_v48  ;;  %v698_v55 = vsub.f32 %v11928_v62, %v16876_v32  ;;  %v12638_v3 = vand.u32 4294901760, %v12613_v59  ;;  %v693_v22 = vand.u32 4294901760, %v692_v52 }
  0x8c   :  { %17696 = vst [vmem:[#allocation181_spill] sm:$0xff] %v12622_v4  ;;  %v705_v53 = vand.u32 4294901760, %v704_v15  ;;  %1695 = vmatprep.subr.mxu1 %v12622_v4  ;;  %v12641_v61 = vand.u32 4294901760, %v185_v58  ;;  %v711_v32 = vand.u32 4294901760, %v710_v43  ;;  %v175_v62 = vsel %vm164_vm1, %v47_v0, 0 }
  0x8d   :  { %17697 = vst [vmem:[#allocation182_spill] sm:$0xff] %v12628_v54  ;;  %17698 = vst [vmem:[#allocation183_spill] sm:$0xff] %v12638_v3  ;;  %v347_v42 = vsub.f32 %v12605_v48, %v12628_v54  ;;  %v699_v56 = vand.u32 4294901760, %v698_v55  ;;  %v12651_v28 = vsub.f32 %v11960_v57, %v11980_v33  ;;  %v353_v52 = vsub.f32 %v12613_v59, %v12638_v3 }
  0x8e   :  { %17699 = vst [vmem:[#allocation184_spill] sm:$0xff] %v12641_v61  ;;  %v9563_v15 = vpack.c.bf16 %v705_v53, %v693_v22  ;;  %1697 = vmatpush1.msra.mxu1 %v12641_v61  ;;  %v12656_v11 = vand.u32 4294901760, %v175_v62  ;;  %v16888_v0 = vand.u32 4294901760, %v11934_v63  ;;  %v16889_v54 = vand.u32 4294901760, %v11937_v19  ;;  %v17704_v53 = vld [vmem:[#allocation96_spill] sm:$0xff] }
  0x8f   :  { %17700 = vst [vmem:[#allocation185_spill] sm:$0xff] %v12651_v28  ;;  %v348_v55 = vand.u32 4294901760, %v347_v42  ;;  %v9565_v43 = vpack.c.bf16 %v711_v32, %v699_v56  ;;  %1715 = vmatmul.mubr.f32.vlgmr.msra.gmra.mrb[0].mxu1 %v12050_v40  ;;  %v354_v48 = vand.u32 4294901760, %v353_v52  ;;  %v12664_v33 = vand.u32 4294901760, %v46_v34  ;;  %v17705_v56 = vld [vmem:[#allocation97_spill] sm:$0xff] }
  0x90   :  { %17701 = vst [vmem:[#allocation186_spill] sm:$0xff] %v12656_v11  ;;  %9564 = vmatprep.subr.bf16.mxu0 %v9563_v15  ;;  %v12662_v57 = vsub.f32 %v175_v62, %v12656_v11  ;;  %v16899_v22 = vand.u32 4294901760, %v17704_v53  ;;  %1725 = vmatprep.mubr.f32.mxu1 %v332_v16  ;;  %v1772_v42 = vsub.f32 %v11934_v63, %v16888_v0  ;;  %v16898_v32 = vand.u32 4294901760, %v17705_v56  ;;  %v17706_v62 = vld [vmem:[#allocation98_spill] sm:$0xff] }
  0x91   :  { %17703 = vst [vmem:[#allocation188_spill] sm:$0xff] %v12664_v33  ;;  %349 = vmatprep.mubr.f32.mxu0 %v348_v55  ;;  %9566 = vmatpush1.bf16.msra.mxu0 %v9565_v43  ;;  %v1784_v40 = vsub.f32 %v11937_v19, %v16889_v54  ;;  %v12676_v52 = vsub.f32 %v17706_v62, %v11968_v44  ;;  %v16908_v0 = vand.u32 4294901760, %v12651_v28  ;;  %v16910_v63 = vand.u32 4294901760, %v11998_v25 }
  0x92   :  { %17702 = vst [vmem:[#allocation187_spill] sm:$0xff] %v12662_v57  ;;  %355 = vmatmul.mubr.f32.gmra.mrb[4].mxu0 %v354_v48  ;;  %v12679_v15 = vand.u32 4294901760, %v12662_v57  ;;  %v12682_v16 = vsub.f32 %v46_v34, %v12664_v33  ;;  %v1778_v43 = vsub.f32 %v17704_v53, %v16899_v22  ;;  %v1773_v54 = vand.u32 4294901760, %v1772_v42 }
  0x93   :  { %17707 = vst [vmem:[#allocation98_spill] sm:$0xff] %v12676_v52  ;;  %v1785_v3 = vand.u32 4294901760, %v1784_v40  ;;  %v1790_v62 = vsub.f32 %v17705_v56, %v16898_v32  ;;  %v16909_v44 = vand.u32 4294901760, %v12676_v52  ;;  %1731 = vmatmul.mubr.f32.gmra.mrb[2].mxu1 %v12577_v18  ;;  %v722_v42 = vsub.f32 %v12651_v28, %v16908_v0 }
  0x94   :  { %17708 = vst [vmem:[#allocation189_spill] sm:$0xff] %v12679_v15  ;;  %17709 = vst [vmem:[#allocation190_spill] sm:$0xff] %v12682_v16  ;;  %v363_v34 = vsub.f32 %v12662_v57, %v12679_v15  ;;  %v12696_v59 = vand.u32 4294901760, %v12682_v16  ;;  %v1779_v19 = vand.u32 4294901760, %v1778_v43  ;;  %1741 = vmatprep.mubr.f32.mxu1 %v348_v55  ;;  %v12702_v40 = vsub.f32 %v185_v58, %v12641_v61  ;;  %v17712_v57 = vld [vmem:[#allocation10_spill] sm:$0xff]  ;;  %v17713_v43 = vld [vmem:[#allocation11_spill] sm:$0xff] }
  0x95   :  { %v9847_v32 = vpack.c.bf16 %v1785_v3, %v1773_v54  ;;  %v1791_v22 = vand.u32 4294901760, %v1790_v62  ;;  %v716_v18 = vsub.f32 %v12676_v52, %v16909_v44  ;;  %v9567_v53 = vpack.c.bf16 %v17713_v43, %v17712_v57  ;;  %v17718_v61 = vld [vmem:[#allocation101_spill] sm:$0xff] }
  0x96   :  { %17710 = vst [vmem:[#allocation191_spill] sm:$0xff] %v12696_v59  ;;  %17711 = vst [vmem:[#allocation192_spill] sm:$0xff] %v12702_v40  ;;  %v364_v56 = vand.u32 4294901760, %v363_v34  ;;  %v369_v15 = vsub.f32 %v12682_v16, %v12696_v59  ;;  %v723_v58 = vand.u32 4294901760, %v722_v42  ;;  %v16911_v3 = vand.u32 4294901760, %v12000_v37  ;;  %v17744_v16 = vld [vmem:[#allocation50_spill] sm:$0xff] }
  0x97   :  { %9848 = vmatprep.subr.bf16.mxu1 %v9847_v32  ;;  %v9849_v55 = vpack.c.bf16 %v1791_v22, %v1779_v19  ;;  %v717_v0 = vand.u32 4294901760, %v716_v18  ;;  %1747 = vmatmul.mubr.f32.gmra.mrb[4].mxu1 %v354_v48  ;;  %v1796_v62 = vsub.f32 %v11998_v25, %v16910_v63  ;;  %v16916_v34 = vand.u32 4294901760, %v12034_v36  ;;  %v17714_v22 = vld [vmem:[#allocation13_spill] sm:$0xff]  ;;  %v17715_v32 = vld [vmem:[#allocation14_spill] sm:$0xff] }
  0x98   :  { %365 = vmatprep.mubr.f32.mxu0 %v364_v56  ;;  %v370_v54 = vand.u32 4294901760, %v369_v15  ;;  %v16917_v44 = vand.u32 4294901760, %v12036_v5  ;;  %1757 = vmatprep.mubr.f32.mxu1 %v364_v56  ;;  %v1808_v19 = vsub.f32 %v12000_v37, %v16911_v3  ;;  %v9569_v48 = vpack.c.bf16 %v17715_v32, %v17714_v22  ;;  %v17716_v56 = vld [vmem:[#allocation16_spill] sm:$0xff]  ;;  %v17764_v52 = vld [vmem:[#allocation65_spill] sm:$0xff] }
  0x99   :  { %9850 = vmatpush1.bf16.msra.mxu1 %v9849_v55  ;;  %718 = vmatprep.subr.mxu0 %v717_v0  ;;  %v16918_v15 = vand.u32 4294901760, %v12067_v8  ;;  %v1797_v18 = vand.u32 4294901760, %v1796_v62  ;;  %v1802_v63 = vsub.f32 %v12034_v36, %v16916_v34  ;;  %v17717_v55 = vld [vmem:[#allocation17_spill] sm:$0xff]  ;;  %v17719_v62 = vand.u32 4294901760, %v12069_v13 }
  0x9a   :  { %371 = vmatmul.mubr.f32.gmra.mrb[6].mxu0 %v370_v54  ;;  %v1814_v0 = vsub.f32 %v12036_v5, %v16917_v44  ;;  %v9571_v3 = vpack.c.bf16 %v17717_v55, %v17716_v56  ;;  %v1809_v59 = vand.u32 4294901760, %v1808_v19  ;;  %v16919_v34 = vand.u32 4294901760, %v12084_v17 }
  0x9b   :  { %724 = vmatpush1.msra.mxu0 %v723_v58  ;;  %732 = vmatprep.mubr.f32.mxu0 %v17718_v61  ;;  %v1820_v42 = vsub.f32 %v12067_v8, %v16918_v15  ;;  %v1832_v32 = vsub.f32 %v12069_v13, %v17719_v62  ;;  %v1803_v22 = vand.u32 4294901760, %v1802_v63  ;;  %v9573_v55 = vpack.c.bf16 %v11633_v39, %v11631_v38  ;;  %v17720_v62 = vld [vmem:[#allocation102_spill] sm:$0xff]  ;;  %v17740_v38 = vld [vmem:[#allocation47_spill] sm:$0xff] }
  0x9c   :  { %9568 = vmatprep.subr.bf16.mxu0 %v9567_v53  ;;  %v1815_v44 = vand.u32 4294901760, %v1814_v0  ;;  %v16920_v58 = vand.u32 4294901760, %v12092_v51  ;;  %1763 = vmatmul.mubr.f32.gmra.mrb[6].mxu1 %v370_v54  ;;  %v9851_v19 = vpack.c.bf16 %v1809_v59, %v1797_v18  ;;  %v1826_v15 = vsub.f32 %v12084_v17, %v16919_v34 }
  0x9d   :  { %v1821_v56 = vand.u32 4294901760, %v1820_v42  ;;  %v1833_v43 = vand.u32 4294901760, %v1832_v32  ;;  %2124 = vmatprep.mubr.f32.mxu1 %v17718_v61  ;;  %v16921_v0 = vand.u32 4294901760, %v12105_v6  ;;  %v16923_v54 = vand.u32 4294901760, %v12113_v46  ;;  %v17721_v42 = vld [vmem:[#allocation23_spill] sm:$0xff] }
  0x9e   :  { %734 = vmatmul.mubr.f32.vlgmr.msra.gmra.mrb[0].mxu0 %v17720_v62  ;;  %v9853_v53 = vpack.c.bf16 %v1815_v44, %v1803_v22  ;;  %v1838_v63 = vsub.f32 %v12092_v51, %v16920_v58  ;;  %9852 = vmatprep.subr.bf16.mxu1 %v9851_v19  ;;  %v1827_v32 = vand.u32 4294901760, %v1826_v15  ;;  %v9575_v18 = vpack.c.bf16 %v17721_v42, %v11646_v45  ;;  %v17723_v15 = vld [vmem:[#allocation26_spill] sm:$0xff] }
  0x9f   :  { %9570 = vmatpush1.bf16.msra.mxu0 %v9569_v48  ;;  %v9855_v59 = vpack.c.bf16 %v1833_v43, %v1821_v56  ;;  %v16924_v34 = vand.u32 4294901760, %v12128_v31  ;;  %v1844_v22 = vsub.f32 %v12105_v6, %v16921_v0  ;;  %v1856_v58 = vsub.f32 %v12113_v46, %v16923_v54  ;;  %v17722_v43 = vld [vmem:[#allocation25_spill] sm:$0xff]  ;;  %740 = vmatprep.mubr.f32.mxu0 %v12520_v2  ;;  %v17760_v2 = vld [vmem:[#allocation62_spill] sm:$0xff] }
  0xa0   :  { %9854 = vmatpush1.bf16.msra.mxu1 %v9853_v53  ;;  %9572 = vmatprep.subr.bf16.mxu0 %v9571_v3  ;;  %v1839_v44 = vand.u32 4294901760, %v1838_v63  ;;  %v16925_v48 = vand.u32 4294901760, %v12137_v49  ;;  %v9577_v56 = vpack.c.bf16 %v17723_v15, %v17722_v43  ;;  %v16927_v3 = vand.u32 4294901760, %v12157_v60  ;;  %v17724_v15 = vld [vmem:[#allocation28_spill] sm:$0xff]  ;;  %v17725_v43 = vld [vmem:[#allocation29_spill] sm:$0xff] }
  0xa1   :  { %9856 = vmatprep.subr.bf16.mxu1 %v9855_v59  ;;  %v1850_v19 = vsub.f32 %v12128_v31, %v16924_v34  ;;  %v1845_v0 = vand.u32 4294901760, %v1844_v22  ;;  %v1857_v61 = vand.u32 4294901760, %v1856_v58  ;;  %v9579_v34 = vpack.c.bf16 %v17725_v43, %v17724_v15  ;;  %v17727_v43 = vld [vmem:[#allocation31_spill] sm:$0xff]  ;;  %v17728_v15 = vld [vmem:[#allocation32_spill] sm:$0xff] }
  0xa2   :  { %v9857_v63 = vpack.c.bf16 %v1839_v44, %v1827_v32  ;;  %v1862_v59 = vsub.f32 %v12137_v49, %v16925_v48  ;;  %742 = vmatmul.mubr.f32.gmra.mrb[2].mxu0 %v12515_v24  ;;  %v1868_v53 = vsub.f32 %v12157_v60, %v16927_v3  ;;  %v17726_v42 = vand.u32 4294901760, %v12163_v20  ;;  %v17756_v24 = vld [vmem:[#allocation59_spill] sm:$0xff] }
  0xa3   :  { %9574 = vmatpush1.bf16.msra.mxu0 %v9573_v55  ;;  %v1851_v54 = vand.u32 4294901760, %v1850_v19  ;;  %748 = vmatprep.mubr.f32.mxu0 %v12593_v27  ;;  %v9859_v58 = vpack.c.bf16 %v1857_v61, %v1845_v0  ;;  %v16930_v55 = vand.u32 4294901760, %v12172_v1  ;;  %v16929_v22 = vand.u32 4294901760, %v12184_v26 }
  0xa4   :  { %v1880_v32 = vsub.f32 %v12163_v20, %v17726_v42  ;;  %9858 = vmatpush1.bf16.msra.mxu1 %v9857_v63  ;;  %9576 = vmatprep.subr.bf16.mxu0 %v9575_v18  ;;  %v1863_v44 = vand.u32 4294901760, %v1862_v59  ;;  %v1869_v19 = vand.u32 4294901760, %v1868_v53  ;;  %v9581_v45 = vpack.c.bf16 %v17728_v15, %v17727_v43  ;;  %v17729_v53 = vld [vmem:[#allocation34_spill] sm:$0xff]  ;;  %v17730_v63 = vld [vmem:[#allocation35_spill] sm:$0xff]  ;;  %v17737_v15 = vld [vmem:[#allocation128_spill] sm:$0xff] }
  0xa5   :  { %v16931_v3 = vand.u32 4294901760, %v12196_v23  ;;  %9860 = vmatprep.subr.bf16.mxu1 %v9859_v58  ;;  %v1874_v42 = vsub.f32 %v12172_v1, %v16930_v55  ;;  %v1886_v61 = vsub.f32 %v12184_v26, %v16929_v22  ;;  %v16932_v0 = vand.u32 4294901760, %v12203_v9  ;;  %v17731_v22 = vld [vmem:[#allocation38_spill] sm:$0xff] }
  0xa6   :  { %v1881_v48 = vand.u32 4294901760, %v1880_v32  ;;  %v9861_v39 = vpack.c.bf16 %v1863_v44, %v1851_v54  ;;  %750 = vmatmul.mubr.f32.gmra.mrb[4].mxu0 %v12595_v41  ;;  %v9583_v59 = vpack.c.bf16 %v17730_v63, %v17729_v53  ;;  %v16934_v32 = vand.u32 4294901760, %v12217_v50  ;;  %v17752_v41 = vld [vmem:[#allocation56_spill] sm:$0xff] }
  0xa7   :  { %9578 = vmatpush1.bf16.msra.mxu0 %v9577_v56  ;;  %v1892_v54 = vsub.f32 %v12196_v23, %v16931_v3  ;;  %756 = vmatprep.mubr.f32.mxu0 %v12656_v11  ;;  %v1875_v58 = vand.u32 4294901760, %v1874_v42  ;;  %v1887_v44 = vand.u32 4294901760, %v1886_v61  ;;  %v1904_v56 = vsub.f32 %v12203_v9, %v16932_v0 }
  0xa8   :  { %v9863_v18 = vpack.c.bf16 %v1881_v48, %v1869_v19  ;;  %9862 = vmatpush1.bf16.msra.mxu1 %v9861_v39  ;;  %9580 = vmatprep.subr.bf16.mxu0 %v9579_v34  ;;  %v16935_v48 = vand.u32 4294901760, %v12226_v29  ;;  %v9585_v55 = vpack.c.bf16 %v17731_v22, %v11705_v12  ;;  %v1898_v3 = vsub.f32 %v12217_v50, %v16934_v32  ;;  %v17733_v22 = vld [vmem:[#allocation41_spill] sm:$0xff] }
  0xa9   :  { %v1893_v19 = vand.u32 4294901760, %v1892_v54  ;;  %v16936_v39 = vand.u32 4294901760, %v12243_v10  ;;  %v9865_v34 = vpack.c.bf16 %v1887_v44, %v1875_v58  ;;  %v1905_v42 = vand.u32 4294901760, %v1904_v56  ;;  %v17732_v54 = vld [vmem:[#allocation40_spill] sm:$0xff] }
  0xaa   :  { %9864 = vmatprep.subr.bf16.mxu1 %v9863_v18  ;;  %v1910_v61 = vsub.f32 %v12226_v29, %v16935_v48  ;;  %v16937_v0 = vand.u32 4294901760, %v12248_v14  ;;  %758 = vmatmul.mubr.f32.gmra.mrb[6].mxu0 %v12664_v33  ;;  %v1899_v18 = vand.u32 4294901760, %v1898_v3  ;;  %v9587_v12 = vpack.c.bf16 %v17733_v22, %v17732_v54  ;;  %v17734_v44 = vld [vmem:[#allocation104_spill] sm:$0xff]  ;;  %v17735_v22 = vld [vmem:[#allocation43_spill] sm:$0xff]  ;;  %v17748_v33 = vld [vmem:[#allocation53_spill] sm:$0xff] }
  0xab   :  { %9582 = vmatpush1.bf16.msra.mxu0 %v9581_v45  ;;  %v1916_v32 = vsub.f32 %v12243_v10, %v16936_v39  ;;  %v16939_v58 = vand.u32 4294901760, %v12257_v30  ;;  %946 = vmatprep.mubr.f32.mxu0 %v17734_v44  ;;  %v9867_v56 = vpack.c.bf16 %v1905_v42, %v1893_v19  ;;  %v16940_v3 = vand.u32 4294901760, %v12269_v47  ;;  %v17736_v54 = vld [vmem:[#allocation44_spill] sm:$0xff]  ;;  %v17738_v42 = vld [vmem:[#allocation130_spill] sm:$0xff] }
  0xac   :  { %9866 = vmatpush1.bf16.msra.mxu1 %v9865_v34  ;;  %9584 = vmatprep.subr.bf16.mxu0 %v9583_v59  ;;  %v1911_v48 = vand.u32 4294901760, %v1910_v61  ;;  %v1928_v45 = vsub.f32 %v12248_v14, %v16937_v0  ;;  %v9589_v53 = vpack.c.bf16 %v17736_v54, %v17735_v22  ;;  %v16943_v43 = vand.u32 4294901760, %v17737_v15  ;;  %v17739_v0 = vld [vmem:[#allocation46_spill] sm:$0xff]  ;;  %v17741_v22 = vld [vmem:[#allocation131_spill] sm:$0xff] }
  0xad   :  { %v1917_v63 = vand.u32 4294901760, %v1916_v32  ;;  %v1922_v39 = vsub.f32 %v12257_v30, %v16939_v58  ;;  %9868 = vmatprep.subr.bf16.mxu1 %v9867_v56  ;;  %v1934_v34 = vsub.f32 %v12269_v47, %v16940_v3  ;;  %v16944_v61 = vand.u32 4294901760, %v17738_v42  ;;  %v17743_v3 = vld [vmem:[#allocation49_spill] sm:$0xff] }
  0xae   :  { %v9869_v59 = vpack.c.bf16 %v1911_v48, %v1899_v18  ;;  %v1929_v19 = vand.u32 4294901760, %v1928_v45  ;;  %v9591_v54 = vpack.c.bf16 %v17740_v38, %v17739_v0  ;;  %v1940_v58 = vsub.f32 %v17737_v15, %v16943_v43  ;;  %v17742_v45 = vld [vmem:[#allocation133_spill] sm:$0xff]  ;;  %v17745_v0 = vld [vmem:[#allocation135_spill] sm:$0xff] }
  0xaf   :  { %9586 = vmatpush1.bf16.msra.mxu0 %v9585_v55  ;;  %v1923_v32 = vand.u32 4294901760, %v1922_v39  ;;  %v16947_v57 = vand.u32 4294901760, %v17741_v22  ;;  %v1935_v18 = vand.u32 4294901760, %v1934_v34  ;;  %v1952_v56 = vsub.f32 %v17738_v42, %v16944_v61  ;;  %v17747_v61 = vld [vmem:[#allocation52_spill] sm:$0xff] }
  0xb0   :  { %9870 = vmatpush1.bf16.msra.mxu1 %v9869_v59  ;;  %9588 = vmatprep.subr.bf16.mxu0 %v9587_v12  ;;  %v9871_v48 = vpack.c.bf16 %v1929_v19, %v1917_v63  ;;  %v16950_v55 = vand.u32 4294901760, %v17742_v45  ;;  %v1941_v39 = vand.u32 4294901760, %v1940_v58  ;;  %v9593_v38 = vpack.c.bf16 %v17744_v16, %v17743_v3  ;;  %v17746_v19 = vld [vmem:[#allocation136_spill] sm:$0xff]  ;;  %v17749_v3 = vld [vmem:[#allocation137_spill] sm:$0xff] }
  0xb1   :  { %v1946_v43 = vsub.f32 %v17741_v22, %v16947_v57  ;;  %v16953_v44 = vand.u32 4294901760, %v17745_v0  ;;  %v9873_v12 = vpack.c.bf16 %v1935_v18, %v1923_v32  ;;  %v1953_v63 = vand.u32 4294901760, %v1952_v56  ;;  %v17750_v56 = vld [vmem:[#allocation139_spill] sm:$0xff] }
  0xb2   :  { %9872 = vmatprep.subr.bf16.mxu1 %v9871_v48  ;;  %v1958_v59 = vsub.f32 %v17742_v45, %v16950_v55  ;;  %v16956_v34 = vand.u32 4294901760, %v17746_v19  ;;  %v9595_v16 = vpack.c.bf16 %v17748_v33, %v17747_v61  ;;  %v16959_v11 = vand.u32 4294901760, %v17749_v3  ;;  %v17751_v55 = vld [vmem:[#allocation55_spill] sm:$0xff]  ;;  %v17753_v61 = vld [vmem:[#allocation140_spill] sm:$0xff] }
  0xb3   :  { %9590 = vmatpush1.bf16.msra.mxu0 %v9589_v53  ;;  %v1947_v58 = vand.u32 4294901760, %v1946_v43  ;;  %v1964_v57 = vsub.f32 %v17745_v0, %v16953_v44  ;;  %v9875_v32 = vpack.c.bf16 %v1953_v63, %v1941_v39  ;;  %v16962_v53 = vand.u32 4294901760, %v17750_v56  ;;  %v17754_v63 = vld [vmem:[#allocation142_spill] sm:$0xff] }
  0xb4   :  { %9874 = vmatpush1.bf16.msra.mxu1 %v9873_v12  ;;  %9592 = vmatprep.subr.bf16.mxu0 %v9591_v54  ;;  %v1959_v48 = vand.u32 4294901760, %v1958_v59  ;;  %v1976_v18 = vsub.f32 %v17746_v19, %v16956_v34  ;;  %v9597_v33 = vpack.c.bf16 %v17752_v41, %v17751_v55  ;;  %v1970_v44 = vsub.f32 %v17749_v3, %v16959_v11  ;;  %v17755_v34 = vld [vmem:[#allocation58_spill] sm:$0xff]  ;;  %v17757_v55 = vld [vmem:[#allocation143_spill] sm:$0xff] }
  0xb5   :  { %v1965_v43 = vand.u32 4294901760, %v1964_v57  ;;  %v16965_v27 = vand.u32 4294901760, %v17753_v61  ;;  %9876 = vmatprep.subr.bf16.mxu1 %v9875_v32  ;;  %v1982_v12 = vsub.f32 %v17750_v56, %v16962_v53  ;;  %v16966_v59 = vand.u32 4294901760, %v17754_v63  ;;  %v17759_v53 = vld [vmem:[#allocation61_spill] sm:$0xff] }
  0xb6   :  { %v9877_v54 = vpack.c.bf16 %v1959_v48, %v1947_v58  ;;  %v1977_v39 = vand.u32 4294901760, %v1976_v18  ;;  %v1971_v57 = vand.u32 4294901760, %v1970_v44  ;;  %v9599_v41 = vpack.c.bf16 %v17756_v24, %v17755_v34  ;;  %v17758_v18 = vld [vmem:[#allocation145_spill] sm:$0xff]  ;;  %v17761_v34 = vld [vmem:[#allocation147_spill] sm:$0xff] }
  0xb7   :  { %9594 = vmatpush1.bf16.msra.mxu0 %v9593_v38  ;;  %v1988_v11 = vsub.f32 %v17753_v61, %v16965_v27  ;;  %v16969_v28 = vand.u32 4294901760, %v17757_v55  ;;  %v1983_v32 = vand.u32 4294901760, %v1982_v12  ;;  %v2000_v48 = vsub.f32 %v17754_v63, %v16966_v59  ;;  %v17763_v59 = vld [vmem:[#allocation64_spill] sm:$0xff] }
  0xb8   :  { %9878 = vmatpush1.bf16.msra.mxu1 %v9877_v54  ;;  %9596 = vmatprep.subr.bf16.mxu0 %v9595_v16  ;;  %v9879_v58 = vpack.c.bf16 %v1977_v39, %v1965_v43  ;;  %v16971_v38 = vand.u32 4294901760, %v17758_v18  ;;  %v9601_v24 = vpack.c.bf16 %v17760_v2, %v17759_v53  ;;  %v16973_v62 = vand.u32 4294901760, %v17761_v34  ;;  %v17762_v39 = vld [vmem:[#allocation148_spill] sm:$0xff]  ;;  %v17765_v53 = vld [vmem:[#allocation149_spill] sm:$0xff] }
  0xb9   :  { %v1989_v44 = vand.u32 4294901760, %v1988_v11  ;;  %v1994_v27 = vsub.f32 %v17757_v55, %v16969_v28  ;;  %v9881_v16 = vpack.c.bf16 %v1983_v32, %v1971_v57  ;;  %v2001_v43 = vand.u32 4294901760, %v2000_v48  ;;  %v17766_v48 = vld [vmem:[#allocation151_spill] sm:$0xff] }
  0xba   :  { %9880 = vmatprep.subr.bf16.mxu1 %v9879_v58  ;;  %v2006_v54 = vsub.f32 %v17758_v18, %v16971_v38  ;;  %v16975_v12 = vand.u32 4294901760, %v17762_v39  ;;  %v9603_v2 = vpack.c.bf16 %v17764_v52, %v17763_v59  ;;  %v2012_v28 = vsub.f32 %v17761_v34, %v16973_v62  ;;  %v17767_v38 = vld [vmem:[#allocation67_spill] sm:$0xff]  ;;  %v17768_v18 = vld [vmem:[#allocation68_spill] sm:$0xff] }
  0xbb   :  { %9598 = vmatpush1.bf16.msra.mxu0 %v9597_v33  ;;  %v1995_v11 = vand.u32 4294901760, %v1994_v27  ;;  %v16977_v55 = vand.u32 4294901760, %v17765_v53  ;;  %v9883_v57 = vpack.c.bf16 %v2001_v43, %v1989_v44  ;;  %v16979_v33 = vand.u32 4294901760, %v17766_v48  ;;  %v17769_v59 = vld [vmem:[#allocation152_spill] sm:$0xff]  ;;  %v17770_v43 = vld [vmem:[#allocation154_spill] sm:$0xff] }
  0xbc   :  { %9882 = vmatpush1.bf16.msra.mxu1 %v9881_v16  ;;  %9600 = vmatprep.subr.bf16.mxu0 %v9599_v41  ;;  %v2007_v58 = vand.u32 4294901760, %v2006_v54  ;;  %v2024_v32 = vsub.f32 %v17762_v39, %v16975_v12  ;;  %v2013_v27 = vand.u32 4294901760, %v2012_v28  ;;  %v9605_v52 = vpack.c.bf16 %v17768_v18, %v17767_v38  ;;  %v17771_v12 = vld [vmem:[#allocation70_spill] sm:$0xff]  ;;  %v17772_v39 = vld [vmem:[#allocation71_spill] sm:$0xff] }
  0xbd   :  { %v2018_v62 = vsub.f32 %v17765_v53, %v16977_v55  ;;  %v16981_v34 = vand.u32 4294901760, %v17769_v59  ;;  %9884 = vmatprep.subr.bf16.mxu1 %v9883_v57  ;;  %v2030_v16 = vsub.f32 %v17766_v48, %v16979_v33  ;;  %v16982_v54 = vand.u32 4294901760, %v17770_v43  ;;  %v17773_v38 = vld [vmem:[#allocation155_spill] sm:$0xff]  ;;  %v17775_v33 = vld [vmem:[#allocation73_spill] sm:$0xff]  ;;  %v17776_v48 = vld [vmem:[#allocation74_spill] sm:$0xff] }
  0xbe   :  { %v9885_v41 = vpack.c.bf16 %v2007_v58, %v1995_v11  ;;  %v2025_v44 = vand.u32 4294901760, %v2024_v32  ;;  %v9607_v18 = vpack.c.bf16 %v17772_v39, %v17771_v12  ;;  %v16984_v53 = vand.u32 4294901760, %v17773_v38  ;;  %v17774_v32 = vld [vmem:[#allocation157_spill] sm:$0xff] }
  0xbf   :  { %9602 = vmatpush1.bf16.msra.mxu0 %v9601_v24  ;;  %v2019_v28 = vand.u32 4294901760, %v2018_v62  ;;  %v2036_v55 = vsub.f32 %v17769_v59, %v16981_v34  ;;  %v2031_v57 = vand.u32 4294901760, %v2030_v16  ;;  %v2048_v58 = vsub.f32 %v17770_v43, %v16982_v54  ;;  %v17778_v54 = vld [vmem:[#allocation76_spill] sm:$0xff]  ;;  %v17779_v43 = vld [vmem:[#allocation77_spill] sm:$0xff] }
  0xc0   :  { %9886 = vmatpush1.bf16.msra.mxu1 %v9885_v41  ;;  %9604 = vmatprep.subr.bf16.mxu0 %v9603_v2  ;;  %v9887_v11 = vpack.c.bf16 %v2025_v44, %v2013_v27  ;;  %v16986_v24 = vand.u32 4294901760, %v17774_v32  ;;  %v9609_v39 = vpack.c.bf16 %v17776_v48, %v17775_v33  ;;  %v2042_v34 = vsub.f32 %v17773_v38, %v16984_v53  ;;  %v17777_v44 = vld [vmem:[#allocation160_spill] sm:$0xff]  ;;  %v17780_v33 = vld [vmem:[#allocation161_spill] sm:$0xff] }
  0xc1   :  { %v2037_v62 = vand.u32 4294901760, %v2036_v55  ;;  %v16988_v12 = vand.u32 4294901760, %v12501_v21  ;;  %v9889_v2 = vpack.c.bf16 %v2031_v57, %v2019_v28  ;;  %v2049_v27 = vand.u32 4294901760, %v2048_v58  ;;  %v17781_v58 = vld [vmem:[#allocation165_spill] sm:$0xff] }
  0xc2   :  { %9888 = vmatprep.subr.bf16.mxu1 %v9887_v11  ;;  %v2054_v41 = vsub.f32 %v17774_v32, %v16986_v24  ;;  %v16991_v16 = vand.u32 4294901760, %v17777_v44  ;;  %v2043_v55 = vand.u32 4294901760, %v2042_v34  ;;  %v9611_v48 = vpack.c.bf16 %v17779_v43, %v17778_v54  ;;  %v17782_v24 = vld [vmem:[#allocation79_spill] sm:$0xff]  ;;  %v17783_v32 = vld [vmem:[#allocation80_spill] sm:$0xff]  ;;  %v17784_v54 = vld [vmem:[#allocation170_spill] sm:$0xff] }
  0xc3   :  { %9606 = vmatpush1.bf16.msra.mxu0 %v9605_v52  ;;  %v2060_v53 = vsub.f32 %v12501_v21, %v16988_v12  ;;  %v16992_v38 = vand.u32 4294901760, %v17780_v33  ;;  %v9891_v28 = vpack.c.bf16 %v2049_v27, %v2037_v62  ;;  %v16993_v52 = vand.u32 4294901760, %v17781_v58 }
  0xc4   :  { %9890 = vmatpush1.bf16.msra.mxu1 %v9889_v2  ;;  %9608 = vmatprep.subr.bf16.mxu0 %v9607_v18  ;;  %v2055_v11 = vand.u32 4294901760, %v2054_v41  ;;  %v2072_v57 = vsub.f32 %v17777_v44, %v16991_v16  ;;  %v9613_v43 = vpack.c.bf16 %v17783_v32, %v17782_v24  ;;  %v16995_v21 = vand.u32 4294901760, %v17784_v54  ;;  %v17785_v41 = vld [vmem:[#allocation81_spill] sm:$0xff]  ;;  %v17786_v16 = vld [vmem:[#allocation83_spill] sm:$0xff] }
  0xc5   :  { %v2061_v34 = vand.u32 4294901760, %v2060_v53  ;;  %v2066_v12 = vsub.f32 %v17780_v33, %v16992_v38  ;;  %9892 = vmatprep.subr.bf16.mxu1 %v9891_v28  ;;  %v2078_v2 = vsub.f32 %v17781_v58, %v16993_v52  ;;  %v16996_v27 = vand.u32 4294901760, %v12567_v35  ;;  %v17788_v52 = vld [vmem:[#allocation84_spill] sm:$0xff]  ;;  %v17789_v58 = vld [vmem:[#allocation85_spill] sm:$0xff] }
  0xc6   :  { %v9893_v18 = vpack.c.bf16 %v2055_v11, %v2043_v55  ;;  %v2073_v62 = vand.u32 4294901760, %v2072_v57  ;;  %v9615_v32 = vpack.c.bf16 %v17786_v16, %v17785_v41  ;;  %v2084_v38 = vsub.f32 %v17784_v54, %v16995_v21  ;;  %v17787_v57 = vld [vmem:[#allocation175_spill] sm:$0xff] }
  0xc7   :  { %9610 = vmatpush1.bf16.msra.mxu0 %v9609_v39  ;;  %v2067_v53 = vand.u32 4294901760, %v2066_v12  ;;  %v16997_v24 = vand.u32 4294901760, %v12589_v7  ;;  %v2079_v28 = vand.u32 4294901760, %v2078_v2  ;;  %v2096_v11 = vsub.f32 %v12567_v35, %v16996_v27  ;;  %v17790_v41 = vld [vmem:[#allocation179_spill] sm:$0xff]  ;;  %v17792_v2 = vld [vmem:[#allocation88_spill] sm:$0xff]  ;;  %v17795_v35 = vld [vmem:[#allocation94_spill] sm:$0xff] }
  0xc8   :  { %9894 = vmatpush1.bf16.msra.mxu1 %v9893_v18  ;;  %9612 = vmatprep.subr.bf16.mxu0 %v9611_v48  ;;  %v9895_v55 = vpack.c.bf16 %v2073_v62, %v2061_v34  ;;  %v17004_v39 = vand.u32 4294901760, %v17787_v57  ;;  %v2085_v12 = vand.u32 4294901760, %v2084_v38  ;;  %v9617_v16 = vpack.c.bf16 %v17789_v58, %v17788_v52  ;;  %v17793_v38 = vld [vmem:[#allocation89_spill] sm:$0xff] }
  0xc9   :  { %v2090_v21 = vsub.f32 %v12589_v7, %v16997_v24  ;;  %v12978_v18 = vsub.f32 %v17790_v41, %v12622_v4  ;;  %v9897_v48 = vpack.c.bf16 %v2079_v28, %v2067_v53  ;;  %v2097_v34 = vand.u32 4294901760, %v2096_v11  ;;  %v17794_v7 = vld [vmem:[#allocation93_spill] sm:$0xff]  ;;  %v17796_v28 = vld [vmem:[#allocation96_spill] sm:$0xff] }
  0xca   :  { %9896 = vmatprep.subr.bf16.mxu1 %v9895_v55  ;;  %v2102_v62 = vsub.f32 %v17787_v57, %v17004_v39  ;;  %v9619_v27 = vpack.c.bf16 %v17793_v38, %v17792_v2  ;;  %v17007_v24 = vand.u32 4294901760, %v12702_v40  ;;  %v9903_v41 = vpack.c.bf16 %v17795_v35, %v17794_v7  ;;  %v17797_v11 = vld [vmem:[#allocation97_spill] sm:$0xff]  ;;  %v17815_v35 = vld [vmem:[#allocation163_spill] sm:$0xff] }
  0xcb   :  { %17791 = vst [vmem:[#allocation128_spill] sm:$0xff] %v12978_v18  ;;  %9614 = vmatpush1.bf16.msra.mxu0 %v9613_v43  ;;  %v2091_v58 = vand.u32 4294901760, %v2090_v21  ;;  %v17005_v52 = vand.u32 4294901760, %v12978_v18  ;;  %v9899_v53 = vpack.c.bf16 %v2097_v34, %v2085_v12  ;;  %v9905_v4 = vpack.c.bf16 %v17797_v11, %v17796_v28  ;;  %v17808_v28 = vld [vmem:[#allocation157_spill] sm:$0xff] }
  0xcc   :  { %9898 = vmatpush1.bf16.msra.mxu1 %v9897_v48  ;;  %9616 = vmatprep.subr.bf16.mxu0 %v9615_v32  ;;  %v2103_v55 = vand.u32 4294901760, %v2102_v62  ;;  %v9907_v39 = vpack.c.bf16 %v12000_v37, %v11998_v25  ;;  %v2114_v43 = vsub.f32 %v12702_v40, %v17007_v24  ;;  %v9909_v48 = vpack.c.bf16 %v12036_v5, %v12034_v36  ;;  %v17798_v24 = vld [vmem:[#allocation90_spill] sm:$0xff]  ;;  %v17799_v25 = vld [vmem:[#allocation91_spill] sm:$0xff]  ;;  %v17804_v5 = vld [vmem:[#allocation149_spill] sm:$0xff] }
  0xcd   :  { %v2108_v21 = vsub.f32 %v12978_v18, %v17005_v52  ;;  %v9911_v32 = vpack.c.bf16 %v12069_v13, %v12067_v8  ;;  %9900 = vmatprep.subr.bf16.mxu1 %v9899_v53  ;;  %v9913_v34 = vpack.c.bf16 %v12092_v51, %v12084_v17  ;;  %v9915_v62 = vpack.c.bf16 %v12113_v46, %v12105_v6  ;;  %v17805_v13 = vld [vmem:[#allocation151_spill] sm:$0xff]  ;;  %v17810_v51 = vld [vmem:[#allocation98_spill] sm:$0xff]  ;;  %v17816_v38 = vld [vmem:[#allocation185_spill] sm:$0xff] }
  0xce   :  { %v9901_v12 = vpack.c.bf16 %v2103_v55, %v2091_v58  ;;  %v9917_v52 = vpack.c.bf16 %v12137_v49, %v12128_v31  ;;  %v9621_v11 = vpack.c.bf16 %v17799_v25, %v17798_v24  ;;  %v2115_v53 = vand.u32 4294901760, %v2114_v43  ;;  %v17802_v58 = vld [vmem:[#allocation147_spill] sm:$0xff]  ;;  %v17811_v55 = vld [vmem:[#allocation165_spill] sm:$0xff]  ;;  %v17813_v24 = vld [vmem:[#allocation174_spill] sm:$0xff] }
  0xcf   :  { %9618 = vmatpush1.bf16.msra.mxu0 %v9617_v16  ;;  %v2109_v37 = vand.u32 4294901760, %v2108_v21  ;;  %v17800_v16 = vld [vmem:[#allocation143_spill] sm:$0xff]  ;;  %v17803_v21 = vld [vmem:[#allocation148_spill] sm:$0xff]  ;;  %v17814_v36 = vld [vmem:[#allocation102_spill] sm:$0xff]  ;;  %vm8081_vm6 = vcmask 523270   ;;  %vm8657_vm7 = vcmask 261120  }
  0xd0   :  { %9902 = vmatpush1.bf16.msra.mxu1 %v9901_v12  ;;  %9620 = vmatprep.subr.bf16.mxu0 %v9619_v27  ;;  %v17806_v27 = vld [vmem:[#allocation154_spill] sm:$0xff]  ;;  %v17807_v43 = vld [vmem:[#allocation155_spill] sm:$0xff]  ;;  %v17818_v7 = vld [vmem:[#allocation109_spill] sm:$0xff] }
  0xd1   :  { %2110 = vmatprep.subr.mxu1 %v2109_v37  ;;  %v17801_v37 = vld [vmem:[#allocation145_spill] sm:$0xff]  ;;  %v17809_v12 = vld [vmem:[#allocation159_spill] sm:$0xff]  ;;  %v17819_v25 = vld [vmem:[#allocation12_spill] sm:$0xff] }
  0xd2   :  { %v17821_v17 = vld [vmem:[#allocation15_spill] sm:$0xff]  ;;  %v17824_v8 = vld [vmem:[#allocation166_spill] sm:$0xff] }
  0xd3   :  { %9622 = vmatpush1.bf16.msra.mxu0 %v9621_v11  ;;  %v17812_v11 = vld [vmem:[#allocation172_spill] sm:$0xff] }
  0xd4   :  { %2116 = vmatpush1.msra.mxu1 %v2115_v53  ;;  %934 = vmatprep.subr.mxu0 %v17810_v51  ;;  %v17817_v53 = vld [vmem:[#allocation9_spill] sm:$0xff]  ;;  %v17820_v51 = vld [vmem:[#allocation162_spill] sm:$0xff] }
  0xd5   :  { %9904 = vmatprep.subr.bf16.mxu1 %v9903_v41  ;;  %2126 = vmatmul.mubr.f32.vlgmr.msra.gmra.mrb[0].mxu1 %v17814_v36  ;;  %v17822_v41 = vld [vmem:[#allocation167_spill] sm:$0xff]  ;;  %v17827_v36 = vld [vmem:[#allocation21_spill] sm:$0xff] }
  0xd6   :  { %9906 = vmatpush1.bf16.msra.mxu1 %v9905_v4  ;;  %2132 = vmatprep.mubr.f32.mxu1 %v17815_v35  ;;  %v17823_v4 = vld [vmem:[#allocation176_spill] sm:$0xff]  ;;  %v17825_v35 = vld [vmem:[#allocation18_spill] sm:$0xff] }
  0xd7   :  { %937 = vmatpush1.msra.mxu0 %v17816_v38  ;;  %9908 = vmatprep.subr.bf16.mxu1 %v9907_v39  ;;  %v17826_v39 = vld [vmem:[#allocation177_spill] sm:$0xff] }
  0xd8   :  { %9624 = vmatprep.subr.bf16.mxu0 %v17817_v53  ;;  %949 = vmatmul.mubr.f32.vlgmr.msra.gmra.mrb[0].mxu0 %v17818_v7  ;;  %v17838_v53 = vand.u32 4294901760, %v12163_v20 }
  0xd9   :  { %9626 = vmatpush1.bf16.msra.mxu0 %v17819_v25  ;;  %2134 = vmatmul.mubr.f32.gmra.mrb[2].mxu1 %v17820_v51  ;;  %v17828_v25 = vld [vmem:[#allocation178_spill] sm:$0xff]  ;;  %v17830_v51 = vld [vmem:[#allocation180_spill] sm:$0xff] }
  0xda   :  { %9910 = vmatpush1.bf16.msra.mxu1 %v9909_v48  ;;  %9628 = vmatprep.subr.bf16.mxu0 %v17821_v17  ;;  %v17829_v48 = vld [vmem:[#allocation186_spill] sm:$0xff] }
  0xdb   :  { %9912 = vmatprep.subr.bf16.mxu1 %v9911_v32  ;;  %956 = vmatprep.mubr.f32.mxu0 %v17822_v41  ;;  %v17831_v32 = vand.u32 4294901760, %v12105_v6  ;;  %v17840_v6 = vand.u32 4294901760, %v12184_v26 }
  0xdc   :  { %2140 = vmatprep.mubr.f32.mxu1 %v17823_v4  ;;  %959 = vmatmul.mubr.f32.gmra.mrb[2].mxu0 %v17824_v8  ;;  %v17832_v4 = vand.u32 4294901760, %v12113_v46  ;;  %v17839_v46 = vand.u32 4294901760, %v12172_v1 }
  0xdd   :  { %9630 = vmatpush1.bf16.msra.mxu0 %v17825_v35  ;;  %2142 = vmatmul.mubr.f32.gmra.mrb[4].mxu1 %v17826_v39  ;;  %v17833_v35 = vand.u32 4294901760, %v12128_v31  ;;  %v17834_v39 = vand.u32 4294901760, %v12137_v49  ;;  %v17842_v49 = vand.u32 4294901760, %v12196_v23  ;;  %v17843_v31 = vand.u32 4294901760, %v12203_v9 }
  0xde   :  { %9914 = vmatpush1.bf16.msra.mxu1 %v9913_v34  ;;  %9632 = vmatprep.subr.bf16.mxu0 %v17827_v36  ;;  %v13073_v17 = vpack.c.bf16 %v17832_v4, %v17831_v32  ;;  %v17835_v36 = vld [vmem:[#allocation24_spill] sm:$0xff]  ;;  %v13093_v4 = vpack.c.bf16 %v17840_v6, %v17839_v46  ;;  %v17846_v32 = vand.u32 4294901760, %v12217_v50  ;;  %v17850_v46 = vand.u32 4294901760, %v12248_v14 }
  0xdf   :  { %9916 = vmatprep.subr.bf16.mxu1 %v9915_v62  ;;  %966 = vmatprep.mubr.f32.mxu0 %v17828_v25  ;;  %v13079_v34 = vpack.c.bf16 %v17834_v39, %v17833_v35  ;;  %v17836_v62 = vld [vmem:[#allocation188_spill] sm:$0xff]  ;;  %v13099_v35 = vpack.c.bf16 %v17843_v31, %v17842_v49  ;;  %v17845_v39 = vld [vmem:[#allocation27_spill] sm:$0xff]  ;;  %v17853_v49 = vand.u32 4294901760, %v12269_v47 }
  0xe0   :  { %2148 = vmatprep.mubr.f32.mxu1 %v17829_v48  ;;  %969 = vmatmul.mubr.f32.gmra.mrb[4].mxu0 %v17830_v51  ;;  %v17837_v48 = vand.u32 4294901760, %v12157_v60  ;;  %17841 = vst [vmem:[#allocation130_spill] sm:$0xff] %v13093_v4  ;;  %v17852_v4 = vand.u32 4294901760, %v12257_v30 }
  0xe1   :  { %9634 = vmatpush1.bf16.msra.mxu0 %v17835_v36  ;;  %2150 = vmatmul.mubr.f32.gmra.mrb[6].mxu1 %v17836_v62  ;;  %17844 = vst [vmem:[#allocation131_spill] sm:$0xff] %v13099_v35  ;;  %v17849_v62 = vand.u32 4294901760, %v12243_v10  ;;  %v17856_v35 = vld [vmem:[#allocation187_spill] sm:$0xff] }
  0xe2   :  { %v13087_v38 = vpack.c.bf16 %v17838_v53, %v17837_v48  ;;  %9918 = vmatpush1.bf16.msra.mxu1 %v9917_v52  ;;  %9636 = vmatprep.subr.bf16.mxu0 %v17845_v39  ;;  %v17847_v53 = vand.u32 4294901760, %v12226_v29  ;;  %v13118_v31 = vpack.c.bf16 %v17853_v49, %v17852_v4  ;;  %v17855_v52 = vpack.c.bf16 %v12163_v20, %v12157_v60  ;;  %v17865_v60 = vld [vmem:[#allocation30_spill] sm:$0xff]  ;;  %v17866_v20 = vld [vmem:[#allocation108_spill] sm:$0xff] }
  0xe3   :  { %v13112_v6 = vpack.c.bf16 %v17850_v46, %v17849_v62  ;;  %976 = vmatprep.mubr.f32.mxu0 %v17856_v35  ;;  %v17860_v62 = vld [vmem:[#allocation104_spill] sm:$0xff]  ;;  %v17861_v46 = vld [vmem:[#allocation190_spill] sm:$0xff]  ;;  %v17863_v4 = vand.u32 4294901760, %v17742_v45 }
  0xe4   :  { %v13106_v48 = vpack.c.bf16 %v17847_v53, %v17846_v32  ;;  %17854 = vst [vmem:[#allocation136_spill] sm:$0xff] %v13118_v31  ;;  %9920 = vmatprep.subr.bf16.mxu1 %v17855_v52  ;;  %v17857_v32 = vand.u32 4294901760, %v17737_v15  ;;  %v17858_v53 = vand.u32 4294901760, %v17738_v42  ;;  %2338 = vmatprep.mubr.f32.mxu1 %v17860_v62  ;;  %v17867_v52 = vpack.c.bf16 %v12184_v26, %v12172_v1  ;;  %v17874_v1 = vld [vmem:[#allocation36_spill] sm:$0xff] }
  0xe5   :  { %17851 = vst [vmem:[#allocation135_spill] sm:$0xff] %v13112_v6  ;;  %979 = vmatmul.mubr.f32.gmra.mrb[6].mxu0 %v17861_v46  ;;  %v17862_v6 = vand.u32 4294901760, %v17741_v22  ;;  %v17870_v62 = vand.u32 4294901760, %v17746_v19  ;;  %v17875_v26 = vpack.c.bf16 %v12226_v29, %v12217_v50  ;;  %v17882_v29 = vld [vmem:[#allocation42_spill] sm:$0xff]  ;;  %v17883_v50 = vpack.c.bf16 %v12269_v47, %v12257_v30  ;;  %v17890_v30 = vld [vmem:[#allocation48_spill] sm:$0xff] }
  0xe6   :  { %17848 = vst [vmem:[#allocation133_spill] sm:$0xff] %v13106_v48  ;;  %v13128_v48 = vpack.c.bf16 %v17858_v53, %v17857_v32  ;;  %9638 = vmatpush1.bf16.msra.mxu0 %v17865_v60  ;;  %1110 = vmatprep.mubr.f32.mxu0 %v17866_v20  ;;  %v17868_v32 = vld [vmem:[#allocation33_spill] sm:$0xff]  ;;  %v17869_v53 = vand.u32 4294901760, %v17745_v0  ;;  %v17891_v47 = vpack.c.bf16 %v17742_v45, %v17741_v22  ;;  %v17898_v22 = vld [vmem:[#allocation54_spill] sm:$0xff] }
  0xe7   :  { %v13136_v49 = vpack.c.bf16 %v17863_v4, %v17862_v6  ;;  %9922 = vmatpush1.bf16.msra.mxu1 %v17867_v52  ;;  %9640 = vmatprep.subr.bf16.mxu0 %v17868_v32  ;;  %v17871_v6 = vpack.c.bf16 %v12203_v9, %v12196_v23  ;;  %v17872_v4 = vand.u32 4294901760, %v17749_v3  ;;  %v17876_v52 = vld [vmem:[#allocation39_spill] sm:$0xff]  ;;  %v17879_v23 = vpack.c.bf16 %v12248_v14, %v12243_v10 }
  0xe8   :  { %17859 = vst [vmem:[#allocation137_spill] sm:$0xff] %v13128_v48  ;;  %v13148_v48 = vpack.c.bf16 %v17870_v62, %v17869_v53  ;;  %v17877_v53 = vand.u32 4294901760, %v17753_v61  ;;  %v17878_v62 = vand.u32 4294901760, %v17754_v63  ;;  %v17887_v14 = vpack.c.bf16 %v17738_v42, %v17737_v15 }
  0xe9   :  { %17864 = vst [vmem:[#allocation139_spill] sm:$0xff] %v13136_v49  ;;  %9924 = vmatprep.subr.bf16.mxu1 %v17871_v6  ;;  %v17873_v49 = vand.u32 4294901760, %v17750_v56  ;;  %v17881_v6 = vand.u32 4294901760, %v17801_v37  ;;  %v17895_v42 = vpack.c.bf16 %v17746_v19, %v17745_v0  ;;  %v17899_v45 = vpack.c.bf16 %v17750_v56, %v17749_v3  ;;  %v17906_v3 = vld [vmem:[#allocation60_spill] sm:$0xff] }
  0xea   :  { %9642 = vmatpush1.bf16.msra.mxu0 %v17874_v1  ;;  %v13168_v9 = vpack.c.bf16 %v17878_v62, %v17877_v53  ;;  %v17885_v53 = vand.u32 4294901760, %v17802_v58  ;;  %v17886_v62 = vand.u32 4294901760, %v17803_v21  ;;  %v17903_v19 = vpack.c.bf16 %v17754_v63, %v17753_v61 }
  0xeb   :  { %v13157_v31 = vpack.c.bf16 %v17873_v49, %v17872_v4  ;;  %9926 = vmatpush1.bf16.msra.mxu1 %v17875_v26  ;;  %9644 = vmatprep.subr.bf16.mxu0 %v17876_v52  ;;  %v17880_v49 = vand.u32 4294901760, %v17800_v16  ;;  %v17884_v26 = vld [vmem:[#allocation45_spill] sm:$0xff]  ;;  %v17907_v56 = vpack.c.bf16 %v17801_v37, %v17800_v16  ;;  %v17911_v63 = vpack.c.bf16 %v17803_v21, %v17802_v58  ;;  %v17914_v16 = vld [vmem:[#allocation66_spill] sm:$0xff]  ;;  %v17918_v58 = vld [vmem:[#allocation72_spill] sm:$0xff] }
  0xec   :  { %9928 = vmatprep.subr.bf16.mxu1 %v17879_v23  ;;  %v13188_v10 = vpack.c.bf16 %v17886_v62, %v17885_v53  ;;  %v17888_v23 = vand.u32 4294901760, %v17804_v5  ;;  %v17893_v53 = vand.u32 4294901760, %v17769_v59  ;;  %v17894_v62 = vand.u32 4294901760, %v17806_v27 }
  0xed   :  { %v13177_v4 = vpack.c.bf16 %v17881_v6, %v17880_v49  ;;  %v17889_v49 = vand.u32 4294901760, %v17805_v13  ;;  %v17915_v37 = vpack.c.bf16 %v17805_v13, %v17804_v5  ;;  %v17919_v21 = vpack.c.bf16 %v17808_v28, %v17807_v43  ;;  %v17922_v13 = vld [vmem:[#allocation78_spill] sm:$0xff] }
  0xee   :  { %9646 = vmatpush1.bf16.msra.mxu0 %v17882_v29  ;;  %v13208_v15 = vpack.c.bf16 %v17894_v62, %v17893_v53  ;;  %v17901_v53 = vand.u32 4294901760, %v17809_v12  ;;  %v17902_v62 = vand.u32 4294901760, %v17777_v44  ;;  %v17923_v5 = vpack.c.bf16 %v17811_v55, %v17780_v33 }
  0xef   :  { %9930 = vmatpush1.bf16.msra.mxu1 %v17883_v50  ;;  %9648 = vmatprep.subr.bf16.mxu0 %v17884_v26  ;;  %v13197_v6 = vpack.c.bf16 %v17889_v49, %v17888_v23  ;;  %v17892_v50 = vld [vmem:[#allocation51_spill] sm:$0xff]  ;;  %v17897_v23 = vand.u32 4294901760, %v17808_v28  ;;  %v17926_v28 = vld [vmem:[#allocation86_spill] sm:$0xff] }
  0xf0   :  { %9932 = vmatprep.subr.bf16.mxu1 %v17887_v14  ;;  %v17896_v14 = vand.u32 4294901760, %v17807_v43  ;;  %v13228_v0 = vpack.c.bf16 %v17902_v62, %v17901_v53  ;;  %v17909_v53 = vand.u32 4294901760, %v17784_v54  ;;  %v17910_v62 = vand.u32 4294901760, %v17812_v11 }
  0xf1   :  { %v17927_v43 = vpack.c.bf16 %v17787_v57, %v17813_v24 }
  0xf2   :  { %9650 = vmatpush1.bf16.msra.mxu0 %v17890_v30  ;;  %v13217_v49 = vpack.c.bf16 %v17897_v23, %v17896_v14  ;;  %v17905_v14 = vand.u32 4294901760, %v17811_v55  ;;  %v13248_v61 = vpack.c.bf16 %v17910_v62, %v17909_v53  ;;  %v17917_v53 = vpack.c.bf16 %v17806_v27, %v17769_v59  ;;  %v17920_v62 = vld [vmem:[#allocation75_spill] sm:$0xff]  ;;  %v17924_v59 = vld [vmem:[#allocation82_spill] sm:$0xff] }
  0xf3   :  { %9934 = vmatpush1.bf16.msra.mxu1 %v17891_v47  ;;  %9652 = vmatprep.subr.bf16.mxu0 %v17892_v50  ;;  %v17900_v47 = vld [vmem:[#allocation57_spill] sm:$0xff]  ;;  %v17925_v27 = vpack.c.bf16 %v17812_v11, %v17784_v54  ;;  %v17931_v55 = vld [vmem:[#allocation10_spill] sm:$0xff]  ;;  %v17933_v54 = vld [vmem:[#allocation11_spill] sm:$0xff] }
  0xf4   :  { %9936 = vmatprep.subr.bf16.mxu1 %v17895_v42  ;;  %v17904_v42 = vand.u32 4294901760, %v17780_v33  ;;  %v17930_v33 = vld [vmem:[#allocation100_spill] sm:$0xff]  ;;  %v17934_v11 = vand.u32 4294901760, %v17933_v54  ;;  %v17948_v54 = vld [vmem:[#allocation19_spill] sm:$0xff] }
  0xf6   :  { %9654 = vmatpush1.bf16.msra.mxu0 %v17898_v22  ;;  %v13237_v23 = vpack.c.bf16 %v17905_v14, %v17904_v42  ;;  %v17913_v42 = vand.u32 4294901760, %v17787_v57 }
  0xf7   :  { %9938 = vmatpush1.bf16.msra.mxu1 %v17899_v45  ;;  %9656 = vmatprep.subr.bf16.mxu0 %v17900_v47  ;;  %v17908_v45 = vld [vmem:[#allocation63_spill] sm:$0xff] }
  0xf8   :  { %9940 = vmatprep.subr.bf16.mxu1 %v17903_v19  ;;  %v17912_v19 = vand.u32 4294901760, %v17813_v24  ;;  %v17936_v24 = vld [vmem:[#allocation13_spill] sm:$0xff] }
  0xf9   :  { %v17937_v57 = vand.u32 4294901760, %v17936_v24  ;;  %v17950_v24 = vld [vmem:[#allocation20_spill] sm:$0xff] }
  0xfa   :  { %9658 = vmatpush1.bf16.msra.mxu0 %v17906_v3  ;;  %v13257_v14 = vpack.c.bf16 %v17913_v42, %v17912_v19  ;;  %v17932_v19 = vand.u32 4294901760, %v17931_v55  ;;  %v17945_v55 = vld [vmem:[#allocation103_spill] sm:$0xff] }
  0xfb   :  { %9942 = vmatpush1.bf16.msra.mxu1 %v17907_v56  ;;  %9660 = vmatprep.subr.bf16.mxu0 %v17908_v45  ;;  %v17916_v56 = vld [vmem:[#allocation69_spill] sm:$0xff] }
  0xfc   :  { %9944 = vmatprep.subr.bf16.mxu1 %v17911_v63  ;;  %v17921_v63 = vpack.c.bf16 %v17777_v44, %v17809_v12  ;;  %v17928_v44 = vld [vmem:[#allocation87_spill] sm:$0xff]  ;;  %v9679_v42 = vpack.c.bf16 %v17934_v11, %v17932_v19  ;;  %v17946_v19 = vld [vmem:[#allocation105_spill] sm:$0xff]  ;;  %v17949_v11 = vand.u32 4294901760, %v17948_v54 }
  0xfd   :  { %v17929_v12 = vld [vmem:[#allocation99_spill] sm:$0xff]  ;;  %v17960_v54 = vld [vmem:[#allocation25_spill] sm:$0xff] }
  0xfe   :  { %9662 = vmatpush1.bf16.msra.mxu0 %v17914_v16 }
  0xff   :  { %9946 = vmatpush1.bf16.msra.mxu1 %v17915_v37  ;;  %9664 = vmatprep.subr.bf16.mxu0 %v17916_v56  ;;  %v17935_v37 = vld [vmem:[#allocation92_spill] sm:$0xff] }
 0x100   :  { %9948 = vmatprep.subr.bf16.mxu1 %v17917_v53  ;;  %v17938_v53 = vld [vmem:[#allocation14_spill] sm:$0xff] }
 0x102   :  { %9666 = vmatpush1.bf16.msra.mxu0 %v17918_v58 }
 0x103   :  { %9950 = vmatpush1.bf16.msra.mxu1 %v17919_v21  ;;  %9668 = vmatprep.subr.bf16.mxu0 %v17920_v62  ;;  %v17939_v21 = vand.u32 4294901760, %v17938_v53 }
 0x104   :  { %9952 = vmatprep.subr.bf16.mxu1 %v17921_v63 }
 0x105   :  { %v9681_v63 = vpack.c.bf16 %v17939_v21, %v17937_v57  ;;  %v17951_v57 = vand.u32 4294901760, %v17950_v24  ;;  %v17952_v21 = vld [vmem:[#allocation111_spill] sm:$0xff] }
 0x106   :  { %9670 = vmatpush1.bf16.msra.mxu0 %v17922_v13 }
 0x107   :  { %9954 = vmatpush1.bf16.msra.mxu1 %v17923_v5  ;;  %9672 = vmatprep.subr.bf16.mxu0 %v17924_v59  ;;  %v17940_v5 = vld [vmem:[#allocation95_spill] sm:$0xff]  ;;  %v9685_v53 = vpack.c.bf16 %v17951_v57, %v17949_v11  ;;  %v17961_v11 = vand.u32 4294901760, %v17960_v54 }
 0x108   :  { %9956 = vmatprep.subr.bf16.mxu1 %v17925_v27  ;;  %v17941_v27 = vld [vmem:[#allocation16_spill] sm:$0xff]  ;;  %v17972_v54 = vld [vmem:[#allocation31_spill] sm:$0xff] }
 0x10a   :  { %9674 = vmatpush1.bf16.msra.mxu0 %v17926_v28 }
 0x10b   :  { %9958 = vmatpush1.bf16.msra.mxu1 %v17927_v43  ;;  %9676 = vmatprep.subr.bf16.mxu0 %v17928_v44  ;;  %v17942_v43 = vand.u32 4294901760, %v17941_v27 }
 0x10c   :  { %2326 = vmatprep.subr.mxu1 %v12978_v18 }
 0x10e   :  { %9678 = vmatpush1.bf16.msra.mxu0 %v17929_v12 }
 0x10f   :  { %2329 = vmatpush1.msra.mxu1 %v12702_v40  ;;  %1098 = vmatprep.subr.mxu0 %v17930_v33  ;;  %v17943_v40 = vld [vmem:[#allocation17_spill] sm:$0xff] }
 0x110   :  { %9960 = vmatprep.subr.bf16.mxu1 %v17935_v37  ;;  %2341 = vmatmul.mubr.f32.vlgmr.msra.gmra.mrb[0].mxu1 %v17818_v7  ;;  %v17944_v33 = vand.u32 4294901760, %v17943_v40  ;;  %v17947_v7 = vld [vmem:[#allocation110_spill] sm:$0xff] }
 0x111   :  { %9962 = vmatpush1.bf16.msra.mxu1 %v17940_v5  ;;  %2348 = vmatprep.mubr.f32.mxu1 %v17822_v41  ;;  %v17953_v40 = vld [vmem:[#allocation22_spill] sm:$0xff]  ;;  %v17997_v5 = vld [vmem:[#allocation44_spill] sm:$0xff] }
 0x112   :  { %v9683_v12 = vpack.c.bf16 %v17944_v33, %v17942_v43  ;;  %1100 = vmatpush1.msra.mxu0 %v17945_v55  ;;  %9964 = vmatprep.subr.bf16.mxu1 %v17946_v19  ;;  %v17954_v41 = vand.u32 4294901760, %v17953_v40  ;;  %v17955_v33 = vld [vmem:[#allocation23_spill] sm:$0xff]  ;;  %v17957_v19 = vld [vmem:[#allocation114_spill] sm:$0xff]  ;;  %v17965_v40 = vld [vmem:[#allocation28_spill] sm:$0xff] }
 0x113   :  { %9680 = vmatprep.subr.bf16.mxu0 %v9679_v42  ;;  %1114 = vmatmul.mubr.f32.vlgmr.msra.gmra.mrb[0].mxu0 %v17947_v7  ;;  %v17956_v27 = vand.u32 4294901760, %v17955_v33  ;;  %v17958_v42 = vld [vmem:[#allocation169_spill] sm:$0xff]  ;;  %v17994_v55 = vld [vmem:[#allocation124_spill] sm:$0xff] }
 0x114   :  { %9682 = vmatpush1.bf16.msra.mxu0 %v9681_v63  ;;  %2351 = vmatmul.mubr.f32.gmra.mrb[2].mxu1 %v17824_v8  ;;  %v17959_v63 = vld [vmem:[#allocation168_spill] sm:$0xff]  ;;  %v17962_v8 = vld [vmem:[#allocation26_spill] sm:$0xff]  ;;  %v17967_v33 = vld [vmem:[#allocation29_spill] sm:$0xff] }
 0x115   :  { %9966 = vmatpush1.bf16.msra.mxu1 %v17952_v21  ;;  %9684 = vmatprep.subr.bf16.mxu0 %v9683_v12  ;;  %v9687_v43 = vpack.c.bf16 %v17956_v27, %v17954_v41  ;;  %v17963_v24 = vand.u32 4294901760, %v17962_v8  ;;  %v17964_v12 = vld [vmem:[#allocation118_spill] sm:$0xff]  ;;  %v17966_v41 = vand.u32 4294901760, %v17965_v40  ;;  %v17968_v27 = vand.u32 4294901760, %v17967_v33  ;;  %v17969_v21 = vld [vmem:[#allocation120_spill] sm:$0xff]  ;;  %v17979_v33 = vld [vmem:[#allocation35_spill] sm:$0xff] }
 0x116   :  { %9968 = vmatprep.subr.bf16.mxu1 %v17957_v19  ;;  %1122 = vmatprep.mubr.f32.mxu0 %v17958_v42  ;;  %v17977_v40 = vld [vmem:[#allocation34_spill] sm:$0xff] }
 0x117   :  { %2358 = vmatprep.mubr.f32.mxu1 %v17828_v25  ;;  %1126 = vmatmul.mubr.f32.gmra.mrb[2].mxu0 %v17959_v63  ;;  %v9689_v57 = vpack.c.bf16 %v17963_v24, %v17961_v11  ;;  %v9691_v19 = vpack.c.bf16 %v17968_v27, %v17966_v41  ;;  %v17970_v25 = vld [vmem:[#allocation182_spill] sm:$0xff]  ;;  %v17973_v11 = vand.u32 4294901760, %v17972_v54  ;;  %v17978_v41 = vand.u32 4294901760, %v17977_v40  ;;  %v17984_v54 = vld [vmem:[#allocation37_spill] sm:$0xff]  ;;  %v17989_v40 = vld [vmem:[#allocation123_spill] sm:$0xff] }
 0x118   :  { %9686 = vmatpush1.bf16.msra.mxu0 %v9685_v53  ;;  %2361 = vmatmul.mubr.f32.gmra.mrb[4].mxu1 %v17830_v51  ;;  %v17971_v53 = vld [vmem:[#allocation183_spill] sm:$0xff]  ;;  %v17974_v51 = vld [vmem:[#allocation32_spill] sm:$0xff]  ;;  %v17980_v27 = vand.u32 4294901760, %v17979_v33 }
 0x119   :  { %9970 = vmatpush1.bf16.msra.mxu1 %v17964_v12  ;;  %9688 = vmatprep.subr.bf16.mxu0 %v9687_v43  ;;  %v17975_v8 = vand.u32 4294901760, %v17974_v51  ;;  %v17976_v43 = vld [vmem:[#allocation121_spill] sm:$0xff]  ;;  %v17981_v12 = vld [vmem:[#allocation122_spill] sm:$0xff] }
 0x11a   :  { %9972 = vmatprep.subr.bf16.mxu1 %v17969_v21  ;;  %1134 = vmatprep.mubr.f32.mxu0 %v17970_v25  ;;  %v9695_v21 = vpack.c.bf16 %v17980_v27, %v17978_v41  ;;  %v17990_v41 = vld [vmem:[#allocation40_spill] sm:$0xff]  ;;  %v17992_v27 = vld [vmem:[#allocation41_spill] sm:$0xff] }
 0x11b   :  { %2368 = vmatprep.mubr.f32.mxu1 %v17856_v35  ;;  %1138 = vmatmul.mubr.f32.gmra.mrb[4].mxu0 %v17971_v53  ;;  %v9693_v24 = vpack.c.bf16 %v17975_v8, %v17973_v11  ;;  %v17982_v35 = vld [vmem:[#allocation189_spill] sm:$0xff]  ;;  %v17985_v11 = vand.u32 4294901760, %v17984_v54  ;;  %v17991_v33 = vand.u32 4294901760, %v17990_v41  ;;  %v17998_v54 = vand.u32 4294901760, %v17997_v5  ;;  %v18004_v41 = vld [vmem:[#allocation126_spill] sm:$0xff]  ;;  %v18010_v5 = vld [vmem:[#allocation52_spill] sm:$0xff] }
 0x11c   :  { %9690 = vmatpush1.bf16.msra.mxu0 %v9689_v57  ;;  %2371 = vmatmul.mubr.f32.gmra.mrb[6].mxu1 %v17861_v46  ;;  %v17983_v57 = vld [vmem:[#allocation191_spill] sm:$0xff]  ;;  %v17986_v46 = vld [vmem:[#allocation38_spill] sm:$0xff] }
 0x11d   :  { %9974 = vmatpush1.bf16.msra.mxu1 %v17976_v43  ;;  %9692 = vmatprep.subr.bf16.mxu0 %v9691_v19  ;;  %v17987_v51 = vand.u32 4294901760, %v17986_v46  ;;  %v17988_v19 = vld [vmem:[#allocation101_spill] sm:$0xff] }
 0x11e   :  { %9976 = vmatprep.subr.bf16.mxu1 %v17981_v12  ;;  %1146 = vmatprep.mubr.f32.mxu0 %v17982_v35  ;;  %v17993_v12 = vand.u32 4294901760, %v17992_v27  ;;  %v17999_v46 = vld [vmem:[#allocation125_spill] sm:$0xff]  ;;  %v18007_v27 = vld [vmem:[#allocation50_spill] sm:$0xff] }
 0x11f   :  { %2502 = vmatprep.mubr.f32.mxu1 %v17866_v20  ;;  %1150 = vmatmul.mubr.f32.gmra.mrb[6].mxu0 %v17983_v57  ;;  %v9697_v8 = vpack.c.bf16 %v17987_v51, %v17985_v11  ;;  %v17995_v20 = vld [vmem:[#allocation43_spill] sm:$0xff]  ;;  %v18000_v11 = vld [vmem:[#allocation46_spill] sm:$0xff] }
 0x120   :  { %9694 = vmatpush1.bf16.msra.mxu0 %v9693_v24  ;;  %1395 = vmatprep.mubr.f32.mxu0 %v17988_v19  ;;  %v9699_v43 = vpack.c.bf16 %v17993_v12, %v17991_v33  ;;  %v17996_v24 = vand.u32 4294901760, %v17995_v20  ;;  %v18001_v51 = vand.u32 4294901760, %v18000_v11  ;;  %v18005_v12 = vld [vmem:[#allocation49_spill] sm:$0xff]  ;;  %v18009_v20 = vld [vmem:[#allocation127_spill] sm:$0xff] }
 0x121   :  { %9978 = vmatpush1.bf16.msra.mxu1 %v17989_v40  ;;  %9696 = vmatprep.subr.bf16.mxu0 %v9695_v21  ;;  %v18002_v40 = vld [vmem:[#allocation47_spill] sm:$0xff]  ;;  %v18006_v33 = vand.u32 4294901760, %v18005_v12  ;;  %v18014_v11 = vld [vmem:[#allocation129_spill] sm:$0xff]  ;;  %v18019_v12 = vld [vmem:[#allocation132_spill] sm:$0xff] }
 0x122   :  { %9980 = vmatprep.subr.bf16.mxu1 %v17994_v55  ;;  %v9701_v37 = vpack.c.bf16 %v17998_v54, %v17996_v24  ;;  %v18003_v21 = vand.u32 4294901760, %v18002_v40  ;;  %v18011_v24 = vand.u32 4294901760, %v18010_v5  ;;  %v18012_v54 = vld [vmem:[#allocation53_spill] sm:$0xff]  ;;  %v18015_v40 = vld [vmem:[#allocation55_spill] sm:$0xff]  ;;  %v18024_v5 = vld [vmem:[#allocation134_spill] sm:$0xff] }
 0x124   :  { %9698 = vmatpush1.bf16.msra.mxu0 %v9697_v8  ;;  %v9703_v18 = vpack.c.bf16 %v18003_v21, %v18001_v51  ;;  %v18008_v8 = vand.u32 4294901760, %v18007_v27  ;;  %v18016_v51 = vand.u32 4294901760, %v18015_v40  ;;  %v18017_v21 = vld [vmem:[#allocation56_spill] sm:$0xff]  ;;  %v18029_v40 = vld [vmem:[#allocation138_spill] sm:$0xff] }
 0x125   :  { %9982 = vmatpush1.bf16.msra.mxu1 %v17999_v46  ;;  %9700 = vmatprep.subr.bf16.mxu0 %v9699_v43  ;;  %v18013_v43 = vand.u32 4294901760, %v18012_v54 }
 0x126   :  { %9984 = vmatprep.subr.bf16.mxu1 %v18004_v41  ;;  %v9705_v55 = vpack.c.bf16 %v18008_v8, %v18006_v33  ;;  %v18020_v33 = vld [vmem:[#allocation58_spill] sm:$0xff]  ;;  %v18022_v8 = vld [vmem:[#allocation59_spill] sm:$0xff] }
 0x127   :  { %v9707_v46 = vpack.c.bf16 %v18013_v43, %v18011_v24  ;;  %v18021_v27 = vand.u32 4294901760, %v18020_v33  ;;  %v18025_v24 = vld [vmem:[#allocation61_spill] sm:$0xff]  ;;  %v18027_v43 = vld [vmem:[#allocation62_spill] sm:$0xff] }
 0x128   :  { %9702 = vmatpush1.bf16.msra.mxu0 %v9701_v37  ;;  %v18018_v37 = vand.u32 4294901760, %v18017_v21  ;;  %v18026_v54 = vand.u32 4294901760, %v18025_v24  ;;  %v18034_v33 = vld [vmem:[#allocation141_spill] sm:$0xff]  ;;  %v18039_v24 = vld [vmem:[#allocation144_spill] sm:$0xff] }
 0x129   :  { %9986 = vmatpush1.bf16.msra.mxu1 %v18009_v20  ;;  %9704 = vmatprep.subr.bf16.mxu0 %v9703_v18  ;;  %v18023_v18 = vand.u32 4294901760, %v18022_v8 }
 0x12a   :  { %9988 = vmatprep.subr.bf16.mxu1 %v18014_v11  ;;  %v9709_v41 = vpack.c.bf16 %v18018_v37, %v18016_v51  ;;  %v18030_v51 = vld [vmem:[#allocation64_spill] sm:$0xff]  ;;  %v18032_v37 = vld [vmem:[#allocation65_spill] sm:$0xff] }
 0x12b   :  { %v9711_v20 = vpack.c.bf16 %v18023_v18, %v18021_v27  ;;  %v18031_v21 = vand.u32 4294901760, %v18030_v51  ;;  %v18035_v27 = vld [vmem:[#allocation67_spill] sm:$0xff]  ;;  %v18037_v18 = vld [vmem:[#allocation68_spill] sm:$0xff]  ;;  %v18044_v51 = vld [vmem:[#allocation146_spill] sm:$0xff] }
 0x12c   :  { %9706 = vmatpush1.bf16.msra.mxu0 %v9705_v55  ;;  %v18028_v55 = vand.u32 4294901760, %v18027_v43  ;;  %v18036_v8 = vand.u32 4294901760, %v18035_v27  ;;  %v18049_v27 = vld [vmem:[#allocation150_spill] sm:$0xff] }
 0x12d   :  { %9990 = vmatpush1.bf16.msra.mxu1 %v18019_v12  ;;  %9708 = vmatprep.subr.bf16.mxu0 %v9707_v46  ;;  %v18033_v46 = vand.u32 4294901760, %v18032_v37 }
 0x12e   :  { %9992 = vmatprep.subr.bf16.mxu1 %v18024_v5  ;;  %v9713_v11 = vpack.c.bf16 %v18028_v55, %v18026_v54  ;;  %v18040_v54 = vld [vmem:[#allocation70_spill] sm:$0xff]  ;;  %v18042_v55 = vld [vmem:[#allocation71_spill] sm:$0xff] }
 0x12f   :  { %v9715_v12 = vpack.c.bf16 %v18033_v46, %v18031_v21  ;;  %v18041_v43 = vand.u32 4294901760, %v18040_v54  ;;  %v18045_v21 = vld [vmem:[#allocation73_spill] sm:$0xff]  ;;  %v18047_v46 = vld [vmem:[#allocation74_spill] sm:$0xff] }
 0x130   :  { %9710 = vmatpush1.bf16.msra.mxu0 %v9709_v41  ;;  %v18038_v41 = vand.u32 4294901760, %v18037_v18  ;;  %v18046_v37 = vand.u32 4294901760, %v18045_v21  ;;  %v18054_v54 = vld [vmem:[#allocation153_spill] sm:$0xff]  ;;  %v18059_v21 = vld [vmem:[#allocation156_spill] sm:$0xff] }
 0x131   :  { %9994 = vmatpush1.bf16.msra.mxu1 %v18029_v40  ;;  %9712 = vmatprep.subr.bf16.mxu0 %v9711_v20  ;;  %v18043_v20 = vand.u32 4294901760, %v18042_v55 }
 0x132   :  { %9996 = vmatprep.subr.bf16.mxu1 %v18034_v33  ;;  %v9717_v5 = vpack.c.bf16 %v18038_v41, %v18036_v8  ;;  %v18050_v8 = vld [vmem:[#allocation76_spill] sm:$0xff]  ;;  %v18052_v41 = vld [vmem:[#allocation77_spill] sm:$0xff] }
 0x133   :  { %v9719_v40 = vpack.c.bf16 %v18043_v20, %v18041_v43  ;;  %v18051_v18 = vand.u32 4294901760, %v18050_v8  ;;  %v18055_v43 = vld [vmem:[#allocation79_spill] sm:$0xff]  ;;  %v18057_v20 = vld [vmem:[#allocation80_spill] sm:$0xff]  ;;  %v18064_v8 = vld [vmem:[#allocation158_spill] sm:$0xff] }
 0x134   :  { %9714 = vmatpush1.bf16.msra.mxu0 %v9713_v11  ;;  %v18048_v11 = vand.u32 4294901760, %v18047_v46  ;;  %v18056_v55 = vand.u32 4294901760, %v18055_v43  ;;  %v18069_v43 = vld [vmem:[#allocation164_spill] sm:$0xff] }
 0x135   :  { %9998 = vmatpush1.bf16.msra.mxu1 %v18039_v24  ;;  %9716 = vmatprep.subr.bf16.mxu0 %v9715_v12  ;;  %v18053_v12 = vand.u32 4294901760, %v18052_v41 }
 0x136   :  { %10000 = vmatprep.subr.bf16.mxu1 %v18044_v51  ;;  %v9721_v33 = vpack.c.bf16 %v18048_v11, %v18046_v37  ;;  %v18060_v37 = vld [vmem:[#allocation81_spill] sm:$0xff]  ;;  %v18062_v11 = vld [vmem:[#allocation83_spill] sm:$0xff] }
 0x137   :  { %v9723_v24 = vpack.c.bf16 %v18053_v12, %v18051_v18  ;;  %v18061_v46 = vand.u32 4294901760, %v18060_v37  ;;  %v18065_v18 = vld [vmem:[#allocation84_spill] sm:$0xff]  ;;  %v18067_v12 = vld [vmem:[#allocation85_spill] sm:$0xff]  ;;  %v18073_v37 = vld [vmem:[#allocation171_spill] sm:$0xff] }
 0x138   :  { %9718 = vmatpush1.bf16.msra.mxu0 %v9717_v5  ;;  %v18058_v5 = vand.u32 4294901760, %v18057_v20  ;;  %v18066_v41 = vand.u32 4294901760, %v18065_v18  ;;  %v18071_v20 = vld [vmem:[#allocation89_spill] sm:$0xff] }
 0x139   :  { %10002 = vmatpush1.bf16.msra.mxu1 %v18049_v27  ;;  %9720 = vmatprep.subr.bf16.mxu0 %v9719_v40  ;;  %v18063_v40 = vand.u32 4294901760, %v18062_v11  ;;  %v18078_v18 = vld [vmem:[#allocation173_spill] sm:$0xff] }
 0x13a   :  { %10004 = vmatprep.subr.bf16.mxu1 %v18054_v54  ;;  %v9725_v51 = vpack.c.bf16 %v18058_v5, %v18056_v55  ;;  %v18070_v55 = vand.u32 4294901760, %v17792_v2 }
 0x13b   :  { %v9727_v27 = vpack.c.bf16 %v18063_v40, %v18061_v46  ;;  %v18074_v46 = vld [vmem:[#allocation90_spill] sm:$0xff]  ;;  %v18076_v40 = vld [vmem:[#allocation91_spill] sm:$0xff] }
 0x13c   :  { %9722 = vmatpush1.bf16.msra.mxu0 %v9721_v33  ;;  %v18068_v33 = vand.u32 4294901760, %v18067_v12  ;;  %v18075_v11 = vand.u32 4294901760, %v18074_v46  ;;  %v18080_v12 = vld [vmem:[#allocation93_spill] sm:$0xff]  ;;  %v18088_v46 = vld [vmem:[#allocation106_spill] sm:$0xff] }
 0x13d   :  { %10006 = vmatpush1.bf16.msra.mxu1 %v18059_v21  ;;  %9724 = vmatprep.subr.bf16.mxu0 %v9723_v24  ;;  %v18072_v24 = vand.u32 4294901760, %v18071_v20  ;;  %v18084_v20 = vld [vmem:[#allocation96_spill] sm:$0xff]  ;;  %v18089_v21 = vand.u32 4294901760, %v18088_v46  ;;  %v18104_v46 = vld [vmem:[#allocation115_spill] sm:$0xff] }
 0x13e   :  { %10008 = vmatprep.subr.bf16.mxu1 %v18064_v8  ;;  %v9729_v54 = vpack.c.bf16 %v18068_v33, %v18066_v41  ;;  %v18079_v41 = vld [vmem:[#allocation181_spill] sm:$0xff]  ;;  %v18082_v33 = vld [vmem:[#allocation94_spill] sm:$0xff] }
 0x13f   :  { %v9731_v5 = vpack.c.bf16 %v18072_v24, %v18070_v55  ;;  %v18083_v2 = vand.u32 4294901760, %v18082_v33  ;;  %v18085_v55 = vand.u32 4294901760, %v18084_v20  ;;  %v18086_v24 = vld [vmem:[#allocation97_spill] sm:$0xff]  ;;  %v13491_v20 = vld [vmem:[%s16572_s3 + $0x10] sm:$0xff] }
 0x140   :  { %9726 = vmatpush1.bf16.msra.mxu0 %v9725_v51  ;;  %v18077_v51 = vand.u32 4294901760, %v18076_v40  ;;  %v18090_v40 = vld [vmem:[#allocation107_spill] sm:$0xff]  ;;  %18101 = vst [vmem:[#allocation152_spill] sm:$0xff] %v13491_v20 }
 0x141   :  { %10010 = vmatpush1.bf16.msra.mxu1 %v18069_v43  ;;  %9728 = vmatprep.subr.bf16.mxu0 %v9727_v27  ;;  %v18081_v27 = vand.u32 4294901760, %v18080_v12  ;;  %v13469_v12 = vld [vmem:[%s16572_s3 + $0x8] sm:$0xff] }
 0x142   :  { %10012 = vmatprep.subr.bf16.mxu1 %v18073_v37  ;;  %v9733_v8 = vpack.c.bf16 %v18077_v51, %v18075_v11  ;;  %v18087_v37 = vand.u32 4294901760, %v18086_v24  ;;  %v18091_v11 = vand.u32 4294901760, %v18090_v40  ;;  %v17017_v33 = vand.u32 4294901760, %v13469_v12  ;;  %v13501_v24 = vld [vmem:[%s16572_s3 + $0x38] sm:$0xff] }
 0x143   :  { %v10015_v43 = vpack.c.bf16 %v18083_v2, %v18081_v27  ;;  %v18105_v40 = vand.u32 4294901760, %v18104_v46  ;;  %v18110_v46 = vld [vmem:[#allocation102_spill] sm:$0xff] }
 0x144   :  { %9730 = vmatpush1.bf16.msra.mxu0 %v9729_v54  ;;  %v10017_v54 = vpack.c.bf16 %v18087_v37, %v18085_v55  ;;  %v10019_v51 = vpack.c.bf16 %v18091_v11, %v18089_v21  ;;  %v13479_v21 = vld [vmem:[%s16572_s3] sm:$0xff]  ;;  %v13496_v55 = vld [vmem:[%s16572_s3 + $0x28] sm:$0xff] }
 0x145   :  { %10014 = vmatpush1.bf16.msra.mxu1 %v18078_v18  ;;  %9732 = vmatprep.subr.bf16.mxu0 %v9731_v5  ;;  %v18092_v18 = vld [vmem:[#allocation184_spill] sm:$0xff]  ;;  %v18093_v5 = vld [vmem:[#allocation98_spill] sm:$0xff]  ;;  %18096 = vst [vmem:[#allocation142_spill] sm:$0xff] %v13479_v21 }
 0x146   :  { %2490 = vmatprep.subr.mxu1 %v18079_v41  ;;  %v18094_v41 = vand.u32 4294901760, %v18093_v5  ;;  %v18097_v37 = vld [vmem:[#allocation112_spill] sm:$0xff] }
 0x147   :  { %v18106_v11 = vld [vmem:[#allocation116_spill] sm:$0xff] }
 0x148   :  { %9734 = vmatpush1.bf16.msra.mxu0 %v9733_v8  ;;  %v13474_v8 = vld [vmem:[%s16572_s3 + $0x18] sm:$0xff]  ;;  %v18107_v5 = vand.u32 4294901760, %v18106_v11 }
 0x149   :  { %2492 = vmatpush1.msra.mxu1 %v18092_v18  ;;  %1383 = vmatprep.subr.mxu0 %v18094_v41  ;;  %18095 = vst [vmem:[#allocation140_spill] sm:$0xff] %v13474_v8  ;;  %v18099_v41 = vld [vmem:[#allocation113_spill] sm:$0xff]  ;;  %v17019_v2 = vand.u32 4294901760, %v13474_v8 }
 0x14a   :  { %10016 = vmatprep.subr.bf16.mxu1 %v10015_v43  ;;  %2506 = vmatmul.mubr.f32.vlgmr.msra.gmra.mrb[0].mxu1 %v17947_v7  ;;  %v18098_v43 = vand.u32 4294901760, %v18097_v37  ;;  %v18100_v7 = vand.u32 4294901760, %v18099_v41  ;;  %v10023_v37 = vpack.c.bf16 %v18107_v5, %v18105_v40  ;;  %v13531_v40 = vsub.f32 %v13469_v12, %v17017_v33 }
 0x14b   :  { %10018 = vmatpush1.bf16.msra.mxu1 %v10017_v54  ;;  %2514 = vmatprep.mubr.f32.mxu1 %v17958_v42  ;;  %v18102_v42 = vld [vmem:[#allocation185_spill] sm:$0xff]  ;;  %v13536_v11 = vsub.f32 %v13474_v8, %v17019_v2  ;;  %v18114_v33 = vand.u32 4294901760, %v13479_v21  ;;  %v18116_v2 = vand.u32 4294901760, %v13491_v20 }
 0x14c   :  { %v10021_v27 = vpack.c.bf16 %v18100_v7, %v18098_v43  ;;  %v18103_v54 = vand.u32 4294901760, %v18102_v42  ;;  %10020 = vmatprep.subr.bf16.mxu1 %v10019_v51  ;;  %v13514_v7 = vld [vmem:[%s16572_s3 + $0x20] sm:$0xff]  ;;  %v13519_v42 = vld [vmem:[%s16572_s3 + $0x30] sm:$0xff]  ;;  %v13524_v51 = vld [vmem:[%s16572_s3 + $0x48] sm:$0xff]  ;;  %18111 = vst [vmem:[#allocation161_spill] sm:$0xff] %v13531_v40 }
 0x14d   :  { %18108 = vst [vmem:[#allocation160_spill] sm:$0xff] %v13519_v42  ;;  %18112 = vst [vmem:[#allocation170_spill] sm:$0xff] %v13536_v11  ;;  %v18113_v43 = vld [vmem:[#allocation12_spill] sm:$0xff]  ;;  %v13550_v40 = vsub.f32 %v13479_v21, %v18114_v33  ;;  %v13555_v5 = vsub.f32 %v13491_v20, %v18116_v2  ;;  %v18120_v33 = vld [vmem:[#allocation15_spill] sm:$0xff]  ;;  %v18125_v11 = vand.u32 4294901760, %v13496_v55  ;;  %v18127_v21 = vand.u32 4294901760, %v13501_v24 }
 0x14e   :  { %1387 = vmatpush1.msra.mxu0 %v18103_v54  ;;  %v18109_v54 = vld [vmem:[#allocation9_spill] sm:$0xff]  ;;  %2518 = vmatmul.mubr.f32.gmra.mrb[2].mxu1 %v17959_v63  ;;  %v13567_v63 = vld [vmem:[%s16572_s3 + $0x50] sm:$0xff] }
 0x14f   :  { %9736 = vmatprep.subr.bf16.mxu0 %v18109_v54  ;;  %1397 = vmatmul.mubr.f32.vlgmr.msra.gmra.mrb[0].mxu0 %v18110_v46  ;;  %v13543_v54 = vld [vmem:[%s16572_s3 + $0x58] sm:$0xff]  ;;  %18115 = vst [vmem:[#allocation175_spill] sm:$0xff] %v13550_v40  ;;  %18117 = vst [vmem:[#allocation179_spill] sm:$0xff] %v13555_v5  ;;  %v18121_v40 = vld [vmem:[#allocation117_spill] sm:$0xff]  ;;  %v13577_v20 = vsub.f32 %v13496_v55, %v18125_v11  ;;  %v13582_v46 = vsub.f32 %v13501_v24, %v18127_v21  ;;  %v18131_v11 = vand.u32 4294901760, %v13514_v7 }
 0x150   :  { %9738 = vmatpush1.bf16.msra.mxu0 %v18113_v43  ;;  %v13562_v43 = vld [vmem:[%s16572_s3 + $0x40] sm:$0xff]  ;;  %18119 = vst [vmem:[#allocation143_spill] sm:$0xff] %v13567_v63  ;;  %10022 = vmatpush1.bf16.msra.mxu1 %v10021_v27  ;;  %v18122_v2 = vand.u32 4294901760, %v18121_v40  ;;  %v18123_v5 = vld [vmem:[#allocation119_spill] sm:$0xff]  ;;  %v13588_v27 = vld [vmem:[%s16572_s3 + $0x68] sm:$0xff] }
 0x151   :  { %18118 = vst [vmem:[#allocation88_spill] sm:$0xff] %v13562_v43  ;;  %9740 = vmatprep.subr.bf16.mxu0 %v18120_v33  ;;  %v18124_v18 = vand.u32 4294901760, %v18123_v5  ;;  %18126 = vst [vmem:[#allocation145_spill] sm:$0xff] %v13577_v20  ;;  %10024 = vmatprep.subr.bf16.mxu1 %v10023_v37  ;;  %v18130_v40 = vld [vmem:[#allocation163_spill] sm:$0xff]  ;;  %v13599_v21 = vsub.f32 %v13514_v7, %v18131_v11  ;;  %v18133_v5 = vand.u32 4294901760, %v13519_v42  ;;  %v13610_v8 = vld [vmem:[%s16572_s3 + $0x60] sm:$0xff] }
 0x152   :  { %18128 = vst [vmem:[#allocation147_spill] sm:$0xff] %v13582_v46  ;;  %1403 = vmatprep.mubr.f32.mxu0 %v18130_v40  ;;  %v13615_v37 = vld [vmem:[%s16572_s3 + $0x70] sm:$0xff]  ;;  %2526 = vmatprep.mubr.f32.mxu1 %v17970_v25  ;;  %v18137_v11 = vand.u32 4294901760, %v13524_v51  ;;  %v18141_v25 = vand.u32 4294901760, %v13543_v54 }
 0x153   :  { %v10025_v41 = vpack.c.bf16 %v18124_v18, %v18122_v2  ;;  %v13593_v18 = vld [vmem:[%s16572_s3 + $0x78] sm:$0xff]  ;;  %18132 = vst [vmem:[#allocation149_spill] sm:$0xff] %v13599_v21  ;;  %v13604_v33 = vsub.f32 %v13519_v42, %v18133_v5  ;;  %18135 = vst [vmem:[#allocation154_spill] sm:$0xff] %v13615_v37  ;;  %v18136_v46 = vld [vmem:[#allocation162_spill] sm:$0xff]  ;;  %2530 = vmatmul.mubr.f32.gmra.mrb[4].mxu1 %v17971_v53 }
 0x154   :  { %18129 = vst [vmem:[#allocation148_spill] sm:$0xff] %v13593_v18  ;;  %1405 = vmatmul.mubr.f32.gmra.mrb[2].mxu0 %v18136_v46  ;;  %v13622_v5 = vsub.f32 %v13524_v51, %v18137_v11  ;;  %v13629_v21 = vld [vmem:[%s16572_s3 + $0x88] sm:$0xff]  ;;  %v13636_v42 = vsub.f32 %v13543_v54, %v18141_v25  ;;  %v18147_v25 = vand.u32 4294901760, %v13567_v63  ;;  %v18154_v11 = vand.u32 4294901760, %v13593_v18  ;;  %2538 = vmatprep.mubr.f32.mxu1 %v17982_v35  ;;  %v13712_v35 = vld [vmem:[%s16572_s3 + $0xb0] sm:$0xff] }
 0x155   :  { %18134 = vst [vmem:[#allocation151_spill] sm:$0xff] %v13604_v33  ;;  %18139 = vst [vmem:[#allocation157_spill] sm:$0xff] %v13629_v21  ;;  %v18140_v20 = vld [vmem:[#allocation18_spill] sm:$0xff]  ;;  %v13643_v33 = vld [vmem:[%s16572_s3 + $0x98] sm:$0xff]  ;;  %10026 = vmatpush1.bf16.msra.mxu1 %v10025_v41 }
 0x156   :  { %18138 = vst [vmem:[#allocation155_spill] sm:$0xff] %v13622_v5  ;;  %9742 = vmatpush1.bf16.msra.mxu0 %v18140_v20  ;;  %18142 = vst [vmem:[#allocation159_spill] sm:$0xff] %v13636_v42  ;;  %v18144_v5 = vld [vmem:[#allocation21_spill] sm:$0xff]  ;;  %v18145_v20 = vand.u32 4294901760, %v13562_v43  ;;  %v13654_v42 = vsub.f32 %v13567_v63, %v18147_v25  ;;  %10028 = vmatprep.subr.bf16.mxu1 %v13073_v17  ;;  %v18152_v25 = vand.u32 4294901760, %v13588_v27  ;;  %v13689_v17 = vld [vmem:[%s16572_s3 + $0xb8] sm:$0xff] }
 0x157   :  { %18143 = vst [vmem:[#allocation165_spill] sm:$0xff] %v13643_v33  ;;  %9744 = vmatprep.subr.bf16.mxu0 %v18144_v5  ;;  %v13661_v41 = vld [vmem:[%s16572_s3 + $0x80] sm:$0xff]  ;;  %v13666_v5 = vld [vmem:[%s16572_s3 + $0x90] sm:$0xff]  ;;  %v13684_v63 = vld [vmem:[%s16572_s3 + $0xa8] sm:$0xff]  ;;  %2542 = vmatmul.mubr.f32.gmra.mrb[6].mxu1 %v17983_v57 }
 0x158   :  { %v13649_v53 = vsub.f32 %v13562_v43, %v18145_v20  ;;  %18148 = vst [vmem:[#allocation174_spill] sm:$0xff] %v13654_v42  ;;  %18149 = vst [vmem:[#allocation109_spill] sm:$0xff] %v13661_v41  ;;  %v18151_v20 = vld [vmem:[#allocation176_spill] sm:$0xff]  ;;  %v13673_v2 = vsub.f32 %v13588_v27, %v18152_v25  ;;  %v13678_v42 = vsub.f32 %v13593_v18, %v18154_v11  ;;  %v18158_v43 = vld [vmem:[#allocation177_spill] sm:$0xff]  ;;  %v18159_v25 = vand.u32 4294901760, %v13610_v8 }
 0x159   :  { %18150 = vst [vmem:[#allocation167_spill] sm:$0xff] %v13666_v5  ;;  %1411 = vmatprep.mubr.f32.mxu0 %v18151_v20  ;;  %18156 = vst [vmem:[#allocation180_spill] sm:$0xff] %v13684_v63  ;;  %v13707_v18 = vld [vmem:[%s16572_s3 + $0xa0] sm:$0xff]  ;;  %10030 = vmatpush1.bf16.msra.mxu1 %v13079_v34  ;;  %v18169_v34 = vand.u32 4294901760, %v13661_v41 }
 0x15a   :  { %18146 = vst [vmem:[#allocation172_spill] sm:$0xff] %v13649_v53  ;;  %18153 = vst [vmem:[#allocation166_spill] sm:$0xff] %v13673_v2  ;;  %1413 = vmatmul.mubr.f32.gmra.mrb[4].mxu0 %v18158_v43  ;;  %v13696_v11 = vsub.f32 %v13610_v8, %v18159_v25  ;;  %v18161_v53 = vand.u32 4294901760, %v13615_v37  ;;  %v18163_v25 = vand.u32 4294901760, %v13629_v21  ;;  %10032 = vmatprep.subr.bf16.mxu1 %v13087_v38  ;;  %v13759_v38 = vld [vmem:[%s16572_s3 + $0xc0] sm:$0xff] }
 0x15b   :  { %18155 = vst [vmem:[#allocation178_spill] sm:$0xff] %v13678_v42  ;;  %18157 = vst [vmem:[#allocation24_spill] sm:$0xff] %v13689_v17  ;;  %9746 = vmatpush1.bf16.msra.mxu0 %v17835_v36  ;;  %v18166_v36 = vand.u32 4294901760, %v13643_v33  ;;  %2787 = vmatprep.mubr.f32.mxu1 %v17988_v19 }
 0x15c   :  { %18160 = vst [vmem:[#allocation27_spill] sm:$0xff] %v13696_v11  ;;  %v13701_v42 = vsub.f32 %v13615_v37, %v18161_v53  ;;  %v13719_v53 = vsub.f32 %v13629_v21, %v18163_v25  ;;  %v13726_v11 = vld [vmem:[%s16572_s3 + $0xc8] sm:$0xff]  ;;  %9748 = vmatprep.subr.bf16.mxu0 %v17845_v39  ;;  %v13747_v39 = vsub.f32 %v13661_v41, %v18169_v34  ;;  %v13787_v41 = vld [vmem:[%s16572_s3 + $0xf8] sm:$0xff]  ;;  %v13792_v21 = vld [vmem:[%s16572_s3 + $0xe0] sm:$0xff] }
 0x15d   :  { %18165 = vst [vmem:[#allocation190_spill] sm:$0xff] %v13726_v11  ;;  %v13733_v57 = vsub.f32 %v13643_v33, %v18166_v36  ;;  %v18171_v36 = vand.u32 4294901760, %v13666_v5  ;;  %v13764_v33 = vld [vmem:[%s16572_s3 + $0xd0] sm:$0xff]  ;;  %v13769_v34 = vld [vmem:[%s16572_s3 + $0xe8] sm:$0xff]  ;;  %v3190_v37 = vand.u32 4294901760, %v13792_v21 }
 0x15e   :  { %18162 = vst [vmem:[#allocation187_spill] sm:$0xff] %v13701_v42  ;;  %18164 = vst [vmem:[#allocation104_spill] sm:$0xff] %v13719_v53  ;;  %v13740_v42 = vld [vmem:[%s16572_s3 + $0xd8] sm:$0xff]  ;;  %v18168_v53 = vld [vmem:[#allocation186_spill] sm:$0xff] }
 0x15f   :  { %18167 = vst [vmem:[#allocation30_spill] sm:$0xff] %v13733_v57  ;;  %1419 = vmatprep.mubr.f32.mxu0 %v18168_v53  ;;  %18170 = vst [vmem:[#allocation108_spill] sm:$0xff] %v13747_v39  ;;  %v13752_v25 = vsub.f32 %v13666_v5, %v18171_v36  ;;  %v18173_v36 = vld [vmem:[#allocation188_spill] sm:$0xff]  ;;  %v18174_v57 = vand.u32 4294901760, %v13684_v63  ;;  %9750 = vmatpush1.bf16.msra.mxu0 %v17865_v60  ;;  %v18180_v5 = vand.u32 4294901760, %v13712_v35  ;;  %v18183_v60 = vand.u32 4294901760, %v13726_v11 }
 0x160   :  { %1421 = vmatmul.mubr.f32.gmra.mrb[6].mxu0 %v18173_v36  ;;  %9752 = vmatprep.subr.bf16.mxu0 %v17868_v32  ;;  %v18186_v32 = vand.u32 4294901760, %v13740_v42 }
 0x161   :  { %18172 = vst [vmem:[#allocation33_spill] sm:$0xff] %v13752_v25  ;;  %v13776_v2 = vsub.f32 %v13684_v63, %v18174_v57  ;;  %v18176_v25 = vand.u32 4294901760, %v13689_v17  ;;  %1550 = vmatprep.mubr.f32.mxu0 %v17988_v19  ;;  %v18178_v57 = vand.u32 4294901760, %v13707_v18  ;;  %v13812_v63 = vsub.f32 %v13726_v11, %v18183_v60 }
 0x162   :  { %v17060_v60 = vand.u32 4294901760, %v13787_v41 }
 0x163   :  { %18175 = vst [vmem:[#allocation36_spill] sm:$0xff] %v13776_v2  ;;  %v13781_v39 = vsub.f32 %v13689_v17, %v18176_v25  ;;  %v13799_v25 = vsub.f32 %v13707_v18, %v18178_v57  ;;  %v18182_v17 = vld [vmem:[#allocation130_spill] sm:$0xff]  ;;  %18184 = vst [vmem:[#allocation48_spill] sm:$0xff] %v13812_v63  ;;  %v18185_v2 = vld [vmem:[#allocation131_spill] sm:$0xff]  ;;  %v18187_v57 = vand.u32 4294901760, %v13759_v38  ;;  %9754 = vmatpush1.bf16.msra.mxu0 %v17874_v1 }
 0x164   :  { %10034 = vmatpush1.bf16.msra.mxu1 %v18182_v17  ;;  %v13826_v17 = vsub.f32 %v13740_v42, %v18186_v32  ;;  %v13849_v32 = vsub.f32 %v13787_v41, %v17060_v60  ;;  %9756 = vmatprep.subr.bf16.mxu0 %v17876_v52  ;;  %v18198_v60 = vld [vmem:[#allocation136_spill] sm:$0xff]  ;;  %v18203_v52 = vld [vmem:[#allocation99_spill] sm:$0xff] }
 0x165   :  { %18177 = vst [vmem:[#allocation39_spill] sm:$0xff] %v13781_v39  ;;  %18179 = vst [vmem:[#allocation42_spill] sm:$0xff] %v13799_v25  ;;  %v13804_v39 = vsub.f32 %v13712_v35, %v18180_v5  ;;  %v13820_v5 = vld [vmem:[%s16572_s3 + $0xf0] sm:$0xff]  ;;  %10036 = vmatprep.subr.bf16.mxu1 %v18185_v2  ;;  %v13833_v25 = vsub.f32 %v13759_v38, %v18187_v57  ;;  %v18191_v2 = vand.u32 4294901760, %v13769_v34 }
 0x166   :  { %18193 = vst [vmem:[#allocation60_spill] sm:$0xff] %v13849_v32  ;;  %v3194_v57 = vand.u32 4294901760, %v13820_v5  ;;  %v18199_v32 = vld [vmem:[#allocation137_spill] sm:$0xff] }
 0x167   :  { %18181 = vst [vmem:[#allocation45_spill] sm:$0xff] %v13804_v39  ;;  %18188 = vst [vmem:[#allocation51_spill] sm:$0xff] %v13833_v25  ;;  %v18189_v39 = vand.u32 4294901760, %v13764_v33  ;;  %v13843_v11 = vsub.f32 %v13769_v34, %v18191_v2  ;;  %v13855_v25 = vsub.f32 %v13792_v21, %v3190_v37  ;;  %v18196_v2 = vld [vmem:[#allocation135_spill] sm:$0xff]  ;;  %9758 = vmatpush1.bf16.msra.mxu0 %v17882_v29  ;;  %v18206_v29 = vld [vmem:[#allocation100_spill] sm:$0xff] }
 0x168   :  { %v13863_v1 = vsub.f32 %v13820_v5, %v3194_v57  ;;  %9760 = vmatprep.subr.bf16.mxu0 %v17884_v26  ;;  %v18207_v26 = vand.u32 4294901760, %v13469_v12  ;;  %v18230_v12 = vand.u32 4294901760, %v13524_v51  ;;  %v18293_v21 = vld [vmem:[#allocation156_spill] sm:$0xff] }
 0x169   :  { %v13838_v63 = vsub.f32 %v13764_v33, %v18189_v39  ;;  %18192 = vst [vmem:[#allocation57_spill] sm:$0xff] %v13843_v11  ;;  %18194 = vst [vmem:[#allocation63_spill] sm:$0xff] %v13855_v25  ;;  %v18195_v39 = vld [vmem:[#allocation133_spill] sm:$0xff]  ;;  %v18295_v5 = vld [vmem:[#allocation164_spill] sm:$0xff] }
 0x16a   :  { %10038 = vmatpush1.bf16.msra.mxu1 %v18195_v39  ;;  %18197 = vst [vmem:[#allocation66_spill] sm:$0xff] %v13863_v1  ;;  %v18200_v39 = vld [vmem:[#allocation139_spill] sm:$0xff] }
 0x16b   :  { %18190 = vst [vmem:[#allocation54_spill] sm:$0xff] %v13838_v63  ;;  %10040 = vmatprep.subr.bf16.mxu1 %v18196_v2  ;;  %9762 = vmatpush1.bf16.msra.mxu0 %v17890_v30 }
 0x16c   :  { %9764 = vmatprep.subr.bf16.mxu0 %v17892_v50  ;;  %v18211_v50 = vld [vmem:[#allocation92_spill] sm:$0xff] }
 0x16e   :  { %10042 = vmatpush1.bf16.msra.mxu1 %v18198_v60  ;;  %v18233_v60 = vld [vmem:[#allocation118_spill] sm:$0xff] }
 0x16f   :  { %10044 = vmatprep.subr.bf16.mxu1 %v18199_v32  ;;  %9766 = vmatpush1.bf16.msra.mxu0 %v17898_v22  ;;  %v18214_v22 = vld [vmem:[#allocation103_spill] sm:$0xff]  ;;  %v18235_v32 = vld [vmem:[#allocation88_spill] sm:$0xff] }
 0x170   :  { %9768 = vmatprep.subr.bf16.mxu0 %v17900_v47  ;;  %v18215_v47 = vld [vmem:[#allocation105_spill] sm:$0xff]  ;;  %v18236_v2 = vand.u32 4294901760, %v18235_v32 }
 0x172   :  { %10046 = vmatpush1.bf16.msra.mxu1 %v18200_v39  ;;  %v18237_v39 = vld [vmem:[#allocation143_spill] sm:$0xff] }
 0x173   :  { %10048 = vmatprep.subr.bf16.mxu1 %v13148_v48  ;;  %9770 = vmatpush1.bf16.msra.mxu0 %v17906_v3  ;;  %v18201_v48 = vld [vmem:[#allocation128_spill] sm:$0xff]  ;;  %v18238_v51 = vand.u32 4294901760, %v18237_v39 }
 0x174   :  { %9772 = vmatprep.subr.bf16.mxu0 %v17908_v45  ;;  %v18218_v3 = vld [vmem:[#allocation152_spill] sm:$0xff] }
 0x175   :  { %v18219_v45 = vand.u32 4294901760, %v18218_v3 }
 0x176   :  { %10050 = vmatpush1.bf16.msra.mxu1 %v13157_v31  ;;  %v18202_v31 = vand.u32 4294901760, %v18201_v48  ;;  %v13958_v48 = vpack.c.bf16 %v18238_v51, %v18236_v2  ;;  %v18272_v2 = vld [vmem:[#allocation190_spill] sm:$0xff]  ;;  %v18274_v51 = vand.u32 4294901760, %v13740_v42  ;;  %v18282_v42 = vand.u32 4294901760, %v13787_v41  ;;  %v18289_v41 = vld [vmem:[#allocation144_spill] sm:$0xff] }
 0x177   :  { %10052 = vmatprep.subr.bf16.mxu1 %v13168_v9  ;;  %9774 = vmatpush1.bf16.msra.mxu0 %v17914_v16  ;;  %v18204_v9 = vld [vmem:[#allocation192_spill] sm:$0xff]  ;;  %v18222_v16 = vand.u32 4294901760, %v13501_v24  ;;  %v18273_v39 = vand.u32 4294901760, %v18272_v2  ;;  %v3054_v2 = vld [vmem:[%s16572_s3 + $0x130] sm:$0xff] }
 0x178   :  { %9776 = vmatprep.subr.bf16.mxu0 %v17916_v56  ;;  %18239 = vst [vmem:[#allocation86_spill] sm:$0xff] %v13958_v48 }
 0x17a   :  { %10054 = vmatpush1.bf16.msra.mxu1 %v13177_v4  ;;  %v18205_v4 = vand.u32 4294901760, %v18204_v9 }
 0x17b   :  { %10056 = vmatprep.subr.bf16.mxu1 %v13188_v10  ;;  %9778 = vmatpush1.bf16.msra.mxu0 %v17918_v58  ;;  %v18208_v10 = vld [vmem:[#allocation140_spill] sm:$0xff]  ;;  %v18224_v58 = vld [vmem:[#allocation111_spill] sm:$0xff] }
 0x17c   :  { %9780 = vmatprep.subr.bf16.mxu0 %v17920_v62  ;;  %v18225_v62 = vld [vmem:[#allocation114_spill] sm:$0xff] }
 0x17e   :  { %10058 = vmatpush1.bf16.msra.mxu1 %v13197_v6  ;;  %v18209_v6 = vand.u32 4294901760, %v18208_v10  ;;  %v18247_v10 = vld [vmem:[#allocation154_spill] sm:$0xff] }
 0x17f   :  { %10060 = vmatprep.subr.bf16.mxu1 %v13208_v15  ;;  %9782 = vmatpush1.bf16.msra.mxu0 %v17922_v13  ;;  %v18212_v15 = vld [vmem:[#allocation102_spill] sm:$0xff]  ;;  %v18226_v13 = vand.u32 4294901760, %v13514_v7  ;;  %v18234_v7 = vld [vmem:[#allocation120_spill] sm:$0xff] }
 0x180   :  { %9784 = vmatprep.subr.bf16.mxu0 %v17924_v59  ;;  %v13906_v30 = vpack.c.bf16 %v18209_v6, %v18207_v26  ;;  %v18227_v59 = vld [vmem:[#allocation160_spill] sm:$0xff]  ;;  %v18246_v26 = vand.u32 4294901760, %v13610_v8  ;;  %v18257_v8 = vld [vmem:[#allocation109_spill] sm:$0xff] }
 0x181   :  { %v18258_v3 = vand.u32 4294901760, %v18257_v8  ;;  %v3049_v8 = vld [vmem:[%s16572_s3 + $0x108] sm:$0xff] }
 0x182   :  { %10062 = vmatpush1.bf16.msra.mxu1 %v13217_v49  ;;  %18210 = vst [vmem:[#allocation69_spill] sm:$0xff] %v13906_v30  ;;  %v18213_v49 = vld [vmem:[#allocation95_spill] sm:$0xff] }
 0x183   :  { %10064 = vmatprep.subr.bf16.mxu1 %v13228_v0  ;;  %9786 = vmatpush1.bf16.msra.mxu0 %v17926_v28  ;;  %v18216_v0 = vld [vmem:[#allocation142_spill] sm:$0xff]  ;;  %v18228_v28 = vand.u32 4294901760, %v18227_v59 }
 0x184   :  { %9788 = vmatprep.subr.bf16.mxu0 %v17928_v44 }
 0x185   :  { %v13938_v44 = vpack.c.bf16 %v18228_v28, %v18226_v13  ;;  %v18264_v13 = vld [vmem:[#allocation24_spill] sm:$0xff] }
 0x186   :  { %10066 = vmatpush1.bf16.msra.mxu1 %v13237_v23  ;;  %v18217_v23 = vand.u32 4294901760, %v18216_v0  ;;  %v18265_v59 = vand.u32 4294901760, %v18264_v13  ;;  %v3055_v13 = vld [vmem:[%s16572_s3 + $0x138] sm:$0xff] }
 0x187   :  { %10068 = vmatprep.subr.bf16.mxu1 %v13248_v61  ;;  %9790 = vmatpush1.bf16.msra.mxu0 %v18203_v52  ;;  %18229 = vst [vmem:[#allocation78_spill] sm:$0xff] %v13938_v44 }
 0x188   :  { %1540 = vmatprep.subr.mxu0 %v18206_v29  ;;  %v13918_v61 = vpack.c.bf16 %v18219_v45, %v18217_v23  ;;  %v18245_v29 = vld [vmem:[#allocation122_spill] sm:$0xff]  ;;  %v18256_v23 = vld [vmem:[#allocation124_spill] sm:$0xff]  ;;  %v18259_v45 = vld [vmem:[#allocation167_spill] sm:$0xff] }
 0x18a   :  { %10070 = vmatpush1.bf16.msra.mxu1 %v13257_v14  ;;  %18220 = vst [vmem:[#allocation72_spill] sm:$0xff] %v13918_v61  ;;  %v18221_v14 = vand.u32 4294901760, %v13496_v55  ;;  %v18231_v55 = vand.u32 4294901760, %v13543_v54  ;;  %v18240_v54 = vand.u32 4294901760, %v13588_v27  ;;  %v18248_v27 = vand.u32 4294901760, %v18247_v10  ;;  %v18284_v10 = vld [vmem:[#allocation132_spill] sm:$0xff] }
 0x18b   :  { %2775 = vmatprep.subr.mxu1 %v18202_v31  ;;  %1542 = vmatpush1.msra.mxu0 %v18214_v22  ;;  %v18241_v31 = vld [vmem:[#allocation148_spill] sm:$0xff]  ;;  %v18252_v22 = vld [vmem:[#allocation165_spill] sm:$0xff] }
 0x18c   :  { %1552 = vmatmul.mubr.f32.vlgmr.msra.gmra.mrb[0].mxu0 %v18212_v15  ;;  %10128 = vmatprep.subr.bf16.mxu0 %v13906_v30  ;;  %v13926_v56 = vpack.c.bf16 %v18222_v16, %v18221_v14  ;;  %v13946_v24 = vpack.c.bf16 %v18231_v55, %v18230_v12  ;;  %v18242_v52 = vand.u32 4294901760, %v18241_v31  ;;  %v13978_v6 = vpack.c.bf16 %v18248_v27, %v18246_v26  ;;  %v18267_v12 = vld [vmem:[#allocation125_spill] sm:$0xff]  ;;  %v18268_v55 = vld [vmem:[#allocation126_spill] sm:$0xff]  ;;  %v18276_v31 = vld [vmem:[#allocation127_spill] sm:$0xff] }
 0x18d   :  { %1558 = vmatprep.mubr.f32.mxu0 %v18130_v40  ;;  %10130 = vmatpush1.bf16.msra.mxu0 %v13918_v61  ;;  %v18260_v14 = vand.u32 4294901760, %v18259_v45  ;;  %v18285_v27 = vld [vmem:[#allocation134_spill] sm:$0xff] }
 0x18e   :  { %2779 = vmatpush1.msra.mxu1 %v18205_v4  ;;  %18223 = vst [vmem:[#allocation75_spill] sm:$0xff] %v13926_v56  ;;  %10132 = vmatprep.subr.bf16.mxu0 %v13926_v56  ;;  %18232 = vst [vmem:[#allocation82_spill] sm:$0xff] %v13946_v24  ;;  %v13966_v9 = vpack.c.bf16 %v18242_v52, %v18240_v54  ;;  %v18244_v4 = vld [vmem:[#allocation121_spill] sm:$0xff]  ;;  %v14018_v54 = vpack.c.bf16 %v18274_v51, %v18273_v39  ;;  %v3210_v51 = vand.u32 4294901760, %v3054_v2  ;;  %v18327_v56 = vld [vmem:[#allocation170_spill] sm:$0xff] }
 0x18f   :  { %10072 = vmatprep.subr.bf16.mxu1 %v18211_v50  ;;  %2789 = vmatmul.mubr.f32.vlgmr.msra.gmra.mrb[0].mxu1 %v18212_v15  ;;  %18249 = vst [vmem:[#allocation10_spill] sm:$0xff] %v13978_v6  ;;  %v18250_v50 = vld [vmem:[#allocation157_spill] sm:$0xff]  ;;  %v13995_v16 = vpack.c.bf16 %v18260_v14, %v18258_v3  ;;  %v3196_v3 = vand.u32 4294901760, %v3049_v8  ;;  %v17130_v61 = vand.u32 4294901760, %v18327_v56 }
 0x190   :  { %10074 = vmatpush1.bf16.msra.mxu1 %v18213_v49  ;;  %2795 = vmatprep.mubr.f32.mxu1 %v18130_v40  ;;  %18243 = vst [vmem:[#allocation87_spill] sm:$0xff] %v13966_v9  ;;  %v18251_v49 = vand.u32 4294901760, %v18250_v50  ;;  %18275 = vst [vmem:[#allocation17_spill] sm:$0xff] %v14018_v54  ;;  %v18277_v52 = vld [vmem:[#allocation129_spill] sm:$0xff]  ;;  %v18290_v50 = vld [vmem:[#allocation146_spill] sm:$0xff] }
 0x191   :  { %10076 = vmatprep.subr.bf16.mxu1 %v18215_v47  ;;  %1560 = vmatmul.mubr.f32.gmra.mrb[2].mxu0 %v18136_v46  ;;  %v18253_v47 = vand.u32 4294901760, %v18252_v22  ;;  %18261 = vst [vmem:[#allocation13_spill] sm:$0xff] %v13995_v16  ;;  %v18292_v22 = vld [vmem:[#allocation153_spill] sm:$0xff]  ;;  %v14081_v45 = vsub.f32 %v3049_v8, %v3196_v3 }
 0x192   :  { %1566 = vmatprep.mubr.f32.mxu0 %v18151_v20  ;;  %10134 = vmatpush1.bf16.msra.mxu0 %v13938_v44 }
 0x193   :  { %2797 = vmatmul.mubr.f32.gmra.mrb[2].mxu1 %v18136_v46  ;;  %10136 = vmatprep.subr.bf16.mxu0 %v13946_v24  ;;  %v13986_v0 = vpack.c.bf16 %v18253_v47, %v18251_v49  ;;  %v18291_v49 = vld [vmem:[#allocation150_spill] sm:$0xff]  ;;  %v18297_v47 = vld [vmem:[#allocation173_spill] sm:$0xff]  ;;  %18301 = vst [vmem:[#allocation23_spill] sm:$0xff] %v14081_v45 }
 0x194   :  { %10078 = vmatpush1.bf16.msra.mxu1 %v18224_v58  ;;  %2803 = vmatprep.mubr.f32.mxu1 %v18151_v20  ;;  %v18262_v58 = vld [vmem:[#allocation180_spill] sm:$0xff]  ;;  %v18326_v24 = vld [vmem:[#allocation161_spill] sm:$0xff] }
 0x195   :  { %10080 = vmatprep.subr.bf16.mxu1 %v18225_v62  ;;  %1568 = vmatmul.mubr.f32.gmra.mrb[4].mxu0 %v18158_v43  ;;  %18254 = vst [vmem:[#allocation11_spill] sm:$0xff] %v13986_v0  ;;  %v18263_v62 = vand.u32 4294901760, %v18262_v58 }
 0x196   :  { %1574 = vmatprep.mubr.f32.mxu0 %v18168_v53  ;;  %10138 = vmatpush1.bf16.msra.mxu0 %v13958_v48 }
 0x197   :  { %2805 = vmatmul.mubr.f32.gmra.mrb[4].mxu1 %v18158_v43  ;;  %10140 = vmatprep.subr.bf16.mxu0 %v13966_v9  ;;  %v14002_v28 = vpack.c.bf16 %v18265_v59, %v18263_v62  ;;  %v3053_v62 = vld [vmem:[%s16572_s3 + $0x128] sm:$0xff] }
 0x198   :  { %10082 = vmatpush1.bf16.msra.mxu1 %v18233_v60  ;;  %2811 = vmatprep.mubr.f32.mxu1 %v18168_v53  ;;  %v18269_v60 = vand.u32 4294901760, %v13707_v18  ;;  %v18278_v18 = vand.u32 4294901760, %v13759_v38  ;;  %v18287_v38 = vld [vmem:[#allocation138_spill] sm:$0xff] }
 0x199   :  { %10084 = vmatprep.subr.bf16.mxu1 %v18234_v7  ;;  %1576 = vmatmul.mubr.f32.gmra.mrb[6].mxu0 %v18173_v36  ;;  %18266 = vst [vmem:[#allocation14_spill] sm:$0xff] %v14002_v28  ;;  %v18270_v7 = vand.u32 4294901760, %v13712_v35  ;;  %v18279_v35 = vand.u32 4294901760, %v13764_v33  ;;  %v14043_v33 = vpack.c.bf16 %v3194_v57, %v3190_v37  ;;  %v18294_v37 = vld [vmem:[#allocation158_spill] sm:$0xff]  ;;  %v18296_v57 = vld [vmem:[#allocation171_spill] sm:$0xff] }
 0x19a   :  { %10142 = vmatpush1.bf16.msra.mxu0 %v13978_v6  ;;  %v3078_v6 = vld [vmem:[%s16572_s3 + $0x1f0] sm:$0xff] }
 0x19b   :  { %2813 = vmatmul.mubr.f32.gmra.mrb[6].mxu1 %v18173_v36  ;;  %10144 = vmatprep.subr.bf16.mxu0 %v13986_v0  ;;  %v14011_v32 = vpack.c.bf16 %v18270_v7, %v18269_v60  ;;  %18286 = vst [vmem:[#allocation20_spill] sm:$0xff] %v14043_v33  ;;  %v3208_v60 = vand.u32 4294901760, %v3055_v13  ;;  %v3052_v7 = vld [vmem:[%s16572_s3 + $0x120] sm:$0xff]  ;;  %v3258_v48 = vand.u32 4294901760, %v3078_v6 }
 0x19c   :  { %10086 = vmatpush1.bf16.msra.mxu1 %v18244_v4  ;;  %2942 = vmatprep.mubr.f32.mxu1 %v17988_v19  ;;  %v18255_v19 = vld [vmem:[#allocation123_spill] sm:$0xff]  ;;  %v14027_v4 = vpack.c.bf16 %v18279_v35, %v18278_v18  ;;  %v3206_v39 = vand.u32 4294901760, %v3052_v7  ;;  %v3057_v18 = vld [vmem:[%s16572_s3 + $0x148] sm:$0xff] }
 0x19d   :  { %10088 = vmatprep.subr.bf16.mxu1 %v18245_v29  ;;  %18271 = vst [vmem:[#allocation16_spill] sm:$0xff] %v14011_v32  ;;  %v18281_v29 = vand.u32 4294901760, %v13769_v34  ;;  %v18288_v34 = vld [vmem:[#allocation141_spill] sm:$0xff]  ;;  %v3059_v35 = vld [vmem:[%s16572_s3 + $0x158] sm:$0xff] }
 0x19e   :  { %10146 = vmatpush1.bf16.msra.mxu0 %v13995_v16  ;;  %18280 = vst [vmem:[#allocation110_spill] sm:$0xff] %v14027_v4 }
 0x19f   :  { %10148 = vmatprep.subr.bf16.mxu0 %v14002_v28  ;;  %v14034_v26 = vpack.c.bf16 %v18282_v42, %v18281_v29  ;;  %v14118_v42 = vsub.f32 %v3055_v13, %v3208_v60  ;;  %v3065_v13 = vld [vmem:[%s16572_s3 + $0x188] sm:$0xff]  ;;  %v3079_v28 = vld [vmem:[%s16572_s3 + $0x1f8] sm:$0xff] }
 0x1a0   :  { %10090 = vmatpush1.bf16.msra.mxu1 %v18255_v19  ;;  %v18298_v19 = vld [vmem:[#allocation181_spill] sm:$0xff]  ;;  %v3256_v0 = vand.u32 4294901760, %v3079_v28 }
 0x1a1   :  { %10092 = vmatprep.subr.bf16.mxu1 %v18256_v23  ;;  %18283 = vst [vmem:[#allocation19_spill] sm:$0xff] %v14034_v26  ;;  %v18299_v23 = vld [vmem:[#allocation184_spill] sm:$0xff]  ;;  %18309 = vst [vmem:[#allocation183_spill] sm:$0xff] %v14118_v42 }
 0x1a2   :  { %10150 = vmatpush1.bf16.msra.mxu0 %v14011_v32 }
 0x1a3   :  { %10152 = vmatprep.subr.bf16.mxu0 %v14018_v54 }
 0x1a4   :  { %10094 = vmatpush1.bf16.msra.mxu1 %v18267_v12 }
 0x1a5   :  { %10096 = vmatprep.subr.bf16.mxu1 %v18268_v55  ;;  %v3204_v55 = vand.u32 4294901760, %v3053_v62 }
 0x1a6   :  { %10154 = vmatpush1.bf16.msra.mxu0 %v14027_v4 }
 0x1a7   :  { %10156 = vmatprep.subr.bf16.mxu0 %v14034_v26  ;;  %v14116_v29 = vsub.f32 %v3053_v62, %v3204_v55 }
 0x1a8   :  { %10098 = vmatpush1.bf16.msra.mxu1 %v18276_v31  ;;  %v14105_v31 = vpack.c.bf16 %v3208_v60, %v3204_v55  ;;  %v3067_v55 = vld [vmem:[%s16572_s3 + $0x198] sm:$0xff]  ;;  %v3228_v60 = vand.u32 4294901760, %v3065_v13 }
 0x1a9   :  { %10100 = vmatprep.subr.bf16.mxu1 %v18277_v52  ;;  %v14107_v52 = vpack.c.bf16 %v3210_v51, %v3206_v39  ;;  %18308 = vst [vmem:[#allocation182_spill] sm:$0xff] %v14116_v29 }
 0x1aa   :  { %10158 = vmatpush1.bf16.msra.mxu0 %v14043_v33  ;;  %18306 = vst [vmem:[#allocation28_spill] sm:$0xff] %v14105_v31  ;;  %v3074_v33 = vld [vmem:[%s16572_s3 + $0x1d0] sm:$0xff] }
 0x1ab   :  { %18307 = vst [vmem:[#allocation29_spill] sm:$0xff] %v14107_v52  ;;  %v3250_v4 = vand.u32 4294901760, %v3074_v33 }
 0x1ac   :  { %10102 = vmatpush1.bf16.msra.mxu1 %v18284_v10  ;;  %v3212_v10 = vand.u32 4294901760, %v3057_v18 }
 0x1ad   :  { %10104 = vmatprep.subr.bf16.mxu1 %v18285_v27  ;;  %v3216_v27 = vand.u32 4294901760, %v3059_v35 }
 0x1b0   :  { %10106 = vmatpush1.bf16.msra.mxu1 %v18287_v38  ;;  %v3056_v38 = vld [vmem:[%s16572_s3 + $0x140] sm:$0xff] }
 0x1b1   :  { %10108 = vmatprep.subr.bf16.mxu1 %v18288_v34  ;;  %v3058_v34 = vld [vmem:[%s16572_s3 + $0x150] sm:$0xff] }
 0x1b4   :  { %10110 = vmatpush1.bf16.msra.mxu1 %v18289_v41  ;;  %v14127_v41 = vsub.f32 %v3052_v7, %v3206_v39  ;;  %v3232_v7 = vand.u32 4294901760, %v3067_v55  ;;  %v3066_v39 = vld [vmem:[%s16572_s3 + $0x190] sm:$0xff] }
 0x1b5   :  { %10112 = vmatprep.subr.bf16.mxu1 %v18290_v50  ;;  %v14129_v50 = vsub.f32 %v3054_v2, %v3210_v51  ;;  %v3064_v2 = vld [vmem:[%s16572_s3 + $0x180] sm:$0xff] }
 0x1b6   :  { %18310 = vst [vmem:[#allocation31_spill] sm:$0xff] %v14127_v41  ;;  %v3230_v51 = vand.u32 4294901760, %v3064_v2 }
 0x1b7   :  { %18311 = vst [vmem:[#allocation32_spill] sm:$0xff] %v14129_v50 }
 0x1b8   :  { %10114 = vmatpush1.bf16.msra.mxu1 %v18291_v49  ;;  %v3214_v49 = vand.u32 4294901760, %v3056_v38  ;;  %v14243_v50 = vsub.f32 %v3064_v2, %v3230_v51 }
 0x1b9   :  { %10116 = vmatprep.subr.bf16.mxu1 %v18292_v22  ;;  %v3218_v22 = vand.u32 4294901760, %v3058_v34 }
 0x1ba   :  { %18334 = vst [vmem:[#allocation59_spill] sm:$0xff] %v14243_v50 }
 0x1bb   :  { %v14148_v8 = vsub.f32 %v3058_v34, %v3218_v22 }
 0x1bc   :  { %10118 = vmatpush1.bf16.msra.mxu1 %v18293_v21  ;;  %v14131_v21 = vpack.c.bf16 %v3216_v27, %v3212_v10 }
 0x1bd   :  { %10120 = vmatprep.subr.bf16.mxu1 %v18294_v37  ;;  %v14133_v37 = vsub.f32 %v3057_v18, %v3212_v10  ;;  %18317 = vst [vmem:[#allocation38_spill] sm:$0xff] %v14148_v8  ;;  %v3234_v18 = vand.u32 4294901760, %v3066_v39 }
 0x1be   :  { %18312 = vst [vmem:[#allocation34_spill] sm:$0xff] %v14131_v21 }
 0x1bf   :  { %18313 = vst [vmem:[#allocation35_spill] sm:$0xff] %v14133_v37  ;;  %v14177_v10 = vpack.c.bf16 %v3234_v18, %v3230_v51  ;;  %v14241_v37 = vsub.f32 %v3067_v55, %v3232_v7  ;;  %v18354_v51 = vld [vmem:[#allocation48_spill] sm:$0xff] }
 0x1c0   :  { %10122 = vmatpush1.bf16.msra.mxu1 %v18295_v5  ;;  %v14135_v5 = vsub.f32 %v3059_v35, %v3216_v27  ;;  %v14175_v35 = vpack.c.bf16 %v3232_v7, %v3228_v60  ;;  %v3069_v27 = vld [vmem:[%s16572_s3 + $0x1a8] sm:$0xff]  ;;  %v3087_v7 = vld [vmem:[%s16572_s3 + $0x238] sm:$0xff] }
 0x1c1   :  { %10124 = vmatprep.subr.bf16.mxu1 %v18296_v57  ;;  %v14137_v57 = vpack.c.bf16 %v3218_v22, %v3214_v49  ;;  %18321 = vst [vmem:[#allocation43_spill] sm:$0xff] %v14177_v10  ;;  %v3236_v34 = vand.u32 4294901760, %v3069_v27  ;;  %v3068_v22 = vld [vmem:[%s16572_s3 + $0x1a0] sm:$0xff]  ;;  %18333 = vst [vmem:[#allocation58_spill] sm:$0xff] %v14241_v37 }
 0x1c2   :  { %18314 = vst [vmem:[#allocation189_spill] sm:$0xff] %v14135_v5  ;;  %18320 = vst [vmem:[#allocation41_spill] sm:$0xff] %v14175_v35  ;;  %v14239_v5 = vsub.f32 %v3065_v13, %v3228_v60  ;;  %v14267_v13 = vsub.f32 %v3079_v28, %v3256_v0  ;;  %v3085_v60 = vld [vmem:[%s16572_s3 + $0x228] sm:$0xff] }
 0x1c3   :  { %18315 = vst [vmem:[#allocation191_spill] sm:$0xff] %v14137_v57  ;;  %v14247_v41 = vsub.f32 %v3069_v27, %v3236_v34  ;;  %v4428_v27 = vand.u32 4294901760, %v3087_v7 }
 0x1c4   :  { %10126 = vmatpush1.bf16.msra.mxu1 %v18297_v47  ;;  %v3061_v47 = vld [vmem:[%s16572_s3 + $0x168] sm:$0xff]  ;;  %18332 = vst [vmem:[#allocation56_spill] sm:$0xff] %v14239_v5  ;;  %18346 = vst [vmem:[#allocation77_spill] sm:$0xff] %v14267_v13 }
 0x1c5   :  { %2932 = vmatprep.subr.mxu1 %v18298_v19  ;;  %v3063_v19 = vld [vmem:[%s16572_s3 + $0x178] sm:$0xff]  ;;  %18336 = vst [vmem:[#allocation62_spill] sm:$0xff] %v14247_v41 }
 0x1c8   :  { %2934 = vmatpush1.msra.mxu1 %v18299_v23  ;;  %v14146_v23 = vsub.f32 %v3056_v38, %v3214_v49  ;;  %v3071_v38 = vld [vmem:[%s16572_s3 + $0x1b8] sm:$0xff] }
 0x1c9   :  { %2944 = vmatmul.mubr.f32.vlgmr.msra.gmra.mrb[0].mxu1 %v18212_v15  ;;  %v3051_v15 = vld [vmem:[%s16572_s3 + $0x118] sm:$0xff]  ;;  %v3240_v49 = vand.u32 4294901760, %v3071_v38 }
 0x1ca   :  { %2950 = vmatprep.mubr.f32.mxu1 %v18130_v40  ;;  %v3200_v40 = vand.u32 4294901760, %v3051_v15  ;;  %18316 = vst [vmem:[#allocation37_spill] sm:$0xff] %v14146_v23 }
 0x1cb   :  { %v14249_v44 = vsub.f32 %v3071_v38, %v3240_v49  ;;  %v3084_v38 = vld [vmem:[%s16572_s3 + $0x220] sm:$0xff] }
 0x1cc   :  { %v14083_v14 = vsub.f32 %v3051_v15, %v3200_v40  ;;  %v3220_v15 = vand.u32 4294901760, %v3061_v47 }
 0x1cd   :  { %2952 = vmatmul.mubr.f32.gmra.mrb[2].mxu1 %v18136_v46  ;;  %v3048_v46 = vld [vmem:[%s16572_s3 + $0x100] sm:$0xff]  ;;  %18337 = vst [vmem:[#allocation64_spill] sm:$0xff] %v14249_v44 }
 0x1ce   :  { %2958 = vmatprep.mubr.f32.mxu1 %v18151_v20  ;;  %v3198_v20 = vand.u32 4294901760, %v3048_v46  ;;  %18302 = vst [vmem:[#allocation169_spill] sm:$0xff] %v14083_v14  ;;  %v14231_v30 = vsub.f32 %v3061_v47, %v3220_v15 }
 0x1d0   :  { %v14094_v59 = vsub.f32 %v3048_v46, %v3198_v20  ;;  %v3062_v46 = vld [vmem:[%s16572_s3 + $0x170] sm:$0xff]  ;;  %18328 = vst [vmem:[#allocation50_spill] sm:$0xff] %v14231_v30 }
 0x1d1   :  { %2960 = vmatmul.mubr.f32.gmra.mrb[4].mxu1 %v18158_v43  ;;  %v3050_v43 = vld [vmem:[%s16572_s3 + $0x110] sm:$0xff] }
 0x1d2   :  { %2966 = vmatprep.mubr.f32.mxu1 %v18168_v53  ;;  %v3202_v53 = vand.u32 4294901760, %v3050_v43  ;;  %18304 = vst [vmem:[#allocation25_spill] sm:$0xff] %v14094_v59 }
 0x1d4   :  { %v14085_v58 = vpack.c.bf16 %v3202_v53, %v3198_v20  ;;  %v14096_v12 = vsub.f32 %v3050_v43, %v3202_v53  ;;  %v3226_v20 = vand.u32 4294901760, %v3062_v46 }
 0x1d5   :  { %2968 = vmatmul.mubr.f32.gmra.mrb[6].mxu1 %v18173_v36  ;;  %v14079_v36 = vpack.c.bf16 %v3200_v40, %v3196_v3  ;;  %v3224_v3 = vand.u32 4294901760, %v3063_v19  ;;  %v3060_v40 = vld [vmem:[%s16572_s3 + $0x160] sm:$0xff] }
 0x1d6   :  { %18303 = vst [vmem:[#allocation168_spill] sm:$0xff] %v14085_v58  ;;  %18305 = vst [vmem:[#allocation26_spill] sm:$0xff] %v14096_v12  ;;  %v3222_v43 = vand.u32 4294901760, %v3060_v40  ;;  %v14237_v23 = vsub.f32 %v3062_v46, %v3226_v20  ;;  %v14261_v46 = vsub.f32 %v3074_v33, %v3250_v4  ;;  %v3080_v33 = vld [vmem:[%s16572_s3 + $0x200] sm:$0xff] }
 0x1d7   :  { %18300 = vst [vmem:[#allocation22_spill] sm:$0xff] %v14079_v36  ;;  %10160 = vmatprep.subr.bf16.mxu0 %v14079_v36  ;;  %v14157_v53 = vpack.c.bf16 %v3224_v3, %v3220_v15  ;;  %v4418_v2 = vand.u32 4294901760, %v3080_v33 }
 0x1d8   :  { %10162 = vmatpush1.bf16.msra.mxu0 %v14085_v58  ;;  %v14159_v62 = vpack.c.bf16 %v3226_v20, %v3222_v43  ;;  %v14235_v8 = vsub.f32 %v3060_v40, %v3222_v43  ;;  %18331 = vst [vmem:[#allocation55_spill] sm:$0xff] %v14237_v23  ;;  %18343 = vst [vmem:[#allocation73_spill] sm:$0xff] %v14261_v46 }
 0x1d9   :  { %10164 = vmatprep.subr.bf16.mxu0 %v14105_v31  ;;  %18318 = vst [vmem:[#allocation101_spill] sm:$0xff] %v14157_v53  ;;  %v3075_v31 = vld [vmem:[%s16572_s3 + $0x1d8] sm:$0xff] }
 0x1da   :  { %18319 = vst [vmem:[#allocation40_spill] sm:$0xff] %v14159_v62  ;;  %v3248_v36 = vand.u32 4294901760, %v3075_v31  ;;  %18330 = vst [vmem:[#allocation53_spill] sm:$0xff] %v14235_v8 }
 0x1dc   :  { %10166 = vmatpush1.bf16.msra.mxu0 %v14107_v52 }
 0x1dd   :  { %10168 = vmatprep.subr.bf16.mxu0 %v14131_v21  ;;  %v14193_v21 = vpack.c.bf16 %v3240_v49, %v3236_v34  ;;  %v14315_v49 = vsub.f32 %v3080_v33, %v4418_v2 }
 0x1df   :  { %18322 = vst [vmem:[#allocation44_spill] sm:$0xff] %v14193_v21  ;;  %18356 = vst [vmem:[#allocation90_spill] sm:$0xff] %v14315_v49 }
 0x1e0   :  { %10170 = vmatpush1.bf16.msra.mxu0 %v14137_v57 }
 0x1e1   :  { %10172 = vmatprep.subr.bf16.mxu0 %v14157_v53  ;;  %v3238_v53 = vand.u32 4294901760, %v3068_v22 }
 0x1e3   :  { %v14251_v47 = vsub.f32 %v3068_v22, %v3238_v53 }
 0x1e4   :  { %10174 = vmatpush1.bf16.msra.mxu0 %v14159_v62  ;;  %v3070_v62 = vld [vmem:[%s16572_s3 + $0x1b0] sm:$0xff] }
 0x1e5   :  { %10176 = vmatprep.subr.bf16.mxu0 %v14175_v35  ;;  %v3242_v57 = vand.u32 4294901760, %v3070_v62  ;;  %v3073_v35 = vld [vmem:[%s16572_s3 + $0x1c8] sm:$0xff]  ;;  %18338 = vst [vmem:[#allocation65_spill] sm:$0xff] %v14251_v47 }
 0x1e6   :  { %v3244_v58 = vand.u32 4294901760, %v3073_v35 }
 0x1e7   :  { %v14195_v52 = vpack.c.bf16 %v3242_v57, %v3238_v53 }
 0x1e8   :  { %10178 = vmatpush1.bf16.msra.mxu0 %v14177_v10  ;;  %v3072_v10 = vld [vmem:[%s16572_s3 + $0x1c0] sm:$0xff]  ;;  %v14211_v54 = vpack.c.bf16 %v3248_v36, %v3244_v58  ;;  %v14255_v15 = vsub.f32 %v3073_v35, %v3244_v58  ;;  %v18350_v58 = vand.u32 4294901760, %v18326_v24  ;;  %v17128_v35 = vand.u32 4294901760, %v13826_v17 }
 0x1e9   :  { %18323 = vst [vmem:[#allocation46_spill] sm:$0xff] %v14195_v52  ;;  %10180 = vmatprep.subr.bf16.mxu0 %v14193_v21  ;;  %v3246_v26 = vand.u32 4294901760, %v3072_v10  ;;  %v3077_v21 = vld [vmem:[%s16572_s3 + $0x1e8] sm:$0xff] }
 0x1ea   :  { %18324 = vst [vmem:[#allocation47_spill] sm:$0xff] %v14211_v54  ;;  %v3252_v16 = vand.u32 4294901760, %v3077_v21  ;;  %18340 = vst [vmem:[#allocation68_spill] sm:$0xff] %v14255_v15 }
 0x1eb   :  { %v14213_v32 = vpack.c.bf16 %v3250_v4, %v3246_v26  ;;  %v14259_v40 = vsub.f32 %v3072_v10, %v3246_v26  ;;  %v3292_v4 = vsub.f32 %v18327_v56, %v17130_v61  ;;  %v4424_v10 = vand.u32 4294901760, %v3085_v60 }
 0x1ec   :  { %10182 = vmatpush1.bf16.msra.mxu0 %v14195_v52  ;;  %v3076_v52 = vld [vmem:[%s16572_s3 + $0x1e0] sm:$0xff]  ;;  %v14263_v43 = vpack.c.bf16 %v3256_v0, %v3252_v16  ;;  %v14265_v20 = vsub.f32 %v3077_v21, %v3252_v16 }
 0x1ed   :  { %18325 = vst [vmem:[#allocation49_spill] sm:$0xff] %v14213_v32  ;;  %10184 = vmatprep.subr.bf16.mxu0 %v14211_v54  ;;  %v3254_v9 = vand.u32 4294901760, %v3076_v52  ;;  %v14233_v54 = vsub.f32 %v3063_v19, %v3224_v3  ;;  %v14253_v19 = vsub.f32 %v3070_v62, %v3242_v57  ;;  %v14257_v3 = vsub.f32 %v3075_v31, %v3248_v36  ;;  %v3082_v31 = vld [vmem:[%s16572_s3 + $0x210] sm:$0xff] }
 0x1ee   :  { %18342 = vst [vmem:[#allocation71_spill] sm:$0xff] %v14259_v40  ;;  %18344 = vst [vmem:[#allocation74_spill] sm:$0xff] %v14263_v43  ;;  %v14273_v57 = vsub.f32 %v3078_v6, %v3258_v48  ;;  %v3280_v36 = vsub.f32 %v18326_v24, %v18350_v58  ;;  %v3293_v16 = vand.u32 4294901760, %v3292_v4  ;;  %v3086_v58 = vld [vmem:[%s16572_s3 + $0x230] sm:$0xff]  ;;  %v3436_v4 = vsub.f32 %v13826_v17, %v17128_v35  ;;  %v3091_v35 = vld [vmem:[%s16572_s3 + $0x258] sm:$0xff] }
 0x1ef   :  { %18329 = vst [vmem:[#allocation52_spill] sm:$0xff] %v14233_v54  ;;  %18339 = vst [vmem:[#allocation67_spill] sm:$0xff] %v14253_v19  ;;  %v14269_v55 = vpack.c.bf16 %v3258_v48, %v3254_v9  ;;  %v14271_v53 = vsub.f32 %v3076_v52, %v3254_v9  ;;  %v3081_v48 = vld [vmem:[%s16572_s3 + $0x208] sm:$0xff]  ;;  %v3083_v9 = vld [vmem:[%s16572_s3 + $0x218] sm:$0xff] }
 0x1f0   :  { %10186 = vmatpush1.bf16.msra.mxu0 %v14213_v32  ;;  %v14245_v32 = vsub.f32 %v3066_v39, %v3234_v18  ;;  %18341 = vst [vmem:[#allocation70_spill] sm:$0xff] %v14257_v3  ;;  %18345 = vst [vmem:[#allocation76_spill] sm:$0xff] %v14265_v20  ;;  %v3281_v0 = vand.u32 4294901760, %v3280_v36  ;;  %v4416_v6 = vand.u32 4294901760, %v3081_v48  ;;  %v4420_v26 = vand.u32 4294901760, %v3083_v9 }
 0x1f1   :  { %18347 = vst [vmem:[#allocation79_spill] sm:$0xff] %v14269_v55  ;;  %18348 = vst [vmem:[#allocation80_spill] sm:$0xff] %v14271_v53  ;;  %10188 = vmatprep.subr.bf16.mxu0 %v14263_v43  ;;  %v4422_v39 = vand.u32 4294901760, %v3082_v31  ;;  %v17129_v18 = vand.u32 4294901760, %v18354_v51  ;;  %v18390_v43 = vand.u32 4294901760, %v14118_v42 }
 0x1f2   :  { %18335 = vst [vmem:[#allocation61_spill] sm:$0xff] %v14245_v32  ;;  %18349 = vst [vmem:[#allocation81_spill] sm:$0xff] %v14273_v57  ;;  %v10191_v28 = vpack.c.bf16 %v3293_v16, %v3281_v0  ;;  %v14295_v52 = vpack.c.bf16 %v4420_v26, %v4416_v6  ;;  %v14297_v21 = vsub.f32 %v3081_v48, %v4416_v6  ;;  %v18361_v48 = vld [vmem:[#allocation51_spill] sm:$0xff]  ;;  %v17134_v6 = vand.u32 4294901760, %v13838_v63 }
 0x1f3   :  { %v14299_v62 = vsub.f32 %v3083_v9, %v4420_v26  ;;  %v14313_v34 = vpack.c.bf16 %v4422_v39, %v4418_v2  ;;  %v14317_v22 = vsub.f32 %v3082_v31, %v4422_v39  ;;  %v3424_v36 = vsub.f32 %v18354_v51, %v17129_v18 }
 0x1f4   :  { %10190 = vmatpush1.bf16.msra.mxu0 %v14269_v55  ;;  %18351 = vst [vmem:[#allocation83_spill] sm:$0xff] %v14295_v52  ;;  %18352 = vst [vmem:[#allocation84_spill] sm:$0xff] %v14297_v21  ;;  %10512 = vmatprep.subr.bf16.mxu1 %v14295_v52  ;;  %v14328_v0 = vpack.c.bf16 %v4428_v27, %v4424_v10  ;;  %v14330_v16 = vsub.f32 %v3085_v60, %v4424_v10  ;;  %v17131_v9 = vand.u32 4294901760, %v18361_v48  ;;  %v3089_v60 = vld [vmem:[%s16572_s3 + $0x248] sm:$0xff]  ;;  %v18392_v21 = vld [vmem:[#allocation35_spill] sm:$0xff] }
 0x1f5   :  { %10192 = vmatprep.subr.bf16.mxu0 %v10191_v28  ;;  %18353 = vst [vmem:[#allocation85_spill] sm:$0xff] %v14299_v62  ;;  %18355 = vst [vmem:[#allocation89_spill] sm:$0xff] %v14313_v34  ;;  %10514 = vmatpush1.bf16.msra.mxu1 %v14313_v34  ;;  %v14333_v28 = vsub.f32 %v3087_v7, %v4428_v27  ;;  %v4426_v26 = vand.u32 4294901760, %v3084_v38  ;;  %v3425_v33 = vand.u32 4294901760, %v3424_v36  ;;  %v3437_v31 = vand.u32 4294901760, %v3436_v4  ;;  %v18363_v36 = vld [vmem:[#allocation60_spill] sm:$0xff] }
 0x1f6   :  { %18357 = vst [vmem:[#allocation91_spill] sm:$0xff] %v14317_v22  ;;  %18358 = vst [vmem:[#allocation93_spill] sm:$0xff] %v14328_v0  ;;  %10516 = vmatprep.subr.bf16.mxu1 %v14328_v0  ;;  %v4430_v2 = vand.u32 4294901760, %v3086_v58  ;;  %v3430_v7 = vsub.f32 %v18361_v48, %v17131_v9  ;;  %v3442_v10 = vsub.f32 %v13838_v63, %v17134_v6  ;;  %v18367_v9 = vand.u32 4294901760, %v13843_v11 }
 0x1f7   :  { %18359 = vst [vmem:[#allocation94_spill] sm:$0xff] %v14330_v16  ;;  %18360 = vst [vmem:[#allocation96_spill] sm:$0xff] %v14333_v28  ;;  %v14348_v27 = vsub.f32 %v3084_v38, %v4426_v26  ;;  %v14354_v18 = vpack.c.bf16 %v3437_v31, %v3425_v33  ;;  %v3088_v38 = vld [vmem:[%s16572_s3 + $0x240] sm:$0xff]  ;;  %v18368_v34 = vand.u32 4294901760, %v18363_v36  ;;  %v4432_v33 = vand.u32 4294901760, %v3089_v60 }
 0x1f8   :  { %v14356_v61 = vpack.c.bf16 %v4430_v2, %v4426_v26  ;;  %v14358_v39 = vsub.f32 %v3086_v58, %v4430_v2  ;;  %v3448_v0 = vsub.f32 %v13843_v11, %v18367_v9  ;;  %v3431_v6 = vand.u32 4294901760, %v3430_v7  ;;  %v3090_v9 = vld [vmem:[%s16572_s3 + $0x250] sm:$0xff] }
 0x1f9   :  { %18362 = vst [vmem:[#allocation97_spill] sm:$0xff] %v14348_v27  ;;  %18364 = vst [vmem:[#allocation106_spill] sm:$0xff] %v14354_v18  ;;  %v3443_v4 = vand.u32 4294901760, %v3442_v10  ;;  %v3460_v52 = vsub.f32 %v18363_v36, %v18368_v34  ;;  %v4436_v58 = vand.u32 4294901760, %v3091_v35  ;;  %v17146_v31 = vand.u32 4294901760, %v13855_v25  ;;  %v3093_v34 = vld [vmem:[%s16572_s3 + $0x268] sm:$0xff] }
 0x1fa   :  { %18365 = vst [vmem:[#allocation107_spill] sm:$0xff] %v14356_v61  ;;  %18366 = vst [vmem:[#allocation98_spill] sm:$0xff] %v14358_v39  ;;  %10518 = vmatpush1.bf16.msra.mxu1 %v14356_v61  ;;  %v3449_v26 = vand.u32 4294901760, %v3448_v0  ;;  %v14377_v10 = vsub.f32 %v3089_v60, %v4432_v33  ;;  %v4434_v27 = vand.u32 4294901760, %v3088_v38  ;;  %v18373_v55 = vand.u32 4294901760, %v13863_v1 }
 0x1fb   :  { %v14375_v39 = vpack.c.bf16 %v3443_v4, %v3431_v6  ;;  %v3461_v7 = vand.u32 4294901760, %v3460_v52  ;;  %v14382_v0 = vpack.c.bf16 %v4436_v58, %v4432_v33  ;;  %v14384_v61 = vsub.f32 %v3091_v35, %v4436_v58  ;;  %v3095_v52 = vld [vmem:[%s16572_s3 + $0x278] sm:$0xff] }
 0x1fc   :  { %18370 = vst [vmem:[#allocation113_spill] sm:$0xff] %v14377_v10  ;;  %v3454_v2 = vsub.f32 %v13855_v25, %v17146_v31  ;;  %v3466_v6 = vsub.f32 %v13863_v1, %v18373_v55  ;;  %v4438_v4 = vand.u32 4294901760, %v3090_v9  ;;  %v14397_v10 = vsub.f32 %v3088_v38, %v4434_v27  ;;  %v3092_v38 = vld [vmem:[%s16572_s3 + $0x260] sm:$0xff]  ;;  %v18464_v1 = vld [vmem:[#allocation30_spill] sm:$0xff] }
 0x1fd   :  { %18369 = vst [vmem:[#allocation112_spill] sm:$0xff] %v14375_v39  ;;  %18371 = vst [vmem:[#allocation185_spill] sm:$0xff] %v14382_v0  ;;  %v14395_v60 = vpack.c.bf16 %v3461_v7, %v3449_v26  ;;  %v17149_v35 = vand.u32 4294901760, %v14081_v45  ;;  %10520 = vmatprep.subr.bf16.mxu1 %v14382_v0  ;;  %v17155_v31 = vand.u32 4294901760, %v14083_v14  ;;  %v4444_v7 = vand.u32 4294901760, %v3095_v52  ;;  %v18463_v25 = vld [vmem:[#allocation104_spill] sm:$0xff] }
 0x1fe   :  { %18372 = vst [vmem:[#allocation115_spill] sm:$0xff] %v14384_v61  ;;  %18375 = vst [vmem:[#allocation9_spill] sm:$0xff] %v14397_v10  ;;  %v3455_v33 = vand.u32 4294901760, %v3454_v2  ;;  %v3467_v58 = vand.u32 4294901760, %v3466_v6  ;;  %v4440_v61 = vand.u32 4294901760, %v3093_v34  ;;  %v14402_v28 = vpack.c.bf16 %v4438_v4, %v4434_v27  ;;  %v3094_v2 = vld [vmem:[%s16572_s3 + $0x270] sm:$0xff] }
 0x1ff   :  { %18374 = vst [vmem:[#allocation116_spill] sm:$0xff] %v14395_v60  ;;  %v14404_v55 = vsub.f32 %v3090_v9, %v4438_v4  ;;  %v3472_v26 = vsub.f32 %v14081_v45, %v17149_v35  ;;  %v3484_v27 = vsub.f32 %v14083_v14, %v17155_v31  ;;  %v17156_v4 = vand.u32 4294901760, %v14094_v59 }
 0x200   :  { %18376 = vst [vmem:[#allocation12_spill] sm:$0xff] %v14402_v28  ;;  %v14415_v6 = vpack.c.bf16 %v3467_v58, %v3455_v33  ;;  %v14420_v9 = vsub.f32 %v3093_v34, %v4440_v61  ;;  %10522 = vmatpush1.bf16.msra.mxu1 %v14402_v28  ;;  %v14424_v0 = vpack.c.bf16 %v4444_v7, %v4440_v61  ;;  %v17159_v10 = vand.u32 4294901760, %v14096_v12 }
 0x201   :  { %18377 = vst [vmem:[#allocation15_spill] sm:$0xff] %v14404_v55  ;;  %v3473_v35 = vand.u32 4294901760, %v3472_v26  ;;  %v14426_v55 = vsub.f32 %v3095_v52, %v4444_v7  ;;  %v3485_v16 = vand.u32 4294901760, %v3484_v27  ;;  %v3478_v33 = vsub.f32 %v14094_v59, %v17156_v4  ;;  %v3097_v52 = vld [vmem:[%s16572_s3 + $0x288] sm:$0xff]  ;;  %v3099_v26 = vld [vmem:[%s16572_s3 + $0x298] sm:$0xff] }
 0x202   :  { %18378 = vst [vmem:[#allocation117_spill] sm:$0xff] %v14415_v6  ;;  %18379 = vst [vmem:[#allocation119_spill] sm:$0xff] %v14420_v9  ;;  %v4442_v58 = vand.u32 4294901760, %v3092_v38  ;;  %v4446_v31 = vand.u32 4294901760, %v3094_v2  ;;  %10524 = vmatprep.subr.bf16.mxu1 %v14424_v0  ;;  %v3490_v34 = vsub.f32 %v14096_v12, %v17159_v10  ;;  %v3096_v10 = vld [vmem:[%s16572_s3 + $0x280] sm:$0xff]  ;;  %v3508_v22 = vsub.f32 %v14118_v42, %v18390_v43 }
 0x203   :  { %18380 = vst [vmem:[#allocation163_spill] sm:$0xff] %v14424_v0  ;;  %18381 = vst [vmem:[#allocation162_spill] sm:$0xff] %v14426_v55  ;;  %v14443_v7 = vpack.c.bf16 %v3485_v16, %v3473_v35  ;;  %v3479_v27 = vand.u32 4294901760, %v3478_v33  ;;  %v18386_v55 = vand.u32 4294901760, %v14116_v29  ;;  %v4448_v35 = vand.u32 4294901760, %v3097_v52  ;;  %v3100_v6 = vld [vmem:[%s16572_s3 + $0x2a0] sm:$0xff] }
 0x204   :  { %v14445_v4 = vpack.c.bf16 %v4446_v31, %v4442_v58  ;;  %v14447_v0 = vsub.f32 %v3092_v38, %v4442_v58  ;;  %v3491_v61 = vand.u32 4294901760, %v3490_v34  ;;  %v14452_v28 = vsub.f32 %v3094_v2, %v4446_v31  ;;  %v3098_v38 = vld [vmem:[%s16572_s3 + $0x290] sm:$0xff]  ;;  %v18389_v31 = vld [vmem:[#allocation32_spill] sm:$0xff] }
 0x205   :  { %18382 = vst [vmem:[#allocation18_spill] sm:$0xff] %v14443_v7  ;;  %v3496_v9 = vsub.f32 %v14116_v29, %v18386_v55  ;;  %v4452_v33 = vand.u32 4294901760, %v3099_v26  ;;  %v17177_v2 = vand.u32 4294901760, %v18389_v31  ;;  %v3103_v55 = vld [vmem:[%s16572_s3 + $0x2b8] sm:$0xff]  ;;  %v4454_v62 = vand.u32 4294901760, %v3098_v38 }
 0x206   :  { %18383 = vst [vmem:[#allocation21_spill] sm:$0xff] %v14445_v4  ;;  %18384 = vst [vmem:[#allocation176_spill] sm:$0xff] %v14447_v0  ;;  %10526 = vmatpush1.bf16.msra.mxu1 %v14445_v4  ;;  %v14462_v58 = vpack.c.bf16 %v3491_v61, %v3479_v27  ;;  %v18388_v0 = vld [vmem:[#allocation31_spill] sm:$0xff]  ;;  %v3101_v4 = vld [vmem:[%s16572_s3 + $0x2a8] sm:$0xff]  ;;  %v17186_v56 = vand.u32 4294901760, %v18392_v21  ;;  %v3509_v24 = vand.u32 4294901760, %v3508_v22 }
 0x207   :  { %18385 = vst [vmem:[#allocation177_spill] sm:$0xff] %v14452_v28  ;;  %v17176_v34 = vand.u32 4294901760, %v18388_v0  ;;  %v4450_v28 = vand.u32 4294901760, %v3096_v10  ;;  %v3497_v16 = vand.u32 4294901760, %v3496_v9  ;;  %v14475_v61 = vpack.c.bf16 %v4452_v33, %v4448_v35  ;;  %v18393_v9 = vld [vmem:[#allocation189_spill] sm:$0xff] }
 0x208   :  { %18387 = vst [vmem:[#allocation186_spill] sm:$0xff] %v14462_v58  ;;  %v3514_v49 = vsub.f32 %v18389_v31, %v17177_v2  ;;  %v17187_v58 = vand.u32 4294901760, %v18393_v9  ;;  %v4456_v7 = vand.u32 4294901760, %v3101_v4  ;;  %v4460_v43 = vand.u32 4294901760, %v3103_v55  ;;  %v18397_v31 = vld [vmem:[#allocation37_spill] sm:$0xff] }
 0x209   :  { %18391 = vst [vmem:[#allocation188_spill] sm:$0xff] %v14475_v61  ;;  %v3502_v27 = vsub.f32 %v18388_v0, %v17176_v34  ;;  %10528 = vmatprep.subr.bf16.mxu1 %v14475_v61  ;;  %v14489_v39 = vpack.c.bf16 %v4454_v62, %v4450_v28  ;;  %v3520_v2 = vsub.f32 %v18392_v21, %v17186_v56  ;;  %v17189_v0 = vand.u32 4294901760, %v18397_v31  ;;  %v18438_v21 = vld [vmem:[#allocation179_spill] sm:$0xff] }
 0x20a   :  { %v3515_v34 = vand.u32 4294901760, %v3514_v49  ;;  %v14494_v18 = vpack.c.bf16 %v3509_v24, %v3497_v16  ;;  %v3532_v22 = vsub.f32 %v18393_v9, %v17187_v58  ;;  %v14499_v61 = vpack.c.bf16 %v4460_v43, %v4456_v7  ;;  %v3102_v24 = vld [vmem:[%s16572_s3 + $0x2b0] sm:$0xff] }
 0x20b   :  { %v3503_v60 = vand.u32 4294901760, %v3502_v27  ;;  %18394 = vst [vmem:[#allocation130_spill] sm:$0xff] %v14489_v39  ;;  %10530 = vmatpush1.bf16.msra.mxu1 %v14489_v39  ;;  %v3521_v49 = vand.u32 4294901760, %v3520_v2  ;;  %v18398_v27 = vld [vmem:[#allocation38_spill] sm:$0xff]  ;;  %v4458_v16 = vand.u32 4294901760, %v3100_v6  ;;  %v14509_v56 = vsub.f32 %v3097_v52, %v4448_v35 }
 0x20c   :  { %18395 = vst [vmem:[#allocation131_spill] sm:$0xff] %v14494_v18  ;;  %18396 = vst [vmem:[#allocation133_spill] sm:$0xff] %v14499_v61  ;;  %v14511_v18 = vsub.f32 %v3099_v26, %v4452_v33  ;;  %v14513_v58 = vsub.f32 %v3096_v10, %v4450_v28  ;;  %v14515_v9 = vsub.f32 %v3098_v38, %v4454_v62  ;;  %10532 = vmatprep.subr.bf16.mxu1 %v14499_v61 }
 0x20d   :  { %v14502_v42 = vpack.c.bf16 %v3515_v34, %v3503_v60  ;;  %18399 = vst [vmem:[#allocation135_spill] sm:$0xff] %v14509_v56  ;;  %v3105_v60 = vld [vmem:[%s16572_s3 + $0x2c8] sm:$0xff]  ;;  %v3533_v34 = vand.u32 4294901760, %v3532_v22  ;;  %v14521_v2 = vsub.f32 %v3101_v4, %v4456_v7  ;;  %v14523_v29 = vsub.f32 %v3103_v55, %v4460_v43  ;;  %v3107_v4 = vld [vmem:[%s16572_s3 + $0x2d8] sm:$0xff]  ;;  %v3104_v43 = vld [vmem:[%s16572_s3 + $0x2c0] sm:$0xff] }
 0x20e   :  { %18400 = vst [vmem:[#allocation136_spill] sm:$0xff] %v14511_v18  ;;  %18401 = vst [vmem:[#allocation137_spill] sm:$0xff] %v14513_v58  ;;  %v3526_v52 = vsub.f32 %v18397_v31, %v17189_v0  ;;  %v18405_v28 = vand.u32 4294901760, %v18398_v27  ;;  %v4462_v10 = vand.u32 4294901760, %v3102_v24  ;;  %v14531_v26 = vsub.f32 %v3100_v6, %v4458_v16  ;;  %v18437_v31 = vld [vmem:[#allocation175_spill] sm:$0xff] }
 0x20f   :  { %18402 = vst [vmem:[#allocation139_spill] sm:$0xff] %v14515_v9  ;;  %18403 = vst [vmem:[#allocation128_spill] sm:$0xff] %v14521_v2  ;;  %v17192_v35 = vand.u32 4294901760, %v14231_v30  ;;  %v14537_v7 = vpack.c.bf16 %v3533_v34, %v3521_v49  ;;  %v17193_v38 = vand.u32 4294901760, %v14233_v54  ;;  %v4464_v55 = vand.u32 4294901760, %v3105_v60 }
 0x210   :  { %18404 = vst [vmem:[#allocation99_spill] sm:$0xff] %v14523_v29  ;;  %v3538_v62 = vsub.f32 %v18398_v27, %v18405_v28  ;;  %18406 = vst [vmem:[#allocation192_spill] sm:$0xff] %v14531_v26  ;;  %v3527_v33 = vand.u32 4294901760, %v3526_v52  ;;  %v14543_v28 = vpack.c.bf16 %v4462_v10, %v4458_v16  ;;  %v14545_v6 = vsub.f32 %v3102_v24, %v4462_v10  ;;  %v3106_v16 = vld [vmem:[%s16572_s3 + $0x2d0] sm:$0xff] }
 0x211   :  { %v3544_v0 = vsub.f32 %v14231_v30, %v17192_v35  ;;  %v3556_v49 = vsub.f32 %v14233_v54, %v17193_v38  ;;  %v4468_v34 = vand.u32 4294901760, %v3107_v4  ;;  %v14553_v52 = vsub.f32 %v3105_v60, %v4464_v55  ;;  %v3109_v38 = vld [vmem:[%s16572_s3 + $0x2e8] sm:$0xff] }
 0x212   :  { %v3539_v22 = vand.u32 4294901760, %v3538_v62  ;;  %18407 = vst [vmem:[#allocation100_spill] sm:$0xff] %v14543_v28  ;;  %18408 = vst [vmem:[#allocation140_spill] sm:$0xff] %v14545_v6  ;;  %10534 = vmatpush1.bf16.msra.mxu1 %v14543_v28  ;;  %v17200_v10 = vand.u32 4294901760, %v14237_v23  ;;  %v4466_v35 = vand.u32 4294901760, %v3104_v43  ;;  %v17224_v2 = vand.u32 4294901760, %v14251_v47 }
 0x213   :  { %18409 = vst [vmem:[#allocation92_spill] sm:$0xff] %v14553_v52  ;;  %v3545_v24 = vand.u32 4294901760, %v3544_v0  ;;  %v3557_v60 = vand.u32 4294901760, %v3556_v49  ;;  %v14566_v39 = vpack.c.bf16 %v4468_v34, %v4464_v55  ;;  %v14568_v61 = vsub.f32 %v3107_v4, %v4468_v34  ;;  %v3111_v55 = vld [vmem:[%s16572_s3 + $0x2f8] sm:$0xff] }
 0x214   :  { %v14559_v62 = vpack.c.bf16 %v3539_v22, %v3527_v33  ;;  %v18412_v52 = vand.u32 4294901760, %v14235_v8  ;;  %v3562_v0 = vsub.f32 %v14237_v23, %v17200_v10  ;;  %v4470_v22 = vand.u32 4294901760, %v3106_v16  ;;  %v3108_v10 = vld [vmem:[%s16572_s3 + $0x2e0] sm:$0xff] }
 0x215   :  { %18410 = vst [vmem:[#allocation102_spill] sm:$0xff] %v14566_v39  ;;  %18411 = vst [vmem:[#allocation95_spill] sm:$0xff] %v14568_v61  ;;  %v14576_v28 = vsub.f32 %v3104_v43, %v4466_v35  ;;  %v14582_v49 = vpack.c.bf16 %v3557_v60, %v3545_v24  ;;  %10536 = vmatprep.subr.bf16.mxu1 %v14566_v39  ;;  %v17206_v34 = vand.u32 4294901760, %v14241_v37  ;;  %v18416_v61 = vand.u32 4294901760, %v14239_v5 }
 0x216   :  { %v3550_v33 = vsub.f32 %v14235_v8, %v18412_v52  ;;  %v4472_v52 = vand.u32 4294901760, %v3109_v38  ;;  %v3563_v43 = vand.u32 4294901760, %v3562_v0  ;;  %v14591_v6 = vsub.f32 %v3106_v16, %v4470_v22 }
 0x217   :  { %18413 = vst [vmem:[#allocation103_spill] sm:$0xff] %v14576_v28  ;;  %v14589_v28 = vpack.c.bf16 %v4470_v22, %v4466_v35  ;;  %v3568_v24 = vsub.f32 %v14239_v5, %v18416_v61  ;;  %v3580_v60 = vsub.f32 %v14241_v37, %v17206_v34  ;;  %v3110_v35 = vld [vmem:[%s16572_s3 + $0x2f0] sm:$0xff]  ;;  %v17212_v61 = vand.u32 4294901760, %v14245_v32  ;;  %v3113_v34 = vld [vmem:[%s16572_s3 + $0x308] sm:$0xff] }
 0x218   :  { %v3551_v4 = vand.u32 4294901760, %v3550_v33  ;;  %18415 = vst [vmem:[#allocation142_spill] sm:$0xff] %v14591_v6  ;;  %v4476_v33 = vand.u32 4294901760, %v3111_v55  ;;  %v14599_v39 = vsub.f32 %v3109_v38, %v4472_v52  ;;  %v4474_v22 = vand.u32 4294901760, %v3108_v10  ;;  %v18446_v5 = vld [vmem:[#allocation159_spill] sm:$0xff] }
 0x219   :  { %18414 = vst [vmem:[#allocation105_spill] sm:$0xff] %v14589_v28  ;;  %10538 = vmatpush1.bf16.msra.mxu1 %v14589_v28  ;;  %v3569_v16 = vand.u32 4294901760, %v3568_v24  ;;  %v3581_v38 = vand.u32 4294901760, %v3580_v60  ;;  %v18420_v6 = vand.u32 4294901760, %v14243_v50  ;;  %v4478_v24 = vand.u32 4294901760, %v3110_v35 }
 0x21a   :  { %18417 = vst [vmem:[#allocation152_spill] sm:$0xff] %v14599_v39  ;;  %v14605_v0 = vpack.c.bf16 %v3563_v43, %v3551_v4  ;;  %v14612_v39 = vpack.c.bf16 %v4476_v33, %v4472_v52  ;;  %v14614_v26 = vsub.f32 %v3111_v55, %v4476_v33  ;;  %v3586_v43 = vsub.f32 %v14245_v32, %v17212_v61  ;;  %v3115_v52 = vld [vmem:[%s16572_s3 + $0x318] sm:$0xff]  ;;  %v3112_v61 = vld [vmem:[%s16572_s3 + $0x300] sm:$0xff] }
 0x21b   :  { %v3574_v4 = vsub.f32 %v14243_v50, %v18420_v6  ;;  %v14622_v28 = vsub.f32 %v3108_v10, %v4474_v22  ;;  %v14628_v60 = vpack.c.bf16 %v3581_v38, %v3569_v16  ;;  %v17220_v6 = vand.u32 4294901760, %v14249_v44 }
 0x21c   :  { %18418 = vst [vmem:[#allocation111_spill] sm:$0xff] %v14612_v39  ;;  %18419 = vst [vmem:[#allocation114_spill] sm:$0xff] %v14614_v26  ;;  %10540 = vmatprep.subr.bf16.mxu1 %v14612_v39  ;;  %v4480_v33 = vand.u32 4294901760, %v3113_v34  ;;  %v3587_v10 = vand.u32 4294901760, %v3586_v43  ;;  %v14637_v29 = vsub.f32 %v3110_v35, %v4478_v24  ;;  %v18424_v26 = vand.u32 4294901760, %v14247_v41 }
 0x21d   :  { %18421 = vst [vmem:[#allocation160_spill] sm:$0xff] %v14622_v28  ;;  %v3575_v55 = vand.u32 4294901760, %v3574_v4  ;;  %v14635_v28 = vpack.c.bf16 %v4478_v24, %v4474_v22  ;;  %v3604_v38 = vsub.f32 %v14249_v44, %v17220_v6  ;;  %v4484_v4 = vand.u32 4294901760, %v3115_v52  ;;  %v3114_v22 = vld [vmem:[%s16572_s3 + $0x310] sm:$0xff] }
 0x21e   :  { %18423 = vst [vmem:[#allocation120_spill] sm:$0xff] %v14637_v29  ;;  %v3592_v16 = vsub.f32 %v14247_v41, %v18424_v26  ;;  %v14645_v39 = vsub.f32 %v3113_v34, %v4480_v33  ;;  %v17227_v26 = vand.u32 4294901760, %v14253_v19  ;;  %v4482_v24 = vand.u32 4294901760, %v3112_v61  ;;  %v18453_v44 = vld [vmem:[#allocation166_spill] sm:$0xff] }
 0x21f   :  { %18422 = vst [vmem:[#allocation118_spill] sm:$0xff] %v14635_v28  ;;  %v14651_v43 = vpack.c.bf16 %v3587_v10, %v3575_v55  ;;  %10542 = vmatpush1.bf16.msra.mxu1 %v14635_v28  ;;  %v3605_v29 = vand.u32 4294901760, %v3604_v38  ;;  %v14655_v9 = vpack.c.bf16 %v4484_v4, %v4480_v33  ;;  %v14657_v6 = vsub.f32 %v3115_v52, %v4484_v4 }
 0x220   :  { %18425 = vst [vmem:[#allocation88_spill] sm:$0xff] %v14645_v39  ;;  %v3593_v35 = vand.u32 4294901760, %v3592_v16  ;;  %v3598_v34 = vsub.f32 %v14251_v47, %v17224_v2  ;;  %v3610_v55 = vsub.f32 %v14253_v19, %v17227_v26  ;;  %v4486_v10 = vand.u32 4294901760, %v3114_v22 }
 0x221   :  { %18426 = vst [vmem:[#allocation143_spill] sm:$0xff] %v14655_v9  ;;  %18427 = vst [vmem:[#allocation148_spill] sm:$0xff] %v14657_v6  ;;  %v14665_v39 = vsub.f32 %v3112_v61, %v4482_v24  ;;  %v17226_v16 = vand.u32 4294901760, %v14255_v15  ;;  %10544 = vmatprep.subr.bf16.mxu1 %v14655_v9  ;;  %v17230_v52 = vand.u32 4294901760, %v14257_v3  ;;  %v17231_v38 = vand.u32 4294901760, %v14259_v40 }
 0x222   :  { %v14668_v28 = vpack.c.bf16 %v3605_v29, %v3593_v35  ;;  %v3599_v33 = vand.u32 4294901760, %v3598_v34  ;;  %v3611_v4 = vand.u32 4294901760, %v3610_v55  ;;  %v14673_v2 = vpack.c.bf16 %v4486_v10, %v4482_v24 }
 0x223   :  { %18428 = vst [vmem:[#allocation121_spill] sm:$0xff] %v14665_v39  ;;  %v14675_v6 = vsub.f32 %v3114_v22, %v4486_v10  ;;  %v3616_v61 = vsub.f32 %v14255_v15, %v17226_v16  ;;  %v3628_v29 = vsub.f32 %v14257_v3, %v17230_v52  ;;  %v3622_v35 = vsub.f32 %v14259_v40, %v17231_v38  ;;  %v18452_v3 = vld [vmem:[#allocation174_spill] sm:$0xff] }
 0x224   :  { %18429 = vst [vmem:[#allocation122_spill] sm:$0xff] %v14673_v2  ;;  %v17235_v34 = vand.u32 4294901760, %v14261_v46  ;;  %v17236_v55 = vand.u32 4294901760, %v14265_v20  ;;  %v14688_v24 = vpack.c.bf16 %v3611_v4, %v3599_v33  ;;  %10546 = vmatpush1.bf16.msra.mxu1 %v14673_v2  ;;  %v17239_v10 = vand.u32 4294901760, %v14267_v13 }
 0x225   :  { %18430 = vst [vmem:[#allocation154_spill] sm:$0xff] %v14675_v6  ;;  %v3617_v22 = vand.u32 4294901760, %v3616_v61  ;;  %v17241_v16 = vand.u32 4294901760, %v14271_v53  ;;  %v3629_v26 = vand.u32 4294901760, %v3628_v29  ;;  %v3623_v9 = vand.u32 4294901760, %v3622_v35 }
 0x226   :  { %v3634_v52 = vsub.f32 %v14261_v46, %v17235_v34  ;;  %v3640_v38 = vsub.f32 %v14265_v20, %v17236_v55  ;;  %v3652_v33 = vsub.f32 %v14267_v13, %v17239_v10  ;;  %v17242_v61 = vand.u32 4294901760, %v14273_v57 }
 0x227   :  { %v3646_v4 = vsub.f32 %v14271_v53, %v17241_v16  ;;  %v14706_v29 = vpack.c.bf16 %v3629_v26, %v3617_v22  ;;  %v17262_v27 = vand.u32 4294901760, %v18437_v31  ;;  %v18456_v46 = vand.u32 4294901760, %v18446_v5 }
 0x228   :  { %v3635_v35 = vand.u32 4294901760, %v3634_v52  ;;  %v3641_v2 = vand.u32 4294901760, %v3640_v38  ;;  %v3653_v6 = vand.u32 4294901760, %v3652_v33  ;;  %v3658_v55 = vsub.f32 %v14273_v57, %v17242_v61  ;;  %v14744_v61 = vld [vmem:[%s16571_s2] sm:$0xf] }
 0x229   :  { %v3647_v34 = vand.u32 4294901760, %v3646_v4  ;;  %v18458_v19 = vand.u32 4294901760, %v18452_v3  ;;  %v17315_v11 = vand.u32 4294901760, %v18464_v1 }
 0x22a   :  { %v14711_v39 = vpack.c.bf16 %v3635_v35, %v3623_v9  ;;  %v14713_v58 = vpack.c.bf16 %v3653_v6, %v3641_v2  ;;  %v3659_v10 = vand.u32 4294901760, %v3658_v55  ;;  %v17250_v55 = vlaneseq }
 0x22b   :  { %v17265_v9 = vand.u32 4294901760, %v18438_v21  ;;  %v3346_v20 = vsub.f32 %v18452_v3, %v18458_v19  ;;  %v17313_v19 = vand.u32 4294901760, %v18463_v25 }
 0x22c   :  { %v14715_v18 = vpack.c.bf16 %v3659_v10, %v3647_v34  ;;  %v14734_v38 = vshrl.u32 %v17250_v55, 7 }
 0x22d   :  { %v3347_v36 = vand.u32 4294901760, %v3346_v20 }
 0x22e   :  { %18435 = vst [vmem:[#allocation157_spill] sm:$0xff] %v14734_v38  ;;  %v17256_v33 = vsub.s32 0, %v14734_v38 }
 0x230   :  { %v2991_v2 = vrot.slane %v14744_v61, %v17256_v33  ;;  %v3286_v33 = vsub.f32 %v18437_v31, %v17262_v27 }
 0x25f   :  { %v1553_v6 = vpop.f32.mrb[0].mxu0 }
 0x260   :  { %v1555_v34 = vpop.f32.mrb[1].mxu0 }
 0x264   :  { %v1561_v26 = vpop.f32.mrb[2].mxu0 }
 0x265   :  { %v2974_v52 = vmax.f32 %v1553_v6, %v1561_v26  ;;  %v1563_v16 = vpop.f32.mrb[3].mxu0  ;;  %v17259_v26 = vsub.s32 1, %v14734_v38 }
 0x266   :  { %v2975_v56 = vmax.f32 %v1555_v34, %v1563_v16 }
 0x267   :  { %v2995_v35 = vrot.slane %v14744_v61, %v17259_v26 }
 0x268   :  { %v1569_v59 = vpop.f32.mrb[4].mxu0 }
 0x269   :  { %v1571_v12 = vpop.f32.mrb[5].mxu0 }
 0x26c   :  { %v1577_v34 = vpop.f32.mrb[6].mxu0 }
 0x26d   :  { %v2978_v55 = vmax.f32 %v1569_v59, %v1577_v34  ;;  %v1579_v45 = vpop.f32.mrb[7].mxu0  ;;  %v18441_v59 = vld [vmem:[#allocation149_spill] sm:$0xff] }
 0x26e   :  { %v2979_v4 = vmax.f32 %v1571_v12, %v1579_v45  ;;  %v3298_v45 = vsub.f32 %v18438_v21, %v17265_v9  ;;  %v18439_v12 = vld [vmem:[#allocation145_spill] sm:$0xff]  ;;  %v3287_v9 = vand.u32 4294901760, %v3286_v33 }
 0x26f   :  { %v2982_v6 = vmax.f32 %v2974_v52, %v2978_v55  ;;  %v17268_v23 = vand.u32 4294901760, %v18439_v12  ;;  %v18440_v55 = vld [vmem:[#allocation147_spill] sm:$0xff] }
 0x270   :  { %v2983_v34 = vmax.f32 %v2975_v56, %v2979_v4  ;;  %v3299_v32 = vand.u32 4294901760, %v3298_v45  ;;  %v18448_v27 = vand.u32 4294901760, %v18440_v55  ;;  %v18449_v45 = vand.u32 4294901760, %v18441_v59 }
 0x271   :  { %v3008_v8 = vadd.f32 %v2991_v2, %v2982_v6  ;;  %v18442_v6 = vld [vmem:[#allocation151_spill] sm:$0xff] }
 0x272   :  { %v3009_v26 = vadd.f32 %v2995_v35, %v2983_v34  ;;  %v3304_v35 = vsub.f32 %v18439_v12, %v17268_v23  ;;  %v3316_v33 = vsub.f32 %v18440_v55, %v18448_v27  ;;  %v3310_v23 = vsub.f32 %v18441_v59, %v18449_v45  ;;  %v18454_v45 = vld [vmem:[#allocation178_spill] sm:$0xff] }
 0x273   :  { %v3012_v52 = vmax.f32 %v3008_v8, 0.0  ;;  %v18445_v8 = vld [vmem:[#allocation155_spill] sm:$0xff]  ;;  %v18450_v56 = vand.u32 4294901760, %v18442_v6  ;;  %v10193_v41 = vpack.c.bf16 %v3299_v32, %v3287_v9 }
 0x274   :  { %v3013_v4 = vmax.f32 %v3009_v26, 0.0  ;;  %v3305_v9 = vand.u32 4294901760, %v3304_v35  ;;  %v3317_v37 = vand.u32 4294901760, %v3316_v33  ;;  %v3311_v15 = vand.u32 4294901760, %v3310_v23 }
 0x275   :  { %v14777_v50 = vand.u32 4294901760, %v3012_v52  ;;  %v3322_v2 = vsub.f32 %v18442_v6, %v18450_v56  ;;  %v3340_v56 = vsub.f32 %v18446_v5, %v18456_v46  ;;  %v18460_v33 = vand.u32 4294901760, %v18454_v45 }
 0x276   :  { %v14782_v34 = vand.u32 4294901760, %v3013_v4  ;;  %v10195_v14 = vpack.c.bf16 %v3317_v37, %v3305_v9  ;;  %v18467_v9 = vld [vmem:[#allocation33_spill] sm:$0xff] }
 0x277   :  { %18443 = vst [vmem:[#allocation165_spill] sm:$0xff] %v14777_v50  ;;  %v14789_v26 = vsub.f32 %v3012_v52, %v14777_v50  ;;  %v18451_v52 = vld [vmem:[#allocation172_spill] sm:$0xff]  ;;  %v3364_v30 = vsub.f32 %v18454_v45, %v18460_v33  ;;  %v3323_v13 = vand.u32 4294901760, %v3322_v2  ;;  %v17318_v20 = vand.u32 4294901760, %v18467_v9 }
 0x278   :  { %18444 = vst [vmem:[#allocation123_spill] sm:$0xff] %v14782_v34  ;;  %v14800_v16 = vsub.f32 %v3013_v4, %v14782_v34  ;;  %v18455_v4 = vand.u32 4294901760, %v18445_v8  ;;  %v18457_v54 = vand.u32 4294901760, %v18451_v52 }
 0x279   :  { %18447 = vst [vmem:[#allocation124_spill] sm:$0xff] %v14789_v26  ;;  %v17293_v27 = vand.u32 4294901760, %v14789_v26  ;;  %v3365_v33 = vand.u32 4294901760, %v3364_v30  ;;  %v10197_v37 = vpack.c.bf16 %v3323_v13, %v3311_v15  ;;  %v3376_v30 = vsub.f32 %v18463_v25, %v17313_v19  ;;  %v18470_v19 = vld [vmem:[#allocation42_spill] sm:$0xff] }
 0x27a   :  { %v17298_v47 = vand.u32 4294901760, %v14800_v16  ;;  %v3328_v40 = vsub.f32 %v18445_v8, %v18455_v4  ;;  %v3334_v46 = vsub.f32 %v18451_v52, %v18457_v54  ;;  %v3341_v54 = vand.u32 4294901760, %v3340_v56 }
 0x27b   :  { %v3269_v32 = vsub.f32 %v14789_v26, %v17293_v27  ;;  %v18459_v27 = vand.u32 4294901760, %v18453_v44  ;;  %v18461_v26 = vld [vmem:[#allocation27_spill] sm:$0xff] }
 0x27c   :  { %v3263_v4 = vsub.f32 %v14800_v16, %v17298_v47  ;;  %v17314_v53 = vand.u32 4294901760, %v18461_v26  ;;  %v18462_v47 = vld [vmem:[#allocation187_spill] sm:$0xff]  ;;  %v3329_v22 = vand.u32 4294901760, %v3328_v40 }
 0x27d   :  { %v3352_v35 = vsub.f32 %v18453_v44, %v18459_v27  ;;  %v3270_v10 = vand.u32 4294901760, %v3269_v32  ;;  %v3335_v27 = vand.u32 4294901760, %v3334_v46  ;;  %v18465_v2 = vand.u32 4294901760, %v18462_v47  ;;  %v18466_v32 = vld [vmem:[#allocation108_spill] sm:$0xff] }
 0x27e   :  { %v3264_v57 = vand.u32 4294901760, %v3263_v4  ;;  %v3358_v23 = vsub.f32 %v18461_v26, %v17314_v53  ;;  %v10199_v56 = vpack.c.bf16 %v3341_v54, %v3329_v22  ;;  %v18468_v4 = vld [vmem:[#allocation36_spill] sm:$0xff]  ;;  %v3394_v54 = vsub.f32 %v18467_v9, %v17318_v20 }
 0x27f   :  { %v3353_v48 = vand.u32 4294901760, %v3352_v35  ;;  %v3370_v40 = vsub.f32 %v18462_v47, %v18465_v2  ;;  %v10201_v2 = vpack.c.bf16 %v3347_v36, %v3335_v27  ;;  %v17322_v53 = vand.u32 4294901760, %v18470_v19 }
 0x280   :  { %3265 = vmatprep.mubr.f32.mxu0 %v3264_v57  ;;  %v17319_v57 = vand.u32 4294901760, %v18466_v32  ;;  %v3359_v13 = vand.u32 4294901760, %v3358_v23  ;;  %v3377_v46 = vand.u32 4294901760, %v3376_v30 }
 0x281   :  { %3271 = vmatmul.mubr.f32.vlgmr.msra.gmra.mrb[8].mxu0 %v3270_v10  ;;  %v3388_v10 = vsub.f32 %v18464_v1, %v17315_v11  ;;  %v10203_v15 = vpack.c.bf16 %v3365_v33, %v3353_v48  ;;  %v3371_v22 = vand.u32 4294901760, %v3370_v40  ;;  %v18471_v11 = vld [vmem:[#allocation45_spill] sm:$0xff]  ;;  %v18472_v48 = vand.u32 4294901760, %v18468_v4 }
 0x282   :  { %10194 = vmatpush1.bf16.msra.mxu0 %v10193_v41  ;;  %3662 = vmatprep.mubr.f32.mxu0 %v14782_v34  ;;  %v18469_v41 = vld [vmem:[#allocation39_spill] sm:$0xff]  ;;  %v17325_v34 = vand.u32 4294901760, %v18471_v11  ;;  %v3406_v20 = vsub.f32 %v18470_v19, %v17322_v53  ;;  %v18475_v53 = vld [vmem:[#allocation112_spill] sm:$0xff] }
 0x283   :  { %10196 = vmatprep.subr.bf16.mxu0 %v10195_v14  ;;  %v3382_v14 = vsub.f32 %v18466_v32, %v17319_v57  ;;  %v3389_v35 = vand.u32 4294901760, %v3388_v10  ;;  %v3400_v36 = vsub.f32 %v18468_v4, %v18472_v48  ;;  %v18473_v23 = vand.u32 4294901760, %v18469_v41 }
 0x284   :  { %v10205_v33 = vpack.c.bf16 %v3371_v22, %v3359_v13  ;;  %v3407_v63 = vand.u32 4294901760, %v3406_v20  ;;  %v18474_v22 = vld [vmem:[#allocation106_spill] sm:$0xff]  ;;  %v18477_v20 = vld [vmem:[#allocation117_spill] sm:$0xff] }
 0x285   :  { %v3412_v27 = vsub.f32 %v18469_v41, %v18473_v23  ;;  %v3383_v40 = vand.u32 4294901760, %v3382_v14  ;;  %v10207_v30 = vpack.c.bf16 %v3389_v35, %v3377_v46  ;;  %v3401_v10 = vand.u32 4294901760, %v3400_v36 }
 0x286   :  { %10198 = vmatpush1.bf16.msra.mxu0 %v10197_v37  ;;  %v3395_v37 = vand.u32 4294901760, %v3394_v54 }
 0x287   :  { %10200 = vmatprep.subr.bf16.mxu0 %v10199_v56  ;;  %v3418_v56 = vsub.f32 %v18471_v11, %v17325_v34  ;;  %v3413_v48 = vand.u32 4294901760, %v3412_v27  ;;  %v18525_v34 = vld [vmem:[#allocation59_spill] sm:$0xff] }
 0x288   :  { %v10209_v57 = vpack.c.bf16 %v3395_v37, %v3383_v40  ;;  %v18478_v40 = vld [vmem:[#allocation18_spill] sm:$0xff]  ;;  %v3002_v37 = vsub.s32 3, %v14734_v38 }
 0x289   :  { %v3419_v23 = vand.u32 4294901760, %v3418_v56  ;;  %v18479_v56 = vld [vmem:[#allocation186_spill] sm:$0xff] }
 0x28a   :  { %10202 = vmatpush1.bf16.msra.mxu0 %v10201_v2  ;;  %v10211_v2 = vpack.c.bf16 %v3413_v48, %v3401_v10 }
 0x28b   :  { %10204 = vmatprep.subr.bf16.mxu0 %v10203_v15  ;;  %v10213_v13 = vpack.c.bf16 %v3419_v23, %v3407_v63  ;;  %v18476_v15 = vld [vmem:[#allocation116_spill] sm:$0xff] }
 0x28e   :  { %10206 = vmatpush1.bf16.msra.mxu0 %v10205_v33 }
 0x28f   :  { %10208 = vmatprep.subr.bf16.mxu0 %v10207_v30 }
 0x292   :  { %10210 = vmatpush1.bf16.msra.mxu0 %v10209_v57  ;;  %v2998_v57 = vsub.s32 2, %v14734_v38 }
 0x293   :  { %10212 = vmatprep.subr.bf16.mxu0 %v10211_v2 }
 0x294   :  { %v2999_v48 = vrot.slane %v14744_v61, %v2998_v57  ;;  %v10269_v57 = vpack.c.bf16 %v18462_v47, %v18461_v26 }
 0x296   :  { %10214 = vmatpush1.bf16.msra.mxu0 %v10213_v13  ;;  %v3003_v13 = vrot.slane %v14744_v61, %v3002_v37  ;;  %v10271_v37 = vpack.c.bf16 %v18464_v1, %v18463_v25 }
 0x297   :  { %10216 = vmatprep.subr.bf16.mxu0 %v18474_v22 }
 0x29a   :  { %10218 = vmatpush1.bf16.msra.mxu0 %v18475_v53  ;;  %v18480_v53 = vld [vmem:[#allocation131_spill] sm:$0xff] }
 0x29b   :  { %10220 = vmatprep.subr.bf16.mxu0 %v18476_v15 }
 0x29c   :  { %v2945_v14 = vpop.f32.mrb[0].mxu1 }
 0x29d   :  { %v2947_v54 = vpop.f32.mrb[1].mxu1 }
 0x29e   :  { %10222 = vmatpush1.bf16.msra.mxu0 %v18477_v20 }
 0x29f   :  { %10224 = vmatprep.subr.bf16.mxu0 %v18478_v40  ;;  %v18486_v40 = vld [vmem:[#allocation170_spill] sm:$0xff] }
 0x2a0   :  { %v2953_v46 = vpop.f32.mrb[2].mxu1 }
 0x2a1   :  { %v2976_v35 = vmax.f32 %v2945_v14, %v2953_v46  ;;  %v2955_v36 = vpop.f32.mrb[3].mxu1 }
 0x2a2   :  { %v2977_v27 = vmax.f32 %v2947_v54, %v2955_v36  ;;  %10226 = vmatpush1.bf16.msra.mxu0 %v18479_v56  ;;  %v10273_v56 = vpack.c.bf16 %v18467_v9, %v18466_v32 }
 0x2a3   :  { %10228 = vmatprep.subr.bf16.mxu0 %v18480_v53  ;;  %v10277_v53 = vpack.c.bf16 %v18471_v11, %v18470_v19 }
 0x2a4   :  { %v2961_v33 = vpop.f32.mrb[4].mxu1 }
 0x2a5   :  { %v2963_v63 = vpop.f32.mrb[5].mxu1 }
 0x2a6   :  { %10230 = vmatpush1.bf16.msra.mxu0 %v14502_v42 }
 0x2a7   :  { %10232 = vmatprep.subr.bf16.mxu0 %v14537_v7 }
 0x2a8   :  { %v2969_v30 = vpop.f32.mrb[6].mxu1 }
 0x2a9   :  { %v2980_v10 = vmax.f32 %v2961_v33, %v2969_v30  ;;  %v2971_v23 = vpop.f32.mrb[7].mxu1  ;;  %v10275_v30 = vpack.c.bf16 %v18469_v41, %v18468_v4 }
 0x2aa   :  { %v2981_v2 = vmax.f32 %v2963_v63, %v2971_v23  ;;  %10234 = vmatpush1.bf16.msra.mxu0 %v14559_v62  ;;  %v18489_v23 = vld [vmem:[#allocation51_spill] sm:$0xff] }
 0x2ab   :  { %v2984_v22 = vmax.f32 %v2976_v35, %v2980_v10  ;;  %10236 = vmatprep.subr.bf16.mxu0 %v14582_v49  ;;  %v18487_v10 = vpack.c.bf16 %v13826_v17, %v18354_v51 }
 0x2ac   :  { %v2985_v14 = vmax.f32 %v2977_v27, %v2981_v2 }
 0x2ad   :  { %v3010_v54 = vadd.f32 %v2999_v48, %v2984_v22  ;;  %v18488_v48 = vld [vmem:[#allocation54_spill] sm:$0xff]  ;;  %v18492_v22 = vld [vmem:[#allocation57_spill] sm:$0xff] }
 0x2ae   :  { %v3011_v15 = vadd.f32 %v3003_v13, %v2985_v14  ;;  %10238 = vmatpush1.bf16.msra.mxu0 %v14605_v0  ;;  %v18490_v2 = vpack.c.bf16 %v18488_v48, %v18489_v23  ;;  %v18491_v13 = vld [vmem:[#allocation60_spill] sm:$0xff] }
 0x2af   :  { %v3014_v46 = vmax.f32 %v3010_v54, 0.0  ;;  %10240 = vmatprep.subr.bf16.mxu0 %v14628_v60  ;;  %v18493_v14 = vpack.c.bf16 %v18491_v13, %v18492_v22  ;;  %v18494_v54 = vld [vmem:[#allocation66_spill] sm:$0xff] }
 0x2b0   :  { %v3015_v36 = vmax.f32 %v3011_v15, 0.0  ;;  %v18495_v15 = vld [vmem:[#allocation63_spill] sm:$0xff] }
 0x2b1   :  { %v14895_v20 = vand.u32 4294901760, %v3014_v46 }
 0x2b2   :  { %v3130_v33 = vsel %vm3128_vm2, %v3015_v36, 0  ;;  %10242 = vmatpush1.bf16.msra.mxu0 %v14651_v43  ;;  %v18485_v43 = vld [vmem:[#allocation161_spill] sm:$0xff] }
 0x2b3   :  { %18481 = vst [vmem:[#allocation109_spill] sm:$0xff] %v14895_v20  ;;  %v14898_v61 = vsub.f32 %v3014_v46, %v14895_v20  ;;  %v14900_v35 = vand.u32 4294901760, %v3130_v33  ;;  %10244 = vmatprep.subr.bf16.mxu0 %v14668_v28  ;;  %v10255_v63 = vpack.c.bf16 %v18486_v40, %v18485_v43  ;;  %v10257_v28 = vpack.c.bf16 %v18438_v21, %v18437_v31  ;;  %v18497_v36 = vld [vmem:[#allocation169_spill] sm:$0xff] }
 0x2b4   :  { %v18496_v46 = vpack.c.bf16 %v18494_v54, %v18495_v15  ;;  %v18531_v20 = vld [vmem:[#allocation65_spill] sm:$0xff] }
 0x2b5   :  { %18482 = vst [vmem:[#allocation167_spill] sm:$0xff] %v14898_v61  ;;  %18483 = vst [vmem:[#allocation180_spill] sm:$0xff] %v14900_v35  ;;  %v17323_v42 = vand.u32 4294901760, %v14898_v61  ;;  %v14906_v7 = vsub.f32 %v3130_v33, %v14900_v35  ;;  %v18498_v33 = vld [vmem:[#allocation23_spill] sm:$0xff] }
 0x2b6   :  { %10246 = vmatpush1.bf16.msra.mxu0 %v14688_v24  ;;  %v10259_v24 = vpack.c.bf16 %v18440_v55, %v18439_v12 }
 0x2b7   :  { %18484 = vst [vmem:[#allocation24_spill] sm:$0xff] %v14906_v7  ;;  %v4525_v62 = vsub.f32 %v14898_v61, %v17323_v42  ;;  %v17324_v49 = vand.u32 4294901760, %v14906_v7  ;;  %10248 = vmatprep.subr.bf16.mxu0 %v14706_v29  ;;  %v10267_v29 = vpack.c.bf16 %v18454_v45, %v18453_v44  ;;  %v18522_v42 = vld [vmem:[#allocation56_spill] sm:$0xff]  ;;  %v18528_v61 = vld [vmem:[#allocation62_spill] sm:$0xff] }
 0x2b9   :  { %v4519_v0 = vsub.f32 %v14906_v7, %v17324_v49  ;;  %v4526_v60 = vand.u32 4294901760, %v4525_v62  ;;  %v18499_v62 = vpack.c.bf16 %v18497_v36, %v18498_v33 }
 0x2ba   :  { %10250 = vmatpush1.bf16.msra.mxu0 %v14711_v39  ;;  %v10261_v39 = vpack.c.bf16 %v18442_v6, %v18441_v59 }
 0x2bb   :  { %v4520_v27 = vand.u32 4294901760, %v4519_v0  ;;  %10252 = vmatprep.subr.bf16.mxu0 %v14713_v58  ;;  %v10263_v58 = vpack.c.bf16 %v18446_v5, %v18445_v8  ;;  %v18500_v0 = vld [vmem:[#allocation26_spill] sm:$0xff] }
 0x2bd   :  { %4521 = vmatprep.mubr.f32.mxu1 %v4520_v27 }
 0x2be   :  { %4527 = vmatmul.mubr.f32.vlgmr.msra.gmra.mrb[8].mxu1 %v4526_v60  ;;  %10254 = vmatpush1.bf16.msra.mxu0 %v14715_v18  ;;  %v10265_v18 = vpack.c.bf16 %v18452_v3, %v18451_v52  ;;  %v18501_v60 = vld [vmem:[#allocation25_spill] sm:$0xff] }
 0x2bf   :  { %10256 = vmatprep.subr.bf16.mxu0 %v10255_v63  ;;  %v18502_v27 = vpack.c.bf16 %v18500_v0, %v18501_v60  ;;  %v18503_v63 = vld [vmem:[#allocation183_spill] sm:$0xff] }
 0x2c1   :  { %3664 = vmatmul.mubr.f32.vlgmr.msra.gmra.mrb[8].mxu0 %v14777_v50  ;;  %v18534_v50 = vld [vmem:[#allocation68_spill] sm:$0xff] }
 0x2c2   :  { %10258 = vmatpush1.bf16.msra.mxu0 %v10257_v28  ;;  %3864 = vmatprep.mubr.f32.mxu0 %v14800_v16  ;;  %v18504_v28 = vld [vmem:[#allocation182_spill] sm:$0xff] }
 0x2c3   :  { %10260 = vmatprep.subr.bf16.mxu0 %v10259_v24  ;;  %v18505_v24 = vpack.c.bf16 %v18503_v63, %v18504_v28 }
 0x2c6   :  { %10262 = vmatpush1.bf16.msra.mxu0 %v10261_v39  ;;  %v18506_v39 = vld [vmem:[#allocation32_spill] sm:$0xff] }
 0x2c7   :  { %10264 = vmatprep.subr.bf16.mxu0 %v10263_v58  ;;  %v18507_v58 = vld [vmem:[#allocation31_spill] sm:$0xff] }
 0x2ca   :  { %10266 = vmatpush1.bf16.msra.mxu0 %v10265_v18  ;;  %v18508_v18 = vpack.c.bf16 %v18506_v39, %v18507_v58 }
 0x2cb   :  { %10268 = vmatprep.subr.bf16.mxu0 %v10267_v29  ;;  %v18509_v29 = vld [vmem:[#allocation189_spill] sm:$0xff] }
 0x2ce   :  { %10270 = vmatpush1.bf16.msra.mxu0 %v10269_v57  ;;  %v18510_v57 = vld [vmem:[#allocation35_spill] sm:$0xff] }
 0x2cf   :  { %10272 = vmatprep.subr.bf16.mxu0 %v10271_v37  ;;  %v18511_v37 = vpack.c.bf16 %v18509_v29, %v18510_v57 }
 0x2d2   :  { %10274 = vmatpush1.bf16.msra.mxu0 %v10273_v56  ;;  %v18512_v56 = vld [vmem:[#allocation38_spill] sm:$0xff] }
 0x2d3   :  { %10276 = vmatprep.subr.bf16.mxu0 %v10275_v30  ;;  %v18513_v30 = vld [vmem:[#allocation37_spill] sm:$0xff] }
 0x2d6   :  { %10278 = vmatpush1.bf16.msra.mxu0 %v10277_v53  ;;  %v18514_v53 = vpack.c.bf16 %v18512_v56, %v18513_v30 }
 0x2d7   :  { %10280 = vmatprep.subr.bf16.mxu0 %v18487_v10  ;;  %v18515_v10 = vld [vmem:[#allocation52_spill] sm:$0xff] }
 0x2da   :  { %10282 = vmatpush1.bf16.msra.mxu0 %v18490_v2  ;;  %v18516_v2 = vld [vmem:[#allocation50_spill] sm:$0xff] }
 0x2db   :  { %10284 = vmatprep.subr.bf16.mxu0 %v18493_v14  ;;  %v18517_v14 = vpack.c.bf16 %v18515_v10, %v18516_v2 }
 0x2de   :  { %10286 = vmatpush1.bf16.msra.mxu0 %v18496_v46  ;;  %v18518_v46 = vld [vmem:[#allocation55_spill] sm:$0xff] }
 0x2df   :  { %10288 = vmatprep.subr.bf16.mxu0 %v18499_v62  ;;  %v18519_v62 = vld [vmem:[#allocation53_spill] sm:$0xff] }
 0x2e2   :  { %10290 = vmatpush1.bf16.msra.mxu0 %v18502_v27  ;;  %v18520_v27 = vpack.c.bf16 %v18518_v46, %v18519_v62  ;;  %v18537_v62 = vld [vmem:[#allocation71_spill] sm:$0xff] }
 0x2e3   :  { %10292 = vmatprep.subr.bf16.mxu0 %v18505_v24  ;;  %v18521_v24 = vld [vmem:[#allocation58_spill] sm:$0xff] }
 0x2e4   :  { %v18523_v49 = vpack.c.bf16 %v18521_v24, %v18522_v42  ;;  %v18540_v42 = vld [vmem:[#allocation76_spill] sm:$0xff] }
 0x2e6   :  { %10294 = vmatpush1.bf16.msra.mxu0 %v18508_v18  ;;  %v18524_v18 = vld [vmem:[#allocation61_spill] sm:$0xff] }
 0x2e7   :  { %10296 = vmatprep.subr.bf16.mxu0 %v18511_v37  ;;  %v18526_v38 = vpack.c.bf16 %v18524_v18, %v18525_v34  ;;  %v18527_v37 = vld [vmem:[#allocation64_spill] sm:$0xff] }
 0x2e8   :  { %v18529_v7 = vpack.c.bf16 %v18527_v37, %v18528_v61  ;;  %v18543_v34 = vld [vmem:[#allocation80_spill] sm:$0xff] }
 0x2ea   :  { %10298 = vmatpush1.bf16.msra.mxu0 %v18514_v53  ;;  %v18530_v53 = vld [vmem:[#allocation67_spill] sm:$0xff] }
 0x2eb   :  { %10300 = vmatprep.subr.bf16.mxu0 %v18517_v14  ;;  %v18532_v35 = vpack.c.bf16 %v18530_v53, %v18531_v20  ;;  %v18533_v14 = vld [vmem:[#allocation70_spill] sm:$0xff]  ;;  %v18546_v53 = vld [vmem:[#allocation124_spill] sm:$0xff] }
 0x2ec   :  { %v18535_v46 = vpack.c.bf16 %v18533_v14, %v18534_v50  ;;  %v18549_v14 = vld [vmem:[#allocation75_spill] sm:$0xff] }
 0x2ee   :  { %10302 = vmatpush1.bf16.msra.mxu0 %v18520_v27  ;;  %v18536_v27 = vld [vmem:[#allocation73_spill] sm:$0xff] }
 0x2ef   :  { %10304 = vmatprep.subr.bf16.mxu0 %v18523_v49  ;;  %v18538_v24 = vpack.c.bf16 %v18536_v27, %v18537_v62  ;;  %v18539_v49 = vld [vmem:[#allocation77_spill] sm:$0xff]  ;;  %v18551_v27 = vld [vmem:[#allocation82_spill] sm:$0xff] }
 0x2f0   :  { %v18541_v18 = vpack.c.bf16 %v18539_v49, %v18540_v42  ;;  %v18553_v49 = vld [vmem:[#allocation87_spill] sm:$0xff]  ;;  %v18682_v42 = vld [vmem:[#allocation136_spill] sm:$0xff] }
 0x2f1   :  { %v17368_v62 = vand.u32 4294901760, %v18682_v42 }
 0x2f2   :  { %10306 = vmatpush1.bf16.msra.mxu0 %v18526_v38  ;;  %v18542_v38 = vld [vmem:[#allocation81_spill] sm:$0xff] }
 0x2f3   :  { %10308 = vmatprep.subr.bf16.mxu0 %v18529_v7  ;;  %v18544_v37 = vpack.c.bf16 %v18542_v38, %v18543_v34  ;;  %v18545_v7 = vld [vmem:[#allocation69_spill] sm:$0xff] }
 0x2f4   :  { %v18556_v38 = vld [vmem:[#allocation13_spill] sm:$0xff] }
 0x2f6   :  { %10310 = vmatpush1.bf16.msra.mxu0 %v18532_v35  ;;  %v18547_v35 = vld [vmem:[#allocation72_spill] sm:$0xff] }
 0x2f7   :  { %10312 = vmatprep.subr.bf16.mxu0 %v18535_v46  ;;  %v18548_v46 = vand.u32 4294901760, %v14800_v16  ;;  %v18558_v16 = vld [vmem:[#allocation16_spill] sm:$0xff] }
 0x2fa   :  { %10314 = vmatpush1.bf16.msra.mxu0 %v18538_v24  ;;  %v18550_v24 = vld [vmem:[#allocation78_spill] sm:$0xff] }
 0x2fb   :  { %10316 = vmatprep.subr.bf16.mxu0 %v18541_v18  ;;  %v18552_v18 = vld [vmem:[#allocation86_spill] sm:$0xff] }
 0x2fe   :  { %10318 = vmatpush1.bf16.msra.mxu0 %v18544_v37  ;;  %v18554_v37 = vld [vmem:[#allocation10_spill] sm:$0xff] }
 0x2ff   :  { %10320 = vmatprep.subr.bf16.mxu0 %v18545_v7  ;;  %v18555_v7 = vld [vmem:[#allocation11_spill] sm:$0xff] }
 0x301   :  { %3867 = vmatmul.mubr.f32.vlgmr.msra.gmra.mrb[8].mxu0 %v18546_v53 }
 0x302   :  { %10322 = vmatpush1.bf16.msra.mxu0 %v18547_v35  ;;  %4004 = vmatprep.mubr.f32.mxu0 %v18548_v46  ;;  %v18557_v35 = vld [vmem:[#allocation14_spill] sm:$0xff]  ;;  %v18559_v46 = vld [vmem:[#allocation17_spill] sm:$0xff] }
 0x303   :  { %10324 = vmatprep.subr.bf16.mxu0 %v18549_v14  ;;  %v18560_v14 = vld [vmem:[#allocation110_spill] sm:$0xff] }
 0x306   :  { %10326 = vmatpush1.bf16.msra.mxu0 %v18550_v24  ;;  %v18561_v24 = vld [vmem:[#allocation19_spill] sm:$0xff] }
 0x307   :  { %10328 = vmatprep.subr.bf16.mxu0 %v18551_v27  ;;  %v18562_v27 = vld [vmem:[#allocation20_spill] sm:$0xff] }
 0x30a   :  { %10330 = vmatpush1.bf16.msra.mxu0 %v18552_v18  ;;  %v18563_v18 = vld [vmem:[#allocation22_spill] sm:$0xff] }
 0x30b   :  { %10332 = vmatprep.subr.bf16.mxu0 %v18553_v49  ;;  %v18564_v49 = vld [vmem:[#allocation168_spill] sm:$0xff] }
 0x30e   :  { %10334 = vmatpush1.bf16.msra.mxu0 %v18554_v37  ;;  %v18565_v37 = vld [vmem:[#allocation28_spill] sm:$0xff] }
 0x30f   :  { %10336 = vmatprep.subr.bf16.mxu0 %v18555_v7  ;;  %v18566_v7 = vld [vmem:[#allocation29_spill] sm:$0xff] }
 0x312   :  { %10338 = vmatpush1.bf16.msra.mxu0 %v18556_v38  ;;  %v18567_v38 = vld [vmem:[#allocation34_spill] sm:$0xff] }
 0x313   :  { %10340 = vmatprep.subr.bf16.mxu0 %v18557_v35  ;;  %v18568_v35 = vld [vmem:[#allocation191_spill] sm:$0xff] }
 0x316   :  { %10342 = vmatpush1.bf16.msra.mxu0 %v18558_v16  ;;  %v18569_v16 = vld [vmem:[#allocation101_spill] sm:$0xff] }
 0x317   :  { %10344 = vmatprep.subr.bf16.mxu0 %v18559_v46  ;;  %v18570_v46 = vld [vmem:[#allocation40_spill] sm:$0xff] }
 0x31a   :  { %10346 = vmatpush1.bf16.msra.mxu0 %v18560_v14  ;;  %v18571_v14 = vld [vmem:[#allocation41_spill] sm:$0xff] }
 0x31b   :  { %10348 = vmatprep.subr.bf16.mxu0 %v18561_v24  ;;  %v18572_v24 = vld [vmem:[#allocation43_spill] sm:$0xff] }
 0x31e   :  { %10350 = vmatpush1.bf16.msra.mxu0 %v18562_v27  ;;  %v18573_v27 = vld [vmem:[#allocation44_spill] sm:$0xff] }
 0x31f   :  { %10352 = vmatprep.subr.bf16.mxu0 %v18563_v18 }
 0x322   :  { %10354 = vmatpush1.bf16.msra.mxu0 %v18564_v49  ;;  %v18574_v49 = vand.u32 4294901760, %v18485_v43  ;;  %v18582_v43 = vand.u32 4294901760, %v18445_v8  ;;  %v18589_v8 = vand.u32 4294901760, %v18461_v26  ;;  %v18596_v26 = vand.u32 4294901760, %v18468_v4 }
 0x323   :  { %10356 = vmatprep.subr.bf16.mxu0 %v18565_v37  ;;  %v18575_v37 = vand.u32 4294901760, %v18486_v40  ;;  %v18583_v40 = vand.u32 4294901760, %v18446_v5  ;;  %v18590_v5 = vand.u32 4294901760, %v18462_v47  ;;  %v18597_v47 = vand.u32 4294901760, %v18469_v41 }
 0x324   :  { %v18603_v4 = vand.u32 4294901760, %v18488_v48  ;;  %v18604_v41 = vand.u32 4294901760, %v18492_v22  ;;  %v18610_v48 = vand.u32 4294901760, %v18501_v60  ;;  %v18611_v22 = vand.u32 4294901760, %v18500_v0 }
 0x325   :  { %v10383_v18 = vpack.c.bf16 %v18575_v37, %v18574_v49  ;;  %v18618_v60 = vand.u32 4294901760, %v18506_v39  ;;  %v18619_v0 = vand.u32 4294901760, %v18510_v57  ;;  %v18626_v39 = vand.u32 4294901760, %v18516_v2 }
 0x326   :  { %10358 = vmatpush1.bf16.msra.mxu0 %v18566_v7  ;;  %v18576_v7 = vand.u32 4294901760, %v18437_v31  ;;  %v15062_v31 = vpack.c.bf16 %v18583_v40, %v18582_v43  ;;  %v18600_v43 = vand.u32 4294901760, %v18354_v51  ;;  %v18607_v51 = vand.u32 4294901760, %v18494_v54  ;;  %v18614_v54 = vld [vmem:[#allocation84_spill] sm:$0xff] }
 0x327   :  { %10360 = vmatprep.subr.bf16.mxu0 %v18567_v38  ;;  %v18577_v38 = vand.u32 4294901760, %v18438_v21  ;;  %v18584_v21 = vld [vmem:[#allocation46_spill] sm:$0xff]  ;;  %v18627_v57 = vand.u32 4294901760, %v18515_v10 }
 0x32a   :  { %10362 = vmatpush1.bf16.msra.mxu0 %v18568_v35  ;;  %v10385_v35 = vpack.c.bf16 %v18577_v38, %v18576_v7  ;;  %v15081_v38 = vpack.c.bf16 %v18590_v5, %v18589_v8  ;;  %v18591_v7 = vand.u32 4294901760, %v18463_v25  ;;  %v18598_v25 = vand.u32 4294901760, %v18470_v19 }
 0x32b   :  { %10364 = vmatprep.subr.bf16.mxu0 %v18569_v16  ;;  %v18578_v16 = vand.u32 4294901760, %v18439_v12  ;;  %v18585_v12 = vand.u32 4294901760, %v18451_v52  ;;  %v18592_v52 = vand.u32 4294901760, %v18464_v1  ;;  %v18599_v1 = vand.u32 4294901760, %v18471_v11 }
 0x32c   :  { %v18605_v19 = vand.u32 4294901760, %v18491_v13  ;;  %v18606_v11 = vand.u32 4294901760, %v18495_v15  ;;  %v15142_v8 = vpack.c.bf16 %v18611_v22, %v18610_v48  ;;  %v18612_v13 = vand.u32 4294901760, %v18504_v28 }
 0x32d   :  { %v18613_v15 = vand.u32 4294901760, %v18503_v63  ;;  %v18620_v28 = vand.u32 4294901760, %v18509_v29  ;;  %v18621_v63 = vld [vmem:[#allocation90_spill] sm:$0xff] }
 0x32e   :  { %10366 = vmatpush1.bf16.msra.mxu0 %v18570_v46  ;;  %v18579_v46 = vand.u32 4294901760, %v18440_v55  ;;  %v18586_v55 = vand.u32 4294901760, %v18452_v3  ;;  %v18593_v3 = vld [vmem:[#allocation47_spill] sm:$0xff] }
 0x32f   :  { %10368 = vmatprep.subr.bf16.mxu0 %v18571_v14  ;;  %v15148_v5 = vpack.c.bf16 %v18613_v15, %v18612_v13 }
 0x330   :  { %v15050_v34 = vpack.c.bf16 %v18579_v46, %v18578_v16  ;;  %v15069_v49 = vpack.c.bf16 %v18586_v55, %v18585_v12  ;;  %v15100_v16 = vpack.c.bf16 %v18597_v47, %v18596_v26  ;;  %v15106_v46 = vpack.c.bf16 %v18599_v1, %v18598_v25  ;;  %v18622_v25 = vld [vmem:[#allocation91_spill] sm:$0xff] }
 0x331   :  { %v15124_v55 = vpack.c.bf16 %v18605_v19, %v18604_v41  ;;  %v15163_v26 = vpack.c.bf16 %v18620_v28, %v18619_v0  ;;  %v17339_v47 = vand.u32 4294901760, %v18621_v63  ;;  %v17338_v1 = vand.u32 4294901760, %v18622_v25  ;;  %v18628_v19 = vld [vmem:[#allocation53_spill] sm:$0xff]  ;;  %v18637_v28 = vld [vmem:[#allocation96_spill] sm:$0xff] }
 0x332   :  { %10370 = vmatpush1.bf16.msra.mxu0 %v18572_v24  ;;  %v18580_v24 = vand.u32 4294901760, %v18441_v59  ;;  %v18587_v59 = vand.u32 4294901760, %v18453_v44  ;;  %v18594_v44 = vand.u32 4294901760, %v18466_v32  ;;  %v18601_v32 = vand.u32 4294901760, %v13826_v17 }
 0x333   :  { %10372 = vmatprep.subr.bf16.mxu0 %v18573_v27  ;;  %v18581_v27 = vand.u32 4294901760, %v18442_v6  ;;  %v18588_v6 = vand.u32 4294901760, %v18454_v45  ;;  %v18595_v45 = vand.u32 4294901760, %v18467_v9  ;;  %v18602_v9 = vand.u32 4294901760, %v18489_v23 }
 0x334   :  { %v15112_v40 = vpack.c.bf16 %v18601_v32, %v18600_v43  ;;  %v18608_v17 = vand.u32 4294901760, %v18498_v33  ;;  %v18609_v23 = vand.u32 4294901760, %v18497_v36  ;;  %v18617_v36 = vand.u32 4294901760, %v18507_v58  ;;  %v18623_v43 = vld [vmem:[#allocation74_spill] sm:$0xff] }
 0x335   :  { %v15056_v14 = vpack.c.bf16 %v18581_v27, %v18580_v24  ;;  %v15075_v27 = vpack.c.bf16 %v18588_v6, %v18587_v59  ;;  %v15087_v24 = vpack.c.bf16 %v18592_v52, %v18591_v7  ;;  %v15094_v37 = vpack.c.bf16 %v18595_v45, %v18594_v44  ;;  %v18615_v52 = vld [vmem:[#allocation85_spill] sm:$0xff] }
 0x336   :  { %10374 = vmatpush1.bf16.msra.mxu0 %v18584_v21  ;;  %v15118_v12 = vpack.c.bf16 %v18603_v4, %v18602_v9  ;;  %v15130_v59 = vpack.c.bf16 %v18607_v51, %v18606_v11  ;;  %v15136_v6 = vpack.c.bf16 %v18609_v23, %v18608_v17  ;;  %v17345_v7 = vand.u32 4294901760, %v18614_v54  ;;  %v18616_v44 = vld [vmem:[#allocation49_spill] sm:$0xff]  ;;  %v18630_v11 = vld [vmem:[#allocation55_spill] sm:$0xff]  ;;  %v18632_v17 = vld [vmem:[#allocation56_spill] sm:$0xff] }
 0x337   :  { %10376 = vmatprep.subr.bf16.mxu0 %v18593_v3  ;;  %v17340_v33 = vand.u32 4294901760, %v18615_v52  ;;  %v15157_v45 = vpack.c.bf16 %v18618_v60, %v18617_v36  ;;  %v18624_v32 = vand.u32 4294901760, %v18513_v30  ;;  %v18625_v58 = vand.u32 4294901760, %v18512_v56  ;;  %v18634_v23 = vld [vmem:[#allocation58_spill] sm:$0xff] }
 0x338   :  { %v15178_v4 = vpack.c.bf16 %v18627_v57, %v18626_v39  ;;  %v4536_v29 = vsub.f32 %v18614_v54, %v17345_v7  ;;  %v18629_v30 = vand.u32 4294901760, %v18628_v19  ;;  %v18631_v56 = vand.u32 4294901760, %v18630_v11  ;;  %v18636_v60 = vld [vmem:[#allocation94_spill] sm:$0xff]  ;;  %v18639_v19 = vld [vmem:[#allocation97_spill] sm:$0xff] }
 0x339   :  { %v15172_v9 = vpack.c.bf16 %v18625_v58, %v18624_v32  ;;  %v4548_v41 = vsub.f32 %v18615_v52, %v17340_v33  ;;  %v18633_v2 = vand.u32 4294901760, %v18632_v17  ;;  %v18635_v10 = vand.u32 4294901760, %v18634_v23  ;;  %v18638_v58 = vld [vmem:[#allocation79_spill] sm:$0xff]  ;;  %v18640_v11 = vld [vmem:[#allocation98_spill] sm:$0xff]  ;;  %v18643_v23 = vld [vmem:[#allocation61_spill] sm:$0xff] }
 0x33a   :  { %10378 = vmatpush1.bf16.msra.mxu0 %v18616_v44  ;;  %v15190_v51 = vpack.c.bf16 %v18631_v56, %v18629_v30  ;;  %v4542_v22 = vsub.f32 %v18621_v63, %v17339_v47  ;;  %v4554_v13 = vsub.f32 %v18622_v25, %v17338_v1  ;;  %v4537_v15 = vand.u32 4294901760, %v4536_v29  ;;  %v18641_v17 = vld [vmem:[#allocation59_spill] sm:$0xff]  ;;  %v18647_v47 = vld [vmem:[#allocation64_spill] sm:$0xff] }
 0x33b   :  { %10380 = vmatprep.subr.bf16.mxu0 %v18623_v43  ;;  %v15196_v48 = vpack.c.bf16 %v18635_v10, %v18633_v2  ;;  %v4549_v36 = vand.u32 4294901760, %v4548_v41  ;;  %v17344_v0 = vand.u32 4294901760, %v18636_v60  ;;  %v17341_v32 = vand.u32 4294901760, %v18637_v28  ;;  %v15267_v7 = vld [vmem:[%s16574_s5 + $0x10] sm:$0xff]  ;;  %v15317_v43 = vld [vmem:[%s16574_s5 + $0x20] sm:$0xff] }
 0x33c   :  { %v4543_v39 = vand.u32 4294901760, %v4542_v22  ;;  %v4555_v57 = vand.u32 4294901760, %v4554_v13  ;;  %v17342_v30 = vand.u32 4294901760, %v18639_v19  ;;  %v17343_v56 = vand.u32 4294901760, %v18640_v11 }
 0x33d   :  { %v18642_v2 = vand.u32 4294901760, %v18641_v17  ;;  %v18644_v10 = vand.u32 4294901760, %v18643_v23  ;;  %v15215_v29 = vpack.c.bf16 %v4549_v36, %v4537_v15  ;;  %v4560_v41 = vsub.f32 %v18636_v60, %v17344_v0  ;;  %v15262_v0 = vld [vmem:[%s16574_s5] sm:$0xff] }
 0x33e   :  { %10382 = vmatpush1.bf16.msra.mxu0 %v18638_v58  ;;  %v4572_v22 = vsub.f32 %v18637_v28, %v17341_v32  ;;  %v18646_v13 = vand.u32 4294901760, %v18528_v61  ;;  %v15229_v17 = vpack.c.bf16 %v4555_v57, %v4543_v39  ;;  %v4566_v15 = vsub.f32 %v18639_v19, %v17342_v30  ;;  %v18651_v61 = vld [vmem:[#allocation113_spill] sm:$0xff]  ;;  %v18653_v39 = vld [vmem:[#allocation123_spill] sm:$0xff] }
 0x33f   :  { %10384 = vmatprep.subr.bf16.mxu0 %v10383_v18  ;;  %v15213_v1 = vpack.c.bf16 %v18644_v10, %v18642_v2  ;;  %18645 = vst [vmem:[#allocation125_spill] sm:$0xff] %v15215_v29  ;;  %v18648_v18 = vand.u32 4294901760, %v18647_v47  ;;  %v4578_v36 = vsub.f32 %v18640_v11, %v17343_v56  ;;  %v18650_v2 = vand.u32 4294901760, %v18546_v53  ;;  %v18652_v47 = vld [vmem:[#allocation115_spill] sm:$0xff]  ;;  %v15245_v30 = vld [vmem:[%s16574_s5 + $0x8] sm:$0xff] }
 0x340   :  { %18649 = vst [vmem:[#allocation126_spill] sm:$0xff] %v15229_v17  ;;  %v4561_v23 = vand.u32 4294901760, %v4560_v41  ;;  %v4573_v10 = vand.u32 4294901760, %v4572_v22  ;;  %v17346_v32 = vand.u32 4294901760, %v18651_v61  ;;  %v4567_v57 = vand.u32 4294901760, %v4566_v15  ;;  %v15250_v53 = vld [vmem:[%s16574_s5 + $0x18] sm:$0xff] }
 0x341   :  { %v15227_v33 = vpack.c.bf16 %v18648_v18, %v18646_v13  ;;  %4008 = vmatmul.mubr.f32.vlgmr.msra.gmra.mrb[8].mxu0 %v18650_v2  ;;  %v17347_v13 = vand.u32 4294901760, %v18652_v47  ;;  %v4579_v18 = vand.u32 4294901760, %v4578_v36  ;;  %v18654_v41 = vld [vmem:[#allocation9_spill] sm:$0xff]  ;;  %v18655_v2 = vld [vmem:[#allocation15_spill] sm:$0xff]  ;;  %v17349_v15 = vand.u32 4294901760, %v15245_v30 }
 0x342   :  { %10386 = vmatpush1.bf16.msra.mxu0 %v10385_v35  ;;  %4271 = vmatprep.mubr.f32.mxu0 %v18653_v39  ;;  %v15255_v35 = vpack.c.bf16 %v4573_v10, %v4561_v23  ;;  %v17348_v36 = vand.u32 4294901760, %v15250_v53  ;;  %v17351_v10 = vand.u32 4294901760, %v15262_v0  ;;  %v17350_v56 = vand.u32 4294901760, %v15267_v7 }
 0x343   :  { %10388 = vmatprep.subr.bf16.mxu0 %v15050_v34  ;;  %v4584_v34 = vsub.f32 %v18651_v61, %v17346_v32  ;;  %v15272_v23 = vpack.c.bf16 %v4579_v18, %v4567_v57  ;;  %v4596_v22 = vsub.f32 %v18652_v47, %v17347_v13  ;;  %v18659_v29 = vand.u32 4294901760, %v18654_v41  ;;  %v18759_v61 = vld [vmem:[#allocation119_spill] sm:$0xff] }
 0x344   :  { %18656 = vst [vmem:[#allocation190_spill] sm:$0xff] %v15255_v35  ;;  %v15283_v35 = vpack.c.bf16 %v17348_v36, %v17349_v15  ;;  %v18660_v18 = vand.u32 4294901760, %v18655_v2  ;;  %v15296_v13 = vpack.c.bf16 %v17350_v56, %v17351_v10  ;;  %v15322_v36 = vld [vmem:[%s16574_s5 + $0x30] sm:$0xff] }
 0x345   :  { %18657 = vst [vmem:[#allocation127_spill] sm:$0xff] %v15272_v23  ;;  %v4585_v17 = vand.u32 4294901760, %v4584_v34  ;;  %v4590_v57 = vsub.f32 %v18654_v41, %v18659_v29  ;;  %v4597_v23 = vand.u32 4294901760, %v4596_v22  ;;  %v15301_v34 = vld [vmem:[%s16574_s5 + $0x28] sm:$0xff]  ;;  %v15306_v29 = vld [vmem:[%s16574_s5 + $0x38] sm:$0xff] }
 0x346   :  { %18658 = vst [vmem:[#allocation129_spill] sm:$0xff] %v15283_v35  ;;  %v4602_v32 = vsub.f32 %v18655_v2, %v18660_v18  ;;  %10390 = vmatpush1.bf16.msra.mxu0 %v15056_v14  ;;  %18661 = vst [vmem:[#allocation132_spill] sm:$0xff] %v15296_v13  ;;  %v18662_v18 = vld [vmem:[#allocation119_spill] sm:$0xff]  ;;  %v18663_v14 = vld [vmem:[#allocation162_spill] sm:$0xff]  ;;  %10728 = vmatprep.subr.bf16.mxu1 %v15283_v35  ;;  %v18667_v44 = vand.u32 4294901760, %v15301_v34  ;;  %v18668_v3 = vand.u32 4294901760, %v15306_v29 }
 0x347   :  { %10392 = vmatprep.subr.bf16.mxu0 %v15062_v31  ;;  %v4591_v56 = vand.u32 4294901760, %v4590_v57  ;;  %10730 = vmatpush1.bf16.msra.mxu1 %v15296_v13  ;;  %v15325_v31 = vpack.c.bf16 %v4597_v23, %v4585_v17  ;;  %v18665_v15 = vand.u32 4294901760, %v18662_v18  ;;  %v18670_v13 = vand.u32 4294901760, %v18663_v14  ;;  %v18671_v23 = vld [vmem:[#allocation176_spill] sm:$0xff] }
 0x348   :  { %v4603_v22 = vand.u32 4294901760, %v4602_v32  ;;  %v15338_v21 = vpack.c.bf16 %v18668_v3, %v18667_v44  ;;  %v17356_v32 = vand.u32 4294901760, %v18671_v23  ;;  %v18672_v57 = vand.u32 4294901760, %v15317_v43  ;;  %v15355_v3 = vld [vmem:[%s16574_s5 + $0x48] sm:$0xff]  ;;  %v15360_v44 = vld [vmem:[%s16574_s5 + $0x58] sm:$0xff]  ;;  %v15373_v35 = vld [vmem:[%s16574_s5 + $0x40] sm:$0xff] }
 0x349   :  { %18664 = vst [vmem:[#allocation134_spill] sm:$0xff] %v15325_v31  ;;  %v4608_v58 = vsub.f32 %v18662_v18, %v18665_v15  ;;  %v4620_v17 = vsub.f32 %v18663_v14, %v18670_v13  ;;  %v18673_v15 = vand.u32 4294901760, %v15322_v36  ;;  %v18679_v14 = vand.u32 4294901760, %v15355_v3 }
 0x34a   :  { %v15332_v10 = vpack.c.bf16 %v4603_v22, %v4591_v56  ;;  %18669 = vst [vmem:[#allocation141_spill] sm:$0xff] %v15338_v21  ;;  %10394 = vmatpush1.bf16.msra.mxu0 %v15069_v49  ;;  %v18676_v49 = vld [vmem:[#allocation135_spill] sm:$0xff]  ;;  %10732 = vmatprep.subr.bf16.mxu1 %v15338_v21  ;;  %v18680_v18 = vand.u32 4294901760, %v15360_v44 }
 0x34b   :  { %v15349_v56 = vpack.c.bf16 %v18673_v15, %v18672_v57  ;;  %v4609_v22 = vand.u32 4294901760, %v4608_v58  ;;  %v17365_v13 = vand.u32 4294901760, %v18676_v49  ;;  %10396 = vmatprep.subr.bf16.mxu0 %v15075_v27  ;;  %v4621_v57 = vand.u32 4294901760, %v4620_v17  ;;  %v15378_v27 = vld [vmem:[%s16574_s5 + $0x50] sm:$0xff] }
 0x34c   :  { %18666 = vst [vmem:[#allocation138_spill] sm:$0xff] %v15332_v10  ;;  %v18675_v10 = vld [vmem:[#allocation177_spill] sm:$0xff]  ;;  %v4614_v58 = vsub.f32 %v18671_v23, %v17356_v32  ;;  %v17367_v15 = vand.u32 4294901760, %v15373_v35  ;;  %v17366_v31 = vand.u32 4294901760, %v15378_v27 }
 0x34d   :  { %18674 = vst [vmem:[#allocation144_spill] sm:$0xff] %v15349_v56  ;;  %10734 = vmatpush1.bf16.msra.mxu1 %v15349_v56  ;;  %v18677_v17 = vand.u32 4294901760, %v18675_v10  ;;  %v4632_v21 = vsub.f32 %v18676_v49, %v17365_v13  ;;  %v15389_v39 = vpack.c.bf16 %v4621_v57, %v4609_v22  ;;  %v15395_v56 = vpack.c.bf16 %v18680_v18, %v18679_v14  ;;  %v18684_v57 = vld [vmem:[#allocation137_spill] sm:$0xff]  ;;  %v15414_v18 = vld [vmem:[%s16574_s5 + $0x78] sm:$0xff] }
 0x34e   :  { %v4615_v23 = vand.u32 4294901760, %v4614_v58  ;;  %10398 = vmatpush1.bf16.msra.mxu0 %v15081_v38  ;;  %v15409_v13 = vld [vmem:[%s16574_s5 + $0x68] sm:$0xff]  ;;  %v18685_v38 = vld [vmem:[#allocation139_spill] sm:$0xff] }
 0x34f   :  { %v4626_v32 = vsub.f32 %v18675_v10, %v18677_v17  ;;  %18678 = vst [vmem:[#allocation146_spill] sm:$0xff] %v15389_v39  ;;  %18681 = vst [vmem:[#allocation150_spill] sm:$0xff] %v15395_v56  ;;  %v15403_v10 = vpack.c.bf16 %v17366_v31, %v17367_v15  ;;  %v4633_v22 = vand.u32 4294901760, %v4632_v21  ;;  %10400 = vmatprep.subr.bf16.mxu0 %v15087_v24  ;;  %10736 = vmatprep.subr.bf16.mxu1 %v15395_v56  ;;  %v15427_v15 = vld [vmem:[%s16574_s5 + $0x60] sm:$0xff]  ;;  %v15432_v24 = vld [vmem:[%s16574_s5 + $0x70] sm:$0xff] }
 0x350   :  { %v4644_v21 = vsub.f32 %v18682_v42, %v17368_v62  ;;  %v18687_v62 = vand.u32 4294901760, %v18684_v57  ;;  %v17381_v31 = vand.u32 4294901760, %v15427_v15  ;;  %v17379_v14 = vand.u32 4294901760, %v15432_v24 }
 0x351   :  { %v4627_v17 = vand.u32 4294901760, %v4626_v32  ;;  %18683 = vst [vmem:[#allocation153_spill] sm:$0xff] %v15403_v10  ;;  %10738 = vmatpush1.bf16.msra.mxu1 %v15403_v10  ;;  %v18688_v56 = vand.u32 4294901760, %v18685_v38  ;;  %v18689_v49 = vand.u32 4294901760, %v15409_v13 }
 0x352   :  { %v4638_v32 = vsub.f32 %v18684_v57, %v18687_v62  ;;  %v4645_v39 = vand.u32 4294901760, %v4644_v21  ;;  %10402 = vmatpush1.bf16.msra.mxu0 %v15094_v37  ;;  %v15457_v21 = vpack.c.bf16 %v17379_v14, %v17381_v31  ;;  %v18694_v57 = vld [vmem:[#allocation99_spill] sm:$0xff] }
 0x353   :  { %v15434_v58 = vpack.c.bf16 %v4627_v17, %v4615_v23  ;;  %v4650_v42 = vsub.f32 %v18685_v38, %v18688_v56  ;;  %v18690_v23 = vand.u32 4294901760, %v15414_v18  ;;  %v17382_v2 = vand.u32 4294901760, %v18694_v57  ;;  %v18695_v56 = vld [vmem:[#allocation192_spill] sm:$0xff]  ;;  %10404 = vmatprep.subr.bf16.mxu0 %v15100_v16 }
 0x354   :  { %v4639_v62 = vand.u32 4294901760, %v4638_v32  ;;  %18693 = vst [vmem:[#allocation164_spill] sm:$0xff] %v15457_v21  ;;  %v17385_v38 = vand.u32 4294901760, %v18695_v56  ;;  %v15462_v41 = vpack.c.bf16 %v4645_v39, %v4633_v22  ;;  %v18697_v32 = vld [vmem:[#allocation140_spill] sm:$0xff]  ;;  %v18699_v22 = vand.u32 4294901760, %v15250_v53 }
 0x355   :  { %18686 = vst [vmem:[#allocation156_spill] sm:$0xff] %v15434_v58  ;;  %v15449_v17 = vpack.c.bf16 %v18690_v23, %v18689_v49  ;;  %v18692_v58 = vld [vmem:[#allocation128_spill] sm:$0xff]  ;;  %v4651_v49 = vand.u32 4294901760, %v4650_v42  ;;  %v4668_v14 = vsub.f32 %v18694_v57, %v17382_v2  ;;  %v18698_v42 = vand.u32 4294901760, %v15245_v30 }
 0x356   :  { %v17380_v10 = vand.u32 4294901760, %v18692_v58  ;;  %18696 = vst [vmem:[#allocation171_spill] sm:$0xff] %v15462_v41  ;;  %v4662_v16 = vsub.f32 %v18695_v56, %v17385_v38  ;;  %v18701_v41 = vand.u32 4294901760, %v18697_v32  ;;  %10406 = vmatpush1.bf16.msra.mxu0 %v15106_v46 }
 0x357   :  { %18691 = vst [vmem:[#allocation158_spill] sm:$0xff] %v15449_v17  ;;  %10740 = vmatprep.subr.bf16.mxu1 %v15449_v17  ;;  %v15479_v39 = vsub.f32 %v15245_v30, %v18698_v42  ;;  %v15486_v31 = vpack.c.bf16 %v4651_v49, %v4639_v62  ;;  %v4669_v30 = vand.u32 4294901760, %v4668_v14  ;;  %10408 = vmatprep.subr.bf16.mxu0 %v15112_v40  ;;  %v17390_v62 = vmov 0.0   ;;  %v18705_v40 = vld [vmem:[#allocation92_spill] sm:$0xff] }
 0x358   :  { %v4656_v37 = vsub.f32 %v18692_v58, %v17380_v10  ;;  %10742 = vmatpush1.bf16.msra.mxu1 %v15457_v21  ;;  %v15484_v10 = vsub.f32 %v15250_v53, %v18699_v22  ;;  %v4674_v2 = vsub.f32 %v18697_v32, %v18701_v41  ;;  %v18702_v21 = vand.u32 4294901760, %v15262_v0  ;;  %5449 = vmatprep.mubr.f32.mxu1 %v17390_v62 }
 0x359   :  { %18700 = vst [vmem:[#allocation173_spill] sm:$0xff] %v15486_v31  ;;  %v4663_v42 = vand.u32 4294901760, %v4662_v16  ;;  %v17389_v17 = vand.u32 4294901760, %v15479_v39 }
 0x35a   :  { %v4657_v23 = vand.u32 4294901760, %v4656_v37  ;;  %v15494_v38 = vsub.f32 %v15262_v0, %v18702_v21  ;;  %v4675_v53 = vand.u32 4294901760, %v4674_v2  ;;  %v17388_v49 = vand.u32 4294901760, %v15484_v10  ;;  %v18706_v21 = vld [vmem:[#allocation95_spill] sm:$0xff]  ;;  %10410 = vmatpush1.bf16.msra.mxu0 %v15118_v12  ;;  %v18710_v12 = vld [vmem:[#allocation142_spill] sm:$0xff] }
 0x35b   :  { %v18703_v37 = vand.u32 4294901760, %v15267_v7  ;;  %v5464_v14 = vsub.f32 %v15479_v39, %v17389_v17  ;;  %5455 = vmatmul.mubr.f32.vlgmr.msra.gmra.mrb[10].mxu1 %v17390_v62  ;;  %v17392_v2 = vand.u32 4294901760, %v18705_v40  ;;  %v17393_v16 = vand.u32 4294901760, %v18706_v21  ;;  %10412 = vmatprep.subr.bf16.mxu0 %v15124_v55 }
 0x35c   :  { %v15507_v46 = vpack.c.bf16 %v4669_v30, %v4657_v23  ;;  %v15515_v22 = vpack.c.bf16 %v4675_v53, %v4663_v42  ;;  %v5476_v41 = vsub.f32 %v15484_v10, %v17388_v49  ;;  %5605 = vmatprep.mubr.f32.mxu1 %v17390_v62  ;;  %v18709_v49 = vld [vmem:[#allocation103_spill] sm:$0xff] }
 0x35d   :  { %v15505_v0 = vsub.f32 %v15267_v7, %v18703_v37  ;;  %v18708_v7 = vand.u32 4294901760, %v15494_v38  ;;  %v5465_v37 = vand.u32 4294901760, %v5464_v14  ;;  %v4680_v42 = vsub.f32 %v18705_v40, %v17392_v2 }
 0x35e   :  { %18704 = vst [vmem:[#allocation181_spill] sm:$0xff] %v15507_v46  ;;  %18707 = vst [vmem:[#allocation184_spill] sm:$0xff] %v15515_v22  ;;  %v4692_v53 = vsub.f32 %v18706_v21, %v17393_v16  ;;  %v17396_v17 = vand.u32 4294901760, %v18709_v49  ;;  %v17397_v14 = vand.u32 4294901760, %v18710_v12  ;;  %v18711_v16 = vand.u32 4294901760, %v15301_v34  ;;  %10414 = vmatpush1.bf16.msra.mxu0 %v15130_v59 }
 0x35f   :  { %v5470_v23 = vsub.f32 %v15494_v38, %v18708_v7  ;;  %v17395_v30 = vand.u32 4294901760, %v15505_v0  ;;  %v5477_v7 = vand.u32 4294901760, %v5476_v41  ;;  %v4681_v46 = vand.u32 4294901760, %v4680_v42  ;;  %10416 = vmatprep.subr.bf16.mxu0 %v15136_v6 }
 0x360   :  { %v4693_v31 = vand.u32 4294901760, %v4692_v53  ;;  %v4686_v2 = vsub.f32 %v18709_v49, %v17396_v17  ;;  %v15544_v21 = vsub.f32 %v15301_v34, %v18711_v16  ;;  %v18715_v16 = vand.u32 4294901760, %v15317_v43 }
 0x361   :  { %v5471_v22 = vand.u32 4294901760, %v5470_v23  ;;  %v5482_v62 = vsub.f32 %v15505_v0, %v17395_v30  ;;  %v15546_v55 = vpack.c.bf16 %v5477_v7, %v5465_v37  ;;  %v4698_v23 = vsub.f32 %v18710_v12, %v17397_v14  ;;  %v18719_v7 = vld [vmem:[#allocation114_spill] sm:$0xff] }
 0x362   :  { %v18713_v30 = vand.u32 4294901760, %v15306_v29  ;;  %v15557_v53 = vpack.c.bf16 %v4693_v31, %v4681_v46  ;;  %v4687_v17 = vand.u32 4294901760, %v4686_v2  ;;  %v17398_v34 = vand.u32 4294901760, %v15544_v21  ;;  %v18718_v2 = vld [vmem:[#allocation152_spill] sm:$0xff]  ;;  %10418 = vmatpush1.bf16.msra.mxu0 %v15142_v8 }
 0x363   :  { %18712 = vst [vmem:[#allocation48_spill] sm:$0xff] %v15546_v55  ;;  %v5483_v41 = vand.u32 4294901760, %v5482_v62  ;;  %v15563_v62 = vsub.f32 %v15317_v43, %v18715_v16  ;;  %10744 = vmatprep.subr.bf16.mxu1 %v15546_v55  ;;  %v18717_v59 = vand.u32 4294901760, %v15322_v36  ;;  %v17403_v6 = vand.u32 4294901760, %v18718_v2  ;;  %10420 = vmatprep.subr.bf16.mxu0 %v15148_v5 }
 0x364   :  { %v15554_v42 = vsub.f32 %v15306_v29, %v18713_v30  ;;  %18714 = vst [vmem:[#allocation175_spill] sm:$0xff] %v15557_v53  ;;  %v4699_v29 = vand.u32 4294901760, %v4698_v23  ;;  %v5488_v46 = vsub.f32 %v15544_v21, %v17398_v34  ;;  %v17406_v16 = vand.u32 4294901760, %v18719_v7  ;;  %v18721_v23 = vld [vmem:[#allocation160_spill] sm:$0xff] }
 0x365   :  { %v15567_v37 = vpack.c.bf16 %v5483_v41, %v5471_v22  ;;  %v15573_v31 = vsub.f32 %v15322_v36, %v18717_v59  ;;  %v17400_v43 = vand.u32 4294901760, %v15563_v62  ;;  %v17409_v59 = vand.u32 4294901760, %v18721_v23 }
 0x366   :  { %v17399_v30 = vand.u32 4294901760, %v15554_v42  ;;  %v15582_v22 = vpack.c.bf16 %v4699_v29, %v4687_v17  ;;  %v5489_v14 = vand.u32 4294901760, %v5488_v46  ;;  %v4704_v17 = vsub.f32 %v18718_v2, %v17403_v6  ;;  %10422 = vmatpush1.bf16.msra.mxu0 %v15157_v45 }
 0x367   :  { %18716 = vst [vmem:[#allocation179_spill] sm:$0xff] %v15567_v37  ;;  %10746 = vmatpush1.bf16.msra.mxu1 %v15567_v37  ;;  %v17408_v36 = vand.u32 4294901760, %v15573_v31  ;;  %v5494_v34 = vsub.f32 %v15563_v62, %v17400_v43  ;;  %v4716_v29 = vsub.f32 %v18719_v7, %v17406_v16  ;;  %v4710_v46 = vsub.f32 %v18721_v23, %v17409_v59  ;;  %v18722_v43 = vld [vmem:[#allocation120_spill] sm:$0xff] }
 0x368   :  { %18720 = vst [vmem:[#allocation145_spill] sm:$0xff] %v15582_v22  ;;  %v5500_v41 = vsub.f32 %v15554_v42, %v17399_v30  ;;  %v17410_v37 = vand.u32 4294901760, %v18722_v43  ;;  %v4705_v53 = vand.u32 4294901760, %v4704_v17  ;;  %v18723_v55 = vand.u32 4294901760, %v15355_v3  ;;  %10424 = vmatprep.subr.bf16.mxu0 %v15163_v26 }
 0x369   :  { %v5506_v8 = vsub.f32 %v15573_v31, %v17408_v36  ;;  %v5495_v22 = vand.u32 4294901760, %v5494_v34  ;;  %v4717_v6 = vand.u32 4294901760, %v4716_v29  ;;  %v4711_v7 = vand.u32 4294901760, %v4710_v46  ;;  %v18731_v46 = vld [vmem:[#allocation148_spill] sm:$0xff] }
 0x36a   :  { %v5501_v30 = vand.u32 4294901760, %v5500_v41  ;;  %v15610_v16 = vsub.f32 %v15355_v3, %v18723_v55  ;;  %v4722_v36 = vsub.f32 %v18722_v43, %v17410_v37  ;;  %v18726_v17 = vand.u32 4294901760, %v15360_v44  ;;  %10426 = vmatpush1.bf16.msra.mxu0 %v15172_v9 }
 0x36b   :  { %v5507_v41 = vand.u32 4294901760, %v5506_v8  ;;  %v15618_v59 = vpack.c.bf16 %v4717_v6, %v4705_v53  ;;  %v18727_v3 = vand.u32 4294901760, %v15373_v35  ;;  %v18729_v53 = vand.u32 4294901760, %v15378_v27  ;;  %v18730_v6 = vld [vmem:[#allocation88_spill] sm:$0xff]  ;;  %10428 = vmatprep.subr.bf16.mxu0 %v15178_v4 }
 0x36c   :  { %v15612_v5 = vpack.c.bf16 %v5501_v30, %v5489_v14  ;;  %v17413_v34 = vand.u32 4294901760, %v15610_v16  ;;  %v15624_v29 = vsub.f32 %v15360_v44, %v18726_v17  ;;  %v4723_v45 = vand.u32 4294901760, %v4722_v36 }
 0x36d   :  { %18725 = vst [vmem:[#allocation149_spill] sm:$0xff] %v15618_v59  ;;  %v15629_v14 = vsub.f32 %v15373_v35, %v18727_v3  ;;  %v15633_v55 = vpack.c.bf16 %v5507_v41, %v5495_v22  ;;  %v15638_v30 = vsub.f32 %v15378_v27, %v18729_v53  ;;  %v17411_v44 = vand.u32 4294901760, %v18730_v6  ;;  %v18733_v41 = vld [vmem:[#allocation121_spill] sm:$0xff] }
 0x36e   :  { %18724 = vst [vmem:[#allocation147_spill] sm:$0xff] %v15612_v5  ;;  %10748 = vmatprep.subr.bf16.mxu1 %v15612_v5  ;;  %v5512_v8 = vsub.f32 %v15610_v16, %v17413_v34  ;;  %v17412_v35 = vand.u32 4294901760, %v15624_v29  ;;  %v17419_v17 = vand.u32 4294901760, %v18731_v46  ;;  %v15648_v22 = vpack.c.bf16 %v4723_v45, %v4711_v7  ;;  %10430 = vmatpush1.bf16.msra.mxu0 %v15190_v51 }
 0x36f   :  { %18728 = vst [vmem:[#allocation151_spill] sm:$0xff] %v15633_v55  ;;  %v17418_v26 = vand.u32 4294901760, %v15629_v14  ;;  %10750 = vmatpush1.bf16.msra.mxu1 %v15633_v55  ;;  %v17420_v36 = vand.u32 4294901760, %v15638_v30  ;;  %v4728_v27 = vsub.f32 %v18730_v6, %v17411_v44  ;;  %v17421_v3 = vand.u32 4294901760, %v18733_v41  ;;  %10432 = vmatprep.subr.bf16.mxu0 %v15196_v48 }
 0x370   :  { %18732 = vst [vmem:[#allocation155_spill] sm:$0xff] %v15648_v22  ;;  %v5513_v53 = vand.u32 4294901760, %v5512_v8  ;;  %v5524_v37 = vsub.f32 %v15624_v29, %v17412_v35  ;;  %v4740_v45 = vsub.f32 %v18731_v46, %v17419_v17  ;;  %v18734_v35 = vld [vmem:[#allocation154_spill] sm:$0xff]  ;;  %v18735_v22 = vand.u32 4294901760, %v15409_v13 }
 0x371   :  { %v5518_v7 = vsub.f32 %v15629_v14, %v17418_v26  ;;  %v5530_v44 = vsub.f32 %v15638_v30, %v17420_v36  ;;  %v4729_v9 = vand.u32 4294901760, %v4728_v27  ;;  %v4734_v8 = vsub.f32 %v18733_v41, %v17421_v3  ;;  %v18813_v41 = vld [vmem:[#allocation110_spill] sm:$0xff] }
 0x372   :  { %v17422_v34 = vand.u32 4294901760, %v18734_v35  ;;  %v5525_v55 = vand.u32 4294901760, %v5524_v37  ;;  %v4741_v26 = vand.u32 4294901760, %v4740_v45  ;;  %v15676_v17 = vsub.f32 %v15409_v13, %v18735_v22  ;;  %10434 = vmatpush1.bf16.msra.mxu0 %v15213_v1 }
 0x373   :  { %v5519_v5 = vand.u32 4294901760, %v5518_v7  ;;  %v5531_v4 = vand.u32 4294901760, %v5530_v44  ;;  %v4735_v59 = vand.u32 4294901760, %v4734_v8  ;;  %v18736_v36 = vand.u32 4294901760, %v15414_v18  ;;  %10436 = vmatprep.subr.bf16.mxu0 %v15227_v33  ;;  %v18760_v33 = vld [vmem:[#allocation162_spill] sm:$0xff] }
 0x374   :  { %v4746_v27 = vsub.f32 %v18734_v35, %v17422_v34  ;;  %v15687_v37 = vpack.c.bf16 %v5525_v55, %v5513_v53  ;;  %v15689_v7 = vpack.c.bf16 %v4741_v26, %v4729_v9  ;;  %v17425_v13 = vand.u32 4294901760, %v15676_v17 }
 0x375   :  { %v15684_v3 = vsub.f32 %v15414_v18, %v18736_v36  ;;  %v18738_v44 = vand.u32 4294901760, %v15427_v15  ;;  %v15698_v45 = vpack.c.bf16 %v5531_v4, %v5519_v5  ;;  %v18740_v51 = vand.u32 4294901760, %v15432_v24  ;;  %v18742_v4 = vld [vmem:[#allocation67_spill] sm:$0xff]  ;;  %v18745_v5 = vld [vmem:[#allocation70_spill] sm:$0xff] }
 0x376   :  { %18737 = vst [vmem:[#allocation159_spill] sm:$0xff] %v15687_v37  ;;  %v4747_v8 = vand.u32 4294901760, %v4746_v27  ;;  %10752 = vmatprep.subr.bf16.mxu1 %v15687_v37  ;;  %v5536_v26 = vsub.f32 %v15676_v17, %v17425_v13  ;;  %v18741_v9 = vand.u32 4294901760, %v18531_v20  ;;  %v18743_v27 = vand.u32 4294901760, %v18742_v4  ;;  %v18751_v13 = vld [vmem:[#allocation73_spill] sm:$0xff] }
 0x377   :  { %v15695_v22 = vsub.f32 %v15427_v15, %v18738_v44  ;;  %18739 = vst [vmem:[#allocation172_spill] sm:$0xff] %v15698_v45  ;;  %v17423_v18 = vand.u32 4294901760, %v15684_v3  ;;  %v15704_v55 = vsub.f32 %v15432_v24, %v18740_v51  ;;  %10754 = vmatpush1.bf16.msra.mxu1 %v15698_v45  ;;  %v18746_v48 = vand.u32 4294901760, %v18745_v5  ;;  %v18756_v37 = vld [vmem:[#allocation77_spill] sm:$0xff] }
 0x378   :  { %v15716_v36 = vpack.c.bf16 %v4747_v8, %v4735_v59  ;;  %v10437_v44 = vpack.c.bf16 %v18743_v27, %v18741_v9  ;;  %v5537_v51 = vand.u32 4294901760, %v5536_v26  ;;  %v18744_v8 = vand.u32 4294901760, %v18534_v50  ;;  %v18762_v59 = vld [vmem:[#allocation177_spill] sm:$0xff] }
 0x379   :  { %v17424_v15 = vand.u32 4294901760, %v15695_v22  ;;  %v5548_v24 = vsub.f32 %v15684_v3, %v17423_v18  ;;  %v17426_v53 = vand.u32 4294901760, %v15704_v55  ;;  %v18752_v5 = vand.u32 4294901760, %v18751_v13  ;;  %v18780_v27 = vld [vmem:[#allocation165_spill] sm:$0xff] }
 0x37a   :  { %v10439_v1 = vpack.c.bf16 %v18746_v48, %v18744_v8  ;;  %10438 = vmatpush1.bf16.msra.mxu0 %v10437_v44  ;;  %v18757_v26 = vand.u32 4294901760, %v18756_v37  ;;  %v15758_v4 = vpack.c.bf16 %v15484_v10, %v15479_v39  ;;  %v18764_v44 = vld [vmem:[#allocation135_spill] sm:$0xff]  ;;  %v18766_v37 = vld [vmem:[#allocation137_spill] sm:$0xff] }
 0x37b   :  { %v5542_v34 = vsub.f32 %v15695_v22, %v17424_v15  ;;  %v5549_v18 = vand.u32 4294901760, %v5548_v24  ;;  %v5554_v20 = vsub.f32 %v15704_v55, %v17426_v53  ;;  %v18749_v15 = vld [vmem:[#allocation71_spill] sm:$0xff]  ;;  %v18754_v53 = vld [vmem:[#allocation76_spill] sm:$0xff] }
 0x37c   :  { %v18750_v50 = vand.u32 4294901760, %v18749_v15  ;;  %v18755_v45 = vand.u32 4294901760, %v18754_v53  ;;  %18758 = vst [vmem:[#allocation166_spill] sm:$0xff] %v15758_v4  ;;  %v18761_v15 = vld [vmem:[#allocation176_spill] sm:$0xff]  ;;  %10440 = vmatprep.subr.bf16.mxu0 %v10439_v1  ;;  %v15778_v1 = vpack.c.bf16 %v15505_v0, %v15494_v38 }
 0x37d   :  { %v5543_v9 = vand.u32 4294901760, %v5542_v34  ;;  %v15750_v24 = vpack.c.bf16 %v5549_v18, %v5537_v51  ;;  %v5555_v8 = vand.u32 4294901760, %v5554_v20  ;;  %v18765_v53 = vld [vmem:[#allocation136_spill] sm:$0xff] }
 0x37e   :  { %v10441_v48 = vpack.c.bf16 %v18752_v5, %v18750_v50  ;;  %v10443_v34 = vpack.c.bf16 %v18757_v26, %v18755_v45  ;;  %v18767_v45 = vld [vmem:[#allocation139_spill] sm:$0xff]  ;;  %18768 = vst [vmem:[#allocation27_spill] sm:$0xff] %v15778_v1  ;;  %v15787_v26 = vpack.c.bf16 %v15554_v42, %v15544_v21  ;;  %v18782_v20 = vld [vmem:[#allocation72_spill] sm:$0xff] }
 0x37f   :  { %18753 = vst [vmem:[#allocation174_spill] sm:$0xff] %v15750_v24  ;;  %10756 = vmatprep.subr.bf16.mxu1 %v15750_v24  ;;  %v15765_v18 = vpack.c.bf16 %v5555_v8, %v5543_v9  ;;  %v18769_v9 = vld [vmem:[#allocation80_spill] sm:$0xff]  ;;  %v18771_v8 = vld [vmem:[#allocation81_spill] sm:$0xff]  ;;  %v18774_v50 = vld [vmem:[#allocation95_spill] sm:$0xff] }
 0x380   :  { %10442 = vmatpush1.bf16.msra.mxu0 %v10441_v48  ;;  %v18770_v5 = vand.u32 4294901760, %v18769_v9  ;;  %v18772_v51 = vand.u32 4294901760, %v18771_v8  ;;  %18773 = vst [vmem:[#allocation187_spill] sm:$0xff] %v15787_v26  ;;  %v15797_v48 = vpack.c.bf16 %v15573_v31, %v15563_v62  ;;  %v18783_v9 = vld [vmem:[#allocation123_spill] sm:$0xff]  ;;  %v18795_v24 = vld [vmem:[#allocation86_spill] sm:$0xff] }
 0x381   :  { %18763 = vst [vmem:[#allocation178_spill] sm:$0xff] %v15765_v18  ;;  %10758 = vmatpush1.bf16.msra.mxu1 %v15765_v18  ;;  %10444 = vmatprep.subr.bf16.mxu0 %v10443_v34  ;;  %v18775_v18 = vmov 0.0   ;;  %v18778_v34 = vld [vmem:[#allocation69_spill] sm:$0xff]  ;;  %v18785_v8 = vld [vmem:[#allocation75_spill] sm:$0xff] }
 0x382   :  { %v10445_v13 = vpack.c.bf16 %v18772_v51, %v18770_v5  ;;  %10760 = vmatprep.subr.bf16.mxu1 %v15758_v4  ;;  %18776 = vst [vmem:[#allocation104_spill] sm:$0xff] %v15797_v48  ;;  %v18777_v51 = vld [vmem:[#allocation114_spill] sm:$0xff]  ;;  %v15806_v5 = vpack.c.bf16 %v15624_v29, %v15610_v16 }
 0x384   :  { %5607 = vmatmul.mubr.f32.vlgmr.msra.gmra.mrb[10].mxu1 %v18775_v18  ;;  %10446 = vmatpush1.bf16.msra.mxu0 %v10445_v13  ;;  %18779 = vst [vmem:[#allocation30_spill] sm:$0xff] %v15806_v5  ;;  %v15814_v13 = vpack.c.bf16 %v15638_v30, %v15629_v14 }
 0x385   :  { %10762 = vmatpush1.bf16.msra.mxu1 %v15778_v1  ;;  %5709 = vmatprep.mubr.f32.mxu1 %v18775_v18  ;;  %v18788_v1 = vand.u32 4294901760, %v15484_v10  ;;  %v18797_v10 = vld [vmem:[#allocation87_spill] sm:$0xff] }
 0x386   :  { %10764 = vmatprep.subr.bf16.mxu1 %v15787_v26  ;;  %10448 = vmatprep.subr.bf16.mxu0 %v18778_v34  ;;  %18781 = vst [vmem:[#allocation108_spill] sm:$0xff] %v15814_v13  ;;  %v15820_v34 = vpack.c.bf16 %v15684_v3, %v15676_v17  ;;  %v18790_v26 = vld [vmem:[#allocation78_spill] sm:$0xff] }
 0x387   :  { %4273 = vmatmul.mubr.f32.vlgmr.msra.gmra.mrb[8].mxu0 %v18780_v27 }
 0x388   :  { %10450 = vmatpush1.bf16.msra.mxu0 %v18782_v20  ;;  %4408 = vmatprep.mubr.f32.mxu0 %v18783_v9  ;;  %18784 = vst [vmem:[#allocation33_spill] sm:$0xff] %v15820_v34  ;;  %v15831_v20 = vpack.c.bf16 %v15704_v55, %v15695_v22  ;;  %v18787_v9 = vand.u32 4294901760, %v15479_v39  ;;  %v18796_v39 = vld [vmem:[#allocation129_spill] sm:$0xff] }
 0x389   :  { %10766 = vmatpush1.bf16.msra.mxu1 %v15797_v48  ;;  %10452 = vmatprep.subr.bf16.mxu0 %v18785_v8  ;;  %v18791_v8 = vand.u32 4294901760, %v15494_v38  ;;  %v18792_v48 = vand.u32 4294901760, %v15505_v0  ;;  %v18800_v38 = vld [vmem:[#allocation132_spill] sm:$0xff]  ;;  %v18801_v0 = vld [vmem:[#allocation10_spill] sm:$0xff] }
 0x38a   :  { %10768 = vmatprep.subr.bf16.mxu1 %v15806_v5  ;;  %18786 = vst [vmem:[#allocation36_spill] sm:$0xff] %v15831_v20  ;;  %v15837_v4 = vpack.c.bf16 %v18788_v1, %v18787_v9  ;;  %v18805_v9 = vld [vmem:[#allocation13_spill] sm:$0xff] }
 0x38b   :  { %v15845_v5 = vpack.c.bf16 %v18792_v48, %v18791_v8  ;;  %v18802_v48 = vld [vmem:[#allocation141_spill] sm:$0xff]  ;;  %v18806_v8 = vld [vmem:[#allocation150_spill] sm:$0xff] }
 0x38c   :  { %18789 = vst [vmem:[#allocation39_spill] sm:$0xff] %v15837_v4  ;;  %10454 = vmatpush1.bf16.msra.mxu0 %v18790_v26 }
 0x38d   :  { %10770 = vmatpush1.bf16.msra.mxu1 %v15814_v13  ;;  %18793 = vst [vmem:[#allocation42_spill] sm:$0xff] %v15845_v5  ;;  %v18794_v13 = vld [vmem:[#allocation82_spill] sm:$0xff] }
 0x38e   :  { %10772 = vmatprep.subr.bf16.mxu1 %v15820_v34  ;;  %10456 = vmatprep.subr.bf16.mxu0 %v18794_v13  ;;  %v18803_v13 = vld [vmem:[#allocation11_spill] sm:$0xff]  ;;  %v18809_v34 = vld [vmem:[#allocation16_spill] sm:$0xff] }
 0x390   :  { %10458 = vmatpush1.bf16.msra.mxu0 %v18795_v24  ;;  %v18804_v24 = vld [vmem:[#allocation144_spill] sm:$0xff] }
 0x391   :  { %10774 = vmatpush1.bf16.msra.mxu1 %v15831_v20  ;;  %10460 = vmatprep.subr.bf16.mxu0 %v18797_v10  ;;  %v15852_v1 = vpop.f32.mrb[8].mxu1  ;;  %v18807_v10 = vld [vmem:[#allocation14_spill] sm:$0xff]  ;;  %v18808_v20 = vld [vmem:[#allocation153_spill] sm:$0xff] }
 0x392   :  { %10776 = vmatprep.subr.bf16.mxu1 %v18796_v39  ;;  %18798 = vst [vmem:[#allocation45_spill] sm:$0xff] %v15852_v1  ;;  %v15855_v26 = vpop.f32.mrb[9].mxu1  ;;  %v18811_v1 = vld [vmem:[#allocation17_spill] sm:$0xff] }
 0x393   :  { %18799 = vst [vmem:[#allocation106_spill] sm:$0xff] %v15855_v26  ;;  %v18810_v26 = vld [vmem:[#allocation158_spill] sm:$0xff] }
 0x394   :  { %5712 = vmatmul.mubr.f32.vlgmr.msra.gmra.mrb[10].mxu1 %v18775_v18  ;;  %10462 = vmatpush1.bf16.msra.mxu0 %v18801_v0  ;;  %v18812_v0 = vld [vmem:[#allocation164_spill] sm:$0xff] }
 0x395   :  { %10778 = vmatpush1.bf16.msra.mxu1 %v18800_v38  ;;  %5798 = vmatprep.mubr.f32.mxu1 %v18775_v18 }
 0x396   :  { %10780 = vmatprep.subr.bf16.mxu1 %v18802_v48  ;;  %10464 = vmatprep.subr.bf16.mxu0 %v18803_v13  ;;  %v18814_v13 = vand.u32 4294901760, %v15544_v21  ;;  %v18822_v21 = vand.u32 4294901760, %v15610_v16  ;;  %v18830_v16 = vand.u32 4294901760, %v15676_v17  ;;  %v18839_v17 = vld [vmem:[#allocation191_spill] sm:$0xff] }
 0x398   :  { %10466 = vmatpush1.bf16.msra.mxu0 %v18805_v9  ;;  %v18815_v9 = vand.u32 4294901760, %v15554_v42  ;;  %v18823_v42 = vand.u32 4294901760, %v15624_v29  ;;  %v18831_v29 = vand.u32 4294901760, %v15684_v3  ;;  %v18840_v3 = vld [vmem:[#allocation101_spill] sm:$0xff] }
 0x399   :  { %10782 = vmatpush1.bf16.msra.mxu1 %v18804_v24  ;;  %10468 = vmatprep.subr.bf16.mxu0 %v18807_v10  ;;  %v18817_v10 = vld [vmem:[#allocation19_spill] sm:$0xff] }
 0x39a   :  { %10784 = vmatprep.subr.bf16.mxu1 %v18806_v8  ;;  %v15877_v35 = vpack.c.bf16 %v18815_v9, %v18814_v13  ;;  %v15895_v13 = vpack.c.bf16 %v18823_v42, %v18822_v21  ;;  %v18825_v9 = vld [vmem:[#allocation22_spill] sm:$0xff]  ;;  %v18837_v42 = vld [vmem:[#allocation29_spill] sm:$0xff] }
 0x39c   :  { %10470 = vmatpush1.bf16.msra.mxu0 %v18809_v34  ;;  %18816 = vst [vmem:[#allocation112_spill] sm:$0xff] %v15877_v35  ;;  %v18818_v34 = vand.u32 4294901760, %v15563_v62  ;;  %18824 = vst [vmem:[#allocation117_spill] sm:$0xff] %v15895_v13  ;;  %v18826_v62 = vand.u32 4294901760, %v15629_v14  ;;  %v18834_v14 = vand.u32 4294901760, %v15695_v22  ;;  %v18841_v22 = vld [vmem:[#allocation40_spill] sm:$0xff] }
 0x39d   :  { %10786 = vmatpush1.bf16.msra.mxu1 %v18808_v20  ;;  %10472 = vmatprep.subr.bf16.mxu0 %v18811_v1  ;;  %v18819_v1 = vand.u32 4294901760, %v15573_v31  ;;  %v18827_v31 = vand.u32 4294901760, %v15638_v30  ;;  %v18835_v30 = vand.u32 4294901760, %v15704_v55  ;;  %v18842_v55 = vld [vmem:[#allocation41_spill] sm:$0xff] }
 0x39e   :  { %10788 = vmatprep.subr.bf16.mxu1 %v18810_v26 }
 0x39f   :  { %v15886_v6 = vpack.c.bf16 %v18819_v1, %v18818_v34  ;;  %v18829_v34 = vld [vmem:[#allocation168_spill] sm:$0xff]  ;;  %v15911_v1 = vpack.c.bf16 %v18831_v29, %v18830_v16  ;;  %v15919_v21 = vpack.c.bf16 %v18835_v30, %v18834_v14  ;;  %v18846_v16 = vld [vmem:[#allocation47_spill] sm:$0xff]  ;;  %v18847_v29 = vld [vmem:[#allocation49_spill] sm:$0xff] }
 0x3a0   :  { %10474 = vmatpush1.bf16.msra.mxu0 %v18813_v41  ;;  %v18821_v41 = vld [vmem:[#allocation20_spill] sm:$0xff]  ;;  %v18849_v14 = vld [vmem:[#allocation79_spill] sm:$0xff]  ;;  %v18850_v30 = vld [vmem:[#allocation125_spill] sm:$0xff] }
 0x3a1   :  { %10790 = vmatpush1.bf16.msra.mxu1 %v18812_v0  ;;  %10476 = vmatprep.subr.bf16.mxu0 %v18817_v10  ;;  %18820 = vst [vmem:[#allocation116_spill] sm:$0xff] %v15886_v6  ;;  %v15903_v10 = vpack.c.bf16 %v18827_v31, %v18826_v62  ;;  %18832 = vst [vmem:[#allocation186_spill] sm:$0xff] %v15911_v1  ;;  %v18843_v62 = vld [vmem:[#allocation43_spill] sm:$0xff]  ;;  %v18844_v31 = vld [vmem:[#allocation44_spill] sm:$0xff] }
 0x3a2   :  { %10792 = vmatprep.subr.bf16.mxu1 %v15837_v4  ;;  %18836 = vst [vmem:[#allocation131_spill] sm:$0xff] %v15919_v21  ;;  %v18911_v4 = vld [vmem:[#allocation118_spill] sm:$0xff] }
 0x3a3   :  { %18828 = vst [vmem:[#allocation18_spill] sm:$0xff] %v15903_v10 }
 0x3a4   :  { %5802 = vmatmul.mubr.f32.vlgmr.msra.gmra.mrb[10].mxu1 %v18775_v18  ;;  %10478 = vmatpush1.bf16.msra.mxu0 %v18821_v41  ;;  %v18833_v41 = vld [vmem:[#allocation28_spill] sm:$0xff] }
 0x3a5   :  { %10794 = vmatpush1.bf16.msra.mxu1 %v15845_v5  ;;  %5920 = vmatprep.mubr.f32.mxu1 %v18775_v18  ;;  %v18910_v5 = vld [vmem:[#allocation111_spill] sm:$0xff] }
 0x3a6   :  { %10796 = vmatprep.subr.bf16.mxu1 %v15877_v35  ;;  %10480 = vmatprep.subr.bf16.mxu0 %v18825_v9  ;;  %v18838_v9 = vld [vmem:[#allocation34_spill] sm:$0xff]  ;;  %v18909_v35 = vld [vmem:[#allocation105_spill] sm:$0xff] }
 0x3a8   :  { %10482 = vmatpush1.bf16.msra.mxu0 %v18829_v34  ;;  %v18845_v34 = vld [vmem:[#allocation46_spill] sm:$0xff] }
 0x3a9   :  { %10798 = vmatpush1.bf16.msra.mxu1 %v15886_v6  ;;  %10484 = vmatprep.subr.bf16.mxu0 %v18833_v41  ;;  %v18848_v41 = vld [vmem:[#allocation74_spill] sm:$0xff]  ;;  %v18906_v6 = vld [vmem:[#allocation133_spill] sm:$0xff] }
 0x3aa   :  { %10800 = vmatprep.subr.bf16.mxu1 %v15895_v13  ;;  %v18905_v13 = vld [vmem:[#allocation130_spill] sm:$0xff] }
 0x3ac   :  { %10486 = vmatpush1.bf16.msra.mxu0 %v18837_v42  ;;  %v18851_v42 = vld [vmem:[#allocation126_spill] sm:$0xff] }
 0x3ad   :  { %10802 = vmatpush1.bf16.msra.mxu1 %v15903_v10  ;;  %10488 = vmatprep.subr.bf16.mxu0 %v18838_v9  ;;  %v18852_v9 = vld [vmem:[#allocation180_spill] sm:$0xff] }
 0x3ae   :  { %10804 = vmatprep.subr.bf16.mxu1 %v15911_v1  ;;  %v18902_v1 = vld [vmem:[#allocation163_spill] sm:$0xff]  ;;  %v18904_v10 = vld [vmem:[#allocation188_spill] sm:$0xff] }
 0x3b0   :  { %10490 = vmatpush1.bf16.msra.mxu0 %v18839_v17  ;;  %v18853_v17 = vld [vmem:[#allocation190_spill] sm:$0xff] }
 0x3b1   :  { %10806 = vmatpush1.bf16.msra.mxu1 %v15919_v21  ;;  %10492 = vmatprep.subr.bf16.mxu0 %v18840_v3  ;;  %v18854_v3 = vld [vmem:[#allocation127_spill] sm:$0xff]  ;;  %v18900_v21 = vld [vmem:[#allocation185_spill] sm:$0xff] }
 0x3b2   :  { %10808 = vmatprep.subr.bf16.mxu1 %v18796_v39 }
 0x3b4   :  { %5922 = vmatmul.mubr.f32.vlgmr.msra.gmra.mrb[10].mxu1 %v18775_v18  ;;  %10494 = vmatpush1.bf16.msra.mxu0 %v18841_v22  ;;  %v18855_v22 = vld [vmem:[#allocation134_spill] sm:$0xff] }
 0x3b5   :  { %10810 = vmatpush1.bf16.msra.mxu1 %v18800_v38  ;;  %6008 = vmatprep.mubr.f32.mxu1 %v18775_v18 }
 0x3b6   :  { %10812 = vmatprep.subr.bf16.mxu1 %v18802_v48  ;;  %10496 = vmatprep.subr.bf16.mxu0 %v18842_v55  ;;  %v18857_v55 = vld [vmem:[#allocation48_spill] sm:$0xff] }
 0x3b8   :  { %10498 = vmatpush1.bf16.msra.mxu0 %v18843_v62  ;;  %v18858_v62 = vld [vmem:[#allocation146_spill] sm:$0xff] }
 0x3b9   :  { %10814 = vmatpush1.bf16.msra.mxu1 %v18804_v24  ;;  %10500 = vmatprep.subr.bf16.mxu0 %v18844_v31  ;;  %v18859_v31 = vld [vmem:[#allocation156_spill] sm:$0xff] }
 0x3ba   :  { %10816 = vmatprep.subr.bf16.mxu1 %v18806_v8 }
 0x3bc   :  { %10502 = vmatpush1.bf16.msra.mxu0 %v18845_v34  ;;  %v18860_v34 = vld [vmem:[#allocation171_spill] sm:$0xff] }
 0x3bd   :  { %10818 = vmatpush1.bf16.msra.mxu1 %v18808_v20  ;;  %10504 = vmatprep.subr.bf16.mxu0 %v18846_v16  ;;  %v18861_v16 = vld [vmem:[#allocation173_spill] sm:$0xff] }
 0x3be   :  { %10820 = vmatprep.subr.bf16.mxu1 %v18810_v26 }
 0x3c0   :  { %10506 = vmatpush1.bf16.msra.mxu0 %v18847_v29  ;;  %v18862_v29 = vld [vmem:[#allocation181_spill] sm:$0xff] }
 0x3c1   :  { %10822 = vmatpush1.bf16.msra.mxu1 %v18812_v0  ;;  %10508 = vmatprep.subr.bf16.mxu0 %v18848_v41  ;;  %v18863_v41 = vld [vmem:[#allocation184_spill] sm:$0xff] }
 0x3c2   :  { %10824 = vmatprep.subr.bf16.mxu1 %v18796_v39 }
 0x3c4   :  { %6010 = vmatmul.mubr.f32.vlgmr.msra.gmra.mrb[10].mxu1 %v18775_v18  ;;  %10510 = vmatpush1.bf16.msra.mxu0 %v18849_v14  ;;  %v18864_v14 = vld [vmem:[#allocation175_spill] sm:$0xff] }
 0x3c5   :  { %10826 = vmatpush1.bf16.msra.mxu1 %v18800_v38  ;;  %6120 = vmatprep.mubr.f32.mxu1 %v18775_v18  ;;  %v18917_v38 = vand.u32 4294901760, %v18622_v25  ;;  %v18918_v18 = vand.u32 4294901760, %v18636_v60 }
 0x3c6   :  { %10828 = vmatprep.subr.bf16.mxu1 %v18802_v48  ;;  %10548 = vmatprep.subr.bf16.mxu0 %v18850_v30  ;;  %v18865_v30 = vld [vmem:[#allocation145_spill] sm:$0xff]  ;;  %v18916_v48 = vand.u32 4294901760, %v18621_v63 }
 0x3c7   :  { %4410 = vmatmul.mubr.f32.vlgmr.msra.gmra.mrb[8].mxu0 %v18780_v27  ;;  %v18856_v27 = vld [vmem:[#allocation138_spill] sm:$0xff] }
 0x3c8   :  { %10550 = vmatpush1.bf16.msra.mxu0 %v18851_v42  ;;  %4778 = vmatprep.mubr.f32.mxu0 %v18852_v9  ;;  %v18866_v42 = vld [vmem:[#allocation149_spill] sm:$0xff]  ;;  %v10657_v39 = vpack.c.bf16 %v18917_v38, %v18916_v48  ;;  %v18932_v48 = vand.u32 4294901760, %v18765_v53 }
 0x3c9   :  { %10830 = vmatpush1.bf16.msra.mxu1 %v18804_v24  ;;  %10552 = vmatprep.subr.bf16.mxu0 %v18853_v17  ;;  %v18867_v17 = vld [vmem:[#allocation155_spill] sm:$0xff]  ;;  %v18915_v24 = vld [vmem:[#allocation122_spill] sm:$0xff] }
 0x3ca   :  { %10832 = vmatprep.subr.bf16.mxu1 %v18806_v8 }
 0x3cc   :  { %10554 = vmatpush1.bf16.msra.mxu0 %v18854_v3  ;;  %v18868_v3 = vpack.c.bf16 %v18615_v52, %v18614_v54 }
 0x3cd   :  { %10834 = vmatpush1.bf16.msra.mxu1 %v18808_v20  ;;  %10556 = vmatprep.subr.bf16.mxu0 %v18855_v22  ;;  %v18869_v22 = vld [vmem:[#allocation109_spill] sm:$0xff]  ;;  %v18914_v20 = vand.u32 4294901760, %v18615_v52  ;;  %v18922_v52 = vand.u32 4294901760, %v18640_v11 }
 0x3ce   :  { %10836 = vmatprep.subr.bf16.mxu1 %v18810_v26  ;;  %v18913_v26 = vand.u32 4294901760, %v18614_v54  ;;  %v18921_v54 = vand.u32 4294901760, %v18639_v19 }
 0x3d0   :  { %10558 = vmatpush1.bf16.msra.mxu0 %v18856_v27  ;;  %v18870_v27 = vpack.c.bf16 %v18622_v25, %v18621_v63  ;;  %v10655_v8 = vpack.c.bf16 %v18914_v20, %v18913_v26  ;;  %v10661_v63 = vpack.c.bf16 %v18922_v52, %v18921_v54  ;;  %v18924_v20 = vand.u32 4294901760, %v18652_v47 }
 0x3d1   :  { %10838 = vmatpush1.bf16.msra.mxu1 %v18812_v0  ;;  %10560 = vmatprep.subr.bf16.mxu0 %v18858_v62  ;;  %v18871_v62 = vld [vmem:[#allocation24_spill] sm:$0xff]  ;;  %v18912_v0 = vld [vmem:[#allocation143_spill] sm:$0xff] }
 0x3d2   :  { %10840 = vmatprep.subr.bf16.mxu1 %v18857_v55  ;;  %v18898_v55 = vld [vmem:[#allocation93_spill] sm:$0xff] }
 0x3d4   :  { %10562 = vmatpush1.bf16.msra.mxu0 %v18859_v31  ;;  %v18872_v31 = vpack.c.bf16 %v18637_v28, %v18636_v60 }
 0x3d5   :  { %10564 = vmatprep.subr.bf16.mxu0 %v18860_v34 }
 0x3d8   :  { %10566 = vmatpush1.bf16.msra.mxu0 %v18861_v16  ;;  %v18876_v16 = vld [vmem:[#allocation15_spill] sm:$0xff] }
 0x3d9   :  { %10568 = vmatprep.subr.bf16.mxu0 %v18862_v29  ;;  %v18877_v29 = vld [vmem:[#allocation9_spill] sm:$0xff] }
 0x3dc   :  { %10570 = vmatpush1.bf16.msra.mxu0 %v18863_v41  ;;  %v18878_v41 = vpack.c.bf16 %v18876_v16, %v18877_v29 }
 0x3dd   :  { %10572 = vmatprep.subr.bf16.mxu0 %v18864_v14  ;;  %v18879_v14 = vpack.c.bf16 %v18760_v33, %v18759_v61 }
 0x3e0   :  { %10574 = vmatpush1.bf16.msra.mxu0 %v18865_v30  ;;  %v18880_v30 = vpack.c.bf16 %v18762_v59, %v18761_v15 }
 0x3e1   :  { %10576 = vmatprep.subr.bf16.mxu0 %v18866_v42  ;;  %v18881_v42 = vpack.c.bf16 %v18765_v53, %v18764_v44  ;;  %v18939_v53 = vand.u32 4294901760, %v18705_v40 }
 0x3e4   :  { %10578 = vmatpush1.bf16.msra.mxu0 %v18867_v17  ;;  %v18882_v17 = vpack.c.bf16 %v18767_v45, %v18766_v37 }
 0x3e5   :  { %10580 = vmatprep.subr.bf16.mxu0 %v15689_v7  ;;  %v18873_v7 = vpack.c.bf16 %v18640_v11, %v18639_v19  ;;  %v18928_v19 = vand.u32 4294901760, %v18760_v33  ;;  %v18929_v11 = vand.u32 4294901760, %v18761_v15  ;;  %v18935_v33 = vand.u32 4294901760, %v18692_v58 }
 0x3e6   :  { %v18936_v15 = vand.u32 4294901760, %v18694_v57 }
 0x3e8   :  { %10582 = vmatpush1.bf16.msra.mxu0 %v15716_v36  ;;  %v18874_v36 = vld [vmem:[#allocation113_spill] sm:$0xff] }
 0x3e9   :  { %10584 = vmatprep.subr.bf16.mxu0 %v18868_v3  ;;  %v18875_v34 = vpack.c.bf16 %v18652_v47, %v18874_v36  ;;  %v18883_v3 = vpack.c.bf16 %v18694_v57, %v18692_v58  ;;  %v18923_v25 = vand.u32 4294901760, %v18874_v36  ;;  %v18931_v47 = vand.u32 4294901760, %v18764_v44 }
 0x3ea   :  { %v18938_v44 = vand.u32 4294901760, %v18697_v32  ;;  %v18942_v58 = vand.u32 4294901760, %v18710_v12  ;;  %v18943_v57 = vand.u32 4294901760, %v18718_v2 }
 0x3eb   :  { %4780 = vmatmul.mubr.f32.vlgmr.msra.gmra.mrb[10].mxu0 %v18869_v22  ;;  %v10663_v60 = vpack.c.bf16 %v18924_v20, %v18923_v25 }
 0x3ec   :  { %10586 = vmatpush1.bf16.msra.mxu0 %v18870_v27  ;;  %4924 = vmatprep.mubr.f32.mxu0 %v18871_v62  ;;  %v18884_v27 = vpack.c.bf16 %v18697_v32, %v18695_v56  ;;  %v18945_v32 = vand.u32 4294901760, %v18721_v23 }
 0x3ed   :  { %10588 = vmatprep.subr.bf16.mxu0 %v18872_v31  ;;  %v18885_v31 = vpack.c.bf16 %v18774_v50, %v18705_v40  ;;  %v18946_v40 = vand.u32 4294901760, %v18722_v43 }
 0x3f0   :  { %10590 = vmatpush1.bf16.msra.mxu0 %v18873_v7  ;;  %v18886_v7 = vpack.c.bf16 %v18710_v12, %v18709_v49 }
 0x3f1   :  { %10592 = vmatprep.subr.bf16.mxu0 %v18875_v34  ;;  %v18887_v34 = vpack.c.bf16 %v18777_v51, %v18718_v2 }
 0x3f4   :  { %10594 = vmatpush1.bf16.msra.mxu0 %v18878_v41  ;;  %v18888_v41 = vpack.c.bf16 %v18722_v43, %v18721_v23  ;;  %v18951_v43 = vld [vmem:[#allocation111_spill] sm:$0xff]  ;;  %v18952_v23 = vld [vmem:[#allocation118_spill] sm:$0xff] }
 0x3f5   :  { %10596 = vmatprep.subr.bf16.mxu0 %v18879_v14  ;;  %v18889_v14 = vld [vmem:[#allocation88_spill] sm:$0xff] }
 0x3f8   :  { %10598 = vmatpush1.bf16.msra.mxu0 %v18880_v30  ;;  %v18890_v30 = vpack.c.bf16 %v18731_v46, %v18889_v14 }
 0x3f9   :  { %10600 = vmatprep.subr.bf16.mxu0 %v18881_v42  ;;  %v18891_v42 = vld [vmem:[#allocation154_spill] sm:$0xff] }
 0x3fa   :  { %v18950_v2 = vand.u32 4294901760, %v18891_v42 }
 0x3fc   :  { %10602 = vmatpush1.bf16.msra.mxu0 %v18882_v17  ;;  %v18892_v17 = vld [vmem:[#allocation121_spill] sm:$0xff] }
 0x3fd   :  { %10604 = vmatprep.subr.bf16.mxu0 %v18883_v3  ;;  %v18893_v3 = vpack.c.bf16 %v18891_v42, %v18892_v17  ;;  %v18949_v12 = vand.u32 4294901760, %v18892_v17 }
 0x3ff   :  { %v10689_v20 = vpack.c.bf16 %v18950_v2, %v18949_v12  ;;  %v18969_v12 = vld [vmem:[#allocation27_spill] sm:$0xff] }
 0x400   :  { %10606 = vmatpush1.bf16.msra.mxu0 %v18884_v27  ;;  %v18894_v27 = vld [vmem:[#allocation83_spill] sm:$0xff] }
 0x401   :  { %10608 = vmatprep.subr.bf16.mxu0 %v18885_v31  ;;  %v18895_v31 = vld [vmem:[#allocation167_spill] sm:$0xff] }
 0x402   :  { %v18970_v2 = vld [vmem:[#allocation187_spill] sm:$0xff] }
 0x404   :  { %10610 = vmatpush1.bf16.msra.mxu0 %v18886_v7  ;;  %v18896_v7 = vld [vmem:[#allocation89_spill] sm:$0xff] }
 0x405   :  { %10612 = vmatprep.subr.bf16.mxu0 %v18887_v34  ;;  %v18897_v34 = vand.u32 4294901760, %v18871_v62  ;;  %v18907_v62 = vld [vmem:[#allocation100_spill] sm:$0xff] }
 0x408   :  { %10614 = vmatpush1.bf16.msra.mxu0 %v18888_v41  ;;  %v18899_v41 = vld [vmem:[#allocation107_spill] sm:$0xff] }
 0x409   :  { %10616 = vmatprep.subr.bf16.mxu0 %v18890_v30  ;;  %v18901_v30 = vld [vmem:[#allocation12_spill] sm:$0xff] }
 0x40c   :  { %10618 = vmatpush1.bf16.msra.mxu0 %v18893_v3  ;;  %v18903_v3 = vld [vmem:[#allocation21_spill] sm:$0xff] }
 0x40d   :  { %10620 = vmatprep.subr.bf16.mxu0 %v18894_v27 }
 0x40f   :  { %4927 = vmatmul.mubr.f32.vlgmr.msra.gmra.mrb[10].mxu0 %v18895_v31 }
 0x410   :  { %10622 = vmatpush1.bf16.msra.mxu0 %v18896_v7  ;;  %5036 = vmatprep.mubr.f32.mxu0 %v18897_v34  ;;  %v18908_v34 = vld [vmem:[#allocation102_spill] sm:$0xff] }
 0x411   :  { %10624 = vmatprep.subr.bf16.mxu0 %v18898_v55 }
 0x414   :  { %10626 = vmatpush1.bf16.msra.mxu0 %v18899_v41 }
 0x415   :  { %10628 = vmatprep.subr.bf16.mxu0 %v18900_v21 }
 0x418   :  { %10630 = vmatpush1.bf16.msra.mxu0 %v18901_v30 }
 0x419   :  { %10632 = vmatprep.subr.bf16.mxu0 %v18902_v1 }
 0x41c   :  { %10634 = vmatpush1.bf16.msra.mxu0 %v18903_v3 }
 0x41d   :  { %10636 = vmatprep.subr.bf16.mxu0 %v18904_v10 }
 0x420   :  { %10638 = vmatpush1.bf16.msra.mxu0 %v18905_v13 }
 0x421   :  { %10640 = vmatprep.subr.bf16.mxu0 %v18906_v6 }
 0x424   :  { %10642 = vmatpush1.bf16.msra.mxu0 %v18907_v62 }
 0x425   :  { %10644 = vmatprep.subr.bf16.mxu0 %v18908_v34 }
 0x428   :  { %10646 = vmatpush1.bf16.msra.mxu0 %v18909_v35 }
 0x429   :  { %10648 = vmatprep.subr.bf16.mxu0 %v18910_v5  ;;  %v18919_v5 = vand.u32 4294901760, %v18637_v28  ;;  %v18925_v28 = vand.u32 4294901760, %v18877_v29 }
 0x42c   :  { %10650 = vmatpush1.bf16.msra.mxu0 %v18911_v4  ;;  %v10659_v4 = vpack.c.bf16 %v18919_v5, %v18918_v18  ;;  %v18926_v18 = vand.u32 4294901760, %v18876_v16  ;;  %v10675_v16 = vpack.c.bf16 %v18936_v15, %v18935_v33 }
 0x42d   :  { %10652 = vmatprep.subr.bf16.mxu0 %v18912_v0  ;;  %v18920_v0 = vand.u32 4294901760, %v18895_v31 }
 0x42e   :  { %v10665_v5 = vpack.c.bf16 %v18926_v18, %v18925_v28  ;;  %v11488_v18 = vmov 0.5  }
 0x430   :  { %10654 = vmatpush1.bf16.msra.mxu0 %v18915_v24 }
 0x431   :  { %10656 = vmatprep.subr.bf16.mxu0 %v10655_v8  ;;  %v10671_v8 = vpack.c.bf16 %v18932_v48, %v18931_v47 }
 0x433   :  { %5040 = vmatmul.mubr.f32.vlgmr.msra.gmra.mrb[10].mxu0 %v18920_v0  ;;  %v18933_v0 = vand.u32 4294901760, %v18766_v37  ;;  %v18940_v37 = vand.u32 4294901760, %v18774_v50  ;;  %v18947_v50 = vand.u32 4294901760, %v18889_v14 }
 0x434   :  { %10658 = vmatpush1.bf16.msra.mxu0 %v10657_v39  ;;  %5219 = vmatprep.mubr.f32.mxu0 %v18852_v9  ;;  %v18927_v39 = vand.u32 4294901760, %v18759_v61  ;;  %v18934_v61 = vand.u32 4294901760, %v18767_v45  ;;  %v18941_v45 = vand.u32 4294901760, %v18709_v49  ;;  %v18948_v49 = vand.u32 4294901760, %v18731_v46  ;;  %v18953_v46 = vld [vmem:[#allocation143_spill] sm:$0xff] }
 0x435   :  { %10660 = vmatprep.subr.bf16.mxu0 %v10659_v4  ;;  %v18930_v4 = vand.u32 4294901760, %v18762_v59  ;;  %v18937_v59 = vand.u32 4294901760, %v18695_v56  ;;  %v10679_v31 = vpack.c.bf16 %v18940_v37, %v18939_v53  ;;  %v18944_v56 = vand.u32 4294901760, %v18777_v51 }
 0x436   :  { %v10667_v26 = vpack.c.bf16 %v18928_v19, %v18927_v39  ;;  %v10673_v36 = vpack.c.bf16 %v18934_v61, %v18933_v0  ;;  %v10681_v54 = vpack.c.bf16 %v18942_v58, %v18941_v45  ;;  %v10687_v25 = vpack.c.bf16 %v18948_v49, %v18947_v50  ;;  %v18966_v50 = vld [vmem:[#allocation174_spill] sm:$0xff] }
 0x437   :  { %v10669_v38 = vpack.c.bf16 %v18930_v4, %v18929_v11  ;;  %v10677_v29 = vpack.c.bf16 %v18938_v44, %v18937_v59  ;;  %v10683_v52 = vpack.c.bf16 %v18944_v56, %v18943_v57  ;;  %v18960_v57 = vld [vmem:[#allocation179_spill] sm:$0xff]  ;;  %v18961_v56 = vmov 0.0   ;;  %v18967_v49 = vld [vmem:[#allocation178_spill] sm:$0xff] }
 0x438   :  { %10662 = vmatpush1.bf16.msra.mxu0 %v10661_v63  ;;  %v10685_v63 = vpack.c.bf16 %v18946_v40, %v18945_v32  ;;  %v18963_v32 = vld [vmem:[#allocation151_spill] sm:$0xff] }
 0x439   :  { %10664 = vmatprep.subr.bf16.mxu0 %v10663_v60  ;;  %v18964_v40 = vld [vmem:[#allocation159_spill] sm:$0xff] }
 0x43c   :  { %10666 = vmatpush1.bf16.msra.mxu0 %v10665_v5 }
 0x43d   :  { %10668 = vmatprep.subr.bf16.mxu0 %v10667_v26 }
 0x440   :  { %10670 = vmatpush1.bf16.msra.mxu0 %v10669_v38 }
 0x441   :  { %10672 = vmatprep.subr.bf16.mxu0 %v10671_v8 }
 0x444   :  { %10674 = vmatpush1.bf16.msra.mxu0 %v10673_v36 }
 0x445   :  { %10676 = vmatprep.subr.bf16.mxu0 %v10675_v16 }
 0x448   :  { %10678 = vmatpush1.bf16.msra.mxu0 %v10677_v29 }
 0x449   :  { %10680 = vmatprep.subr.bf16.mxu0 %v10679_v31 }
 0x44c   :  { %10682 = vmatpush1.bf16.msra.mxu0 %v10681_v54 }
 0x44d   :  { %10684 = vmatprep.subr.bf16.mxu0 %v10683_v52  ;;  %v18962_v52 = vld [vmem:[#allocation147_spill] sm:$0xff] }
 0x450   :  { %10686 = vmatpush1.bf16.msra.mxu0 %v10685_v63  ;;  %v18965_v63 = vld [vmem:[#allocation172_spill] sm:$0xff] }
 0x451   :  { %10688 = vmatprep.subr.bf16.mxu0 %v10687_v25  ;;  %v18968_v25 = vld [vmem:[#allocation166_spill] sm:$0xff] }
 0x454   :  { %10690 = vmatpush1.bf16.msra.mxu0 %v10689_v20  ;;  %v18971_v20 = vld [vmem:[#allocation104_spill] sm:$0xff] }
 0x455   :  { %10692 = vmatprep.subr.bf16.mxu0 %v18894_v27  ;;  %v18957_v27 = vld [vmem:[#allocation45_spill] sm:$0xff] }
 0x457   :  { %5221 = vmatmul.mubr.f32.vlgmr.msra.gmra.mrb[10].mxu0 %v18869_v22 }
 0x458   :  { %10694 = vmatpush1.bf16.msra.mxu0 %v18896_v7  ;;  %5328 = vmatprep.mubr.f32.mxu0 %v18852_v9  ;;  %v18958_v7 = vld [vmem:[#allocation106_spill] sm:$0xff] }
 0x459   :  { %10696 = vmatprep.subr.bf16.mxu0 %v18898_v55 }
 0x45c   :  { %10698 = vmatpush1.bf16.msra.mxu0 %v18899_v41  ;;  %v18959_v41 = vlaneseq }
 0x45d   :  { %10700 = vmatprep.subr.bf16.mxu0 %v18900_v21 }
 0x460   :  { %10702 = vmatpush1.bf16.msra.mxu0 %v18901_v30  ;;  %v5353_v30 = vand.u32 127, %v18959_v41  ;;  %v18991_v41 = vld [vmem:[#allocation131_spill] sm:$0xff] }
 0x461   :  { %10704 = vmatprep.subr.bf16.mxu0 %v18902_v1 }
 0x464   :  { %10706 = vmatpush1.bf16.msra.mxu0 %v18903_v3  ;;  %v5354_v3 = vadd.s32 128, %v5353_v30  ;;  %v18992_v30 = vld [vmem:[#allocation48_spill] sm:$0xff] }
 0x465   :  { %10708 = vmatprep.subr.bf16.mxu0 %v18904_v10  ;;  %v18954_v10 = vld [vmem:[#allocation157_spill] sm:$0xff] }
 0x466   :  { %v18955_v1 = vsub.s32 0, %v18954_v10  ;;  %vm5358_vm3 = vcmp.lt.s32.totalorder %v5354_v3, 192 }
 0x467   :  { %v16164_v5 = vsel %vm5358_vm3, 1.0, %v11488_v18  ;;  %v16169_v47 = vsel %vm5358_vm3, 0.0, %v11488_v18 }
 0x468   :  { %10710 = vmatpush1.bf16.msra.mxu0 %v18905_v13 }
 0x469   :  { %10712 = vmatprep.subr.bf16.mxu0 %v18906_v6  ;;  %v3116_v6 = vld [vmem:[%s16573_s4] sm:$0x3]  ;;  %s11489_s4 = smov 64  }
 0x46a   :  { %v3121_v21 = vrot.slane %v3116_v6, %v18955_v1  ;;  %v18979_v1 = vld [vmem:[#allocation144_spill] sm:$0xff] }
 0x46c   :  { %10714 = vmatpush1.bf16.msra.mxu0 %v18907_v62 }
 0x46d   :  { %10716 = vmatprep.subr.bf16.mxu0 %v18908_v34 }
 0x470   :  { %10718 = vmatpush1.bf16.msra.mxu0 %v18909_v35  ;;  %v18956_v35 = vsub.s32 1, %v18954_v10  ;;  %v18978_v10 = vld [vmem:[#allocation141_spill] sm:$0xff] }
 0x471   :  { %10720 = vmatprep.subr.bf16.mxu0 %v18951_v43  ;;  %v18972_v43 = vld [vmem:[#allocation30_spill] sm:$0xff] }
 0x472   :  { %v3125_v9 = vrot.slane %v3116_v6, %v18956_v35  ;;  %v18975_v6 = vld [vmem:[#allocation36_spill] sm:$0xff]  ;;  %v18981_v35 = vld [vmem:[#allocation153_spill] sm:$0xff] }
 0x474   :  { %10722 = vmatpush1.bf16.msra.mxu0 %v18952_v23  ;;  %v18973_v23 = vld [vmem:[#allocation108_spill] sm:$0xff] }
 0x475   :  { %10724 = vmatprep.subr.bf16.mxu0 %v18953_v46  ;;  %v18974_v46 = vld [vmem:[#allocation33_spill] sm:$0xff] }
 0x478   :  { %10726 = vmatpush1.bf16.msra.mxu0 %v18915_v24 }
 0x47b   :  { %5330 = vmatmul.mubr.f32.vlgmr.msra.gmra.mrb[10].mxu0 %v18869_v22 }
 0x497   :  { %v6011_v51 = vpop.f32.mrb[10].mxu1 }
 0x498   :  { %v6013_v13 = vpop.f32.mrb[11].mxu1 }
 0x49a   :  { %v4411_v55 = vpop.f32.mrb[8].mxu0 }
 0x49b   :  { %v11219_v14 = vadd.f32 %v4411_v55, %v3121_v21  ;;  %v4413_v42 = vpop.f32.mrb[9].mxu0  ;;  %v18980_v21 = vld [vmem:[#allocation150_spill] sm:$0xff]  ;;  %v18983_v55 = vld [vmem:[#allocation164_spill] sm:$0xff] }
 0x49c   :  { %v11222_v17 = vadd.f32 %v4413_v42, %v3125_v9  ;;  %v18982_v9 = vld [vmem:[#allocation158_spill] sm:$0xff] }
 0x49d   :  { %v11220_v24 = vadd.f32 %v11219_v14, %v18957_v27  ;;  %v18984_v14 = vld [vmem:[#allocation39_spill] sm:$0xff]  ;;  %v18985_v42 = vld [vmem:[#allocation42_spill] sm:$0xff]  ;;  %v18987_v27 = vld [vmem:[#allocation116_spill] sm:$0xff] }
 0x49e   :  { %v11223_v22 = vadd.f32 %v11222_v17, %v18958_v7  ;;  %v18986_v17 = vld [vmem:[#allocation112_spill] sm:$0xff]  ;;  %v18989_v7 = vld [vmem:[#allocation18_spill] sm:$0xff] }
 0x54e   :  { %v5331_v62 = vpop.f32.mrb[10].mxu0 }
 0x54f   :  { %v16160_v34 = vadd.f32 %v11220_v24, %v5331_v62  ;;  %v5333_v60 = vpop.f32.mrb[11].mxu0  ;;  %v18988_v24 = vld [vmem:[#allocation117_spill] sm:$0xff] }
 0x550   :  { %v16162_v28 = vadd.f32 %v11223_v22, %v5333_v60  ;;  %v18990_v22 = vld [vmem:[#allocation186_spill] sm:$0xff] }
 0x551   :  { %v6016_v39 = vadd.f32 %v16160_v34, %v6011_v51  ;;  %v18976_v51 = vld [vmem:[#allocation129_spill] sm:$0xff] }
 0x552   :  { %v6017_v19 = vadd.f32 %v16162_v28, %v6013_v13  ;;  %v18977_v13 = vld [vmem:[#allocation132_spill] sm:$0xff] }
 0x553   :  { %v6018_v26 = vmul.f32 0.5, %v6016_v39 }
 0x554   :  { %v6019_v11 = vmul.f32 %v6017_v19, %v16164_v5 }
 0x555   :  { %11393 = vtanh.f32 %v6018_v26 }
 0x556   :  { %11395 = vtanh.f32 %v6019_v11 }
 0x55f   :  { %v11394_v4 = vpop.eup %11393 }
 0x560   :  { %v11396_v38 = vpop.eup %11395  ;;  %v6022_v48 = vmul.f32 0.5, %v11394_v4 }
 0x561   :  { %v6023_v8 = vmul.f32 %v11396_v38, %v16164_v5 }
 0x562   :  { %v6024_v0 = vadd.f32 0.5, %v6022_v48 }
 0x563   :  { %v6025_v61 = vadd.f32 %v6023_v8, %v16169_v47 }
 0x564   :  { %v6026_v33 = vmul.f32 0.0, %v6024_v0 }
 0x565   :  { %v6027_v36 = vmul.f32 %v6025_v61, %v6024_v0 }
 0x567   :  { %6029 = vrot.lane.b32.xlu0 %v6027_v36, %s11489_s4 }
 0x5d9   :  { %v6030_v15 = vpop.permute.xlu0 %6029 }
 0x5da   :  { %v16174_v16 = vadd.f32 %v6030_v15, %v6026_v33 }
 0x5dc   :  { %11397 = vtanh.f32 %v16174_v16  ;;  %v6704_v0 = vrot.slane %v16174_v16, 6 }
 0x5e6   :  { %v11398_v59 = vpop.eup %11397 }
 0x5e7   :  { %v6034_v44 = vmul.f32 %v11398_v59, %v6025_v61 }
 0x5e9   :  { %6036 = vrot.lane.b32.xlu0 %v6034_v44, %s11489_s4 }
 0x65b   :  { %v6037_v29 = vpop.permute.xlu0 %6036 }
 0x65c   :  { %v6038_v53 = vsel %vm5365_vm4, %v6037_v29, 0 }
 0x65d   :  { %v6121_v37 = vand.u32 4294901760, %v6038_v53 }
 0x65f   :  { %v6122_v31 = vsub.f32 %v6038_v53, %v6121_v37 }
 0x661   :  { %v6123_v45 = vand.u32 4294901760, %v6122_v31 }
 0x663   :  { %v6124_v58 = vsub.f32 %v6122_v31, %v6123_v45 }
 0x665   :  { %v6125_v54 = vand.u32 4294901760, %v6124_v58 }
 0x667   :  { %6126 = vmatmul.mubr.f32.vlgmr.msra.gmra.mrb[12].mxu1 %v6125_v54 }
 0x668   :  { %10842 = vmatpush1.bf16.msra.mxu1 %v18960_v57  ;;  %6276 = vmatprep.mubr.f32.mxu1 %v18961_v56 }
 0x669   :  { %10844 = vmatprep.subr.bf16.mxu1 %v18962_v52 }
 0x66c   :  { %10846 = vmatpush1.bf16.msra.mxu1 %v18963_v32 }
 0x66d   :  { %10848 = vmatprep.subr.bf16.mxu1 %v18964_v40 }
 0x670   :  { %10850 = vmatpush1.bf16.msra.mxu1 %v18965_v63 }
 0x671   :  { %10852 = vmatprep.subr.bf16.mxu1 %v18966_v50 }
 0x674   :  { %10854 = vmatpush1.bf16.msra.mxu1 %v18967_v49 }
 0x675   :  { %10856 = vmatprep.subr.bf16.mxu1 %v18968_v25 }
 0x677   :  { %6278 = vmatmul.mubr.f32.vlgmr.msra.gmra.mrb[12].mxu1 %v6121_v37 }
 0x678   :  { %10858 = vmatpush1.bf16.msra.mxu1 %v18969_v12  ;;  %6380 = vmatprep.mubr.f32.mxu1 %v18961_v56 }
 0x679   :  { %10860 = vmatprep.subr.bf16.mxu1 %v18970_v2 }
 0x67c   :  { %10862 = vmatpush1.bf16.msra.mxu1 %v18971_v20 }
 0x67d   :  { %10864 = vmatprep.subr.bf16.mxu1 %v18972_v43 }
 0x680   :  { %10866 = vmatpush1.bf16.msra.mxu1 %v18973_v23 }
 0x681   :  { %10868 = vmatprep.subr.bf16.mxu1 %v18974_v46 }
 0x684   :  { %10870 = vmatpush1.bf16.msra.mxu1 %v18975_v6 }
 0x685   :  { %10872 = vmatprep.subr.bf16.mxu1 %v18976_v51 }
 0x687   :  { %6383 = vmatmul.mubr.f32.vlgmr.msra.gmra.mrb[12].mxu1 %v6122_v31 }
 0x688   :  { %10874 = vmatpush1.bf16.msra.mxu1 %v18977_v13  ;;  %6469 = vmatprep.mubr.f32.mxu1 %v18961_v56 }
 0x689   :  { %10876 = vmatprep.subr.bf16.mxu1 %v18978_v10 }
 0x68c   :  { %10878 = vmatpush1.bf16.msra.mxu1 %v18979_v1 }
 0x68d   :  { %10880 = vmatprep.subr.bf16.mxu1 %v18980_v21 }
 0x690   :  { %10882 = vmatpush1.bf16.msra.mxu1 %v18981_v35 }
 0x691   :  { %10884 = vmatprep.subr.bf16.mxu1 %v18982_v9 }
 0x694   :  { %10886 = vmatpush1.bf16.msra.mxu1 %v18983_v55 }
 0x695   :  { %10888 = vmatprep.subr.bf16.mxu1 %v18984_v14 }
 0x697   :  { %6473 = vmatmul.mubr.f32.vlgmr.msra.gmra.mrb[12].mxu1 %v6123_v45 }
 0x698   :  { %10890 = vmatpush1.bf16.msra.mxu1 %v18985_v42  ;;  %6591 = vmatprep.mubr.f32.mxu1 %v18961_v56 }
 0x699   :  { %10892 = vmatprep.subr.bf16.mxu1 %v18986_v17 }
 0x69c   :  { %10894 = vmatpush1.bf16.msra.mxu1 %v18987_v27 }
 0x69d   :  { %10896 = vmatprep.subr.bf16.mxu1 %v18988_v24 }
 0x6a0   :  { %10898 = vmatpush1.bf16.msra.mxu1 %v18989_v7 }
 0x6a1   :  { %10900 = vmatprep.subr.bf16.mxu1 %v18990_v22 }
 0x6a4   :  { %10902 = vmatpush1.bf16.msra.mxu1 %v18991_v41 }
 0x6a5   :  { %10904 = vmatprep.subr.bf16.mxu1 %v18976_v51 }
 0x6a7   :  { %6593 = vmatmul.mubr.f32.vlgmr.msra.gmra.mrb[12].mxu1 %v6121_v37 }
 0x6a8   :  { %10906 = vmatpush1.bf16.msra.mxu1 %v18977_v13  ;;  %6679 = vmatprep.mubr.f32.mxu1 %v18961_v56 }
 0x6a9   :  { %10908 = vmatprep.subr.bf16.mxu1 %v18978_v10 }
 0x6ac   :  { %10910 = vmatpush1.bf16.msra.mxu1 %v18979_v1 }
 0x6ad   :  { %10912 = vmatprep.subr.bf16.mxu1 %v18980_v21 }
 0x6b0   :  { %10914 = vmatpush1.bf16.msra.mxu1 %v18981_v35 }
 0x6b1   :  { %10916 = vmatprep.subr.bf16.mxu1 %v18982_v9 }
 0x6b4   :  { %10918 = vmatpush1.bf16.msra.mxu1 %v18983_v55 }
 0x6b5   :  { %10920 = vmatprep.subr.bf16.mxu1 %v18976_v51 }
 0x6b7   :  { %6681 = vmatmul.mubr.f32.vlgmr.msra.gmra.mrb[12].mxu1 %v6121_v37 }
 0x6b8   :  { %10922 = vmatpush1.bf16.msra.mxu1 %v18977_v13  ;;  %6801 = vmatprep.mubr.f32.mxu1 %v18961_v56 }
 0x6b9   :  { %10924 = vmatprep.subr.bf16.mxu1 %v18978_v10 }
 0x6bc   :  { %10926 = vmatpush1.bf16.msra.mxu1 %v18979_v1 }
 0x6bd   :  { %10928 = vmatprep.subr.bf16.mxu1 %v18980_v21 }
 0x6c0   :  { %10930 = vmatpush1.bf16.msra.mxu1 %v18981_v35 }
 0x6c1   :  { %10932 = vmatprep.subr.bf16.mxu1 %v18982_v9 }
 0x6c4   :  { %10934 = vmatpush1.bf16.msra.mxu1 %v18983_v55 }
 0x6c5   :  { %10936 = vmatprep.subr.bf16.mxu1 %v18992_v30 }
 0x78a   :  { %v6682_v3 = vpop.f32.mrb[12].mxu1 }
 0x78b   :  { %v6689_v62 = vrot.slane %v6682_v3, 6  ;;  %v6684_v60 = vpop.f32.mrb[13].mxu1 }
 0x78c   :  { %v6690_v18 = vrot.slane %v6684_v60, 6 }
 0x78d   :  { %v6693_v39 = vadd.f32 %v16160_v34, %v6689_v62 }
 0x78e   :  { %v6694_v19 = vadd.f32 %v16162_v28, %v6690_v18 }
 0x78f   :  { %v6695_v26 = vmul.f32 0.5, %v6693_v39 }
 0x790   :  { %v6696_v11 = vmul.f32 %v6694_v19, %v16164_v5 }
 0x791   :  { %11399 = vtanh.f32 %v6695_v26 }
 0x792   :  { %11401 = vtanh.f32 %v6696_v11 }
 0x79b   :  { %v11400_v4 = vpop.eup %11399 }
 0x79c   :  { %v11402_v38 = vpop.eup %11401  ;;  %v6699_v48 = vmul.f32 0.5, %v11400_v4 }
 0x79d   :  { %v6700_v8 = vmul.f32 %v11402_v38, %v16164_v5 }
 0x79e   :  { %v6701_v61 = vadd.f32 0.5, %v6699_v48 }
 0x79f   :  { %v6702_v36 = vadd.f32 %v6700_v8, %v16169_v47 }
 0x7a0   :  { %v6706_v33 = vmul.f32 %v6704_v0, %v6701_v61 }
 0x7a1   :  { %v6707_v15 = vmul.f32 %v6702_v36, %v6701_v61 }
 0x7a3   :  { %6709 = vrot.lane.b32.xlu1 %v6707_v15, %s11489_s4 }
 0x815   :  { %v6710_v59 = vpop.permute.xlu1 %6709 }
 0x816   :  { %v16240_v44 = vadd.f32 %v6710_v59, %v6706_v33 }
 0x818   :  { %11403 = vtanh.f32 %v16240_v44 }
 0x822   :  { %v11404_v29 = vpop.eup %11403 }
 0x823   :  { %v6714_v53 = vmul.f32 %v11404_v29, %v6702_v36 }
 0x825   :  { %v6716_v37 = vrot.slane %v6714_v53, 2 }
 0x827   :  { %6717 = vrot.lane.b32.xlu1 %v6716_v37, %s11489_s4 }
 0x899   :  { %v6718_v31 = vpop.permute.xlu1 %6717 }
 0x89a   :  { %v6719_v16 = vsel %vm5365_vm4, %v6718_v31, 0 }
 0x89b   :  { %v6802_v45 = vand.u32 4294901760, %v6719_v16 }
 0x89d   :  { %v6803_v58 = vsub.f32 %v6719_v16, %v6802_v45 }
 0x89f   :  { %v6804_v54 = vand.u32 4294901760, %v6803_v58 }
 0x8a1   :  { %v6805_v3 = vsub.f32 %v6803_v58, %v6804_v54 }
 0x8a3   :  { %v6806_v62 = vand.u32 4294901760, %v6805_v3 }
 0x8a5   :  { %6807 = vmatmul.mubr.f32.vlgmr.msra.gmra.mrb[14].mxu1 %v6806_v62 }
 0x8a6   :  { %10938 = vmatpush1.bf16.msra.mxu1 %v18960_v57  ;;  %6957 = vmatprep.mubr.f32.mxu1 %v18961_v56 }
 0x8a7   :  { %10940 = vmatprep.subr.bf16.mxu1 %v18962_v52 }
 0x8aa   :  { %10942 = vmatpush1.bf16.msra.mxu1 %v18963_v32 }
 0x8ab   :  { %10944 = vmatprep.subr.bf16.mxu1 %v18964_v40 }
 0x8ae   :  { %10946 = vmatpush1.bf16.msra.mxu1 %v18965_v63 }
 0x8af   :  { %10948 = vmatprep.subr.bf16.mxu1 %v18966_v50 }
 0x8b2   :  { %10950 = vmatpush1.bf16.msra.mxu1 %v18967_v49 }
 0x8b3   :  { %10952 = vmatprep.subr.bf16.mxu1 %v18968_v25 }
 0x8b5   :  { %6959 = vmatmul.mubr.f32.vlgmr.msra.gmra.mrb[14].mxu1 %v6802_v45 }
 0x8b6   :  { %10954 = vmatpush1.bf16.msra.mxu1 %v18969_v12  ;;  %7061 = vmatprep.mubr.f32.mxu1 %v18961_v56 }
 0x8b7   :  { %10956 = vmatprep.subr.bf16.mxu1 %v18970_v2 }
 0x8ba   :  { %10958 = vmatpush1.bf16.msra.mxu1 %v18971_v20 }
 0x8bb   :  { %10960 = vmatprep.subr.bf16.mxu1 %v18972_v43 }
 0x8be   :  { %10962 = vmatpush1.bf16.msra.mxu1 %v18973_v23 }
 0x8bf   :  { %10964 = vmatprep.subr.bf16.mxu1 %v18974_v46 }
 0x8c2   :  { %10966 = vmatpush1.bf16.msra.mxu1 %v18975_v6 }
 0x8c3   :  { %10968 = vmatprep.subr.bf16.mxu1 %v18976_v51 }
 0x8c5   :  { %7064 = vmatmul.mubr.f32.vlgmr.msra.gmra.mrb[14].mxu1 %v6803_v58 }
 0x8c6   :  { %10970 = vmatpush1.bf16.msra.mxu1 %v18977_v13  ;;  %7150 = vmatprep.mubr.f32.mxu1 %v18961_v56 }
 0x8c7   :  { %10972 = vmatprep.subr.bf16.mxu1 %v18978_v10 }
 0x8ca   :  { %10974 = vmatpush1.bf16.msra.mxu1 %v18979_v1 }
 0x8cb   :  { %10976 = vmatprep.subr.bf16.mxu1 %v18980_v21 }
 0x8ce   :  { %10978 = vmatpush1.bf16.msra.mxu1 %v18981_v35 }
 0x8cf   :  { %10980 = vmatprep.subr.bf16.mxu1 %v18982_v9 }
 0x8d2   :  { %10982 = vmatpush1.bf16.msra.mxu1 %v18983_v55 }
 0x8d3   :  { %10984 = vmatprep.subr.bf16.mxu1 %v18984_v14 }
 0x8d5   :  { %7154 = vmatmul.mubr.f32.vlgmr.msra.gmra.mrb[14].mxu1 %v6804_v54 }
 0x8d6   :  { %10986 = vmatpush1.bf16.msra.mxu1 %v18985_v42  ;;  %7272 = vmatprep.mubr.f32.mxu1 %v18961_v56 }
 0x8d7   :  { %10988 = vmatprep.subr.bf16.mxu1 %v18986_v17 }
 0x8da   :  { %10990 = vmatpush1.bf16.msra.mxu1 %v18987_v27 }
 0x8db   :  { %10992 = vmatprep.subr.bf16.mxu1 %v18988_v24 }
 0x8de   :  { %10994 = vmatpush1.bf16.msra.mxu1 %v18989_v7 }
 0x8df   :  { %10996 = vmatprep.subr.bf16.mxu1 %v18990_v22 }
 0x8e2   :  { %10998 = vmatpush1.bf16.msra.mxu1 %v18991_v41 }
 0x8e3   :  { %11000 = vmatprep.subr.bf16.mxu1 %v18976_v51 }
 0x8e5   :  { %7274 = vmatmul.mubr.f32.vlgmr.msra.gmra.mrb[14].mxu1 %v6802_v45 }
 0x8e6   :  { %11002 = vmatpush1.bf16.msra.mxu1 %v18977_v13  ;;  %7360 = vmatprep.mubr.f32.mxu1 %v18961_v56 }
 0x8e7   :  { %11004 = vmatprep.subr.bf16.mxu1 %v18978_v10 }
 0x8ea   :  { %11006 = vmatpush1.bf16.msra.mxu1 %v18979_v1 }
 0x8eb   :  { %11008 = vmatprep.subr.bf16.mxu1 %v18980_v21 }
 0x8ee   :  { %11010 = vmatpush1.bf16.msra.mxu1 %v18981_v35 }
 0x8ef   :  { %11012 = vmatprep.subr.bf16.mxu1 %v18982_v9 }
 0x8f2   :  { %11014 = vmatpush1.bf16.msra.mxu1 %v18983_v55 }
 0x8f3   :  { %11016 = vmatprep.subr.bf16.mxu1 %v18976_v51 }
 0x8f5   :  { %7362 = vmatmul.mubr.f32.vlgmr.msra.gmra.mrb[14].mxu1 %v6802_v45 }
 0x8f6   :  { %11018 = vmatpush1.bf16.msra.mxu1 %v18977_v13  ;;  %7482 = vmatprep.mubr.f32.mxu1 %v18961_v56 }
 0x8f7   :  { %11020 = vmatprep.subr.bf16.mxu1 %v18978_v10 }
 0x8fa   :  { %11022 = vmatpush1.bf16.msra.mxu1 %v18979_v1 }
 0x8fb   :  { %11024 = vmatprep.subr.bf16.mxu1 %v18980_v21 }
 0x8fe   :  { %11026 = vmatpush1.bf16.msra.mxu1 %v18981_v35 }
 0x8ff   :  { %11028 = vmatprep.subr.bf16.mxu1 %v18982_v9 }
 0x902   :  { %11030 = vmatpush1.bf16.msra.mxu1 %v18983_v55 }
 0x903   :  { %11032 = vmatprep.subr.bf16.mxu1 %v18992_v30  ;;  %v7385_v30 = vrot.slane %v16240_v44, 6 }
 0x9c8   :  { %v7363_v60 = vpop.f32.mrb[14].mxu1 }
 0x9c9   :  { %v7370_v18 = vrot.slane %v7363_v60, 4  ;;  %v7365_v39 = vpop.f32.mrb[15].mxu1 }
 0x9ca   :  { %v7371_v19 = vrot.slane %v7365_v39, 4 }
 0x9cb   :  { %v7374_v26 = vadd.f32 %v16160_v34, %v7370_v18  ;;  %v8093_v18 = vld [vmem:[%s16575_s6 + $0x28] sm:$0xff] }
 0x9cc   :  { %v7375_v11 = vadd.f32 %v16162_v28, %v7371_v19  ;;  %v8124_v19 = vand.u32 4294901760, %v8093_v18 }
 0x9cd   :  { %v7376_v4 = vmul.f32 0.5, %v7374_v26 }
 0x9ce   :  { %v7377_v38 = vmul.f32 %v7375_v11, %v16164_v5  ;;  %v8094_v11 = vld [vmem:[%s16575_s6 + $0x30] sm:$0xff] }
 0x9cf   :  { %11405 = vtanh.f32 %v7376_v4  ;;  %v8095_v4 = vld [vmem:[%s16575_s6 + $0x38] sm:$0xff] }
 0x9d0   :  { %11407 = vtanh.f32 %v7377_v38  ;;  %v8127_v38 = vand.u32 4294901760, %v8094_v11 }
 0x9d9   :  { %v11406_v48 = vpop.eup %11405 }
 0x9da   :  { %v11408_v8 = vpop.eup %11407  ;;  %v7380_v0 = vmul.f32 0.5, %v11406_v48  ;;  %v8130_v48 = vand.u32 4294901760, %v8095_v4 }
 0x9db   :  { %v7381_v61 = vmul.f32 %v11408_v8, %v16164_v5 }
 0x9dc   :  { %v7382_v36 = vadd.f32 0.5, %v7380_v0 }
 0x9dd   :  { %v7383_v33 = vadd.f32 %v7381_v61, %v16169_v47  ;;  %v16409_v61 = vpack.c.bf16 %v8130_v48, %v8127_v38 }
 0x9de   :  { %v7387_v15 = vmul.f32 %v7385_v30, %v7382_v36 }
 0x9df   :  { %v7388_v59 = vmul.f32 %v7383_v33, %v7382_v36 }
 0x9e1   :  { %7390 = vrot.lane.b32.xlu0 %v7388_v59, %s11489_s4 }
 0xa53   :  { %v7391_v29 = vpop.permute.xlu0 %7390 }
 0xa54   :  { %v16306_v53 = vadd.f32 %v7391_v29, %v7387_v15 }
 0xa56   :  { %11409 = vtanh.f32 %v16306_v53 }
 0xa60   :  { %v11410_v37 = vpop.eup %11409 }
 0xa61   :  { %v7395_v31 = vmul.f32 %v11410_v37, %v7383_v33 }
 0xa63   :  { %v7397_v16 = vrot.slane %v7395_v31, 4 }
 0xa65   :  { %7398 = vrot.lane.b32.xlu1 %v7397_v16, %s11489_s4  ;;  %v16419_v16 = vsub.f32 %v8093_v18, %v8124_v19 }
 0xad7   :  { %v7399_v45 = vpop.permute.xlu1 %7398 }
 0xad8   :  { %v7400_v44 = vsel %vm5365_vm4, %v7399_v45, 0  ;;  %v16421_v45 = vsub.f32 %v8094_v11, %v8127_v38  ;;  %v8648_v38 = vld [vmem:[%s16577_s8 + $0x10] sm:$0xff] }
 0xad9   :  { %v7483_v58 = vand.u32 4294901760, %v7400_v44 }
 0xadb   :  { %v7484_v54 = vsub.f32 %v7400_v44, %v7483_v58  ;;  %v16423_v44 = vsub.f32 %v8095_v4, %v8130_v48  ;;  %v8649_v48 = vld [vmem:[%s16577_s8 + $0x18] sm:$0xff] }
 0xadd   :  { %v7485_v3 = vand.u32 4294901760, %v7484_v54 }
 0xadf   :  { %v7486_v62 = vsub.f32 %v7484_v54, %v7485_v3 }
 0xae1   :  { %v7487_v60 = vand.u32 4294901760, %v7486_v62 }
 0xae3   :  { %7488 = vmatmul.mubr.f32.vlgmr.msra.gmra.mrb[16].mxu1 %v7487_v60 }
 0xae4   :  { %11034 = vmatpush1.bf16.msra.mxu1 %v18960_v57  ;;  %7638 = vmatprep.mubr.f32.mxu1 %v18961_v56 }
 0xae5   :  { %11036 = vmatprep.subr.bf16.mxu1 %v18962_v52 }
 0xae8   :  { %11038 = vmatpush1.bf16.msra.mxu1 %v18963_v32 }
 0xae9   :  { %11040 = vmatprep.subr.bf16.mxu1 %v18964_v40 }
 0xaec   :  { %11042 = vmatpush1.bf16.msra.mxu1 %v18965_v63 }
 0xaed   :  { %11044 = vmatprep.subr.bf16.mxu1 %v18966_v50 }
 0xaf0   :  { %11046 = vmatpush1.bf16.msra.mxu1 %v18967_v49 }
 0xaf1   :  { %11048 = vmatprep.subr.bf16.mxu1 %v18968_v25 }
 0xaf3   :  { %7640 = vmatmul.mubr.f32.vlgmr.msra.gmra.mrb[16].mxu1 %v7483_v58 }
 0xaf4   :  { %11050 = vmatpush1.bf16.msra.mxu1 %v18969_v12  ;;  %7742 = vmatprep.mubr.f32.mxu1 %v18961_v56 }
 0xaf5   :  { %11052 = vmatprep.subr.bf16.mxu1 %v18970_v2 }
 0xaf8   :  { %11054 = vmatpush1.bf16.msra.mxu1 %v18971_v20 }
 0xaf9   :  { %11056 = vmatprep.subr.bf16.mxu1 %v18972_v43 }
 0xafc   :  { %11058 = vmatpush1.bf16.msra.mxu1 %v18973_v23  ;;  %v8066_v23 = vrot.slane %v16306_v53, 6 }
 0xafd   :  { %11060 = vmatprep.subr.bf16.mxu1 %v18974_v46 }
 0xb00   :  { %11062 = vmatpush1.bf16.msra.mxu1 %v18975_v6 }
 0xb01   :  { %11064 = vmatprep.subr.bf16.mxu1 %v18976_v51 }
 0xb03   :  { %7745 = vmatmul.mubr.f32.vlgmr.msra.gmra.mrb[16].mxu1 %v7484_v54 }
 0xb04   :  { %11066 = vmatpush1.bf16.msra.mxu1 %v18977_v13  ;;  %7831 = vmatprep.mubr.f32.mxu1 %v18961_v56 }
 0xb05   :  { %11068 = vmatprep.subr.bf16.mxu1 %v18978_v10 }
 0xb08   :  { %11070 = vmatpush1.bf16.msra.mxu1 %v18979_v1 }
 0xb09   :  { %11072 = vmatprep.subr.bf16.mxu1 %v18980_v21 }
 0xb0c   :  { %11074 = vmatpush1.bf16.msra.mxu1 %v18981_v35 }
 0xb0d   :  { %11076 = vmatprep.subr.bf16.mxu1 %v18982_v9 }
 0xb10   :  { %11078 = vmatpush1.bf16.msra.mxu1 %v18983_v55 }
 0xb11   :  { %11080 = vmatprep.subr.bf16.mxu1 %v18984_v14 }
 0xb13   :  { %7835 = vmatmul.mubr.f32.vlgmr.msra.gmra.mrb[16].mxu1 %v7485_v3 }
 0xb14   :  { %11082 = vmatpush1.bf16.msra.mxu1 %v18985_v42  ;;  %7953 = vmatprep.mubr.f32.mxu1 %v18961_v56 }
 0xb15   :  { %11084 = vmatprep.subr.bf16.mxu1 %v18986_v17 }
 0xb18   :  { %11086 = vmatpush1.bf16.msra.mxu1 %v18987_v27 }
 0xb19   :  { %11088 = vmatprep.subr.bf16.mxu1 %v18988_v24 }
 0xb1c   :  { %11090 = vmatpush1.bf16.msra.mxu1 %v18989_v7 }
 0xb1d   :  { %11092 = vmatprep.subr.bf16.mxu1 %v18990_v22 }
 0xb20   :  { %11094 = vmatpush1.bf16.msra.mxu1 %v18991_v41  ;;  %v8092_v41 = vld [vmem:[%s16575_s6 + $0x20] sm:$0xff] }
 0xb21   :  { %11096 = vmatprep.subr.bf16.mxu1 %v18976_v51  ;;  %v8121_v39 = vand.u32 4294901760, %v8092_v41 }
 0xb23   :  { %7955 = vmatmul.mubr.f32.vlgmr.msra.gmra.mrb[16].mxu1 %v7483_v58  ;;  %v16397_v26 = vpack.c.bf16 %v8124_v19, %v8121_v39  ;;  %v16417_v31 = vsub.f32 %v8092_v41, %v8121_v39 }
 0xb24   :  { %11098 = vmatpush1.bf16.msra.mxu1 %v18977_v13  ;;  %8041 = vmatprep.mubr.f32.mxu1 %v18961_v56 }
 0xb25   :  { %11100 = vmatprep.subr.bf16.mxu1 %v18978_v10  ;;  %v11490_v10 = vmov 0.0|0.0  }
 0xb28   :  { %11102 = vmatpush1.bf16.msra.mxu1 %v18979_v1 }
 0xb29   :  { %11104 = vmatprep.subr.bf16.mxu1 %v18980_v21 }
 0xb2c   :  { %11106 = vmatpush1.bf16.msra.mxu1 %v18981_v35 }
 0xb2d   :  { %11108 = vmatprep.subr.bf16.mxu1 %v18982_v9  ;;  %v8090_v9 = vld [vmem:[%s16575_s6 + $0x10] sm:$0xff] }
 0xb2e   :  { %v8115_v42 = vand.u32 4294901760, %v8090_v9 }
 0xb30   :  { %11110 = vmatpush1.bf16.msra.mxu1 %v18983_v55  ;;  %v8091_v55 = vld [vmem:[%s16575_s6 + $0x18] sm:$0xff]  ;;  %v16385_v7 = vsub.f32 %v8090_v9, %v8115_v42 }
 0xb31   :  { %11111 = vmatprep.subr.bf16.mxu1 %v11490_v10  ;;  %v8118_v17 = vand.u32 4294901760, %v8091_v55 }
 0xb32   :  { %v8208_v29 = vand.u32 4294901760, %v16385_v7 }
 0xb33   :  { %8043 = vmatmul.mubr.f32.vlgmr.msra.gmra.mrb[16].mxu1 %v7483_v58  ;;  %v16383_v24 = vpack.c.bf16 %v8118_v17, %v8115_v42  ;;  %v16387_v22 = vsub.f32 %v8091_v55, %v8118_v17 }
 0xb34   :  { %v8209_v54 = vsub.f32 %v16385_v7, %v8208_v29  ;;  %9291 = vmatprep.mubr.msk.f32.mxu1 %vm11491_vm5, %v18961_v56 }
 0xb35   :  { %v8215_v53 = vand.u32 4294901760, %v16387_v22 }
 0xb36   :  { %v8210_v60 = vand.u32 4294901760, %v8209_v54 }
 0xb37   :  { %v8216_v62 = vsub.f32 %v16387_v22, %v8215_v53  ;;  %v11163_v9 = vpack.c.bf16 %v8215_v53, %v8208_v29 }
 0xc06   :  { %v8044_v57 = vpop.f32.mrb[16].mxu1 }
 0xc07   :  { %v8051_v52 = vrot.slane %v8044_v57, 2  ;;  %v8046_v32 = vpop.f32.mrb[17].mxu1  ;;  %v8222_v57 = vand.u32 4294901760, %v16417_v31 }
 0xc08   :  { %v8052_v40 = vrot.slane %v8046_v32, 2  ;;  %v8217_v32 = vand.u32 4294901760, %v8216_v62 }
 0xc09   :  { %v8055_v63 = vadd.f32 %v16160_v34, %v8051_v52  ;;  %v8088_v34 = vld [vmem:[%s16575_s6] sm:$0xff]  ;;  %v8229_v52 = vand.u32 4294901760, %v16419_v16 }
 0xc0a   :  { %v8056_v50 = vadd.f32 %v16162_v28, %v8052_v40  ;;  %v8089_v28 = vld [vmem:[%s16575_s6 + $0x8] sm:$0xff]  ;;  %v8223_v40 = vsub.f32 %v16417_v31, %v8222_v57 }
 0xc0b   :  { %v8057_v49 = vmul.f32 0.5, %v8055_v63  ;;  %v8112_v1 = vand.u32 4294901760, %v8089_v28  ;;  %v8230_v63 = vsub.f32 %v16419_v16, %v8229_v52  ;;  %v11166_v55 = vpack.c.bf16 %v8229_v52, %v8222_v57 }
 0xc0c   :  { %v8058_v25 = vmul.f32 %v8056_v50, %v16164_v5  ;;  %v11127_v50 = vpack.c.bf16 %v8217_v32, %v8210_v60 }
 0xc0d   :  { %11411 = vtanh.f32 %v8057_v49  ;;  %v16373_v35 = vsub.f32 %v8089_v28, %v8112_v1  ;;  %v8224_v49 = vand.u32 4294901760, %v8223_v40  ;;  %v11142_v28 = vpack.c.bf16 %v16419_v16, %v16417_v31  ;;  %v9189_v40 = vld [vmem:[%s16576_s7] ss:$0 sm:$0xff]  ;;  %s11492_s7 = smov [#allocation4]  }
 0xc0e   :  { %11413 = vtanh.f32 %v8058_v25  ;;  %v8231_v25 = vand.u32 4294901760, %v8230_v63  ;;  %s9164_s26 = sshll.u32 %s11492_s7, 4  ;;  %s9165_s26 = int_to_ptr.vmem [resolvable:$true] %s9164_s26 }
 0xc0f   :  { %v8201_v0 = vand.u32 4294901760, %v16373_v35  ;;  %s11417_s27 = scalar_lea.vmem %s9165_s26, 32  ;;  %p11422_p1 = scmp.lt.s32.totalorder %s9165_s26, %s9165_s26 }
 0xc10   :  { %p11418_p0 = scmp.ne.s32.totalorder %s9165_s26, %s11417_s27  ;;  %p11423_p2 = scmp.lt.s32.totalorder %s11417_s27, %s11417_s27 }
 0xc11   :  { %v8202_v36 = vsub.f32 %v16373_v35, %v8201_v0 }
 0xc12   :  { %p11424_p3 = por %p11423_p2, %p11422_p1 }
 0xc13   :  { %v8203_v15 = vand.u32 4294901760, %v8202_v36 }
 0xc14   :  { %p11425_p4 = pnand %p11424_p3, %p11418_p0 }
 0xc17   :  { %v11412_v12 = vpop.eup %11411 }
 0xc18   :  { %v11414_v2 = vpop.eup %11413  ;;  %v8061_v20 = vmul.f32 0.5, %v11412_v12  ;;  %v8236_v12 = vand.u32 4294901760, %v16421_v45 }
 0xc19   :  { %v8062_v43 = vmul.f32 %v11414_v2, %v16164_v5  ;;  %v8109_v5 = vand.u32 4294901760, %v8088_v34  ;;  %v8243_v2 = vand.u32 4294901760, %v16423_v44 }
 0xc1a   :  { %v8063_v46 = vadd.f32 0.5, %v8061_v20  ;;  %v11130_v20 = vpack.c.bf16 %v8231_v25, %v8224_v49 }
 0xc1b   :  { %v8064_v6 = vadd.f32 %v8062_v43, %v16169_v47  ;;  %v16369_v21 = vpack.c.bf16 %v8112_v1, %v8109_v5  ;;  %v16371_v47 = vsub.f32 %v8088_v34, %v8109_v5  ;;  %v8237_v43 = vsub.f32 %v16421_v45, %v8236_v12 }
 0xc1c   :  { %v8068_v51 = vmul.f32 %v8066_v23, %v8063_v46  ;;  %v8244_v23 = vsub.f32 %v16423_v44, %v8243_v2  ;;  %v11139_v34 = vpack.c.bf16 %v16387_v22, %v16385_v7  ;;  %v11145_v5 = vpack.c.bf16 %v16423_v44, %v16421_v45 }
 0xc1d   :  { %v8069_v13 = vmul.f32 %v8064_v6, %v8063_v46  ;;  %11113 = vmatpush3.bf16.msra.mxu1 %v16369_v21  ;;  %v8194_v8 = vand.u32 4294901760, %v16371_v47  ;;  %v8238_v46 = vand.u32 4294901760, %v8237_v43 }
 0xc1e   :  { %11114 = vmatprep.subr.bf16.mxu1 %v11490_v10 }
 0xc1f   :  { %8071 = vrot.lane.b32.xlu0 %v8069_v13, %s11489_s4  ;;  %v8195_v30 = vsub.f32 %v16371_v47, %v8194_v8  ;;  %v11136_v13 = vpack.c.bf16 %v16373_v35, %v16371_v47  ;;  %v11160_v1 = vpack.c.bf16 %v8201_v0, %v8194_v8  ;;  %v8668_v8 = vand.u32 4294901760, %v8648_v38 }
 0xc20   :  { %v8671_v0 = vand.u32 4294901760, %v8649_v48 }
 0xc21   :  { %11116 = vmatpush3.bf16.msra.mxu1 %v16383_v24  ;;  %v8196_v33 = vand.u32 4294901760, %v8195_v30 }
 0xc22   :  { %11117 = vmatprep.subr.bf16.mxu1 %v11490_v10  ;;  %v11187_v36 = vpack.c.bf16 %v8671_v0, %v8668_v8 }
 0xc23   :  { %v11124_v58 = vpack.c.bf16 %v8203_v15, %v8196_v33  ;;  %v8756_v33 = vsub.f32 %v8648_v38, %v8668_v8  ;;  %v8763_v15 = vsub.f32 %v8649_v48, %v8671_v0 }
 0xc25   :  { %11119 = vmatpush3.bf16.msra.mxu1 %v16397_v26  ;;  %v8764_v31 = vand.u32 4294901760, %v8763_v15  ;;  %v11199_v57 = vpack.c.bf16 %v8763_v15, %v8756_v33 }
 0xc26   :  { %11120 = vmatprep.subr.bf16.mxu1 %v11490_v10 }
 0xc27   :  { %v8765_v44 = vsub.f32 %v8763_v15, %v8764_v31 }
 0xc29   :  { %11122 = vmatpush3.bf16.msra.mxu1 %v16409_v61 }
 0xc2a   :  { %11123 = vmatprep.subr.bf16.mxu1 %v11490_v10 }
 0xc91   :  { %v8072_v14 = vpop.permute.xlu0 %8071 }
 0xc92   :  { %v8074_v27 = vadd.f32 %v8072_v14, %v8068_v51  ;;  %v11169_v14 = vpack.c.bf16 %v8243_v2, %v8236_v12 }
 0xc94   :  { %11415 = vtanh.f32 %v8074_v27 }
 0xc9e   :  { %v11416_v59 = vpop.eup %11415 }
 0xc9f   :  { %v8076_v37 = vmul.f32 %v11416_v59, %v8064_v6  ;;  %v8245_v6 = vand.u32 4294901760, %v8244_v23 }
 0xca1   :  { %8078 = vrot.lane.b32.xlu0 %v8076_v37, %s11489_s4  ;;  %v8103_v3 = vrot.slane %v8076_v37, 6  ;;  %v11133_v51 = vpack.c.bf16 %v8245_v6, %v8238_v46  ;;  %v8757_v37 = vand.u32 4294901760, %v8756_v33 }
 0xca3   :  { %8104 = vrot.lane.b32.xlu1 %v8103_v3, %s11489_s4  ;;  %v8758_v45 = vsub.f32 %v8756_v33, %v8757_v37  ;;  %v8766_v3 = vand.u32 4294901760, %v8765_v44  ;;  %v11211_v32 = vpack.c.bf16 %v8764_v31, %v8757_v37 }
 0xca5   :  { %v8759_v54 = vand.u32 4294901760, %v8758_v45 }
 0xca7   :  { %8084 = vrot.lane.b32.xlu1 %v8074_v27, %s11489_s4  ;;  %v11193_v62 = vpack.c.bf16 %v8766_v3, %v8759_v54 }
 0xd13   :  { %v8079_v42 = vpop.permute.xlu0 %8078 }
 0xd14   :  { %8082 = vst.msk [vmem:[#allocation4 - $0x6] sm:$0xc0] %vm8081_vm6, %v8079_v42 }
 0xd15   :  { %v8105_v17 = vpop.permute.xlu1 %8104 }
 0xd16   :  { %v8106_v27 = vsel %vm5365_vm4, %v8105_v17, 0 }
 0xd17   :  { %v8181_v47 = vand.u32 4294901760, %v8106_v27 }
 0xd19   :  { %v8182_v35 = vsub.f32 %v8106_v27, %v8181_v47  ;;  %v8085_v41 = vpop.permute.xlu1 %8084 }
 0xd1a   :  { %8087 = vst.msk [vmem:[#allocation6 - $0x6] sm:$0xc0] %vm8081_vm6, %v8085_v41 }
 0xd1b   :  { %v8183_v7 = vand.u32 4294901760, %v8182_v35 }
 0xd1d   :  { %v8184_v22 = vsub.f32 %v8182_v35, %v8183_v7 }
 0xd1f   :  { %v8185_v18 = vand.u32 4294901760, %v8184_v22 }
 0xd21   :  { %9292 = vmatmul.mubr.f32.vlgmr.msra.gmra.mrb[18].mxu1 %v8185_v18 }
 0xd22   :  { %11125 = vmatpush3.bf16.msra.mxu1 %v11124_v58  ;;  %9310 = vmatprep.mubr.msk.f32.mxu1 %vm11491_vm5, %v18961_v56 }
 0xd23   :  { %11126 = vmatprep.subr.bf16.mxu1 %v11490_v10 }
 0xd26   :  { %11128 = vmatpush3.bf16.msra.mxu1 %v11127_v50 }
 0xd27   :  { %11129 = vmatprep.subr.bf16.mxu1 %v11490_v10 }
 0xd2a   :  { %11131 = vmatpush3.bf16.msra.mxu1 %v11130_v20 }
 0xd2b   :  { %11132 = vmatprep.subr.bf16.mxu1 %v11490_v10 }
 0xd2e   :  { %11134 = vmatpush3.bf16.msra.mxu1 %v11133_v51 }
 0xd2f   :  { %11135 = vmatprep.subr.bf16.mxu1 %v11490_v10 }
 0xd31   :  { %9311 = vmatmul.mubr.f32.vlgmr.msra.gmra.mrb[18].mxu1 %v8181_v47 }
 0xd32   :  { %11137 = vmatpush3.bf16.msra.mxu1 %v11136_v13  ;;  %9329 = vmatprep.mubr.msk.f32.mxu1 %vm11491_vm5, %v18961_v56 }
 0xd33   :  { %11138 = vmatprep.subr.bf16.mxu1 %v11490_v10 }
 0xd36   :  { %11140 = vmatpush3.bf16.msra.mxu1 %v11139_v34 }
 0xd37   :  { %11141 = vmatprep.subr.bf16.mxu1 %v11490_v10 }
 0xd3a   :  { %11143 = vmatpush3.bf16.msra.mxu1 %v11142_v28 }
 0xd3b   :  { %11144 = vmatprep.subr.bf16.mxu1 %v11490_v10 }
 0xd3e   :  { %11146 = vmatpush3.bf16.msra.mxu1 %v11145_v5 }
 0xd3f   :  { %11147 = vmatprep.subr.bf16.mxu1 %v11490_v10 }
 0xd41   :  { %9330 = vmatmul.mubr.f32.vlgmr.msra.gmra.mrb[18].mxu1 %v8182_v35 }
 0xd42   :  { %11149 = vmatpush3.bf16.msra.mxu1 %v16369_v21  ;;  %9348 = vmatprep.mubr.msk.f32.mxu1 %vm11491_vm5, %v18961_v56 }
 0xd43   :  { %11150 = vmatprep.subr.bf16.mxu1 %v11490_v10 }
 0xd46   :  { %11152 = vmatpush3.bf16.msra.mxu1 %v16383_v24 }
 0xd47   :  { %11153 = vmatprep.subr.bf16.mxu1 %v11490_v10 }
 0xd4a   :  { %11155 = vmatpush3.bf16.msra.mxu1 %v16397_v26 }
 0xd4b   :  { %11156 = vmatprep.subr.bf16.mxu1 %v11490_v10 }
 0xd4e   :  { %11158 = vmatpush3.bf16.msra.mxu1 %v16409_v61 }
 0xd4f   :  { %11159 = vmatprep.subr.bf16.mxu1 %v11490_v10 }
 0xd51   :  { %9349 = vmatmul.mubr.f32.vlgmr.msra.gmra.mrb[18].mxu1 %v8183_v7 }
 0xd52   :  { %11161 = vmatpush3.bf16.msra.mxu1 %v11160_v1  ;;  %9367 = vmatprep.mubr.msk.f32.mxu1 %vm11491_vm5, %v18961_v56 }
 0xd53   :  { %11162 = vmatprep.subr.bf16.mxu1 %v11490_v10 }
 0xd56   :  { %11164 = vmatpush3.bf16.msra.mxu1 %v11163_v9 }
 0xd57   :  { %11165 = vmatprep.subr.bf16.mxu1 %v11490_v10 }
 0xd5a   :  { %11167 = vmatpush3.bf16.msra.mxu1 %v11166_v55 }
 0xd5b   :  { %11168 = vmatprep.subr.bf16.mxu1 %v11490_v10 }
 0xd5e   :  { %11170 = vmatpush3.bf16.msra.mxu1 %v11169_v14 }
 0xd5f   :  { %11171 = vmatprep.subr.bf16.mxu1 %v11490_v10 }
 0xd61   :  { %9368 = vmatmul.mubr.f32.vlgmr.msra.gmra.mrb[18].mxu1 %v8181_v47 }
 0xd62   :  { %11173 = vmatpush3.bf16.msra.mxu1 %v16369_v21  ;;  %9386 = vmatprep.mubr.msk.f32.mxu1 %vm11491_vm5, %v18961_v56  ;;  %v8646_v21 = vld [vmem:[%s16577_s8] sm:$0xff] }
 0xd63   :  { %11174 = vmatprep.subr.bf16.mxu1 %v11490_v10  ;;  %v8662_v39 = vand.u32 4294901760, %v8646_v21 }
 0xd65   :  { %v8742_v11 = vsub.f32 %v8646_v21, %v8662_v39 }
 0xd66   :  { %11176 = vmatpush3.bf16.msra.mxu1 %v16383_v24  ;;  %v8647_v24 = vld [vmem:[%s16577_s8 + $0x8] sm:$0xff] }
 0xd67   :  { %11177 = vmatprep.subr.bf16.mxu1 %v11490_v10  ;;  %v8665_v19 = vand.u32 4294901760, %v8647_v24 }
 0xd69   :  { %v8749_v4 = vsub.f32 %v8647_v24, %v8665_v19 }
 0xd6a   :  { %11179 = vmatpush3.bf16.msra.mxu1 %v16397_v26  ;;  %v16495_v26 = vpack.c.bf16 %v8665_v19, %v8662_v39 }
 0xd6b   :  { %11180 = vmatprep.subr.bf16.mxu1 %v11490_v10  ;;  %v8750_v30 = vand.u32 4294901760, %v8749_v4  ;;  %v11196_v60 = vpack.c.bf16 %v8749_v4, %v8742_v11 }
 0xd6d   :  { %v8751_v29 = vsub.f32 %v8749_v4, %v8750_v30 }
 0xd6e   :  { %11182 = vmatpush3.bf16.msra.mxu1 %v16409_v61  ;;  %v8743_v61 = vand.u32 4294901760, %v8742_v11 }
 0xd6f   :  { %11183 = vmatprep.subr.bf16.mxu1 %v11490_v10  ;;  %v8752_v16 = vand.u32 4294901760, %v8751_v29 }
 0xd70   :  { %v8744_v59 = vsub.f32 %v8742_v11, %v8743_v61  ;;  %v11208_v52 = vpack.c.bf16 %v8750_v30, %v8743_v61 }
 0xd71   :  { %9387 = vmatmul.mubr.f32.vlgmr.msra.gmra.mrb[18].mxu1 %v8181_v47 }
 0xd72   :  { %9397 = vmatprep.mubr.msk.f32.mxu1 %vm11491_vm5, %v18961_v56  ;;  %11185 = vmatpush3.bf16.msra.mxu1 %v16495_v26  ;;  %v8745_v53 = vand.u32 4294901760, %v8744_v59 }
 0xd73   :  { %11186 = vmatprep.subr.bf16.mxu1 %v11490_v10 }
 0xd74   :  { %v11190_v58 = vpack.c.bf16 %v8752_v16, %v8745_v53 }
 0xd76   :  { %11188 = vmatpush3.bf16.msra.mxu1 %v11187_v36 }
 0xd77   :  { %11189 = vmatprep.subr.bf16.mxu1 %v11490_v10 }
 0xe44   :  { %v8641_v63 = vpop.f32.mrb[18].mxu1 }
 0xe45   :  { %v11225_v50 = vadd.f32 %v9189_v40, %v8641_v63  ;;  %v9388_v49 = vpop.f32.mrb[19].mxu1 }
 0xe47   :  { %v8645_v25 = vmax.f32 %v11225_v50, 0.0 }
 0xe49   :  { %v8659_v12 = vsel %vm8657_vm7, %v8645_v25, 0 }
 0xe4a   :  { %v8730_v2 = vand.u32 4294901760, %v8659_v12 }
 0xe4c   :  { %v8731_v20 = vsub.f32 %v8659_v12, %v8730_v2 }
 0xe4e   :  { %v8732_v43 = vand.u32 4294901760, %v8731_v20 }
 0xe50   :  { %v8733_v23 = vsub.f32 %v8731_v20, %v8732_v43 }
 0xe52   :  { %v8734_v46 = vand.u32 4294901760, %v8733_v23 }
 0xe54   :  { %9398 = vmatmul.mubr.f32.vlgmr.msra.gmra.mrb[20].mxu1 %v8734_v46 }
 0xe55   :  { %11191 = vmatpush3.bf16.msra.mxu1 %v11190_v58  ;;  %9408 = vmatprep.mubr.msk.f32.mxu1 %vm11491_vm5, %v18961_v56 }
 0xe56   :  { %11192 = vmatprep.subr.bf16.mxu1 %v11490_v10 }
 0xe59   :  { %11194 = vmatpush3.bf16.msra.mxu1 %v11193_v62 }
 0xe5a   :  { %11195 = vmatprep.subr.bf16.mxu1 %v11490_v10 }
 0xe5c   :  { %9409 = vmatmul.mubr.f32.vlgmr.msra.gmra.mrb[20].mxu1 %v8730_v2 }
 0xe5d   :  { %11197 = vmatpush3.bf16.msra.mxu1 %v11196_v60  ;;  %9419 = vmatprep.mubr.msk.f32.mxu1 %vm11491_vm5, %v18961_v56 }
 0xe5e   :  { %11198 = vmatprep.subr.bf16.mxu1 %v11490_v10 }
 0xe61   :  { %11200 = vmatpush3.bf16.msra.mxu1 %v11199_v57 }
 0xe62   :  { %11201 = vmatprep.subr.bf16.mxu1 %v11490_v10 }
 0xe64   :  { %9420 = vmatmul.mubr.f32.vlgmr.msra.gmra.mrb[20].mxu1 %v8731_v20 }
 0xe65   :  { %11203 = vmatpush3.bf16.msra.mxu1 %v16495_v26  ;;  %9430 = vmatprep.mubr.msk.f32.mxu1 %vm11491_vm5, %v18961_v56 }
 0xe66   :  { %11204 = vmatprep.subr.bf16.mxu1 %v11490_v10 }
 0xe69   :  { %11206 = vmatpush3.bf16.msra.mxu1 %v11187_v36 }
 0xe6a   :  { %11207 = vmatprep.subr.bf16.mxu1 %v11490_v10 }
 0xe6c   :  { %9431 = vmatmul.mubr.f32.vlgmr.msra.gmra.mrb[20].mxu1 %v8732_v43 }
 0xe6d   :  { %11209 = vmatpush3.bf16.msra.mxu1 %v11208_v52  ;;  %9441 = vmatprep.mubr.msk.f32.mxu1 %vm11491_vm5, %v18961_v56 }
 0xe6e   :  { %11210 = vmatprep.subr.bf16.mxu1 %v11490_v10 }
 0xe71   :  { %11212 = vmatpush3.bf16.msra.mxu1 %v11211_v32 }
 0xe72   :  { %11213 = vmatprep.subr.bf16.mxu1 %v11490_v10 }
 0xe74   :  { %9442 = vmatmul.mubr.f32.vlgmr.msra.gmra.mrb[20].mxu1 %v8730_v2 }
 0xe75   :  { %11215 = vmatpush3.bf16.msra.mxu1 %v16495_v26  ;;  %9452 = vmatprep.mubr.msk.f32.mxu1 %vm11491_vm5, %v18961_v56 }
 0xe76   :  { %11216 = vmatprep.subr.bf16.mxu1 %v11490_v10 }
 0xe79   :  { %11218 = vmatpush3.bf16.msra.mxu1 %v11187_v36 }
 0xe7c   :  { %9453 = vmatmul.mubr.f32.vlgmr.msra.gmra.mrb[20].mxu1 %v8730_v2 }
 0xe7d   :  { %11428 = shalt.err (!%p11425_p4)
}
 0xe7e   :  { %s11429_s30 = scalar_lea.hbm %s16580_s11, 32 }
 0xe7f   :  { %p11430_p5 = scmp.ne.s32.totalorder %s16580_s11, %s11429_s30  ;;  %p11433_p6 = scmp.lt.u32.totalorder %s11429_s30, %s16580_s11 }
 0xe81   :  { %p11435_p7 = pnand %p11433_p6, %p11430_p5 }
 0xe83   :  { %11438 = shalt.err (!%p11435_p7)
}
 0xe84   :  { %9167 = dma.vmem_to_hbm [thread:$0]  %s9165_s26, 32, %s16580_s11, [#allocation5]  }
 0xe85   :  { %s11493_s2 = smov [#allocation6]  }
 0xe86   :  { %s9174_s16 = sshll.u32 %s11493_s2, 4  ;;  %s9175_s16 = int_to_ptr.vmem [resolvable:$true] %s9174_s16 }
 0xe87   :  { %s11439_s17 = scalar_lea.vmem %s9175_s16, 32  ;;  %p11444_p9 = scmp.lt.s32.totalorder %s9175_s16, %s9175_s16 }
 0xe88   :  { %p11440_p8 = scmp.ne.s32.totalorder %s9175_s16, %s11439_s17  ;;  %p11445_p10 = scmp.lt.s32.totalorder %s11439_s17, %s11439_s17 }
 0xe8a   :  { %p11446_p11 = por %p11445_p10, %p11444_p9 }
 0xe8c   :  { %p11447_p12 = pnand %p11446_p11, %p11440_p8 }
 0xe8e   :  { %11450 = shalt.err (!%p11447_p12)
}
 0xe8f   :  { %s11451_s6 = scalar_lea.hbm %s16581_s12, 32 }
 0xe90   :  { %p11452_p13 = scmp.ne.s32.totalorder %s16581_s12, %s11451_s6  ;;  %p11455_p0 = scmp.lt.u32.totalorder %s11451_s6, %s16581_s12 }
 0xe92   :  { %p11457_p1 = pnand %p11455_p0, %p11452_p13 }
 0xe94   :  { %11460 = shalt.err (!%p11457_p1)
}
 0xe95   :  { %9177 = dma.vmem_to_hbm [thread:$0]  %s9175_s16, 32, %s16581_s12, [#allocation5]   ;;  %v9190_v56 = vld [vmem:[%s16578_s9] ss:$0 sm:$0xff]  ;;  %vm9146_vm8 = vcmask 25600  }
 0xe96   :  { %s11494_s8 = smov [#allocation2]  }
 0xe97   :  { %s9154_s4 = sshll.u32 %s11494_s8, 4  ;;  %s9155_s4 = int_to_ptr.vmem [resolvable:$true] %s9154_s4 }
 0xe98   :  { %s11461_s7 = scalar_lea.vmem %s9155_s4, 32  ;;  %p11466_p3 = scmp.lt.s32.totalorder %s9155_s4, %s9155_s4 }
 0xe99   :  { %p11462_p2 = scmp.ne.s32.totalorder %s9155_s4, %s11461_s7  ;;  %p11467_p4 = scmp.lt.s32.totalorder %s11461_s7, %s11461_s7 }
 0xe9b   :  { %p11468_p5 = por %p11467_p4, %p11466_p3 }
 0xe9d   :  { %p11469_p6 = pnand %p11468_p5, %p11462_p2 }
 0xf4f   :  { %v9142_v10 = vpop.f32.mrb[20].mxu1 }
 0xf50   :  { %v11226_v6 = vadd.f32 %v9190_v56, %v9142_v10  ;;  %v9454_v51 = vpop.f32.mrb[21].mxu1 }
 0xf52   :  { %9147 = vst.msk [vmem:[#allocation2] sm:$0x3] %vm9146_vm8, %v11226_v6 }
 0xf53   :  { %11472 = shalt.err (!%p11469_p6)
}
 0xf54   :  { %s11473_s27 = scalar_lea.hbm %s16579_s10, 32 }
 0xf55   :  { %p11474_p7 = scmp.ne.s32.totalorder %s16579_s10, %s11473_s27  ;;  %p11477_p8 = scmp.lt.u32.totalorder %s11473_s27, %s16579_s10 }
 0xf57   :  { %p11479_p9 = pnand %p11477_p8, %p11474_p7 }
 0xf59   :  { %11482 = shalt.err (!%p11479_p9)
}
 0xf5a   :  { %9157 = dma.vmem_to_hbm [thread:$0]  %s9155_s4, 32, %s16579_s10, [#allocation3]  }
 0xf5b   :  { %11483 = dma.done.wait [#allocation3], 32  }
 0xf5c   :  { %11484 = vsyncadd [#allocation3], 4294967264 }
 0xf5d   :  { %11485 = dma.done.wait [#allocation5], 64  }
 0xf5e   :  { %11486 = vsyncadd [#allocation5], 4294967232 }
 0xf5f   :  { %9187 = vsyncpa [#allocation3], 1 }
 0xf60   :  { %9188 = vsyncpa [#allocation5], 1 }

</bundles_post_ra>
